<compile_context>
chip_gen: v7x
topology: tpu7x:2x2x1
jax: 0.10.0
libtpu: 0.0.40
codegen_flags: <defaults>
</compile_context>

<pallas_src>
import functools

import jax
import jax.numpy as jnp
from jax.experimental import pallas as pl
from jax.experimental.pallas import tpu as pltpu


def _vggmod_kernel(H, W, C0, C1, C2, Ws,
                   x_ref, w1_ref, b1_ref, w2_ref, b2_ref, o_ref,
                   xp_ref, pc1_ref, a1_ref, p_ref, pc2_ref, a2_ref):
    """Fused VGGMod forward for one batch element (grid = (B,)).

      conv1(3x3, pad 1) + ReLU -> MaxPool2d(2) -> conv2(3x3, pad 1) + ReLU
        -> AdaptiveAvgPool2d((6, 6))  (== uniform 2x2 mean at these sizes)

    Refs (all VMEM):
      x_ref : (1, H, W, C0)          input image, NHWC
      w1_ref: (9*C0, C1)             conv1 weights, row = (kh*3 + kw)*C0 + cin
      b1_ref: (1, C1)
      w2_ref: (9*C1, C2)
      b2_ref: (1, C2)
      o_ref : (1, H//4, W//4, C2)    pooled output, NHWC
    Scratch:
      xp_ref : (H+2, W+2, C0)        zero-padded conv1 input
      pc1_ref: (H*W, 9*C0)           conv1 im2col slab
      a1_ref : (H//2, 2*W, C1)       conv1 output; pixel (h, w) at [h//2, (h%2)*W + w]
      p_ref  : (H//2+2, Ws+2, C1)    zero-padded maxpool output (conv2 input)
      pc2_ref: ((H//2)*Ws, 9*C1)     conv2 im2col slab (rows padded to width Ws)
      a2_ref : (H//4, 2*Ws, C2)      conv2 output, same row layout trick as a1_ref
    """
    Hp, Wp = H // 2, W // 2          # spatial dims after maxpool
    Ho, Wo = Hp // 2, Wp // 2        # spatial dims after adaptive avg pool (6x6)

    # ---------------- conv1: pad -> im2col -> one MXU dot -> bias + ReLU ----
    xp_ref[...] = jnp.zeros_like(xp_ref)
    xp_ref[1:1 + H, 1:1 + W, :] = x_ref[0]
    for kh in range(3):
        for kw in range(3):
            t = kh * 3 + kw
            pc1_ref[:, t * C0:(t + 1) * C0] = (
                xp_ref[kh:kh + H, kw:kw + W, :].reshape(H * W, C0))
    y1 = jnp.dot(pc1_ref[...], w1_ref[...], preferred_element_type=jnp.float32)
    y1 = jnp.maximum(y1 + b1_ref[...], 0.0)                       # (H*W, C1)

    # ---------------- MaxPool2d(2): sublane-strided corner reads ------------
    a1_ref[...] = y1.reshape(Hp, 2 * W, C1)
    m00 = a1_ref[:, pl.ds(0, Wp, stride=2), :]                    # h even, w even
    m01 = a1_ref[:, pl.ds(1, Wp, stride=2), :]                    # h even, w odd
    m10 = a1_ref[:, pl.ds(W, Wp, stride=2), :]                    # h odd,  w even
    m11 = a1_ref[:, pl.ds(W + 1, Wp, stride=2), :]                # h odd,  w odd
    pooled = jnp.maximum(jnp.maximum(m00, m01), jnp.maximum(m10, m11))

    # ---------------- conv2: pad -> im2col -> one MXU dot -> bias + ReLU ----
    p_ref[...] = jnp.zeros_like(p_ref)
    p_ref[1:1 + Hp, 1:1 + Wp, :] = pooled                         # (Hp, Wp, C1)
    for kh in range(3):
        for kw in range(3):
            t = kh * 3 + kw
            # Read Ws (>= Wp, multiple of 8) columns per row so the reshape to
            # (Hp*Ws, C1) stays sublane-tile aligned; columns w >= Wp are junk
            # computed over zero padding and are never read back.
            pc2_ref[:, t * C1:(t + 1) * C1] = (
                p_ref[kh:kh + Hp, kw:kw + Ws, :].reshape(Hp * Ws, C1))
    y2 = jnp.dot(pc2_ref[...], w2_ref[...], preferred_element_type=jnp.float32)
    y2 = jnp.maximum(y2 + b2_ref[...], 0.0)                       # (Hp*Ws, C2)

    # -------- AdaptiveAvgPool2d((6,6)) == uniform 2x2 mean (12x12 -> 6x6) ---
    a2_ref[...] = y2.reshape(Ho, 2 * Ws, C2)
    q00 = a2_ref[:, pl.ds(0, Wo, stride=2), :]
    q01 = a2_ref[:, pl.ds(1, Wo, stride=2), :]
    q10 = a2_ref[:, pl.ds(Ws, Wo, stride=2), :]
    q11 = a2_ref[:, pl.ds(Ws + 1, Wo, stride=2), :]
    o_ref[0] = ((q00 + q01 + q10 + q11) * 0.25).astype(o_ref.dtype)


def _oihw_to_col(w):
    """(Cout, Cin, 3, 3) -> (9*Cin, Cout); row index = (kh*3 + kw)*Cin + cin."""
    cout, cin, kh, kw = w.shape
    return jnp.transpose(w, (2, 3, 1, 0)).reshape(kh * kw * cin, cout)


def vggmod_forward(x_nchw, params):
    (w1, b1), (w2, b2) = params
    B, C0, H, W = x_nchw.shape
    C1, C2 = w1.shape[0], w2.shape[0]
    Hp, Wp = H // 2, W // 2
    Ho, Wo = Hp // 2, Wp // 2
    # Supported configuration: 24x24 input, so AdaptiveAvgPool2d((6,6)) reduces
    # to a uniform 2x2 mean and all in-kernel reshapes stay tile aligned.
    # TODO(synk): general AdaptiveAvgPool2d (uneven window sizes) not implemented.
    assert W % 8 == 0 and H % 4 == 0 and (Ho, Wo) == (6, 6), (H, W)
    Ws = ((Wp + 7) // 8) * 8                 # conv2 im2col row width (mult of 8)

    x = jnp.transpose(x_nchw, (0, 2, 3, 1)).astype(jnp.float32)   # NCHW -> NHWC
    kernel = functools.partial(_vggmod_kernel, H, W, C0, C1, C2, Ws)
    out = pl.pallas_call(
        kernel,
        out_shape=jax.ShapeDtypeStruct((B, Ho, Wo, C2), jnp.float32),
        grid_spec=pltpu.PrefetchScalarGridSpec(
            num_scalar_prefetch=0,
            grid=(B,),
            in_specs=[
                pl.BlockSpec((1, H, W, C0), lambda b: (b, 0, 0, 0)),
                pl.BlockSpec((9 * C0, C1), lambda b: (0, 0)),
                pl.BlockSpec((1, C1), lambda b: (0, 0)),
                pl.BlockSpec((9 * C1, C2), lambda b: (0, 0)),
                pl.BlockSpec((1, C2), lambda b: (0, 0)),
            ],
            out_specs=pl.BlockSpec((1, Ho, Wo, C2), lambda b: (b, 0, 0, 0)),
            scratch_shapes=[
                pltpu.VMEM((H + 2, W + 2, C0), jnp.float32),      # xp_ref
                pltpu.VMEM((H * W, 9 * C0), jnp.float32),         # pc1_ref
                pltpu.VMEM((Hp, 2 * W, C1), jnp.float32),         # a1_ref
                pltpu.VMEM((Hp + 2, Ws + 2, C1), jnp.float32),    # p_ref
                pltpu.VMEM((Hp * Ws, 9 * C1), jnp.float32),       # pc2_ref
                pltpu.VMEM((Ho, 2 * Ws, C2), jnp.float32),        # a2_ref
            ],
        ),
        compiler_params=pltpu.CompilerParams(
            dimension_semantics=("parallel",)),
    )(x, _oihw_to_col(w1), b1.reshape(1, C1), _oihw_to_col(w2), b2.reshape(1, C2))

    # torch.flatten(x, 1) of the NCHW tensor: NHWC -> NCHW then flatten.  This
    # is tiny wrapper glue on the (B, 6, 6, C2) result; all heavy work stayed
    # in VMEM inside the single kernel above.
    return jnp.transpose(out, (0, 3, 1, 2)).reshape(B, -1)


# -----------------------------------------------------------------------------
# Deterministic parameter init (mirrors _initialize_weights: kaiming_normal_
# mode='fan_out' nonlinearity='relu' for conv weights, zero bias).
# -----------------------------------------------------------------------------
def init_params(key):
    def kaiming_conv(k, cout, cin):
        fan_out = cout * 3 * 3
        std = (2.0 / fan_out) ** 0.5
        return jax.random.normal(k, (cout, cin, 3, 3), jnp.float32) * std
    k1, k2 = jax.random.split(key)
    w1, b1 = kaiming_conv(k1, 8, 3), jnp.zeros((8,), jnp.float32)
    w2, b2 = kaiming_conv(k2, 16, 8), jnp.zeros((16,), jnp.float32)
    return ((w1, b1), (w2, b2))


# -----------------------------------------------------------------------------
# Pure-JAX reference (PyTorch semantics) for correctness checking.
# -----------------------------------------------------------------------------
def reference(x_nchw, params):
    (w1, b1), (w2, b2) = params
    dn = ("NCHW", "OIHW", "NCHW")
    y = jax.lax.conv_general_dilated(x_nchw, w1, (1, 1), ((1, 1), (1, 1)),
                                     dimension_numbers=dn)
    y = jax.nn.relu(y + b1[None, :, None, None])
    y = jax.lax.reduce_window(y, -jnp.inf, jax.lax.max,
                              (1, 1, 2, 2), (1, 1, 2, 2), "VALID")
    y = jax.lax.conv_general_dilated(y, w2, (1, 1), ((1, 1), (1, 1)),
                                     dimension_numbers=dn)
    y = jax.nn.relu(y + b2[None, :, None, None])
    y = jax.lax.reduce_window(y, 0.0, jax.lax.add,
                              (1, 1, 2, 2), (1, 1, 2, 2), "VALID") * 0.25
    return y.reshape(y.shape[0], -1)


if __name__ == "__main__":
    key = jax.random.PRNGKey(0)
    kx, kp = jax.random.split(key)
    # Small shapes: B=2, 3 input channels (RGB), 24x24 spatial (NCHW, PyTorch-style).
    x = jax.random.normal(kx, (2, 3, 24, 24), jnp.float32)
    params = init_params(kp)

    out = jax.block_until_ready(vggmod_forward(x, params))
    ref = jax.block_until_ready(reference(x, params))

    assert out.shape == (2, 16 * 6 * 6), out.shape      # (B, last_cnn_features*6*6)
    err = float(jnp.max(jnp.abs(out - ref)))
    assert jnp.allclose(out, ref, atol=1e-4, rtol=1e-4), f"max abs err {err}"
    print("KERNEL_OK")
</pallas_src>

<mosaic_0001>
module attributes {stable_mosaic.version = 11 : i64} {
  func.func @_vggmod_kernel(%arg0: i32, %arg1: memref<1x24x24x3xf32, #tpu.memory_space<vmem>>, %arg2: memref<27x8xf32, #tpu.memory_space<vmem>>, %arg3: memref<1x8xf32, #tpu.memory_space<vmem>>, %arg4: memref<72x16xf32, #tpu.memory_space<vmem>>, %arg5: memref<1x16xf32, #tpu.memory_space<vmem>>, %arg6: memref<1x6x6x16xf32, #tpu.memory_space<vmem>>, %arg7: memref<26x26x3xf32, #tpu.memory_space<vmem>>, %arg8: memref<576x27xf32, #tpu.memory_space<vmem>>, %arg9: memref<12x48x8xf32, #tpu.memory_space<vmem>>, %arg10: memref<14x18x8xf32, #tpu.memory_space<vmem>>, %arg11: memref<192x72xf32, #tpu.memory_space<vmem>>, %arg12: memref<6x32x16xf32, #tpu.memory_space<vmem>>) attributes {dimension_semantics = [#tpu.dimension_semantics<parallel>], iteration_bounds = array<i64: 2>, scalar_prefetch = 0 : i64, scratch_operands = 6 : i64, tpu.core_type = #tpu.core_type<tc>, window_params = [{transform_indices = @transform_0, window_bounds = array<i64: 1, 24, 24, 3>}, {pipeline_mode = #tpu.pipeline_mode<synchronous>, transform_indices = @transform_1, window_bounds = array<i64: 27, 8>}, {pipeline_mode = #tpu.pipeline_mode<synchronous>, transform_indices = @transform_2, window_bounds = array<i64: 1, 8>}, {pipeline_mode = #tpu.pipeline_mode<synchronous>, transform_indices = @transform_3, window_bounds = array<i64: 72, 16>}, {pipeline_mode = #tpu.pipeline_mode<synchronous>, transform_indices = @transform_4, window_bounds = array<i64: 1, 16>}, {transform_indices = @transform_5, window_bounds = array<i64: 1, 6, 6, 16>}]} {
    %cst = arith.constant 0.000000e+00 : f32
    %0 = vector.broadcast %cst : f32 to vector<26x26x3xf32>
    %c0 = arith.constant 0 : index
    %c0_0 = arith.constant 0 : index
    %c0_1 = arith.constant 0 : index
    %1 = vector.load %arg7[%c0, %c0_0, %c0_1] : memref<26x26x3xf32, #tpu.memory_space<vmem>>, vector<26x26x3xf32>
    tpu.vector_store %arg7[%c0, %c0_0, %c0_1], %0 {strides = array<i32>} : memref<26x26x3xf32, #tpu.memory_space<vmem>>, vector<26x26x3xf32>,
    %c0_2 = arith.constant 0 : index
    %c0_3 = arith.constant 0 : index
    %c0_4 = arith.constant 0 : index
    %c0_5 = arith.constant 0 : index
    %2 = vector.load %arg1[%c0_2, %c0_3, %c0_4, %c0_5] : memref<1x24x24x3xf32, #tpu.memory_space<vmem>>, vector<1x24x24x3xf32>
    %3 = vector.shape_cast %2 : vector<1x24x24x3xf32> to vector<24x24x3xf32>
    %c1 = arith.constant 1 : index
    %c1_6 = arith.constant 1 : index
    %c0_7 = arith.constant 0 : index
    %4 = vector.load %arg7[%c1, %c1_6, %c0_7] : memref<26x26x3xf32, #tpu.memory_space<vmem>>, vector<24x24x3xf32>
    tpu.vector_store %arg7[%c1, %c1_6, %c0_7], %3 {strides = array<i32>} : memref<26x26x3xf32, #tpu.memory_space<vmem>>, vector<24x24x3xf32>,
    %c0_8 = arith.constant 0 : index
    %c0_9 = arith.constant 0 : index
    %c0_10 = arith.constant 0 : index
    %5 = vector.load %arg7[%c0_8, %c0_9, %c0_10] : memref<26x26x3xf32, #tpu.memory_space<vmem>>, vector<24x24x3xf32>
    %6 = vector.shape_cast %5 : vector<24x24x3xf32> to vector<576x3xf32>
    %c0_11 = arith.constant 0 : index
    %c0_12 = arith.constant 0 : index
    %7 = vector.load %arg8[%c0_11, %c0_12] : memref<576x27xf32, #tpu.memory_space<vmem>>, vector<576x3xf32>
    tpu.vector_store %arg8[%c0_11, %c0_12], %6 {strides = array<i32>} : memref<576x27xf32, #tpu.memory_space<vmem>>, vector<576x3xf32>,
    %c0_13 = arith.constant 0 : index
    %c1_14 = arith.constant 1 : index
    %c0_15 = arith.constant 0 : index
    %8 = vector.load %arg7[%c0_13, %c1_14, %c0_15] : memref<26x26x3xf32, #tpu.memory_space<vmem>>, vector<24x24x3xf32>
    %9 = vector.shape_cast %8 : vector<24x24x3xf32> to vector<576x3xf32>
    %c0_16 = arith.constant 0 : index
    %c3 = arith.constant 3 : index
    %10 = vector.load %arg8[%c0_16, %c3] : memref<576x27xf32, #tpu.memory_space<vmem>>, vector<576x3xf32>
    tpu.vector_store %arg8[%c0_16, %c3], %9 {strides = array<i32>} : memref<576x27xf32, #tpu.memory_space<vmem>>, vector<576x3xf32>,
    %c0_17 = arith.constant 0 : index
    %c2 = arith.constant 2 : index
    %c0_18 = arith.constant 0 : index
    %11 = vector.load %arg7[%c0_17, %c2, %c0_18] : memref<26x26x3xf32, #tpu.memory_space<vmem>>, vector<24x24x3xf32>
    %12 = vector.shape_cast %11 : vector<24x24x3xf32> to vector<576x3xf32>
    %c0_19 = arith.constant 0 : index
    %c6 = arith.constant 6 : index
    %13 = vector.load %arg8[%c0_19, %c6] : memref<576x27xf32, #tpu.memory_space<vmem>>, vector<576x3xf32>
    tpu.vector_store %arg8[%c0_19, %c6], %12 {strides = array<i32>} : memref<576x27xf32, #tpu.memory_space<vmem>>, vector<576x3xf32>,
    %c1_20 = arith.constant 1 : index
    %c0_21 = arith.constant 0 : index
    %c0_22 = arith.constant 0 : index
    %14 = vector.load %arg7[%c1_20, %c0_21, %c0_22] : memref<26x26x3xf32, #tpu.memory_space<vmem>>, vector<24x24x3xf32>
    %15 = vector.shape_cast %14 : vector<24x24x3xf32> to vector<576x3xf32>
    %c0_23 = arith.constant 0 : index
    %c9 = arith.constant 9 : index
    %16 = vector.load %arg8[%c0_23, %c9] : memref<576x27xf32, #tpu.memory_space<vmem>>, vector<576x3xf32>
    tpu.vector_store %arg8[%c0_23, %c9], %15 {strides = array<i32>} : memref<576x27xf32, #tpu.memory_space<vmem>>, vector<576x3xf32>,
    %c1_24 = arith.constant 1 : index
    %c1_25 = arith.constant 1 : index
    %c0_26 = arith.constant 0 : index
    %17 = vector.load %arg7[%c1_24, %c1_25, %c0_26] : memref<26x26x3xf32, #tpu.memory_space<vmem>>, vector<24x24x3xf32>
    %18 = vector.shape_cast %17 : vector<24x24x3xf32> to vector<576x3xf32>
    %c0_27 = arith.constant 0 : index
    %c12 = arith.constant 12 : index
    %19 = vector.load %arg8[%c0_27, %c12] : memref<576x27xf32, #tpu.memory_space<vmem>>, vector<576x3xf32>
    tpu.vector_store %arg8[%c0_27, %c12], %18 {strides = array<i32>} : memref<576x27xf32, #tpu.memory_space<vmem>>, vector<576x3xf32>,
    %c1_28 = arith.constant 1 : index
    %c2_29 = arith.constant 2 : index
    %c0_30 = arith.constant 0 : index
    %20 = vector.load %arg7[%c1_28, %c2_29, %c0_30] : memref<26x26x3xf32, #tpu.memory_space<vmem>>, vector<24x24x3xf32>
    %21 = vector.shape_cast %20 : vector<24x24x3xf32> to vector<576x3xf32>
    %c0_31 = arith.constant 0 : index
    %c15 = arith.constant 15 : index
    %22 = vector.load %arg8[%c0_31, %c15] : memref<576x27xf32, #tpu.memory_space<vmem>>, vector<576x3xf32>
    tpu.vector_store %arg8[%c0_31, %c15], %21 {strides = array<i32>} : memref<576x27xf32, #tpu.memory_space<vmem>>, vector<576x3xf32>,
    %c2_32 = arith.constant 2 : index
    %c0_33 = arith.constant 0 : index
    %c0_34 = arith.constant 0 : index
    %23 = vector.load %arg7[%c2_32, %c0_33, %c0_34] : memref<26x26x3xf32, #tpu.memory_space<vmem>>, vector<24x24x3xf32>
    %24 = vector.shape_cast %23 : vector<24x24x3xf32> to vector<576x3xf32>
    %c0_35 = arith.constant 0 : index
    %c18 = arith.constant 18 : index
    %25 = vector.load %arg8[%c0_35, %c18] : memref<576x27xf32, #tpu.memory_space<vmem>>, vector<576x3xf32>
    tpu.vector_store %arg8[%c0_35, %c18], %24 {strides = array<i32>} : memref<576x27xf32, #tpu.memory_space<vmem>>, vector<576x3xf32>,
    %c2_36 = arith.constant 2 : index
    %c1_37 = arith.constant 1 : index
    %c0_38 = arith.constant 0 : index
    %26 = vector.load %arg7[%c2_36, %c1_37, %c0_38] : memref<26x26x3xf32, #tpu.memory_space<vmem>>, vector<24x24x3xf32>
    %27 = vector.shape_cast %26 : vector<24x24x3xf32> to vector<576x3xf32>
    %c0_39 = arith.constant 0 : index
    %c21 = arith.constant 21 : index
    %28 = vector.load %arg8[%c0_39, %c21] : memref<576x27xf32, #tpu.memory_space<vmem>>, vector<576x3xf32>
    tpu.vector_store %arg8[%c0_39, %c21], %27 {strides = array<i32>} : memref<576x27xf32, #tpu.memory_space<vmem>>, vector<576x3xf32>,
    %c2_40 = arith.constant 2 : index
    %c2_41 = arith.constant 2 : index
    %c0_42 = arith.constant 0 : index
    %29 = vector.load %arg7[%c2_40, %c2_41, %c0_42] : memref<26x26x3xf32, #tpu.memory_space<vmem>>, vector<24x24x3xf32>
    %30 = vector.shape_cast %29 : vector<24x24x3xf32> to vector<576x3xf32>
    %c0_43 = arith.constant 0 : index
    %c24 = arith.constant 24 : index
    %31 = vector.load %arg8[%c0_43, %c24] : memref<576x27xf32, #tpu.memory_space<vmem>>, vector<576x3xf32>
    tpu.vector_store %arg8[%c0_43, %c24], %30 {strides = array<i32>} : memref<576x27xf32, #tpu.memory_space<vmem>>, vector<576x3xf32>,
    %c0_44 = arith.constant 0 : index
    %c0_45 = arith.constant 0 : index
    %32 = vector.load %arg8[%c0_44, %c0_45] : memref<576x27xf32, #tpu.memory_space<vmem>>, vector<576x27xf32>
    %c0_46 = arith.constant 0 : index
    %c0_47 = arith.constant 0 : index
    %33 = vector.load %arg2[%c0_46, %c0_47] : memref<27x8xf32, #tpu.memory_space<vmem>>, vector<27x8xf32>
    %cst_48 = arith.constant dense<0.000000e+00> : vector<576x8xf32>
    %34 = tpu.matmul %32, %33, %cst_48 {dimension_numbers = #tpu.dot_dimension_numbers<[1], [0], [0], [1], [0, 0, 1, 1], [], []>} : vector<576x27xf32>, vector<27x8xf32>, vector<576x8xf32> -> vector<576x8xf32>
    %c0_49 = arith.constant 0 : index
    %c0_50 = arith.constant 0 : index
    %35 = vector.load %arg3[%c0_49, %c0_50] : memref<1x8xf32, #tpu.memory_space<vmem>>, vector<1x8xf32>
    %36 = vector.broadcast %35 : vector<1x8xf32> to vector<576x8xf32>
    %37 = arith.addf %34, %36 : vector<576x8xf32>
    %cst_51 = arith.constant 0.000000e+00 : f32
    %38 = vector.broadcast %cst_51 : f32 to vector<576x8xf32>
    %39 = arith.maximumf %37, %38 : vector<576x8xf32>
    %40 = vector.shape_cast %39 : vector<576x8xf32> to vector<12x48x8xf32>
    %c0_52 = arith.constant 0 : index
    %c0_53 = arith.constant 0 : index
    %c0_54 = arith.constant 0 : index
    %41 = vector.load %arg9[%c0_52, %c0_53, %c0_54] : memref<12x48x8xf32, #tpu.memory_space<vmem>>, vector<12x48x8xf32>
    tpu.vector_store %arg9[%c0_52, %c0_53, %c0_54], %40 {strides = array<i32>} : memref<12x48x8xf32, #tpu.memory_space<vmem>>, vector<12x48x8xf32>,
    %c0_55 = arith.constant 0 : index
    %c0_56 = arith.constant 0 : index
    %c0_57 = arith.constant 0 : index
    %42 = tpu.strided_load %arg9[%c0_55, %c0_56, %c0_57] {strides = array<i32: 1, 2, 1>} : memref<12x48x8xf32, #tpu.memory_space<vmem>>, vector<12x12x8xf32>
    %c0_58 = arith.constant 0 : index
    %c1_59 = arith.constant 1 : index
    %c0_60 = arith.constant 0 : index
    %43 = tpu.strided_load %arg9[%c0_58, %c1_59, %c0_60] {strides = array<i32: 1, 2, 1>} : memref<12x48x8xf32, #tpu.memory_space<vmem>>, vector<12x12x8xf32>
    %c0_61 = arith.constant 0 : index
    %c24_62 = arith.constant 24 : index
    %c0_63 = arith.constant 0 : index
    %44 = tpu.strided_load %arg9[%c0_61, %c24_62, %c0_63] {strides = array<i32: 1, 2, 1>} : memref<12x48x8xf32, #tpu.memory_space<vmem>>, vector<12x12x8xf32>
    %c0_64 = arith.constant 0 : index
    %c25 = arith.constant 25 : index
    %c0_65 = arith.constant 0 : index
    %45 = tpu.strided_load %arg9[%c0_64, %c25, %c0_65] {strides = array<i32: 1, 2, 1>} : memref<12x48x8xf32, #tpu.memory_space<vmem>>, vector<12x12x8xf32>
    %46 = arith.maximumf %42, %43 : vector<12x12x8xf32>
    %47 = arith.maximumf %44, %45 : vector<12x12x8xf32>
    %48 = arith.maximumf %46, %47 : vector<12x12x8xf32>
    %cst_66 = arith.constant 0.000000e+00 : f32
    %49 = vector.broadcast %cst_66 : f32 to vector<14x18x8xf32>
    %c0_67 = arith.constant 0 : index
    %c0_68 = arith.constant 0 : index
    %c0_69 = arith.constant 0 : index
    %50 = vector.load %arg10[%c0_67, %c0_68, %c0_69] : memref<14x18x8xf32, #tpu.memory_space<vmem>>, vector<14x18x8xf32>
    tpu.vector_store %arg10[%c0_67, %c0_68, %c0_69], %49 {strides = array<i32>} : memref<14x18x8xf32, #tpu.memory_space<vmem>>, vector<14x18x8xf32>,
    %c1_70 = arith.constant 1 : index
    %c1_71 = arith.constant 1 : index
    %c0_72 = arith.constant 0 : index
    %51 = vector.load %arg10[%c1_70, %c1_71, %c0_72] : memref<14x18x8xf32, #tpu.memory_space<vmem>>, vector<12x12x8xf32>
    tpu.vector_store %arg10[%c1_70, %c1_71, %c0_72], %48 {strides = array<i32>} : memref<14x18x8xf32, #tpu.memory_space<vmem>>, vector<12x12x8xf32>,
    %c0_73 = arith.constant 0 : index
    %c0_74 = arith.constant 0 : index
    %c0_75 = arith.constant 0 : index
    %52 = vector.load %arg10[%c0_73, %c0_74, %c0_75] : memref<14x18x8xf32, #tpu.memory_space<vmem>>, vector<12x16x8xf32>
    %53 = vector.shape_cast %52 : vector<12x16x8xf32> to vector<192x8xf32>
    %c0_76 = arith.constant 0 : index
    %c0_77 = arith.constant 0 : index
    %54 = vector.load %arg11[%c0_76, %c0_77] : memref<192x72xf32, #tpu.memory_space<vmem>>, vector<192x8xf32>
    tpu.vector_store %arg11[%c0_76, %c0_77], %53 {strides = array<i32>} : memref<192x72xf32, #tpu.memory_space<vmem>>, vector<192x8xf32>,
    %c0_78 = arith.constant 0 : index
    %c1_79 = arith.constant 1 : index
    %c0_80 = arith.constant 0 : index
    %55 = vector.load %arg10[%c0_78, %c1_79, %c0_80] : memref<14x18x8xf32, #tpu.memory_space<vmem>>, vector<12x16x8xf32>
    %56 = vector.shape_cast %55 : vector<12x16x8xf32> to vector<192x8xf32>
    %c0_81 = arith.constant 0 : index
    %c8 = arith.constant 8 : index
    %57 = vector.load %arg11[%c0_81, %c8] : memref<192x72xf32, #tpu.memory_space<vmem>>, vector<192x8xf32>
    tpu.vector_store %arg11[%c0_81, %c8], %56 {strides = array<i32>} : memref<192x72xf32, #tpu.memory_space<vmem>>, vector<192x8xf32>,
    %c0_82 = arith.constant 0 : index
    %c2_83 = arith.constant 2 : index
    %c0_84 = arith.constant 0 : index
    %58 = vector.load %arg10[%c0_82, %c2_83, %c0_84] : memref<14x18x8xf32, #tpu.memory_space<vmem>>, vector<12x16x8xf32>
    %59 = vector.shape_cast %58 : vector<12x16x8xf32> to vector<192x8xf32>
    %c0_85 = arith.constant 0 : index
    %c16 = arith.constant 16 : index
    %60 = vector.load %arg11[%c0_85, %c16] : memref<192x72xf32, #tpu.memory_space<vmem>>, vector<192x8xf32>
    tpu.vector_store %arg11[%c0_85, %c16], %59 {strides = array<i32>} : memref<192x72xf32, #tpu.memory_space<vmem>>, vector<192x8xf32>,
    %c1_86 = arith.constant 1 : index
    %c0_87 = arith.constant 0 : index
    %c0_88 = arith.constant 0 : index
    %61 = vector.load %arg10[%c1_86, %c0_87, %c0_88] : memref<14x18x8xf32, #tpu.memory_space<vmem>>, vector<12x16x8xf32>
    %62 = vector.shape_cast %61 : vector<12x16x8xf32> to vector<192x8xf32>
    %c0_89 = arith.constant 0 : index
    %c24_90 = arith.constant 24 : index
    %63 = vector.load %arg11[%c0_89, %c24_90] : memref<192x72xf32, #tpu.memory_space<vmem>>, vector<192x8xf32>
    tpu.vector_store %arg11[%c0_89, %c24_90], %62 {strides = array<i32>} : memref<192x72xf32, #tpu.memory_space<vmem>>, vector<192x8xf32>,
    %c1_91 = arith.constant 1 : index
    %c1_92 = arith.constant 1 : index
    %c0_93 = arith.constant 0 : index
    %64 = vector.load %arg10[%c1_91, %c1_92, %c0_93] : memref<14x18x8xf32, #tpu.memory_space<vmem>>, vector<12x16x8xf32>
    %65 = vector.shape_cast %64 : vector<12x16x8xf32> to vector<192x8xf32>
    %c0_94 = arith.constant 0 : index
    %c32 = arith.constant 32 : index
    %66 = vector.load %arg11[%c0_94, %c32] : memref<192x72xf32, #tpu.memory_space<vmem>>, vector<192x8xf32>
    tpu.vector_store %arg11[%c0_94, %c32], %65 {strides = array<i32>} : memref<192x72xf32, #tpu.memory_space<vmem>>, vector<192x8xf32>,
    %c1_95 = arith.constant 1 : index
    %c2_96 = arith.constant 2 : index
    %c0_97 = arith.constant 0 : index
    %67 = vector.load %arg10[%c1_95, %c2_96, %c0_97] : memref<14x18x8xf32, #tpu.memory_space<vmem>>, vector<12x16x8xf32>
    %68 = vector.shape_cast %67 : vector<12x16x8xf32> to vector<192x8xf32>
    %c0_98 = arith.constant 0 : index
    %c40 = arith.constant 40 : index
    %69 = vector.load %arg11[%c0_98, %c40] : memref<192x72xf32, #tpu.memory_space<vmem>>, vector<192x8xf32>
    tpu.vector_store %arg11[%c0_98, %c40], %68 {strides = array<i32>} : memref<192x72xf32, #tpu.memory_space<vmem>>, vector<192x8xf32>,
    %c2_99 = arith.constant 2 : index
    %c0_100 = arith.constant 0 : index
    %c0_101 = arith.constant 0 : index
    %70 = vector.load %arg10[%c2_99, %c0_100, %c0_101] : memref<14x18x8xf32, #tpu.memory_space<vmem>>, vector<12x16x8xf32>
    %71 = vector.shape_cast %70 : vector<12x16x8xf32> to vector<192x8xf32>
    %c0_102 = arith.constant 0 : index
    %c48 = arith.constant 48 : index
    %72 = vector.load %arg11[%c0_102, %c48] : memref<192x72xf32, #tpu.memory_space<vmem>>, vector<192x8xf32>
    tpu.vector_store %arg11[%c0_102, %c48], %71 {strides = array<i32>} : memref<192x72xf32, #tpu.memory_space<vmem>>, vector<192x8xf32>,
    %c2_103 = arith.constant 2 : index
    %c1_104 = arith.constant 1 : index
    %c0_105 = arith.constant 0 : index
    %73 = vector.load %arg10[%c2_103, %c1_104, %c0_105] : memref<14x18x8xf32, #tpu.memory_space<vmem>>, vector<12x16x8xf32>
    %74 = vector.shape_cast %73 : vector<12x16x8xf32> to vector<192x8xf32>
    %c0_106 = arith.constant 0 : index
    %c56 = arith.constant 56 : index
    %75 = vector.load %arg11[%c0_106, %c56] : memref<192x72xf32, #tpu.memory_space<vmem>>, vector<192x8xf32>
    tpu.vector_store %arg11[%c0_106, %c56], %74 {strides = array<i32>} : memref<192x72xf32, #tpu.memory_space<vmem>>, vector<192x8xf32>,
    %c2_107 = arith.constant 2 : index
    %c2_108 = arith.constant 2 : index
    %c0_109 = arith.constant 0 : index
    %76 = vector.load %arg10[%c2_107, %c2_108, %c0_109] : memref<14x18x8xf32, #tpu.memory_space<vmem>>, vector<12x16x8xf32>
    %77 = vector.shape_cast %76 : vector<12x16x8xf32> to vector<192x8xf32>
    %c0_110 = arith.constant 0 : index
    %c64 = arith.constant 64 : index
    %78 = vector.load %arg11[%c0_110, %c64] : memref<192x72xf32, #tpu.memory_space<vmem>>, vector<192x8xf32>
    tpu.vector_store %arg11[%c0_110, %c64], %77 {strides = array<i32>} : memref<192x72xf32, #tpu.memory_space<vmem>>, vector<192x8xf32>,
    %c0_111 = arith.constant 0 : index
    %c0_112 = arith.constant 0 : index
    %79 = vector.load %arg11[%c0_111, %c0_112] : memref<192x72xf32, #tpu.memory_space<vmem>>, vector<192x72xf32>
    %c0_113 = arith.constant 0 : index
    %c0_114 = arith.constant 0 : index
    %80 = vector.load %arg4[%c0_113, %c0_114] : memref<72x16xf32, #tpu.memory_space<vmem>>, vector<72x16xf32>
    %cst_115 = arith.constant dense<0.000000e+00> : vector<192x16xf32>
    %81 = tpu.matmul %79, %80, %cst_115 {dimension_numbers = #tpu.dot_dimension_numbers<[1], [0], [0], [1], [0, 0, 1, 1], [], []>} : vector<192x72xf32>, vector<72x16xf32>, vector<192x16xf32> -> vector<192x16xf32>
    %c0_116 = arith.constant 0 : index
    %c0_117 = arith.constant 0 : index
    %82 = vector.load %arg5[%c0_116, %c0_117] : memref<1x16xf32, #tpu.memory_space<vmem>>, vector<1x16xf32>
    %83 = vector.broadcast %82 : vector<1x16xf32> to vector<192x16xf32>
    %84 = arith.addf %81, %83 : vector<192x16xf32>
    %cst_118 = arith.constant 0.000000e+00 : f32
    %85 = vector.broadcast %cst_118 : f32 to vector<192x16xf32>
    %86 = arith.maximumf %84, %85 : vector<192x16xf32>
    %87 = vector.shape_cast %86 : vector<192x16xf32> to vector<6x32x16xf32>
    %c0_119 = arith.constant 0 : index
    %c0_120 = arith.constant 0 : index
    %c0_121 = arith.constant 0 : index
    %88 = vector.load %arg12[%c0_119, %c0_120, %c0_121] : memref<6x32x16xf32, #tpu.memory_space<vmem>>, vector<6x32x16xf32>
    tpu.vector_store %arg12[%c0_119, %c0_120, %c0_121], %87 {strides = array<i32>} : memref<6x32x16xf32, #tpu.memory_space<vmem>>, vector<6x32x16xf32>,
    %c0_122 = arith.constant 0 : index
    %c0_123 = arith.constant 0 : index
    %c0_124 = arith.constant 0 : index
    %89 = tpu.strided_load %arg12[%c0_122, %c0_123, %c0_124] {strides = array<i32: 1, 2, 1>} : memref<6x32x16xf32, #tpu.memory_space<vmem>>, vector<6x6x16xf32>
    %c0_125 = arith.constant 0 : index
    %c1_126 = arith.constant 1 : index
    %c0_127 = arith.constant 0 : index
    %90 = tpu.strided_load %arg12[%c0_125, %c1_126, %c0_127] {strides = array<i32: 1, 2, 1>} : memref<6x32x16xf32, #tpu.memory_space<vmem>>, vector<6x6x16xf32>
    %c0_128 = arith.constant 0 : index
    %c16_129 = arith.constant 16 : index
    %c0_130 = arith.constant 0 : index
    %91 = tpu.strided_load %arg12[%c0_128, %c16_129, %c0_130] {strides = array<i32: 1, 2, 1>} : memref<6x32x16xf32, #tpu.memory_space<vmem>>, vector<6x6x16xf32>
    %c0_131 = arith.constant 0 : index
    %c17 = arith.constant 17 : index
    %c0_132 = arith.constant 0 : index
    %92 = tpu.strided_load %arg12[%c0_131, %c17, %c0_132] {strides = array<i32: 1, 2, 1>} : memref<6x32x16xf32, #tpu.memory_space<vmem>>, vector<6x6x16xf32>
    %93 = arith.addf %89, %90 : vector<6x6x16xf32>
    %94 = arith.addf %93, %91 : vector<6x6x16xf32>
    %95 = arith.addf %94, %92 : vector<6x6x16xf32>
    %cst_133 = arith.constant 2.500000e-01 : f32
    %96 = vector.broadcast %cst_133 : f32 to vector<6x6x16xf32>
    %97 = arith.mulf %95, %96 : vector<6x6x16xf32>
    %c0_134 = arith.constant 0 : index
    %c0_135 = arith.constant 0 : index
    %c0_136 = arith.constant 0 : index
    %c0_137 = arith.constant 0 : index
    %98 = vector.load %arg6[%c0_134, %c0_135, %c0_136, %c0_137] : memref<1x6x6x16xf32, #tpu.memory_space<vmem>>, vector<1x6x6x16xf32>
    %99 = vector.shape_cast %98 : vector<1x6x6x16xf32> to vector<6x6x16xf32>
    %100 = vector.shape_cast %97 : vector<6x6x16xf32> to vector<1x6x6x16xf32>
    tpu.vector_store %arg6[%c0_134, %c0_135, %c0_136, %c0_137], %100 {strides = array<i32>} : memref<1x6x6x16xf32, #tpu.memory_space<vmem>>, vector<1x6x6x16xf32>,
    return
  }
  func.func @transform_0(%arg0: i32) -> (i32, i32, i32, i32) {
    %c0_i32 = arith.constant 0 : i32
    %c0_i32_0 = arith.constant 0 : i32
    %c0_i32_1 = arith.constant 0 : i32
    %c0_i32_2 = arith.constant 0 : i32
    return %arg0, %c0_i32, %c0_i32_0, %c0_i32_1 : i32, i32, i32, i32
  }
  func.func @transform_1(%arg0: i32) -> (i32, i32) {
    %c0_i32 = arith.constant 0 : i32
    %c0_i32_0 = arith.constant 0 : i32
    %c0_i32_1 = arith.constant 0 : i32
    return %c0_i32, %c0_i32_0 : i32, i32
  }
  func.func @transform_2(%arg0: i32) -> (i32, i32) {
    %c0_i32 = arith.constant 0 : i32
    %c0_i32_0 = arith.constant 0 : i32
    %c0_i32_1 = arith.constant 0 : i32
    return %c0_i32, %c0_i32_0 : i32, i32
  }
  func.func @transform_3(%arg0: i32) -> (i32, i32) {
    %c0_i32 = arith.constant 0 : i32
    %c0_i32_0 = arith.constant 0 : i32
    %c0_i32_1 = arith.constant 0 : i32
    return %c0_i32, %c0_i32_0 : i32, i32
  }
  func.func @transform_4(%arg0: i32) -> (i32, i32) {
    %c0_i32 = arith.constant 0 : i32
    %c0_i32_0 = arith.constant 0 : i32
    %c0_i32_1 = arith.constant 0 : i32
    return %c0_i32, %c0_i32_0 : i32, i32
  }
  func.func @transform_5(%arg0: i32) -> (i32, i32, i32, i32) {
    %c0_i32 = arith.constant 0 : i32
    %c0_i32_0 = arith.constant 0 : i32
    %c0_i32_1 = arith.constant 0 : i32
    %c0_i32_2 = arith.constant 0 : i32
    return %arg0, %c0_i32, %c0_i32_0, %c0_i32_1 : i32, i32, i32, i32
  }
}

</mosaic_0001>

<bundles_post_ra>
// kernel: tpu_custom_call.1
= control target key start
LH: loop header
LB: loop body
LE: loop exit
PB: predicated region body
PF: predicated region fallthrough
CT: control target
= control target key end

     0   :  { %s7489_s18 = smov 0   ;;  %s10404_s0 = inlined_call_operand.vmem [shape: f32[2,24,24,3], index: 0, kind: input, shape index: {}]   ;;  %s10405_s1 = inlined_call_operand.vmem [shape: f32[27,8], index: 1, kind: input, shape index: {}]   ;;  %s10406_s2 = inlined_call_operand.vmem [shape: f32[1,8], index: 2, kind: input, shape index: {}]   ;;  %s10407_s3 = inlined_call_operand.vmem [shape: f32[72,16], index: 3, kind: input, shape index: {}]   ;;  %s10408_s4 = inlined_call_operand.vmem [shape: f32[1,16], index: 4, kind: input, shape index: {}]   ;;  %s10409_s5 = inlined_call_operand.vmem [shape: f32[2,6,6,16], index: 5, kind: output, shape index: {}]  }
   0x1 LB: > { %s6980_s19 = sadd.s32 4294967295, %s7440_s18   ;;  %p6984_p0 = scmp.ge.s32.totalorder %s7440_s18, 1  ;;  %s7440_s18 = sphi %s7489_s18, %s15_s18  }
   0x2   : > { %p187_p1 = scmp.lt.s32.totalorder %s7440_s18, 3 }
   0x4   : > { %p188_p2 = pnand %p6984_p0, %p187_p1 }
   0x6   : > { %191 = sbr.rel (%p188_p2) target bundleno = 2231 (0x8b7), region = 40 }
   0xd   : > { %vm225_vm0 = vcmask 23552   ;;  %vm229_vm1 = vcmask 17408   ;;  %p7499_p3 = scmp.lt.s32.totalorder %s6980_s19, 1  ;;  %v10410_v0 = vmov 0.0   ;;  %s7443_s25 = smov 3   ;;  %vm980_vm2 = vcmask 48152  }
   0xe   : > { %226 = vst.msk [vmem:[#allocation2] sm:$0xff] %vm225_vm0, %v10410_v0  ;;  %227 = vst.msk [vmem:[#allocation2 + $0x8] sm:$0xff] %vm225_vm0, %v10410_v0  ;;  %s7444_s26 = smov 6   ;;  %vm1413_vm3 = vcmask 72752   ;;  %s7445_s27 = smov 9   ;;  %vm1846_vm4 = vcmask 97352  }
   0xf   : > { %228 = vst.msk [vmem:[#allocation2 + $0x10] sm:$0xff] %vm225_vm0, %v10410_v0  ;;  %231 = vst.msk [vmem:[#allocation2 + $0x20] sm:$0xff] %vm225_vm0, %v10410_v0  ;;  %s10460_s19 = smov (!%p7499_p3, %s6980_s19), 1  ;;  %s7446_s28 = smov 12   ;;  %vm2279_vm5 = vcmask 121952   ;;  %vm2712_vm6 = vcmask 146552  }
  0x10   : > { %232 = vst.msk [vmem:[#allocation2 + $0x28] sm:$0xff] %vm225_vm0, %v10410_v0  ;;  %233 = vst.msk [vmem:[#allocation2 + $0x30] sm:$0xff] %vm225_vm0, %v10410_v0  ;;  %s7397_s21 = smul.u32 576, %s10460_s19  ;;  %s7447_s29 = smov 15   ;;  %vm4385_vm7 = vcmask 1042432   ;;  %vm7450_vm8 = vmmov 1  }
  0x11   : > { %235 = vst.msk [vmem:[#allocation2 + $0x40] sm:$0xff] %vm225_vm0, %v10410_v0  ;;  %236 = vst.msk [vmem:[#allocation2 + $0x48] sm:$0xff] %vm225_vm0, %v10410_v0  ;;  %s7448_s30 = smov 18   ;;  %s7449_s14 = smov 21   ;;  %vm3146_vm10 = vcmask 171152   ;;  %vm3579_vm11 = vcmask 195752  }
  0x12   : > { %237 = vst.msk [vmem:[#allocation2 + $0x50] sm:$0xff] %vm225_vm0, %v10410_v0  ;;  %239 = vst.msk [vmem:[#allocation2 + $0x60] sm:$0xff] %vm225_vm0, %v10410_v0  ;;  %s7721_s24 = scalar_lea.vmem %s10404_s0, %s7397_s21  ;;  %s7451_s15 = smov 24   ;;  %vm4012_vm12 = vcmask 220352   ;;  %vm4168_vm13 = vcmask 220160   ;;  %vm4886_vm14 = vcmask 64512  }
  0x13   : > { %240 = vst.msk [vmem:[#allocation2 + $0x68] sm:$0xff] %vm225_vm0, %v10410_v0  ;;  %241 = vst.msk [vmem:[#allocation2 + $0x70] sm:$0xff] %vm225_vm0, %v10410_v0  ;;  %v332_v1 = vld [vmem:[%s7721_s24 + $0x8] sm:$0xff]  ;;  %v331_v2 = vld [vmem:[%s7721_s24] sm:$0xff]  ;;  %s7452_s20 = smov 8   ;;  %vm5224_vm15 = vcmask 58368  }
  0x14   : > { %243 = vst.msk [vmem:[#allocation2 + $0x80] sm:$0xff] %vm225_vm0, %v10410_v0  ;;  %244 = vst.msk [vmem:[#allocation2 + $0x88] sm:$0xff] %vm225_vm0, %v10410_v0  ;;  %v334_v3 = vld [vmem:[%s7721_s24 + $0x18] sm:$0xff]  ;;  %v333_v7 = vld [vmem:[%s7721_s24 + $0x10] sm:$0xff]  ;;  %s7453_s23 = smov 16   ;;  %s7457_s10 = smov 56  }
  0x15   : > { %245 = vst.msk [vmem:[#allocation2 + $0x90] sm:$0xff] %vm225_vm0, %v10410_v0  ;;  %247 = vst.msk [vmem:[#allocation2 + $0xa0] sm:$0xff] %vm225_vm0, %v10410_v0  ;;  %v620_v4 = vld [vmem:[#allocation2 + $0x1] sm:$0xff]  ;;  %v338_v11 = vld [vmem:[%s7721_s24 + $0x38] sm:$0xff] }
  0x16   : > { %248 = vst.msk [vmem:[#allocation2 + $0xa8] sm:$0xff] %vm225_vm0, %v10410_v0  ;;  %249 = vst.msk [vmem:[#allocation2 + $0xb0] sm:$0xff] %vm225_vm0, %v10410_v0  ;;  %v621_v5 = vld [vmem:[#allocation2 + $0x9] sm:$0xff]  ;;  %764 = vrot.lane.b32.xlu0 %v620_v4, %s7443_s25  ;;  %v476_v9 = vld [vmem:[#allocation2] sm:$0xff] }
  0x17   : > { %251 = vst.msk [vmem:[#allocation2 + $0xc0] sm:$0xff] %vm225_vm0, %v10410_v0  ;;  %252 = vst.msk [vmem:[#allocation2 + $0xc8] sm:$0xff] %vm225_vm0, %v10410_v0  ;;  %v336_v8 = vld [vmem:[%s7721_s24 + $0x28] sm:$0xff]  ;;  %v335_v10 = vld [vmem:[%s7721_s24 + $0x20] sm:$0xff] }
  0x18   : > { %253 = vst.msk [vmem:[#allocation2 + $0xd0] sm:$0xff] %vm225_vm0, %v10410_v0  ;;  %255 = vst.msk [vmem:[#allocation2 + $0xe0] sm:$0xff] %vm225_vm0, %v10410_v0  ;;  %v337_v12 = vld [vmem:[%s7721_s24 + $0x30] sm:$0xff]  ;;  %v340_v13 = vld [vmem:[%s7721_s24 + $0x48] sm:$0xff] }
  0x19   : > { %256 = vst.msk [vmem:[#allocation2 + $0xe8] sm:$0xff] %vm225_vm0, %v10410_v0  ;;  %257 = vst.msk [vmem:[#allocation2 + $0xf0] sm:$0xff] %vm225_vm0, %v10410_v0  ;;  %v339_v14 = vld [vmem:[%s7721_s24 + $0x40] sm:$0xff]  ;;  %v342_v15 = vld [vmem:[%s7721_s24 + $0x58] sm:$0xff] }
  0x1a   : > { %259 = vst.msk [vmem:[#allocation2 + $0x100] sm:$0xff] %vm225_vm0, %v10410_v0  ;;  %260 = vst.msk [vmem:[#allocation2 + $0x108] sm:$0xff] %vm225_vm0, %v10410_v0  ;;  %v341_v16 = vld [vmem:[%s7721_s24 + $0x50] sm:$0xff]  ;;  %v344_v17 = vld [vmem:[%s7721_s24 + $0x68] sm:$0xff]  ;;  %766 = vrot.lane.b32.xlu0 %v621_v5, %s7443_s25 }
  0x1b   : > { %261 = vst.msk [vmem:[#allocation2 + $0x110] sm:$0xff] %vm225_vm0, %v10410_v0  ;;  %263 = vst.msk [vmem:[#allocation2 + $0x120] sm:$0xff] %vm225_vm0, %v10410_v0  ;;  %v343_v18 = vld [vmem:[%s7721_s24 + $0x60] sm:$0xff]  ;;  %v346_v19 = vld [vmem:[%s7721_s24 + $0x78] sm:$0xff] }
  0x1c   : > { %264 = vst.msk [vmem:[#allocation2 + $0x128] sm:$0xff] %vm225_vm0, %v10410_v0  ;;  %265 = vst.msk [vmem:[#allocation2 + $0x130] sm:$0xff] %vm225_vm0, %v10410_v0  ;;  %v345_v20 = vld [vmem:[%s7721_s24 + $0x70] sm:$0xff]  ;;  %v348_v21 = vld [vmem:[%s7721_s24 + $0x88] sm:$0xff] }
  0x1d   : > { %267 = vst.msk [vmem:[#allocation2 + $0x140] sm:$0xff] %vm225_vm0, %v10410_v0  ;;  %268 = vst.msk [vmem:[#allocation2 + $0x148] sm:$0xff] %vm225_vm0, %v10410_v0  ;;  %v347_v22 = vld [vmem:[%s7721_s24 + $0x80] sm:$0xff]  ;;  %v350_v23 = vld [vmem:[%s7721_s24 + $0x98] sm:$0xff] }
  0x1e   : > { %269 = vst.msk [vmem:[#allocation2 + $0x150] sm:$0xff] %vm225_vm0, %v10410_v0  ;;  %271 = vst.msk [vmem:[#allocation2 + $0x160] sm:$0xff] %vm225_vm0, %v10410_v0  ;;  %v349_v24 = vld [vmem:[%s7721_s24 + $0x90] sm:$0xff]  ;;  %v352_v27 = vld [vmem:[%s7721_s24 + $0xa8] sm:$0xff] }
  0x1f   : > { %272 = vst.msk [vmem:[#allocation2 + $0x168] sm:$0xff] %vm225_vm0, %v10410_v0  ;;  %273 = vst.msk [vmem:[#allocation2 + $0x170] sm:$0xff] %vm225_vm0, %v10410_v0  ;;  %v351_v28 = vld [vmem:[%s7721_s24 + $0xa0] sm:$0xff]  ;;  %v354_v29 = vld [vmem:[%s7721_s24 + $0xb8] sm:$0xff] }
  0x20   : > { %275 = vst.msk [vmem:[#allocation2 + $0x180] sm:$0xff] %vm225_vm0, %v10410_v0  ;;  %276 = vst.msk [vmem:[#allocation2 + $0x188] sm:$0xff] %vm225_vm0, %v10410_v0  ;;  %v353_v31 = vld [vmem:[%s7721_s24 + $0xb0] sm:$0xff]  ;;  %v356_v35 = vld [vmem:[%s7721_s24 + $0xc8] sm:$0xff] }
  0x21   : > { %277 = vst.msk [vmem:[#allocation2 + $0x190] sm:$0xff] %vm225_vm0, %v10410_v0  ;;  %279 = vst.msk [vmem:[#allocation2 + $0x1a0] sm:$0xff] %vm225_vm0, %v10410_v0  ;;  %v355_v36 = vld [vmem:[%s7721_s24 + $0xc0] sm:$0xff]  ;;  %v358_v37 = vld [vmem:[%s7721_s24 + $0xd8] sm:$0xff] }
  0x22   : > { %280 = vst.msk [vmem:[#allocation2 + $0x1a8] sm:$0xff] %vm225_vm0, %v10410_v0  ;;  %281 = vst.msk [vmem:[#allocation2 + $0x1b0] sm:$0xff] %vm225_vm0, %v10410_v0  ;;  %v357_v40 = vld [vmem:[%s7721_s24 + $0xd0] sm:$0xff]  ;;  %v360_v41 = vld [vmem:[%s7721_s24 + $0xe8] sm:$0xff] }
  0x23   : > { %283 = vst.msk [vmem:[#allocation2 + $0x1c0] sm:$0xff] %vm225_vm0, %v10410_v0  ;;  %284 = vst.msk [vmem:[#allocation2 + $0x1c8] sm:$0xff] %vm225_vm0, %v10410_v0  ;;  %v359_v42 = vld [vmem:[%s7721_s24 + $0xe0] sm:$0xff]  ;;  %v362_v43 = vld [vmem:[%s7721_s24 + $0xf8] sm:$0xff] }
  0x24   : > { %285 = vst.msk [vmem:[#allocation2 + $0x1d0] sm:$0xff] %vm225_vm0, %v10410_v0  ;;  %287 = vst.msk [vmem:[#allocation2 + $0x1e0] sm:$0xff] %vm225_vm0, %v10410_v0  ;;  %v361_v44 = vld [vmem:[%s7721_s24 + $0xf0] sm:$0xff]  ;;  %v364_v46 = vld [vmem:[%s7721_s24 + $0x108] sm:$0xff] }
  0x25   : > { %288 = vst.msk [vmem:[#allocation2 + $0x1e8] sm:$0xff] %vm225_vm0, %v10410_v0  ;;  %289 = vst.msk [vmem:[#allocation2 + $0x1f0] sm:$0xff] %vm225_vm0, %v10410_v0  ;;  %v363_v47 = vld [vmem:[%s7721_s24 + $0x100] sm:$0xff]  ;;  %v366_v48 = vld [vmem:[%s7721_s24 + $0x118] sm:$0xff] }
  0x26   : > { %291 = vst.msk [vmem:[#allocation2 + $0x200] sm:$0xff] %vm225_vm0, %v10410_v0  ;;  %292 = vst.msk [vmem:[#allocation2 + $0x208] sm:$0xff] %vm225_vm0, %v10410_v0  ;;  %v365_v50 = vld [vmem:[%s7721_s24 + $0x110] sm:$0xff]  ;;  %v368_v51 = vld [vmem:[%s7721_s24 + $0x128] sm:$0xff] }
  0x27   : > { %293 = vst.msk [vmem:[#allocation2 + $0x210] sm:$0xff] %vm225_vm0, %v10410_v0  ;;  %295 = vst.msk [vmem:[#allocation2 + $0x220] sm:$0xff] %vm225_vm0, %v10410_v0  ;;  %v367_v52 = vld [vmem:[%s7721_s24 + $0x120] sm:$0xff]  ;;  %v370_v53 = vld [vmem:[%s7721_s24 + $0x138] sm:$0xff] }
  0x28   : > { %296 = vst.msk [vmem:[#allocation2 + $0x228] sm:$0xff] %vm225_vm0, %v10410_v0  ;;  %297 = vst.msk [vmem:[#allocation2 + $0x230] sm:$0xff] %vm225_vm0, %v10410_v0  ;;  %v369_v54 = vld [vmem:[%s7721_s24 + $0x130] sm:$0xff]  ;;  %v372_v55 = vld [vmem:[%s7721_s24 + $0x148] sm:$0xff] }
  0x29   : > { %299 = vst.msk [vmem:[#allocation2 + $0x240] sm:$0xff] %vm225_vm0, %v10410_v0  ;;  %300 = vst.msk [vmem:[#allocation2 + $0x248] sm:$0xff] %vm225_vm0, %v10410_v0  ;;  %v371_v56 = vld [vmem:[%s7721_s24 + $0x140] sm:$0xff]  ;;  %v374_v57 = vld [vmem:[%s7721_s24 + $0x158] sm:$0xff] }
  0x2a   : > { %301 = vst.msk [vmem:[#allocation2 + $0x250] sm:$0xff] %vm225_vm0, %v10410_v0  ;;  %303 = vst.msk [vmem:[#allocation2 + $0x260] sm:$0xff] %vm225_vm0, %v10410_v0  ;;  %v373_v58 = vld [vmem:[%s7721_s24 + $0x150] sm:$0xff]  ;;  %v376_v59 = vld [vmem:[%s7721_s24 + $0x168] sm:$0xff] }
  0x2b   : > { %304 = vst.msk [vmem:[#allocation2 + $0x268] sm:$0xff] %vm225_vm0, %v10410_v0  ;;  %305 = vst.msk [vmem:[#allocation2 + $0x270] sm:$0xff] %vm225_vm0, %v10410_v0  ;;  %v375_v60 = vld [vmem:[%s7721_s24 + $0x160] sm:$0xff]  ;;  %v378_v61 = vld [vmem:[%s7721_s24 + $0x178] sm:$0xff] }
  0x2c   : > { %307 = vst.msk [vmem:[#allocation2 + $0x280] sm:$0xff] %vm225_vm0, %v10410_v0  ;;  %308 = vst.msk [vmem:[#allocation2 + $0x288] sm:$0xff] %vm225_vm0, %v10410_v0  ;;  %v377_v63 = vld [vmem:[%s7721_s24 + $0x170] sm:$0xff]  ;;  %v380_v4 = vld [vmem:[%s7721_s24 + $0x188] sm:$0xff] }
  0x2d   : > { %309 = vst.msk [vmem:[#allocation2 + $0x290] sm:$0xff] %vm225_vm0, %v10410_v0  ;;  %311 = vst.msk [vmem:[#allocation2 + $0x2a0] sm:$0xff] %vm225_vm0, %v10410_v0  ;;  %v379_v5 = vld [vmem:[%s7721_s24 + $0x180] sm:$0xff] }
  0x2e   : > { %312 = vst.msk [vmem:[#allocation2 + $0x2a8] sm:$0xff] %vm225_vm0, %v10410_v0  ;;  %313 = vst.msk [vmem:[#allocation2 + $0x2b0] sm:$0xff] %vm225_vm0, %v10410_v0 }
  0x2f   : > { %315 = vst.msk [vmem:[#allocation2 + $0x2c0] sm:$0xff] %vm225_vm0, %v10410_v0  ;;  %316 = vst.msk [vmem:[#allocation2 + $0x2c8] sm:$0xff] %vm225_vm0, %v10410_v0 }
  0x30   : > { %317 = vst.msk [vmem:[#allocation2 + $0x2d0] sm:$0xff] %vm225_vm0, %v10410_v0  ;;  %319 = vst.msk [vmem:[#allocation2 + $0x2e0] sm:$0xff] %vm225_vm0, %v10410_v0 }
  0x31   : > { %320 = vst.msk [vmem:[#allocation2 + $0x2e8] sm:$0xff] %vm225_vm0, %v10410_v0  ;;  %321 = vst.msk [vmem:[#allocation2 + $0x2f0] sm:$0xff] %vm225_vm0, %v10410_v0 }
  0x32   : > { %323 = vst.msk [vmem:[#allocation2 + $0x300] sm:$0xff] %vm225_vm0, %v10410_v0  ;;  %324 = vst.msk [vmem:[#allocation2 + $0x308] sm:$0xff] %vm225_vm0, %v10410_v0 }
  0x33   : > { %325 = vst.msk [vmem:[#allocation2 + $0x310] sm:$0xff] %vm225_vm0, %v10410_v0  ;;  %327 = vst.msk [vmem:[#allocation2 + $0x320] sm:$0xff] %vm225_vm0, %v10410_v0 }
  0x34   : > { %328 = vst.msk [vmem:[#allocation2 + $0x328] sm:$0xff] %vm225_vm0, %v10410_v0  ;;  %329 = vst.msk [vmem:[#allocation2 + $0x330] sm:$0xff] %vm225_vm0, %v10410_v0 }
  0x35   : > { %230 = vst.msk [vmem:[#allocation2 + $0x18] sm:$0x3] %vm229_vm1, %v10410_v0  ;;  %234 = vst.msk [vmem:[#allocation2 + $0x38] sm:$0x3] %vm229_vm1, %v10410_v0 }
  0x36   : > { %238 = vst.msk [vmem:[#allocation2 + $0x58] sm:$0x3] %vm229_vm1, %v10410_v0  ;;  %242 = vst.msk [vmem:[#allocation2 + $0x78] sm:$0x3] %vm229_vm1, %v10410_v0 }
  0x37   : > { %246 = vst.msk [vmem:[#allocation2 + $0x98] sm:$0x3] %vm229_vm1, %v10410_v0  ;;  %250 = vst.msk [vmem:[#allocation2 + $0xb8] sm:$0x3] %vm229_vm1, %v10410_v0 }
  0x38   : > { %254 = vst.msk [vmem:[#allocation2 + $0xd8] sm:$0x3] %vm229_vm1, %v10410_v0  ;;  %258 = vst.msk [vmem:[#allocation2 + $0xf8] sm:$0x3] %vm229_vm1, %v10410_v0 }
  0x39   : > { %262 = vst.msk [vmem:[#allocation2 + $0x118] sm:$0x3] %vm229_vm1, %v10410_v0  ;;  %266 = vst.msk [vmem:[#allocation2 + $0x138] sm:$0x3] %vm229_vm1, %v10410_v0 }
  0x3a   : > { %270 = vst.msk [vmem:[#allocation2 + $0x158] sm:$0x3] %vm229_vm1, %v10410_v0  ;;  %274 = vst.msk [vmem:[#allocation2 + $0x178] sm:$0x3] %vm229_vm1, %v10410_v0 }
  0x3b   : > { %278 = vst.msk [vmem:[#allocation2 + $0x198] sm:$0x3] %vm229_vm1, %v10410_v0  ;;  %282 = vst.msk [vmem:[#allocation2 + $0x1b8] sm:$0x3] %vm229_vm1, %v10410_v0 }
  0x3c   : > { %286 = vst.msk [vmem:[#allocation2 + $0x1d8] sm:$0x3] %vm229_vm1, %v10410_v0  ;;  %290 = vst.msk [vmem:[#allocation2 + $0x1f8] sm:$0x3] %vm229_vm1, %v10410_v0  ;;  %v622_v6 = vld [vmem:[#allocation2 + $0x11] sm:$0xff] }
  0x3d   : > { %294 = vst.msk [vmem:[#allocation2 + $0x218] sm:$0x3] %vm229_vm1, %v10410_v0  ;;  %298 = vst.msk [vmem:[#allocation2 + $0x238] sm:$0x3] %vm229_vm1, %v10410_v0  ;;  %768 = vrot.lane.b32.xlu1 %v622_v6, %s7443_s25  ;;  %v382_v6 = vld [vmem:[%s7721_s24 + $0x198] sm:$0xff] }
  0x3e   : > { %302 = vst.msk [vmem:[#allocation2 + $0x258] sm:$0x3] %vm229_vm1, %v10410_v0  ;;  %306 = vst.msk [vmem:[#allocation2 + $0x278] sm:$0x3] %vm229_vm1, %v10410_v0 }
  0x3f   : > { %310 = vst.msk [vmem:[#allocation2 + $0x298] sm:$0x3] %vm229_vm1, %v10410_v0  ;;  %314 = vst.msk [vmem:[#allocation2 + $0x2b8] sm:$0x3] %vm229_vm1, %v10410_v0 }
  0x40   : > { %318 = vst.msk [vmem:[#allocation2 + $0x2d8] sm:$0x3] %vm229_vm1, %v10410_v0  ;;  %322 = vst.msk [vmem:[#allocation2 + $0x2f8] sm:$0x3] %vm229_vm1, %v10410_v0 }
  0x41   : > { %326 = vst.msk [vmem:[#allocation2 + $0x318] sm:$0x3] %vm229_vm1, %v10410_v0  ;;  %330 = vst.msk [vmem:[#allocation2 + $0x338] sm:$0x3] %vm229_vm1, %v10410_v0  ;;  %vm5459_vm1 = vcmask 130112  }
  0x42   : > { %405 = vst.msk [vmem:[#allocation2 + $0x29] sm:$0xff] %vm225_vm0, %v332_v1  ;;  %404 = vst.msk [vmem:[#allocation2 + $0x21] sm:$0xff] %vm225_vm0, %v331_v2 }
  0x43   : > { %407 = vst.msk [vmem:[#allocation2 + $0x41] sm:$0xff] %vm225_vm0, %v334_v3  ;;  %406 = vst.msk [vmem:[#allocation2 + $0x31] sm:$0xff] %vm225_vm0, %v333_v7 }
  0x44   : > { %409 = vst.msk [vmem:[#allocation2 + $0x51] sm:$0xff] %vm225_vm0, %v336_v8  ;;  %548 = vst.msk [vmem:[#allocation3] sm:$0xff] %vm225_vm0, %v476_v9  ;;  %v381_v9 = vld [vmem:[%s7721_s24 + $0x190] sm:$0xff] }
  0x45   : > { %408 = vst.msk [vmem:[#allocation2 + $0x49] sm:$0xff] %vm225_vm0, %v335_v10  ;;  %411 = vst.msk [vmem:[#allocation2 + $0x69] sm:$0xff] %vm225_vm0, %v338_v11  ;;  %v384_v10 = vld [vmem:[%s7721_s24 + $0x1a8] sm:$0xff]  ;;  %v383_v11 = vld [vmem:[%s7721_s24 + $0x1a0] sm:$0xff] }
  0x46   : > { %410 = vst.msk [vmem:[#allocation2 + $0x61] sm:$0xff] %vm225_vm0, %v337_v12  ;;  %413 = vst.msk [vmem:[#allocation2 + $0x81] sm:$0xff] %vm225_vm0, %v340_v13  ;;  %v386_v12 = vld [vmem:[%s7721_s24 + $0x1b8] sm:$0xff]  ;;  %v477_v13 = vld [vmem:[#allocation2 + $0x8] sm:$0xff] }
  0x47   : > { %412 = vst.msk [vmem:[#allocation2 + $0x71] sm:$0xff] %vm225_vm0, %v339_v14  ;;  %415 = vst.msk [vmem:[#allocation2 + $0x91] sm:$0xff] %vm225_vm0, %v342_v15  ;;  %v385_v15 = vld [vmem:[%s7721_s24 + $0x1b0] sm:$0xff] }
  0x48   : > { %414 = vst.msk [vmem:[#allocation2 + $0x89] sm:$0xff] %vm225_vm0, %v341_v16  ;;  %417 = vst.msk [vmem:[#allocation2 + $0xa9] sm:$0xff] %vm225_vm0, %v344_v17  ;;  %v388_v16 = vld [vmem:[%s7721_s24 + $0x1c8] sm:$0xff]  ;;  %v478_v17 = vld [vmem:[#allocation2 + $0x10] sm:$0xff] }
  0x49   : > { %416 = vst.msk [vmem:[#allocation2 + $0xa1] sm:$0xff] %vm225_vm0, %v343_v18  ;;  %419 = vst.msk [vmem:[#allocation2 + $0xc1] sm:$0xff] %vm225_vm0, %v346_v19  ;;  %v624_v25 = vld [vmem:[#allocation2 + $0x29] sm:$0xff]  ;;  %v623_v26 = vld [vmem:[#allocation2 + $0x21] sm:$0xff] }
  0x4a   : > { %418 = vst.msk [vmem:[#allocation2 + $0xb1] sm:$0xff] %vm225_vm0, %v345_v20  ;;  %421 = vst.msk [vmem:[#allocation2 + $0xd1] sm:$0xff] %vm225_vm0, %v348_v21  ;;  %770 = vrot.lane.b32.xlu1 %v623_v26, %s7443_s25  ;;  %772 = vrot.lane.b32.xlu0 %v624_v25, %s7443_s25  ;;  %v625_v30 = vld [vmem:[#allocation2 + $0x31] sm:$0xff]  ;;  %v626_v32 = vld [vmem:[#allocation2 + $0x41] sm:$0xff] }
  0x4b   : > { %420 = vst.msk [vmem:[#allocation2 + $0xc9] sm:$0xff] %vm225_vm0, %v347_v22  ;;  %423 = vst.msk [vmem:[#allocation2 + $0xe9] sm:$0xff] %vm225_vm0, %v350_v23  ;;  %v628_v34 = vld [vmem:[#allocation2 + $0x51] sm:$0xff]  ;;  %v7858_v19 = vld [vmem:[#allocation2 + $0x28] sm:$0xff] }
  0x4c   : > { %422 = vst.msk [vmem:[#allocation2 + $0xe1] sm:$0xff] %vm225_vm0, %v349_v24  ;;  %425 = vst.msk [vmem:[#allocation2 + $0x101] sm:$0xff] %vm225_vm0, %v352_v27  ;;  %v627_v33 = vld [vmem:[#allocation2 + $0x49] sm:$0xff]  ;;  %v387_v20 = vld [vmem:[%s7721_s24 + $0x1c0] sm:$0xff] }
  0x4d   : > { %424 = vst.msk [vmem:[#allocation2 + $0xf1] sm:$0xff] %vm225_vm0, %v351_v28  ;;  %427 = vst.msk [vmem:[#allocation2 + $0x111] sm:$0xff] %vm225_vm0, %v354_v29  ;;  %v630_v38 = vld [vmem:[#allocation2 + $0x69] sm:$0xff]  ;;  %v629_v39 = vld [vmem:[#allocation2 + $0x61] sm:$0xff] }
  0x4e   : > { %426 = vst.msk [vmem:[#allocation2 + $0x109] sm:$0xff] %vm225_vm0, %v353_v31  ;;  %774 = vrot.lane.b32.xlu1 %v625_v30, %s7443_s25  ;;  %776 = vrot.lane.b32.xlu0 %v626_v32, %s7443_s25  ;;  %429 = vst.msk [vmem:[#allocation2 + $0x129] sm:$0xff] %vm225_vm0, %v356_v35  ;;  %v631_v45 = vld [vmem:[#allocation2 + $0x71] sm:$0xff]  ;;  %v632_v49 = vld [vmem:[#allocation2 + $0x81] sm:$0xff] }
  0x4f   : > { %428 = vst.msk [vmem:[#allocation2 + $0x121] sm:$0xff] %vm225_vm0, %v355_v36  ;;  %431 = vst.msk [vmem:[#allocation2 + $0x141] sm:$0xff] %vm225_vm0, %v358_v37  ;;  %v633_v62 = vld [vmem:[#allocation2 + $0x89] sm:$0xff]  ;;  %v634_v1 = vld [vmem:[#allocation2 + $0x91] sm:$0xff] }
  0x50   : > { %430 = vst.msk [vmem:[#allocation2 + $0x131] sm:$0xff] %vm225_vm0, %v357_v40  ;;  %433 = vst.msk [vmem:[#allocation2 + $0x151] sm:$0xff] %vm225_vm0, %v360_v41  ;;  %v635_v2 = vld [vmem:[#allocation2 + $0xa1] sm:$0xff]  ;;  %v636_v3 = vld [vmem:[#allocation2 + $0xa9] sm:$0xff] }
  0x51   : > { %432 = vst.msk [vmem:[#allocation2 + $0x149] sm:$0xff] %vm225_vm0, %v359_v42  ;;  %435 = vst.msk [vmem:[#allocation2 + $0x169] sm:$0xff] %vm225_vm0, %v362_v43  ;;  %v638_v7 = vld [vmem:[#allocation2 + $0xc1] sm:$0xff]  ;;  %v637_v8 = vld [vmem:[#allocation2 + $0xb1] sm:$0xff] }
  0x52   : > { %778 = vrot.lane.b32.xlu1 %v627_v33, %s7443_s25  ;;  %780 = vrot.lane.b32.xlu0 %v628_v34, %s7443_s25  ;;  %434 = vst.msk [vmem:[#allocation2 + $0x161] sm:$0xff] %vm225_vm0, %v361_v44  ;;  %437 = vst.msk [vmem:[#allocation2 + $0x181] sm:$0xff] %vm225_vm0, %v364_v46  ;;  %v639_v14 = vld [vmem:[#allocation2 + $0xc9] sm:$0xff]  ;;  %v640_v18 = vld [vmem:[#allocation2 + $0xd1] sm:$0xff] }
  0x53   : > { %436 = vst.msk [vmem:[#allocation2 + $0x171] sm:$0xff] %vm225_vm0, %v363_v47  ;;  %439 = vst.msk [vmem:[#allocation2 + $0x191] sm:$0xff] %vm225_vm0, %v366_v48  ;;  %v390_v21 = vld [vmem:[%s7721_s24 + $0x1d8] sm:$0xff]  ;;  %v7867_v22 = vld [vmem:[#allocation2 + $0x20] sm:$0xff] }
  0x54   : > { %438 = vst.msk [vmem:[#allocation2 + $0x189] sm:$0xff] %vm225_vm0, %v365_v50  ;;  %441 = vst.msk [vmem:[#allocation2 + $0x1a9] sm:$0xff] %vm225_vm0, %v368_v51  ;;  %v7869_v23 = vld [vmem:[#allocation2 + $0x40] sm:$0xff]  ;;  %v389_v24 = vld [vmem:[%s7721_s24 + $0x1d0] sm:$0xff] }
  0x55   : > { %440 = vst.msk [vmem:[#allocation2 + $0x1a1] sm:$0xff] %vm225_vm0, %v367_v52  ;;  %443 = vst.msk [vmem:[#allocation2 + $0x1c1] sm:$0xff] %vm225_vm0, %v370_v53  ;;  %v392_v25 = vld [vmem:[%s7721_s24 + $0x1e8] sm:$0xff]  ;;  %v7878_v26 = vld [vmem:[#allocation2 + $0x30] sm:$0xff] }
  0x56   : > { %782 = vrot.lane.b32.xlu1 %v629_v39, %s7443_s25  ;;  %784 = vrot.lane.b32.xlu0 %v630_v38, %s7443_s25  ;;  %442 = vst.msk [vmem:[#allocation2 + $0x1b1] sm:$0xff] %vm225_vm0, %v369_v54  ;;  %445 = vst.msk [vmem:[#allocation2 + $0x1d1] sm:$0xff] %vm225_vm0, %v372_v55  ;;  %v7880_v27 = vld [vmem:[#allocation2 + $0x50] sm:$0xff]  ;;  %v391_v28 = vld [vmem:[%s7721_s24 + $0x1e0] sm:$0xff] }
  0x57   : > { %444 = vst.msk [vmem:[#allocation2 + $0x1c9] sm:$0xff] %vm225_vm0, %v371_v56  ;;  %447 = vst.msk [vmem:[#allocation2 + $0x1e9] sm:$0xff] %vm225_vm0, %v374_v57  ;;  %v394_v29 = vld [vmem:[%s7721_s24 + $0x1f8] sm:$0xff]  ;;  %v7890_v30 = vld [vmem:[#allocation2 + $0x48] sm:$0xff] }
  0x58   : > { %446 = vst.msk [vmem:[#allocation2 + $0x1e1] sm:$0xff] %vm225_vm0, %v373_v58  ;;  %449 = vst.msk [vmem:[#allocation2 + $0x201] sm:$0xff] %vm225_vm0, %v376_v59  ;;  %v641_v31 = vld [vmem:[#allocation2 + $0xe1] sm:$0xff]  ;;  %v642_v33 = vld [vmem:[#allocation2 + $0xe9] sm:$0xff] }
  0x59   : > { %448 = vst.msk [vmem:[#allocation2 + $0x1f1] sm:$0xff] %vm225_vm0, %v375_v60  ;;  %451 = vst.msk [vmem:[#allocation2 + $0x211] sm:$0xff] %vm225_vm0, %v378_v61  ;;  %v7897_v32 = vld [vmem:[#allocation2 + $0x68] sm:$0xff]  ;;  %v393_v34 = vld [vmem:[%s7721_s24 + $0x1f0] sm:$0xff] }
  0x5a   : > { %786 = vrot.lane.b32.xlu1 %v631_v45, %s7443_s25  ;;  %788 = vrot.lane.b32.xlu0 %v632_v49, %s7443_s25  ;;  %450 = vst.msk [vmem:[#allocation2 + $0x209] sm:$0xff] %vm225_vm0, %v377_v63  ;;  %453 = vst.msk [vmem:[#allocation2 + $0x229] sm:$0xff] %vm225_vm0, %v380_v4  ;;  %v396_v35 = vld [vmem:[%s7721_s24 + $0x208] sm:$0xff]  ;;  %v7906_v36 = vld [vmem:[#allocation2 + $0x60] sm:$0xff] }
  0x5b   : > { %452 = vst.msk [vmem:[#allocation2 + $0x221] sm:$0xff] %vm225_vm0, %v379_v5  ;;  %455 = vst.msk [vmem:[#allocation2 + $0x241] sm:$0xff] %vm225_vm0, %v382_v6  ;;  %v643_v37 = vld [vmem:[#allocation2 + $0xf1] sm:$0xff]  ;;  %v7911_v38 = vld [vmem:[#allocation2 + $0x80] sm:$0xff] }
  0x5c   : > { %454 = vst.msk [vmem:[#allocation2 + $0x231] sm:$0xff] %vm225_vm0, %v381_v9  ;;  %457 = vst.msk [vmem:[#allocation2 + $0x251] sm:$0xff] %vm225_vm0, %v384_v10  ;;  %v395_v39 = vld [vmem:[%s7721_s24 + $0x200] sm:$0xff]  ;;  %v398_v41 = vld [vmem:[%s7721_s24 + $0x218] sm:$0xff] }
  0x5d   : > { %456 = vst.msk [vmem:[#allocation2 + $0x249] sm:$0xff] %vm225_vm0, %v383_v11  ;;  %459 = vst.msk [vmem:[#allocation2 + $0x269] sm:$0xff] %vm225_vm0, %v386_v12  ;;  %v644_v40 = vld [vmem:[#allocation2 + $0x101] sm:$0xff]  ;;  %v7918_v42 = vld [vmem:[#allocation2 + $0x70] sm:$0xff] }
  0x5e   : > { %790 = vrot.lane.b32.xlu1 %v633_v62, %s7443_s25  ;;  %792 = vrot.lane.b32.xlu0 %v634_v1, %s7443_s25  ;;  %549 = vst.msk [vmem:[#allocation3 + $0x8] sm:$0xff] %vm225_vm0, %v477_v13  ;;  %458 = vst.msk [vmem:[#allocation2 + $0x261] sm:$0xff] %vm225_vm0, %v385_v15  ;;  %v7923_v43 = vld [vmem:[#allocation2 + $0x90] sm:$0xff]  ;;  %v7930_v45 = vld [vmem:[#allocation2 + $0x88] sm:$0xff] }
  0x5f   : > { %461 = vst.msk [vmem:[#allocation2 + $0x281] sm:$0xff] %vm225_vm0, %v388_v16  ;;  %550 = vst.msk [vmem:[#allocation3 + $0x10] sm:$0xff] %vm225_vm0, %v478_v17  ;;  %v397_v44 = vld [vmem:[%s7721_s24 + $0x210] sm:$0xff]  ;;  %v7935_v47 = vld [vmem:[#allocation2 + $0xa8] sm:$0xff] }
  0x60   : > { %552 = vst.msk [vmem:[#allocation3 + $0x20] sm:$0xff] %vm225_vm0, %v7858_v19  ;;  %460 = vst.msk [vmem:[#allocation2 + $0x271] sm:$0xff] %vm225_vm0, %v387_v20  ;;  %v645_v46 = vld [vmem:[#allocation2 + $0x109] sm:$0xff]  ;;  %v399_v48 = vld [vmem:[%s7721_s24 + $0x220] sm:$0xff] }
  0x61   : > { %463 = vst.msk [vmem:[#allocation2 + $0x291] sm:$0xff] %vm225_vm0, %v390_v21  ;;  %551 = vst.msk [vmem:[#allocation3 + $0x18] sm:$0xff] %vm225_vm0, %v7867_v22  ;;  %v646_v49 = vld [vmem:[#allocation2 + $0x111] sm:$0xff]  ;;  %v7941_v50 = vld [vmem:[#allocation2 + $0xa0] sm:$0xff] }
  0x62   : > { %794 = vrot.lane.b32.xlu1 %v635_v2, %s7443_s25  ;;  %796 = vrot.lane.b32.xlu0 %v636_v3, %s7443_s25  ;;  %554 = vst.msk [vmem:[#allocation3 + $0x30] sm:$0xff] %vm225_vm0, %v7869_v23  ;;  %462 = vst.msk [vmem:[#allocation2 + $0x289] sm:$0xff] %vm225_vm0, %v389_v24  ;;  %v7943_v51 = vld [vmem:[#allocation2 + $0xc0] sm:$0xff]  ;;  %v7950_v52 = vld [vmem:[#allocation2 + $0xb0] sm:$0xff] }
  0x63   : > { %465 = vst.msk [vmem:[#allocation2 + $0x2a9] sm:$0xff] %vm225_vm0, %v392_v25  ;;  %553 = vst.msk [vmem:[#allocation3 + $0x28] sm:$0xff] %vm225_vm0, %v7878_v26  ;;  %v7952_v53 = vld [vmem:[#allocation2 + $0xd0] sm:$0xff]  ;;  %v647_v54 = vld [vmem:[#allocation2 + $0x121] sm:$0xff] }
  0x64   : > { %556 = vst.msk [vmem:[#allocation3 + $0x40] sm:$0xff] %vm225_vm0, %v7880_v27  ;;  %464 = vst.msk [vmem:[#allocation2 + $0x2a1] sm:$0xff] %vm225_vm0, %v391_v28  ;;  %v7959_v55 = vld [vmem:[#allocation2 + $0xc8] sm:$0xff]  ;;  %v7967_v58 = vld [vmem:[#allocation2 + $0xe0] sm:$0xff] }
  0x65   : > { %467 = vst.msk [vmem:[#allocation2 + $0x2c1] sm:$0xff] %vm225_vm0, %v394_v29  ;;  %555 = vst.msk [vmem:[#allocation3 + $0x38] sm:$0xff] %vm225_vm0, %v7890_v30  ;;  %v648_v56 = vld [vmem:[#allocation2 + $0x129] sm:$0xff]  ;;  %v7972_v59 = vld [vmem:[#allocation2 + $0x100] sm:$0xff] }
  0x66   : > { %798 = vrot.lane.b32.xlu1 %v637_v8, %s7443_s25  ;;  %800 = vrot.lane.b32.xlu0 %v638_v7, %s7443_s25  ;;  %558 = vst.msk [vmem:[#allocation3 + $0x50] sm:$0xff] %vm225_vm0, %v7897_v32  ;;  %466 = vst.msk [vmem:[#allocation2 + $0x2b1] sm:$0xff] %vm225_vm0, %v393_v34  ;;  %v7963_v57 = vld [vmem:[#allocation2 + $0xe8] sm:$0xff]  ;;  %v649_v60 = vld [vmem:[#allocation2 + $0x131] sm:$0xff] }
  0x67   : > { %469 = vst.msk [vmem:[#allocation2 + $0x2d1] sm:$0xff] %vm225_vm0, %v396_v35  ;;  %557 = vst.msk [vmem:[#allocation3 + $0x48] sm:$0xff] %vm225_vm0, %v7906_v36  ;;  %v7977_v61 = vld [vmem:[#allocation2 + $0xf0] sm:$0xff]  ;;  %v650_v63 = vld [vmem:[#allocation2 + $0x141] sm:$0xff] }
  0x68   : > { %560 = vst.msk [vmem:[#allocation3 + $0x60] sm:$0xff] %vm225_vm0, %v7911_v38  ;;  %468 = vst.msk [vmem:[#allocation2 + $0x2c9] sm:$0xff] %vm225_vm0, %v395_v39  ;;  %v7979_v62 = vld [vmem:[#allocation2 + $0x110] sm:$0xff]  ;;  %v7985_v1 = vld [vmem:[#allocation2 + $0x108] sm:$0xff] }
  0x69   : > { %471 = vst.msk [vmem:[#allocation2 + $0x2e9] sm:$0xff] %vm225_vm0, %v398_v41  ;;  %559 = vst.msk [vmem:[#allocation3 + $0x58] sm:$0xff] %vm225_vm0, %v7918_v42  ;;  %v7989_v2 = vld [vmem:[#allocation2 + $0x128] sm:$0xff]  ;;  %v7994_v3 = vld [vmem:[#allocation2 + $0x120] sm:$0xff] }
  0x6a   : > { %802 = vrot.lane.b32.xlu1 %v639_v14, %s7443_s25  ;;  %804 = vrot.lane.b32.xlu0 %v640_v18, %s7443_s25  ;;  %562 = vst.msk [vmem:[#allocation3 + $0x70] sm:$0xff] %vm225_vm0, %v7923_v43  ;;  %470 = vst.msk [vmem:[#allocation2 + $0x2e1] sm:$0xff] %vm225_vm0, %v397_v44  ;;  %v7996_v4 = vld [vmem:[#allocation2 + $0x140] sm:$0xff]  ;;  %v651_v5 = vld [vmem:[#allocation2 + $0x149] sm:$0xff] }
  0x6b   : > { %561 = vst.msk [vmem:[#allocation3 + $0x68] sm:$0xff] %vm225_vm0, %v7930_v45  ;;  %564 = vst.msk [vmem:[#allocation3 + $0x80] sm:$0xff] %vm225_vm0, %v7935_v47  ;;  %v8003_v6 = vld [vmem:[#allocation2 + $0x130] sm:$0xff]  ;;  %v8011_v9 = vld [vmem:[#allocation2 + $0x148] sm:$0xff] }
  0x6c   : > { %472 = vst.msk [vmem:[#allocation2 + $0x2f1] sm:$0xff] %vm225_vm0, %v399_v48  ;;  %563 = vst.msk [vmem:[#allocation3 + $0x78] sm:$0xff] %vm225_vm0, %v7941_v50  ;;  %v8005_v7 = vld [vmem:[#allocation2 + $0x150] sm:$0xff]  ;;  %v8015_v10 = vld [vmem:[#allocation2 + $0x168] sm:$0xff] }
  0x6d   : > { %566 = vst.msk [vmem:[#allocation3 + $0x90] sm:$0xff] %vm225_vm0, %v7943_v51  ;;  %565 = vst.msk [vmem:[#allocation3 + $0x88] sm:$0xff] %vm225_vm0, %v7950_v52  ;;  %v652_v8 = vld [vmem:[#allocation2 + $0x151] sm:$0xff]  ;;  %v8020_v11 = vld [vmem:[#allocation2 + $0x160] sm:$0xff] }
  0x6e   : > { %806 = vrot.lane.b32.xlu1 %v641_v31, %s7443_s25  ;;  %808 = vrot.lane.b32.xlu0 %v642_v33, %s7443_s25  ;;  %568 = vst.msk [vmem:[#allocation3 + $0xa0] sm:$0xff] %vm225_vm0, %v7952_v53  ;;  %567 = vst.msk [vmem:[#allocation3 + $0x98] sm:$0xff] %vm225_vm0, %v7959_v55  ;;  %v8022_v12 = vld [vmem:[#allocation2 + $0x180] sm:$0xff]  ;;  %v8029_v14 = vld [vmem:[#allocation2 + $0x170] sm:$0xff] }
  0x6f   : > { %570 = vst.msk [vmem:[#allocation3 + $0xb0] sm:$0xff] %vm225_vm0, %v7963_v57  ;;  %569 = vst.msk [vmem:[#allocation3 + $0xa8] sm:$0xff] %vm225_vm0, %v7967_v58  ;;  %v653_v13 = vld [vmem:[#allocation2 + $0x161] sm:$0xff]  ;;  %v8031_v15 = vld [vmem:[#allocation2 + $0x190] sm:$0xff] }
  0x70   : > { %572 = vst.msk [vmem:[#allocation3 + $0xc0] sm:$0xff] %vm225_vm0, %v7972_v59  ;;  %571 = vst.msk [vmem:[#allocation3 + $0xb8] sm:$0xff] %vm225_vm0, %v7977_v61  ;;  %v654_v16 = vld [vmem:[#allocation2 + $0x169] sm:$0xff]  ;;  %v655_v20 = vld [vmem:[#allocation2 + $0x171] sm:$0xff] }
  0x71   : > { %574 = vst.msk [vmem:[#allocation3 + $0xd0] sm:$0xff] %vm225_vm0, %v7979_v62  ;;  %573 = vst.msk [vmem:[#allocation3 + $0xc8] sm:$0xff] %vm225_vm0, %v7985_v1  ;;  %v8037_v17 = vld [vmem:[#allocation2 + $0x188] sm:$0xff]  ;;  %v8047_v21 = vld [vmem:[#allocation2 + $0x1a0] sm:$0xff] }
  0x72   : > { %810 = vrot.lane.b32.xlu1 %v643_v37, %s7443_s25  ;;  %812 = vrot.lane.b32.xlu0 %v644_v40, %s7443_s25  ;;  %576 = vst.msk [vmem:[#allocation3 + $0xe0] sm:$0xff] %vm225_vm0, %v7989_v2  ;;  %575 = vst.msk [vmem:[#allocation3 + $0xd8] sm:$0xff] %vm225_vm0, %v7994_v3  ;;  %v8041_v18 = vld [vmem:[#allocation2 + $0x1a8] sm:$0xff]  ;;  %v8049_v24 = vld [vmem:[#allocation2 + $0x1c0] sm:$0xff] }
  0x73   : > { %578 = vst.msk [vmem:[#allocation3 + $0xf0] sm:$0xff] %vm225_vm0, %v7996_v4  ;;  %577 = vst.msk [vmem:[#allocation3 + $0xe8] sm:$0xff] %vm225_vm0, %v8003_v6  ;;  %v656_v25 = vld [vmem:[#allocation2 + $0x181] sm:$0xff]  ;;  %v657_v28 = vld [vmem:[#allocation2 + $0x189] sm:$0xff] }
  0x74   : > { %580 = vst.msk [vmem:[#allocation3 + $0x100] sm:$0xff] %vm225_vm0, %v8005_v7  ;;  %579 = vst.msk [vmem:[#allocation3 + $0xf8] sm:$0xff] %vm225_vm0, %v8011_v9  ;;  %v8057_v29 = vld [vmem:[#allocation2 + $0x1b0] sm:$0xff]  ;;  %v659_v34 = vld [vmem:[#allocation2 + $0x1a1] sm:$0xff] }
  0x75   : > { %582 = vst.msk [vmem:[#allocation3 + $0x110] sm:$0xff] %vm225_vm0, %v8015_v10  ;;  %581 = vst.msk [vmem:[#allocation3 + $0x108] sm:$0xff] %vm225_vm0, %v8020_v11  ;;  %v8059_v31 = vld [vmem:[#allocation2 + $0x1d0] sm:$0xff]  ;;  %v8067_v35 = vld [vmem:[#allocation2 + $0x1c8] sm:$0xff] }
  0x76   : > { %814 = vrot.lane.b32.xlu1 %v645_v46, %s7443_s25  ;;  %816 = vrot.lane.b32.xlu0 %v646_v49, %s7443_s25  ;;  %584 = vst.msk [vmem:[#allocation3 + $0x120] sm:$0xff] %vm225_vm0, %v8022_v12  ;;  %583 = vst.msk [vmem:[#allocation3 + $0x118] sm:$0xff] %vm225_vm0, %v8029_v14  ;;  %v658_v33 = vld [vmem:[#allocation2 + $0x191] sm:$0xff]  ;;  %v8069_v37 = vld [vmem:[#allocation2 + $0x1e8] sm:$0xff] }
  0x77   : > { %586 = vst.msk [vmem:[#allocation3 + $0x130] sm:$0xff] %vm225_vm0, %v8031_v15  ;;  %585 = vst.msk [vmem:[#allocation3 + $0x128] sm:$0xff] %vm225_vm0, %v8037_v17  ;;  %v660_v39 = vld [vmem:[#allocation2 + $0x1a9] sm:$0xff]  ;;  %v661_v40 = vld [vmem:[#allocation2 + $0x1b1] sm:$0xff] }
  0x78   : > { %588 = vst.msk [vmem:[#allocation3 + $0x140] sm:$0xff] %vm225_vm0, %v8041_v18  ;;  %587 = vst.msk [vmem:[#allocation3 + $0x138] sm:$0xff] %vm225_vm0, %v8047_v21  ;;  %v8077_v41 = vld [vmem:[#allocation2 + $0x1e0] sm:$0xff]  ;;  %v663_v48 = vld [vmem:[#allocation2 + $0x1c9] sm:$0xff] }
  0x79   : > { %590 = vst.msk [vmem:[#allocation3 + $0x150] sm:$0xff] %vm225_vm0, %v8049_v24  ;;  %589 = vst.msk [vmem:[#allocation3 + $0x148] sm:$0xff] %vm225_vm0, %v8057_v29  ;;  %v8079_v44 = vld [vmem:[#allocation2 + $0x200] sm:$0xff]  ;;  %v8087_v49 = vld [vmem:[#allocation2 + $0x1f0] sm:$0xff] }
  0x7a   : > { %818 = vrot.lane.b32.xlu1 %v647_v54, %s7443_s25  ;;  %820 = vrot.lane.b32.xlu0 %v648_v56, %s7443_s25  ;;  %592 = vst.msk [vmem:[#allocation3 + $0x160] sm:$0xff] %vm225_vm0, %v8059_v31  ;;  %591 = vst.msk [vmem:[#allocation3 + $0x158] sm:$0xff] %vm225_vm0, %v8067_v35  ;;  %v662_v46 = vld [vmem:[#allocation2 + $0x1c1] sm:$0xff]  ;;  %v8089_v54 = vld [vmem:[#allocation2 + $0x210] sm:$0xff] }
  0x7b   : > { %594 = vst.msk [vmem:[#allocation3 + $0x170] sm:$0xff] %vm225_vm0, %v8069_v37  ;;  %593 = vst.msk [vmem:[#allocation3 + $0x168] sm:$0xff] %vm225_vm0, %v8077_v41  ;;  %v664_v56 = vld [vmem:[#allocation2 + $0x1d1] sm:$0xff]  ;;  %v8157_v0 = vld [vmem:[#allocation2 + $0x288] sm:$0xff] }
  0x7c   : > { %596 = vst.msk [vmem:[#allocation3 + $0x180] sm:$0xff] %vm225_vm0, %v8079_v44  ;;  %595 = vst.msk [vmem:[#allocation3 + $0x178] sm:$0xff] %vm225_vm0, %v8087_v49 }
  0x7d   : > { %598 = vst.msk [vmem:[#allocation3 + $0x190] sm:$0xff] %vm225_vm0, %v8089_v54  ;;  %10434 = vst [vmem:[#allocation14_spill] sm:$0xff] %v8157_v0 }
  0x7e   : > { %822 = vrot.lane.b32.xlu1 %v649_v60, %s7443_s25  ;;  %824 = vrot.lane.b32.xlu0 %v650_v63, %s7443_s25  ;;  %v665_v60 = vld [vmem:[#allocation2 + $0x1e1] sm:$0xff]  ;;  %609 = vst.msk [vmem:[#allocation3 + $0x1e8] sm:$0xff] %vm225_vm0, %v8157_v0  ;;  %vm7372_vm9 = vmpackc.low %vm4385_vm7, %vm7450_vm8  ;;  %vm6330_vm7 = vcmask 523712   ;;  %vm6475_vm8 = vcmask 589312  }
  0x7f   : > { %v8097_v63 = vld [vmem:[#allocation2 + $0x208] sm:$0xff] }
  0x80   : > { %597 = vst.msk [vmem:[#allocation3 + $0x188] sm:$0xff] %vm225_vm0, %v8097_v63 }
  0x82   : > { %826 = vrot.lane.b32.xlu1 %v651_v5, %s7443_s25  ;;  %828 = vrot.lane.b32.xlu0 %v652_v8, %s7443_s25  ;;  %v8099_v5 = vld [vmem:[#allocation2 + $0x228] sm:$0xff] }
  0x83   : > { %v666_v8 = vld [vmem:[#allocation2 + $0x1e9] sm:$0xff]  ;;  %600 = vst.msk [vmem:[#allocation3 + $0x1a0] sm:$0xff] %vm225_vm0, %v8099_v5 }
  0x86   : > { %830 = vrot.lane.b32.xlu1 %v653_v13, %s7443_s25  ;;  %832 = vrot.lane.b32.xlu0 %v654_v16, %s7443_s25  ;;  %v667_v13 = vld [vmem:[#allocation2 + $0x1f1] sm:$0xff]  ;;  %v8107_v16 = vld [vmem:[#allocation2 + $0x220] sm:$0xff] }
  0x87   : > { %599 = vst.msk [vmem:[#allocation3 + $0x198] sm:$0xff] %vm225_vm0, %v8107_v16 }
  0x8a   : > { %834 = vrot.lane.b32.xlu1 %v655_v20, %s7443_s25  ;;  %836 = vrot.lane.b32.xlu0 %v656_v25, %s7443_s25  ;;  %v8109_v20 = vld [vmem:[#allocation2 + $0x240] sm:$0xff] }
  0x8b   : > { %v668_v25 = vld [vmem:[#allocation2 + $0x201] sm:$0xff]  ;;  %602 = vst.msk [vmem:[#allocation3 + $0x1b0] sm:$0xff] %vm225_vm0, %v8109_v20 }
  0x8e   : > { %838 = vrot.lane.b32.xlu1 %v657_v28, %s7443_s25  ;;  %840 = vrot.lane.b32.xlu0 %v658_v33, %s7443_s25  ;;  %v669_v28 = vld [vmem:[#allocation2 + $0x209] sm:$0xff] }
  0x8f   : > { %v8117_v33 = vld [vmem:[#allocation2 + $0x230] sm:$0xff] }
  0x90   : > { %601 = vst.msk [vmem:[#allocation3 + $0x1a8] sm:$0xff] %vm225_vm0, %v8117_v33 }
  0x92   : > { %842 = vrot.lane.b32.xlu1 %v659_v34, %s7443_s25  ;;  %844 = vrot.lane.b32.xlu0 %v660_v39, %s7443_s25  ;;  %v8119_v34 = vld [vmem:[#allocation2 + $0x250] sm:$0xff] }
  0x93   : > { %10428 = vst [vmem:[#allocation8_spill] sm:$0xff] %v8119_v34  ;;  %v670_v39 = vld [vmem:[#allocation2 + $0x211] sm:$0xff]  ;;  %604 = vst.msk [vmem:[#allocation3 + $0x1c0] sm:$0xff] %vm225_vm0, %v8119_v34 }
  0x96   : > { %846 = vrot.lane.b32.xlu1 %v661_v40, %s7443_s25  ;;  %848 = vrot.lane.b32.xlu0 %v662_v46, %s7443_s25  ;;  %v671_v40 = vld [vmem:[#allocation2 + $0x221] sm:$0xff] }
  0x97   : > { %v8127_v46 = vld [vmem:[#allocation2 + $0x248] sm:$0xff] }
  0x98   : > { %603 = vst.msk [vmem:[#allocation3 + $0x1b8] sm:$0xff] %vm225_vm0, %v8127_v46 }
  0x9a   : > { %850 = vrot.lane.b32.xlu1 %v663_v48, %s7443_s25  ;;  %852 = vrot.lane.b32.xlu0 %v664_v56, %s7443_s25  ;;  %v8129_v48 = vld [vmem:[#allocation2 + $0x268] sm:$0xff] }
  0x9b   : > { %10429 = vst [vmem:[#allocation9_spill] sm:$0xff] %v8129_v48  ;;  %v672_v56 = vld [vmem:[#allocation2 + $0x229] sm:$0xff]  ;;  %606 = vst.msk [vmem:[#allocation3 + $0x1d0] sm:$0xff] %vm225_vm0, %v8129_v48 }
  0x9e   : > { %854 = vrot.lane.b32.xlu1 %v665_v60, %s7443_s25  ;;  %856 = vrot.lane.b32.xlu0 %v666_v8, %s7443_s25  ;;  %v673_v60 = vld [vmem:[#allocation2 + $0x231] sm:$0xff]  ;;  %v8137_v8 = vld [vmem:[#allocation2 + $0x260] sm:$0xff] }
  0x9f   : > { %10430 = vst [vmem:[#allocation10_spill] sm:$0xff] %v8137_v8  ;;  %605 = vst.msk [vmem:[#allocation3 + $0x1c8] sm:$0xff] %vm225_vm0, %v8137_v8  ;;  %v680_v8 = vld [vmem:[#allocation2 + $0x281] sm:$0xff] }
  0xa2   : > { %858 = vrot.lane.b32.xlu1 %v667_v13, %s7443_s25  ;;  %860 = vrot.lane.b32.xlu0 %v668_v25, %s7443_s25  ;;  %v8139_v13 = vld [vmem:[#allocation2 + $0x280] sm:$0xff] }
  0xa3   : > { %10431 = vst [vmem:[#allocation11_spill] sm:$0xff] %v8139_v13  ;;  %v674_v25 = vld [vmem:[#allocation2 + $0x241] sm:$0xff]  ;;  %608 = vst.msk [vmem:[#allocation3 + $0x1e0] sm:$0xff] %vm225_vm0, %v8139_v13  ;;  %v678_v13 = vld [vmem:[#allocation2 + $0x269] sm:$0xff] }
  0xa6   : > { %862 = vrot.lane.b32.xlu1 %v669_v28, %s7443_s25  ;;  %864 = vrot.lane.b32.xlu0 %v670_v39, %s7443_s25  ;;  %v675_v28 = vld [vmem:[#allocation2 + $0x249] sm:$0xff] }
  0xa7   : > { %v8147_v39 = vld [vmem:[#allocation2 + $0x270] sm:$0xff] }
  0xa8   : > { %10432 = vst [vmem:[#allocation12_spill] sm:$0xff] %v8147_v39  ;;  %607 = vst.msk [vmem:[#allocation3 + $0x1d8] sm:$0xff] %vm225_vm0, %v8147_v39  ;;  %v765_v39 = vpop.permute.xlu0 %764 }
  0xa9   : > { %981 = vst.msk [vmem:[#allocation3] sm:$0xff] %vm980_vm2, %v765_v39  ;;  %v8182_v39 = vld [vmem:[#allocation2 + $0x2d0] sm:$0xff] }
  0xaa   : > { %866 = vrot.lane.b32.xlu1 %v671_v40, %s7443_s25  ;;  %868 = vrot.lane.b32.xlu0 %v672_v56, %s7443_s25  ;;  %v8149_v40 = vld [vmem:[#allocation2 + $0x290] sm:$0xff]  ;;  %10438 = vst [vmem:[#allocation18_spill] sm:$0xff] %v8182_v39  ;;  %616 = vst.msk [vmem:[#allocation3 + $0x220] sm:$0xff] %vm225_vm0, %v8182_v39 }
  0xab   : > { %10433 = vst [vmem:[#allocation13_spill] sm:$0xff] %v8149_v40  ;;  %v676_v56 = vld [vmem:[#allocation2 + $0x251] sm:$0xff]  ;;  %610 = vst.msk [vmem:[#allocation3 + $0x1f0] sm:$0xff] %vm225_vm0, %v8149_v40  ;;  %v8171_v40 = vld [vmem:[#allocation2 + $0x2c0] sm:$0xff] }
  0xac   : > { %10437 = vst [vmem:[#allocation17_spill] sm:$0xff] %v8171_v40  ;;  %614 = vst.msk [vmem:[#allocation3 + $0x210] sm:$0xff] %vm225_vm0, %v8171_v40 }
  0xae   : > { %870 = vrot.lane.b32.xlu1 %v673_v60, %s7443_s25  ;;  %872 = vrot.lane.b32.xlu0 %v674_v25, %s7443_s25  ;;  %v677_v60 = vld [vmem:[#allocation2 + $0x261] sm:$0xff] }
  0xaf   : > { %v8159_v25 = vld [vmem:[#allocation2 + $0x2a8] sm:$0xff]  ;;  %v769_v48 = vpop.permute.xlu1 %768 }
  0xb0   : > { %10435 = vst [vmem:[#allocation15_spill] sm:$0xff] %v8159_v25  ;;  %612 = vst.msk [vmem:[#allocation3 + $0x200] sm:$0xff] %vm225_vm0, %v8159_v25  ;;  %v767_v25 = vpop.permute.xlu0 %766 }
  0xb1   : > { %983 = vst.msk [vmem:[#allocation3 + $0x10] sm:$0xff] %vm980_vm2, %v769_v48  ;;  %982 = vst.msk [vmem:[#allocation3 + $0x8] sm:$0xff] %vm980_vm2, %v767_v25  ;;  %v681_v48 = vld [vmem:[#allocation2 + $0x289] sm:$0xff] }
  0xb2   : > { %874 = vrot.lane.b32.xlu1 %v675_v28, %s7443_s25  ;;  %876 = vrot.lane.b32.xlu0 %v676_v56, %s7443_s25  ;;  %v679_v28 = vld [vmem:[#allocation2 + $0x271] sm:$0xff]  ;;  %v8169_v56 = vld [vmem:[#allocation2 + $0x2a0] sm:$0xff]  ;;  %v8192_v25 = vld [vmem:[#allocation2 + $0x2c8] sm:$0xff] }
  0xb3   : > { %10436 = vst [vmem:[#allocation16_spill] sm:$0xff] %v8169_v56  ;;  %611 = vst.msk [vmem:[#allocation3 + $0x1f8] sm:$0xff] %vm225_vm0, %v8169_v56  ;;  %v684_v56 = vld [vmem:[#allocation2 + $0x2a9] sm:$0xff] }
  0xb4   : > { %10439 = vst [vmem:[#allocation19_spill] sm:$0xff] %v8192_v25  ;;  %615 = vst.msk [vmem:[#allocation3 + $0x218] sm:$0xff] %vm225_vm0, %v8192_v25 }
  0xb6   : > { %878 = vrot.lane.b32.xlu1 %v677_v60, %s7443_s25  ;;  %880 = vrot.lane.b32.xlu0 %v678_v13, %s7443_s25  ;;  %v8180_v13 = vld [vmem:[#allocation2 + $0x2b0] sm:$0xff] }
  0xb7   : > { %v682_v60 = vld [vmem:[#allocation2 + $0x291] sm:$0xff]  ;;  %613 = vst.msk [vmem:[#allocation3 + $0x208] sm:$0xff] %vm225_vm0, %v8180_v13 }
  0xba   : > { %882 = vrot.lane.b32.xlu1 %v679_v28, %s7443_s25  ;;  %884 = vrot.lane.b32.xlu0 %v680_v8, %s7443_s25  ;;  %v683_v8 = vld [vmem:[#allocation2 + $0x2a1] sm:$0xff] }
  0xbb   : > { %v8194_v28 = vld [vmem:[#allocation2 + $0x2e8] sm:$0xff] }
  0xbc   : > { %v771_v0 = vpop.permute.xlu1 %770  ;;  %v773_v40 = vpop.permute.xlu0 %772  ;;  %10440 = vst [vmem:[#allocation20_spill] sm:$0xff] %v8194_v28  ;;  %618 = vst.msk [vmem:[#allocation3 + $0x230] sm:$0xff] %vm225_vm0, %v8194_v28 }
  0xbd   : > { %984 = vst.msk [vmem:[#allocation3 + $0x18] sm:$0xff] %vm980_vm2, %v771_v0  ;;  %985 = vst.msk [vmem:[#allocation3 + $0x20] sm:$0xff] %vm980_vm2, %v773_v40  ;;  %v685_v40 = vld [vmem:[#allocation2 + $0x2b1] sm:$0xff] }
  0xbe   : > { %886 = vrot.lane.b32.xlu1 %v681_v48, %s7443_s25  ;;  %888 = vrot.lane.b32.xlu0 %v682_v60, %s7443_s25  ;;  %v8204_v48 = vld [vmem:[#allocation2 + $0x2e0] sm:$0xff] }
  0xbf   : > { %10441 = vst [vmem:[#allocation21_spill] sm:$0xff] %v8204_v48  ;;  %v686_v60 = vld [vmem:[#allocation2 + $0x2c1] sm:$0xff]  ;;  %617 = vst.msk [vmem:[#allocation3 + $0x228] sm:$0xff] %vm225_vm0, %v8204_v48 }
  0xc0   : > { %v775_v34 = vpop.permute.xlu1 %774  ;;  %v777_v0 = vpop.permute.xlu0 %776 }
  0xc1   : > { %986 = vst.msk [vmem:[#allocation3 + $0x28] sm:$0xff] %vm980_vm2, %v775_v34  ;;  %987 = vst.msk [vmem:[#allocation3 + $0x30] sm:$0xff] %vm980_vm2, %v777_v0  ;;  %v687_v34 = vld [vmem:[#allocation2 + $0x2c9] sm:$0xff] }
  0xc2   : > { %890 = vrot.lane.b32.xlu1 %v683_v8, %s7443_s25  ;;  %892 = vrot.lane.b32.xlu0 %v684_v56, %s7443_s25  ;;  %v8212_v8 = vld [vmem:[#allocation2 + $0x2f0] sm:$0xff] }
  0xc3   : > { %10442 = vst [vmem:[#allocation22_spill] sm:$0xff] %v8212_v8  ;;  %v688_v56 = vld [vmem:[#allocation2 + $0x2d1] sm:$0xff]  ;;  %619 = vst.msk [vmem:[#allocation3 + $0x238] sm:$0xff] %vm225_vm0, %v8212_v8 }
  0xc4   : > { %v779_v39 = vpop.permute.xlu1 %778  ;;  %v781_v25 = vpop.permute.xlu0 %780  ;;  %v691_v8 = vld [vmem:[#allocation2 + $0x2f1] sm:$0xff] }
  0xc5   : > { %988 = vst.msk [vmem:[#allocation3 + $0x38] sm:$0xff] %vm980_vm2, %v779_v39  ;;  %989 = vst.msk [vmem:[#allocation3 + $0x40] sm:$0xff] %vm980_vm2, %v781_v25  ;;  %v689_v39 = vld [vmem:[#allocation2 + $0x2e1] sm:$0xff]  ;;  %v690_v25 = vld [vmem:[#allocation2 + $0x2e9] sm:$0xff] }
  0xc6   : > { %894 = vrot.lane.b32.xlu1 %v685_v40, %s7443_s25  ;;  %896 = vrot.lane.b32.xlu0 %v686_v60, %s7443_s25 }
  0xc8   : > { %v783_v0 = vpop.permute.xlu1 %782  ;;  %v785_v28 = vpop.permute.xlu0 %784 }
  0xc9   : > { %990 = vst.msk [vmem:[#allocation3 + $0x48] sm:$0xff] %vm980_vm2, %v783_v0  ;;  %991 = vst.msk [vmem:[#allocation3 + $0x50] sm:$0xff] %vm980_vm2, %v785_v28  ;;  %v1053_v0 = vld [vmem:[#allocation2 + $0x2] sm:$0xff] }
  0xca   : > { %898 = vrot.lane.b32.xlu1 %v687_v34, %s7443_s25  ;;  %900 = vrot.lane.b32.xlu0 %v688_v56, %s7443_s25  ;;  %v1054_v34 = vld [vmem:[#allocation2 + $0xa] sm:$0xff]  ;;  %v1055_v56 = vld [vmem:[#allocation2 + $0x12] sm:$0xff] }
  0xcc   : > { %v787_v40 = vpop.permute.xlu1 %786  ;;  %v789_v60 = vpop.permute.xlu0 %788 }
  0xcd   : > { %992 = vst.msk [vmem:[#allocation3 + $0x58] sm:$0xff] %vm980_vm2, %v787_v40  ;;  %993 = vst.msk [vmem:[#allocation3 + $0x60] sm:$0xff] %vm980_vm2, %v789_v60 }
  0xce   : > { %902 = vrot.lane.b32.xlu1 %v689_v39, %s7443_s25  ;;  %904 = vrot.lane.b32.xlu0 %v690_v25, %s7443_s25  ;;  %v1057_v39 = vld [vmem:[#allocation2 + $0x2a] sm:$0xff] }
  0xd0   : > { %v791_v48 = vpop.permute.xlu1 %790  ;;  %v793_v28 = vpop.permute.xlu0 %792 }
  0xd1   : > { %994 = vst.msk [vmem:[#allocation3 + $0x68] sm:$0xff] %vm980_vm2, %v791_v48  ;;  %995 = vst.msk [vmem:[#allocation3 + $0x70] sm:$0xff] %vm980_vm2, %v793_v28  ;;  %v1056_v48 = vld [vmem:[#allocation2 + $0x22] sm:$0xff] }
  0xd2   : > { %906 = vrot.lane.b32.xlu1 %v691_v8, %s7443_s25  ;;  %1197 = vrot.lane.b32.xlu0 %v1053_v0, %s7444_s26  ;;  %v1058_v8 = vld [vmem:[#allocation2 + $0x32] sm:$0xff]  ;;  %v1059_v0 = vld [vmem:[#allocation2 + $0x42] sm:$0xff]  ;;  %s7455_s25 = smov 40  }
  0xd4   : > { %v795_v40 = vpop.permute.xlu1 %794  ;;  %v797_v60 = vpop.permute.xlu0 %796 }
  0xd5   : > { %996 = vst.msk [vmem:[#allocation3 + $0x78] sm:$0xff] %vm980_vm2, %v795_v40  ;;  %997 = vst.msk [vmem:[#allocation3 + $0x80] sm:$0xff] %vm980_vm2, %v797_v60 }
  0xd6   : > { %1199 = vrot.lane.b32.xlu1 %v1054_v34, %s7444_s26  ;;  %1201 = vrot.lane.b32.xlu0 %v1055_v56, %s7444_s26  ;;  %v1060_v34 = vld [vmem:[#allocation2 + $0x4a] sm:$0xff]  ;;  %v1061_v56 = vld [vmem:[#allocation2 + $0x52] sm:$0xff] }
  0xd8   : > { %v799_v25 = vpop.permute.xlu1 %798  ;;  %v801_v28 = vpop.permute.xlu0 %800 }
  0xd9   : > { %998 = vst.msk [vmem:[#allocation3 + $0x88] sm:$0xff] %vm980_vm2, %v799_v25  ;;  %999 = vst.msk [vmem:[#allocation3 + $0x90] sm:$0xff] %vm980_vm2, %v801_v28 }
  0xda   : > { %1203 = vrot.lane.b32.xlu1 %v1056_v48, %s7444_s26  ;;  %1205 = vrot.lane.b32.xlu0 %v1057_v39, %s7444_s26  ;;  %v1062_v48 = vld [vmem:[#allocation2 + $0x62] sm:$0xff]  ;;  %v1063_v39 = vld [vmem:[#allocation2 + $0x6a] sm:$0xff] }
  0xdc   : > { %v803_v40 = vpop.permute.xlu1 %802  ;;  %v805_v60 = vpop.permute.xlu0 %804 }
  0xdd   : > { %1000 = vst.msk [vmem:[#allocation3 + $0x98] sm:$0xff] %vm980_vm2, %v803_v40  ;;  %1001 = vst.msk [vmem:[#allocation3 + $0xa0] sm:$0xff] %vm980_vm2, %v805_v60 }
  0xde   : > { %1207 = vrot.lane.b32.xlu1 %v1058_v8, %s7444_s26  ;;  %1209 = vrot.lane.b32.xlu0 %v1059_v0, %s7444_s26  ;;  %v1064_v8 = vld [vmem:[#allocation2 + $0x72] sm:$0xff]  ;;  %v1065_v0 = vld [vmem:[#allocation2 + $0x82] sm:$0xff] }
  0xe0   : > { %v807_v25 = vpop.permute.xlu1 %806  ;;  %v809_v28 = vpop.permute.xlu0 %808 }
  0xe1   : > { %1002 = vst.msk [vmem:[#allocation3 + $0xa8] sm:$0xff] %vm980_vm2, %v807_v25  ;;  %1003 = vst.msk [vmem:[#allocation3 + $0xb0] sm:$0xff] %vm980_vm2, %v809_v28 }
  0xe2   : > { %1211 = vrot.lane.b32.xlu1 %v1060_v34, %s7444_s26  ;;  %1213 = vrot.lane.b32.xlu0 %v1061_v56, %s7444_s26  ;;  %v1066_v34 = vld [vmem:[#allocation2 + $0x8a] sm:$0xff]  ;;  %v1067_v56 = vld [vmem:[#allocation2 + $0x92] sm:$0xff] }
  0xe4   : > { %v811_v40 = vpop.permute.xlu1 %810  ;;  %v813_v60 = vpop.permute.xlu0 %812 }
  0xe5   : > { %1004 = vst.msk [vmem:[#allocation3 + $0xb8] sm:$0xff] %vm980_vm2, %v811_v40  ;;  %1005 = vst.msk [vmem:[#allocation3 + $0xc0] sm:$0xff] %vm980_vm2, %v813_v60 }
  0xe6   : > { %1215 = vrot.lane.b32.xlu1 %v1062_v48, %s7444_s26  ;;  %1217 = vrot.lane.b32.xlu0 %v1063_v39, %s7444_s26  ;;  %v1068_v48 = vld [vmem:[#allocation2 + $0xa2] sm:$0xff]  ;;  %v1069_v39 = vld [vmem:[#allocation2 + $0xaa] sm:$0xff] }
  0xe8   : > { %v815_v25 = vpop.permute.xlu1 %814  ;;  %v817_v28 = vpop.permute.xlu0 %816 }
  0xe9   : > { %1006 = vst.msk [vmem:[#allocation3 + $0xc8] sm:$0xff] %vm980_vm2, %v815_v25  ;;  %1007 = vst.msk [vmem:[#allocation3 + $0xd0] sm:$0xff] %vm980_vm2, %v817_v28 }
  0xea   : > { %1219 = vrot.lane.b32.xlu1 %v1064_v8, %s7444_s26  ;;  %1221 = vrot.lane.b32.xlu0 %v1065_v0, %s7444_s26  ;;  %v1070_v8 = vld [vmem:[#allocation2 + $0xb2] sm:$0xff]  ;;  %v1071_v0 = vld [vmem:[#allocation2 + $0xc2] sm:$0xff] }
  0xec   : > { %v819_v40 = vpop.permute.xlu1 %818  ;;  %v821_v60 = vpop.permute.xlu0 %820 }
  0xed   : > { %1008 = vst.msk [vmem:[#allocation3 + $0xd8] sm:$0xff] %vm980_vm2, %v819_v40  ;;  %1009 = vst.msk [vmem:[#allocation3 + $0xe0] sm:$0xff] %vm980_vm2, %v821_v60 }
  0xee   : > { %1223 = vrot.lane.b32.xlu1 %v1066_v34, %s7444_s26  ;;  %1225 = vrot.lane.b32.xlu0 %v1067_v56, %s7444_s26  ;;  %v1072_v34 = vld [vmem:[#allocation2 + $0xca] sm:$0xff]  ;;  %v1073_v56 = vld [vmem:[#allocation2 + $0xd2] sm:$0xff] }
  0xf0   : > { %v823_v25 = vpop.permute.xlu1 %822  ;;  %v825_v28 = vpop.permute.xlu0 %824 }
  0xf1   : > { %1010 = vst.msk [vmem:[#allocation3 + $0xe8] sm:$0xff] %vm980_vm2, %v823_v25  ;;  %1011 = vst.msk [vmem:[#allocation3 + $0xf0] sm:$0xff] %vm980_vm2, %v825_v28 }
  0xf2   : > { %1227 = vrot.lane.b32.xlu1 %v1068_v48, %s7444_s26  ;;  %1229 = vrot.lane.b32.xlu0 %v1069_v39, %s7444_s26  ;;  %v1074_v48 = vld [vmem:[#allocation2 + $0xe2] sm:$0xff]  ;;  %v1075_v39 = vld [vmem:[#allocation2 + $0xea] sm:$0xff] }
  0xf4   : > { %v827_v40 = vpop.permute.xlu1 %826  ;;  %v829_v60 = vpop.permute.xlu0 %828 }
  0xf5   : > { %1012 = vst.msk [vmem:[#allocation3 + $0xf8] sm:$0xff] %vm980_vm2, %v827_v40  ;;  %1013 = vst.msk [vmem:[#allocation3 + $0x100] sm:$0xff] %vm980_vm2, %v829_v60 }
  0xf6   : > { %1231 = vrot.lane.b32.xlu1 %v1070_v8, %s7444_s26  ;;  %1233 = vrot.lane.b32.xlu0 %v1071_v0, %s7444_s26  ;;  %v1076_v8 = vld [vmem:[#allocation2 + $0xf2] sm:$0xff]  ;;  %v1077_v0 = vld [vmem:[#allocation2 + $0x102] sm:$0xff] }
  0xf8   : > { %v831_v25 = vpop.permute.xlu1 %830  ;;  %v833_v28 = vpop.permute.xlu0 %832 }
  0xf9   : > { %1014 = vst.msk [vmem:[#allocation3 + $0x108] sm:$0xff] %vm980_vm2, %v831_v25  ;;  %1015 = vst.msk [vmem:[#allocation3 + $0x110] sm:$0xff] %vm980_vm2, %v833_v28 }
  0xfa   : > { %1235 = vrot.lane.b32.xlu1 %v1072_v34, %s7444_s26  ;;  %1237 = vrot.lane.b32.xlu0 %v1073_v56, %s7444_s26  ;;  %v1078_v34 = vld [vmem:[#allocation2 + $0x10a] sm:$0xff]  ;;  %v1079_v56 = vld [vmem:[#allocation2 + $0x112] sm:$0xff] }
  0xfc   : > { %v835_v40 = vpop.permute.xlu1 %834  ;;  %v837_v60 = vpop.permute.xlu0 %836 }
  0xfd   : > { %1016 = vst.msk [vmem:[#allocation3 + $0x118] sm:$0xff] %vm980_vm2, %v835_v40  ;;  %1017 = vst.msk [vmem:[#allocation3 + $0x120] sm:$0xff] %vm980_vm2, %v837_v60 }
  0xfe   : > { %1239 = vrot.lane.b32.xlu1 %v1074_v48, %s7444_s26  ;;  %1241 = vrot.lane.b32.xlu0 %v1075_v39, %s7444_s26  ;;  %v1080_v48 = vld [vmem:[#allocation2 + $0x122] sm:$0xff]  ;;  %v1081_v39 = vld [vmem:[#allocation2 + $0x12a] sm:$0xff] }
 0x100   : > { %v839_v25 = vpop.permute.xlu1 %838  ;;  %v841_v28 = vpop.permute.xlu0 %840 }
 0x101   : > { %1018 = vst.msk [vmem:[#allocation3 + $0x128] sm:$0xff] %vm980_vm2, %v839_v25  ;;  %1019 = vst.msk [vmem:[#allocation3 + $0x130] sm:$0xff] %vm980_vm2, %v841_v28 }
 0x102   : > { %1243 = vrot.lane.b32.xlu1 %v1076_v8, %s7444_s26  ;;  %1245 = vrot.lane.b32.xlu0 %v1077_v0, %s7444_s26  ;;  %v1082_v8 = vld [vmem:[#allocation2 + $0x132] sm:$0xff]  ;;  %v1083_v0 = vld [vmem:[#allocation2 + $0x142] sm:$0xff] }
 0x104   : > { %v843_v40 = vpop.permute.xlu1 %842  ;;  %v845_v60 = vpop.permute.xlu0 %844 }
 0x105   : > { %1020 = vst.msk [vmem:[#allocation3 + $0x138] sm:$0xff] %vm980_vm2, %v843_v40  ;;  %1021 = vst.msk [vmem:[#allocation3 + $0x140] sm:$0xff] %vm980_vm2, %v845_v60 }
 0x106   : > { %1247 = vrot.lane.b32.xlu1 %v1078_v34, %s7444_s26  ;;  %1249 = vrot.lane.b32.xlu0 %v1079_v56, %s7444_s26  ;;  %v1084_v34 = vld [vmem:[#allocation2 + $0x14a] sm:$0xff]  ;;  %v1085_v56 = vld [vmem:[#allocation2 + $0x152] sm:$0xff] }
 0x108   : > { %v847_v25 = vpop.permute.xlu1 %846  ;;  %v849_v28 = vpop.permute.xlu0 %848 }
 0x109   : > { %1022 = vst.msk [vmem:[#allocation3 + $0x148] sm:$0xff] %vm980_vm2, %v847_v25  ;;  %1023 = vst.msk [vmem:[#allocation3 + $0x150] sm:$0xff] %vm980_vm2, %v849_v28 }
 0x10a   : > { %1251 = vrot.lane.b32.xlu1 %v1080_v48, %s7444_s26  ;;  %1253 = vrot.lane.b32.xlu0 %v1081_v39, %s7444_s26  ;;  %v1086_v48 = vld [vmem:[#allocation2 + $0x162] sm:$0xff]  ;;  %v1087_v39 = vld [vmem:[#allocation2 + $0x16a] sm:$0xff] }
 0x10c   : > { %v851_v40 = vpop.permute.xlu1 %850  ;;  %v853_v60 = vpop.permute.xlu0 %852 }
 0x10d   : > { %1024 = vst.msk [vmem:[#allocation3 + $0x158] sm:$0xff] %vm980_vm2, %v851_v40  ;;  %1025 = vst.msk [vmem:[#allocation3 + $0x160] sm:$0xff] %vm980_vm2, %v853_v60 }
 0x10e   : > { %1255 = vrot.lane.b32.xlu1 %v1082_v8, %s7444_s26  ;;  %1257 = vrot.lane.b32.xlu0 %v1083_v0, %s7444_s26  ;;  %v1088_v8 = vld [vmem:[#allocation2 + $0x172] sm:$0xff]  ;;  %v1089_v0 = vld [vmem:[#allocation2 + $0x182] sm:$0xff] }
 0x110   : > { %v855_v25 = vpop.permute.xlu1 %854  ;;  %v857_v28 = vpop.permute.xlu0 %856 }
 0x111   : > { %1026 = vst.msk [vmem:[#allocation3 + $0x168] sm:$0xff] %vm980_vm2, %v855_v25  ;;  %1027 = vst.msk [vmem:[#allocation3 + $0x170] sm:$0xff] %vm980_vm2, %v857_v28 }
 0x112   : > { %1259 = vrot.lane.b32.xlu1 %v1084_v34, %s7444_s26  ;;  %1261 = vrot.lane.b32.xlu0 %v1085_v56, %s7444_s26  ;;  %v1090_v34 = vld [vmem:[#allocation2 + $0x18a] sm:$0xff]  ;;  %v1091_v56 = vld [vmem:[#allocation2 + $0x192] sm:$0xff] }
 0x114   : > { %v859_v40 = vpop.permute.xlu1 %858  ;;  %v861_v60 = vpop.permute.xlu0 %860 }
 0x115   : > { %1028 = vst.msk [vmem:[#allocation3 + $0x178] sm:$0xff] %vm980_vm2, %v859_v40  ;;  %1029 = vst.msk [vmem:[#allocation3 + $0x180] sm:$0xff] %vm980_vm2, %v861_v60 }
 0x116   : > { %1263 = vrot.lane.b32.xlu1 %v1086_v48, %s7444_s26  ;;  %1265 = vrot.lane.b32.xlu0 %v1087_v39, %s7444_s26  ;;  %v1092_v48 = vld [vmem:[#allocation2 + $0x1a2] sm:$0xff]  ;;  %v1093_v39 = vld [vmem:[#allocation2 + $0x1aa] sm:$0xff] }
 0x118   : > { %v863_v25 = vpop.permute.xlu1 %862  ;;  %v865_v28 = vpop.permute.xlu0 %864 }
 0x119   : > { %1030 = vst.msk [vmem:[#allocation3 + $0x188] sm:$0xff] %vm980_vm2, %v863_v25  ;;  %1031 = vst.msk [vmem:[#allocation3 + $0x190] sm:$0xff] %vm980_vm2, %v865_v28 }
 0x11a   : > { %1267 = vrot.lane.b32.xlu1 %v1088_v8, %s7444_s26  ;;  %1269 = vrot.lane.b32.xlu0 %v1089_v0, %s7444_s26  ;;  %v1094_v8 = vld [vmem:[#allocation2 + $0x1b2] sm:$0xff]  ;;  %v1095_v0 = vld [vmem:[#allocation2 + $0x1c2] sm:$0xff] }
 0x11c   : > { %v867_v40 = vpop.permute.xlu1 %866  ;;  %v869_v60 = vpop.permute.xlu0 %868 }
 0x11d   : > { %1032 = vst.msk [vmem:[#allocation3 + $0x198] sm:$0xff] %vm980_vm2, %v867_v40  ;;  %1033 = vst.msk [vmem:[#allocation3 + $0x1a0] sm:$0xff] %vm980_vm2, %v869_v60 }
 0x11e   : > { %1271 = vrot.lane.b32.xlu1 %v1090_v34, %s7444_s26  ;;  %1273 = vrot.lane.b32.xlu0 %v1091_v56, %s7444_s26  ;;  %v1096_v34 = vld [vmem:[#allocation2 + $0x1ca] sm:$0xff]  ;;  %v1097_v56 = vld [vmem:[#allocation2 + $0x1d2] sm:$0xff] }
 0x120   : > { %v871_v25 = vpop.permute.xlu1 %870  ;;  %v873_v28 = vpop.permute.xlu0 %872 }
 0x121   : > { %1034 = vst.msk [vmem:[#allocation3 + $0x1a8] sm:$0xff] %vm980_vm2, %v871_v25  ;;  %1035 = vst.msk [vmem:[#allocation3 + $0x1b0] sm:$0xff] %vm980_vm2, %v873_v28 }
 0x122   : > { %1275 = vrot.lane.b32.xlu1 %v1092_v48, %s7444_s26  ;;  %1277 = vrot.lane.b32.xlu0 %v1093_v39, %s7444_s26  ;;  %v1098_v48 = vld [vmem:[#allocation2 + $0x1e2] sm:$0xff]  ;;  %v1099_v39 = vld [vmem:[#allocation2 + $0x1ea] sm:$0xff] }
 0x124   : > { %v875_v40 = vpop.permute.xlu1 %874  ;;  %v877_v60 = vpop.permute.xlu0 %876 }
 0x125   : > { %1036 = vst.msk [vmem:[#allocation3 + $0x1b8] sm:$0xff] %vm980_vm2, %v875_v40  ;;  %1037 = vst.msk [vmem:[#allocation3 + $0x1c0] sm:$0xff] %vm980_vm2, %v877_v60 }
 0x126   : > { %1279 = vrot.lane.b32.xlu1 %v1094_v8, %s7444_s26  ;;  %1281 = vrot.lane.b32.xlu0 %v1095_v0, %s7444_s26  ;;  %v1100_v8 = vld [vmem:[#allocation2 + $0x1f2] sm:$0xff]  ;;  %v1101_v0 = vld [vmem:[#allocation2 + $0x202] sm:$0xff] }
 0x128   : > { %v879_v25 = vpop.permute.xlu1 %878  ;;  %v881_v28 = vpop.permute.xlu0 %880 }
 0x129   : > { %1038 = vst.msk [vmem:[#allocation3 + $0x1c8] sm:$0xff] %vm980_vm2, %v879_v25  ;;  %1039 = vst.msk [vmem:[#allocation3 + $0x1d0] sm:$0xff] %vm980_vm2, %v881_v28 }
 0x12a   : > { %1283 = vrot.lane.b32.xlu1 %v1096_v34, %s7444_s26  ;;  %1285 = vrot.lane.b32.xlu0 %v1097_v56, %s7444_s26  ;;  %v1102_v34 = vld [vmem:[#allocation2 + $0x20a] sm:$0xff]  ;;  %v1103_v56 = vld [vmem:[#allocation2 + $0x212] sm:$0xff] }
 0x12c   : > { %v883_v40 = vpop.permute.xlu1 %882  ;;  %v885_v60 = vpop.permute.xlu0 %884 }
 0x12d   : > { %1040 = vst.msk [vmem:[#allocation3 + $0x1d8] sm:$0xff] %vm980_vm2, %v883_v40  ;;  %1041 = vst.msk [vmem:[#allocation3 + $0x1e0] sm:$0xff] %vm980_vm2, %v885_v60 }
 0x12e   : > { %1287 = vrot.lane.b32.xlu1 %v1098_v48, %s7444_s26  ;;  %1289 = vrot.lane.b32.xlu0 %v1099_v39, %s7444_s26  ;;  %v1104_v48 = vld [vmem:[#allocation2 + $0x222] sm:$0xff]  ;;  %v1105_v39 = vld [vmem:[#allocation2 + $0x22a] sm:$0xff] }
 0x130   : > { %v887_v25 = vpop.permute.xlu1 %886  ;;  %v889_v28 = vpop.permute.xlu0 %888 }
 0x131   : > { %1042 = vst.msk [vmem:[#allocation3 + $0x1e8] sm:$0xff] %vm980_vm2, %v887_v25  ;;  %1043 = vst.msk [vmem:[#allocation3 + $0x1f0] sm:$0xff] %vm980_vm2, %v889_v28 }
 0x132   : > { %1291 = vrot.lane.b32.xlu1 %v1100_v8, %s7444_s26  ;;  %1293 = vrot.lane.b32.xlu0 %v1101_v0, %s7444_s26  ;;  %v1106_v8 = vld [vmem:[#allocation2 + $0x232] sm:$0xff]  ;;  %v1107_v0 = vld [vmem:[#allocation2 + $0x242] sm:$0xff] }
 0x134   : > { %v891_v40 = vpop.permute.xlu1 %890  ;;  %v893_v60 = vpop.permute.xlu0 %892 }
 0x135   : > { %1044 = vst.msk [vmem:[#allocation3 + $0x1f8] sm:$0xff] %vm980_vm2, %v891_v40  ;;  %1045 = vst.msk [vmem:[#allocation3 + $0x200] sm:$0xff] %vm980_vm2, %v893_v60 }
 0x136   : > { %1295 = vrot.lane.b32.xlu1 %v1102_v34, %s7444_s26  ;;  %1297 = vrot.lane.b32.xlu0 %v1103_v56, %s7444_s26  ;;  %v1108_v34 = vld [vmem:[#allocation2 + $0x24a] sm:$0xff]  ;;  %v1109_v56 = vld [vmem:[#allocation2 + $0x252] sm:$0xff] }
 0x138   : > { %v895_v25 = vpop.permute.xlu1 %894  ;;  %v897_v28 = vpop.permute.xlu0 %896 }
 0x139   : > { %1046 = vst.msk [vmem:[#allocation3 + $0x208] sm:$0xff] %vm980_vm2, %v895_v25  ;;  %1047 = vst.msk [vmem:[#allocation3 + $0x210] sm:$0xff] %vm980_vm2, %v897_v28 }
 0x13a   : > { %1299 = vrot.lane.b32.xlu1 %v1104_v48, %s7444_s26  ;;  %1301 = vrot.lane.b32.xlu0 %v1105_v39, %s7444_s26  ;;  %v1110_v48 = vld [vmem:[#allocation2 + $0x262] sm:$0xff]  ;;  %v1111_v39 = vld [vmem:[#allocation2 + $0x26a] sm:$0xff] }
 0x13c   : > { %v899_v40 = vpop.permute.xlu1 %898  ;;  %v901_v60 = vpop.permute.xlu0 %900 }
 0x13d   : > { %1048 = vst.msk [vmem:[#allocation3 + $0x218] sm:$0xff] %vm980_vm2, %v899_v40  ;;  %1049 = vst.msk [vmem:[#allocation3 + $0x220] sm:$0xff] %vm980_vm2, %v901_v60 }
 0x13e   : > { %1303 = vrot.lane.b32.xlu1 %v1106_v8, %s7444_s26  ;;  %1305 = vrot.lane.b32.xlu0 %v1107_v0, %s7444_s26  ;;  %v1112_v8 = vld [vmem:[#allocation2 + $0x272] sm:$0xff]  ;;  %v1113_v0 = vld [vmem:[#allocation2 + $0x282] sm:$0xff] }
 0x140   : > { %v903_v25 = vpop.permute.xlu1 %902  ;;  %v905_v28 = vpop.permute.xlu0 %904 }
 0x141   : > { %1050 = vst.msk [vmem:[#allocation3 + $0x228] sm:$0xff] %vm980_vm2, %v903_v25  ;;  %1051 = vst.msk [vmem:[#allocation3 + $0x230] sm:$0xff] %vm980_vm2, %v905_v28 }
 0x142   : > { %1307 = vrot.lane.b32.xlu1 %v1108_v34, %s7444_s26  ;;  %1309 = vrot.lane.b32.xlu0 %v1109_v56, %s7444_s26  ;;  %v1114_v34 = vld [vmem:[#allocation2 + $0x28a] sm:$0xff]  ;;  %v1115_v56 = vld [vmem:[#allocation2 + $0x292] sm:$0xff] }
 0x144   : > { %v907_v40 = vpop.permute.xlu1 %906  ;;  %v1198_v60 = vpop.permute.xlu0 %1197 }
 0x145   : > { %1052 = vst.msk [vmem:[#allocation3 + $0x238] sm:$0xff] %vm980_vm2, %v907_v40  ;;  %vm5604_vm2 = vcmask 195712  }
 0x146   : > { %1414 = vst.msk [vmem:[#allocation3] sm:$0xff] %vm1413_vm3, %v1198_v60  ;;  %1311 = vrot.lane.b32.xlu1 %v1110_v48, %s7444_s26  ;;  %1313 = vrot.lane.b32.xlu0 %v1111_v39, %s7444_s26  ;;  %v1116_v48 = vld [vmem:[#allocation2 + $0x2a2] sm:$0xff]  ;;  %v1117_v39 = vld [vmem:[#allocation2 + $0x2aa] sm:$0xff] }
 0x148   : > { %v1200_v25 = vpop.permute.xlu1 %1199  ;;  %v1202_v28 = vpop.permute.xlu0 %1201 }
 0x149   : > { %1415 = vst.msk [vmem:[#allocation3 + $0x8] sm:$0xff] %vm1413_vm3, %v1200_v25  ;;  %1416 = vst.msk [vmem:[#allocation3 + $0x10] sm:$0xff] %vm1413_vm3, %v1202_v28 }
 0x14a   : > { %1315 = vrot.lane.b32.xlu1 %v1112_v8, %s7444_s26  ;;  %1317 = vrot.lane.b32.xlu0 %v1113_v0, %s7444_s26  ;;  %v1118_v8 = vld [vmem:[#allocation2 + $0x2b2] sm:$0xff]  ;;  %v1119_v0 = vld [vmem:[#allocation2 + $0x2c2] sm:$0xff] }
 0x14c   : > { %v1204_v40 = vpop.permute.xlu1 %1203  ;;  %v1206_v60 = vpop.permute.xlu0 %1205 }
 0x14d   : > { %1417 = vst.msk [vmem:[#allocation3 + $0x18] sm:$0xff] %vm1413_vm3, %v1204_v40  ;;  %1418 = vst.msk [vmem:[#allocation3 + $0x20] sm:$0xff] %vm1413_vm3, %v1206_v60 }
 0x14e   : > { %1319 = vrot.lane.b32.xlu1 %v1114_v34, %s7444_s26  ;;  %1321 = vrot.lane.b32.xlu0 %v1115_v56, %s7444_s26  ;;  %v1120_v34 = vld [vmem:[#allocation2 + $0x2ca] sm:$0xff]  ;;  %v1121_v56 = vld [vmem:[#allocation2 + $0x2d2] sm:$0xff] }
 0x150   : > { %v1208_v25 = vpop.permute.xlu1 %1207  ;;  %v1210_v28 = vpop.permute.xlu0 %1209 }
 0x151   : > { %1419 = vst.msk [vmem:[#allocation3 + $0x28] sm:$0xff] %vm1413_vm3, %v1208_v25  ;;  %1420 = vst.msk [vmem:[#allocation3 + $0x30] sm:$0xff] %vm1413_vm3, %v1210_v28 }
 0x152   : > { %1323 = vrot.lane.b32.xlu1 %v1116_v48, %s7444_s26  ;;  %1325 = vrot.lane.b32.xlu0 %v1117_v39, %s7444_s26  ;;  %v1122_v48 = vld [vmem:[#allocation2 + $0x2e2] sm:$0xff]  ;;  %v1123_v39 = vld [vmem:[#allocation2 + $0x2ea] sm:$0xff] }
 0x154   : > { %v1212_v40 = vpop.permute.xlu1 %1211  ;;  %v1214_v60 = vpop.permute.xlu0 %1213 }
 0x155   : > { %1421 = vst.msk [vmem:[#allocation3 + $0x38] sm:$0xff] %vm1413_vm3, %v1212_v40  ;;  %1422 = vst.msk [vmem:[#allocation3 + $0x40] sm:$0xff] %vm1413_vm3, %v1214_v60 }
 0x156   : > { %1327 = vrot.lane.b32.xlu1 %v1118_v8, %s7444_s26  ;;  %1329 = vrot.lane.b32.xlu0 %v1119_v0, %s7444_s26  ;;  %v1124_v8 = vld [vmem:[#allocation2 + $0x2f2] sm:$0xff] }
 0x158   : > { %v1216_v25 = vpop.permute.xlu1 %1215  ;;  %v1218_v28 = vpop.permute.xlu0 %1217 }
 0x159   : > { %1423 = vst.msk [vmem:[#allocation3 + $0x48] sm:$0xff] %vm1413_vm3, %v1216_v25  ;;  %1424 = vst.msk [vmem:[#allocation3 + $0x50] sm:$0xff] %vm1413_vm3, %v1218_v28  ;;  %v400_v28 = vld [vmem:[%s7721_s24 + $0x228] sm:$0xff] }
 0x15a   : > { %1331 = vrot.lane.b32.xlu1 %v1120_v34, %s7444_s26  ;;  %1333 = vrot.lane.b32.xlu0 %v1121_v56, %s7444_s26  ;;  %473 = vst.msk [vmem:[#allocation2 + $0x301] sm:$0xff] %vm225_vm0, %v400_v28  ;;  %v10447_v28 = vld [vmem:[#allocation11_spill] sm:$0xff] }
 0x15c   : > { %v1220_v40 = vpop.permute.xlu1 %1219  ;;  %v1222_v60 = vpop.permute.xlu0 %1221 }
 0x15d   : > { %1425 = vst.msk [vmem:[#allocation3 + $0x58] sm:$0xff] %vm1413_vm3, %v1220_v40  ;;  %1426 = vst.msk [vmem:[#allocation3 + $0x60] sm:$0xff] %vm1413_vm3, %v1222_v60 }
 0x15e   : > { %1335 = vrot.lane.b32.xlu1 %v1122_v48, %s7444_s26  ;;  %1337 = vrot.lane.b32.xlu0 %v1123_v39, %s7444_s26  ;;  %v401_v48 = vld [vmem:[%s7721_s24 + $0x230] sm:$0xff] }
 0x15f   : > { %474 = vst.msk [vmem:[#allocation2 + $0x309] sm:$0xff] %vm225_vm0, %v401_v48  ;;  %v10448_v48 = vld [vmem:[#allocation14_spill] sm:$0xff] }
 0x160   : > { %v1224_v0 = vpop.permute.xlu1 %1223  ;;  %v1226_v25 = vpop.permute.xlu0 %1225 }
 0x161   : > { %1427 = vst.msk [vmem:[#allocation3 + $0x68] sm:$0xff] %vm1413_vm3, %v1224_v0  ;;  %1428 = vst.msk [vmem:[#allocation3 + $0x70] sm:$0xff] %vm1413_vm3, %v1226_v25 }
 0x162   : > { %1339 = vrot.lane.b32.xlu1 %v1124_v8, %s7444_s26  ;;  %1630 = vrot.lane.b32.xlu0 %v7867_v22, %s7445_s27  ;;  %s7456_s26 = smov 48  }
 0x164   : > { %v1228_v34 = vpop.permute.xlu1 %1227  ;;  %v1230_v56 = vpop.permute.xlu0 %1229 }
 0x165   : > { %1429 = vst.msk [vmem:[#allocation3 + $0x78] sm:$0xff] %vm1413_vm3, %v1228_v34  ;;  %1430 = vst.msk [vmem:[#allocation3 + $0x80] sm:$0xff] %vm1413_vm3, %v1230_v56 }
 0x166   : > { %1632 = vrot.lane.b32.xlu1 %v7858_v19, %s7445_s27  ;;  %1634 = vrot.lane.b32.xlu0 %v7878_v26, %s7445_s27  ;;  %v402_v26 = vld [vmem:[%s7721_s24 + $0x238] sm:$0xff]  ;;  %s7454_s24 = smov 32  }
 0x167   : > { %475 = vst.msk [vmem:[#allocation2 + $0x311] sm:$0xff] %vm225_vm0, %v402_v26  ;;  %vm5267_vm0 = vcmask 60416  }
 0x168   : > { %v1232_v22 = vpop.permute.xlu1 %1231  ;;  %v1234_v39 = vpop.permute.xlu0 %1233 }
 0x169   : > { %1431 = vst.msk [vmem:[#allocation3 + $0x88] sm:$0xff] %vm1413_vm3, %v1232_v22  ;;  %1432 = vst.msk [vmem:[#allocation3 + $0x90] sm:$0xff] %vm1413_vm3, %v1234_v39 }
 0x16a   : > { %1636 = vrot.lane.b32.xlu1 %v7869_v23, %s7445_s27  ;;  %1638 = vrot.lane.b32.xlu0 %v7890_v30, %s7445_s27 }
 0x16c   : > { %v1236_v19 = vpop.permute.xlu1 %1235  ;;  %v1238_v40 = vpop.permute.xlu0 %1237 }
 0x16d   : > { %1433 = vst.msk [vmem:[#allocation3 + $0x98] sm:$0xff] %vm1413_vm3, %v1236_v19  ;;  %1434 = vst.msk [vmem:[#allocation3 + $0xa0] sm:$0xff] %vm1413_vm3, %v1238_v40  ;;  %v10449_v19 = vld [vmem:[#allocation13_spill] sm:$0xff]  ;;  %v10450_v40 = vld [vmem:[#allocation16_spill] sm:$0xff] }
 0x16e   : > { %1640 = vrot.lane.b32.xlu1 %v7880_v27, %s7445_s27  ;;  %1642 = vrot.lane.b32.xlu0 %v7906_v36, %s7445_s27 }
 0x170   : > { %v1240_v60 = vpop.permute.xlu1 %1239  ;;  %v1242_v23 = vpop.permute.xlu0 %1241 }
 0x171   : > { %1435 = vst.msk [vmem:[#allocation3 + $0xa8] sm:$0xff] %vm1413_vm3, %v1240_v60  ;;  %1436 = vst.msk [vmem:[#allocation3 + $0xb0] sm:$0xff] %vm1413_vm3, %v1242_v23  ;;  %v10451_v23 = vld [vmem:[#allocation15_spill] sm:$0xff] }
 0x172   : > { %1644 = vrot.lane.b32.xlu1 %v7897_v32, %s7445_s27  ;;  %1646 = vrot.lane.b32.xlu0 %v7918_v42, %s7445_s27 }
 0x174   : > { %v1244_v30 = vpop.permute.xlu1 %1243  ;;  %v1246_v8 = vpop.permute.xlu0 %1245 }
 0x175   : > { %1437 = vst.msk [vmem:[#allocation3 + $0xb8] sm:$0xff] %vm1413_vm3, %v1244_v30  ;;  %1438 = vst.msk [vmem:[#allocation3 + $0xc0] sm:$0xff] %vm1413_vm3, %v1246_v8 }
 0x176   : > { %1648 = vrot.lane.b32.xlu1 %v7911_v38, %s7445_s27  ;;  %1650 = vrot.lane.b32.xlu0 %v7930_v45, %s7445_s27 }
 0x178   : > { %v1248_v27 = vpop.permute.xlu1 %1247  ;;  %v1250_v36 = vpop.permute.xlu0 %1249 }
 0x179   : > { %1439 = vst.msk [vmem:[#allocation3 + $0xc8] sm:$0xff] %vm1413_vm3, %v1248_v27  ;;  %1440 = vst.msk [vmem:[#allocation3 + $0xd0] sm:$0xff] %vm1413_vm3, %v1250_v36  ;;  %v10452_v27 = vld [vmem:[#allocation17_spill] sm:$0xff]  ;;  %v10453_v36 = vld [vmem:[#allocation19_spill] sm:$0xff] }
 0x17a   : > { %1652 = vrot.lane.b32.xlu1 %v7923_v43, %s7445_s27  ;;  %1654 = vrot.lane.b32.xlu0 %v7941_v50, %s7445_s27 }
 0x17c   : > { %v1252_v32 = vpop.permute.xlu1 %1251  ;;  %v1254_v42 = vpop.permute.xlu0 %1253 }
 0x17d   : > { %1441 = vst.msk [vmem:[#allocation3 + $0xd8] sm:$0xff] %vm1413_vm3, %v1252_v32  ;;  %1442 = vst.msk [vmem:[#allocation3 + $0xe0] sm:$0xff] %vm1413_vm3, %v1254_v42 }
 0x17e   : > { %1656 = vrot.lane.b32.xlu1 %v7935_v47, %s7445_s27  ;;  %1658 = vrot.lane.b32.xlu0 %v7950_v52, %s7445_s27 }
 0x180   : > { %v1256_v38 = vpop.permute.xlu1 %1255  ;;  %v1258_v45 = vpop.permute.xlu0 %1257 }
 0x181   : > { %1443 = vst.msk [vmem:[#allocation3 + $0xe8] sm:$0xff] %vm1413_vm3, %v1256_v38  ;;  %1444 = vst.msk [vmem:[#allocation3 + $0xf0] sm:$0xff] %vm1413_vm3, %v1258_v45  ;;  %v10455_v38 = vld [vmem:[#allocation21_spill] sm:$0xff] }
 0x182   : > { %1660 = vrot.lane.b32.xlu1 %v7943_v51, %s7445_s27  ;;  %1662 = vrot.lane.b32.xlu0 %v7959_v55, %s7445_s27 }
 0x184   : > { %v1260_v43 = vpop.permute.xlu1 %1259  ;;  %v1262_v50 = vpop.permute.xlu0 %1261 }
 0x185   : > { %1445 = vst.msk [vmem:[#allocation3 + $0xf8] sm:$0xff] %vm1413_vm3, %v1260_v43  ;;  %1446 = vst.msk [vmem:[#allocation3 + $0x100] sm:$0xff] %vm1413_vm3, %v1262_v50  ;;  %v10456_v50 = vld [vmem:[#allocation20_spill] sm:$0xff] }
 0x186   : > { %1664 = vrot.lane.b32.xlu1 %v7952_v53, %s7445_s27  ;;  %1666 = vrot.lane.b32.xlu0 %v7967_v58, %s7445_s27 }
 0x188   : > { %v1264_v47 = vpop.permute.xlu1 %1263  ;;  %v1266_v52 = vpop.permute.xlu0 %1265 }
 0x189   : > { %1447 = vst.msk [vmem:[#allocation3 + $0x108] sm:$0xff] %vm1413_vm3, %v1264_v47  ;;  %1448 = vst.msk [vmem:[#allocation3 + $0x110] sm:$0xff] %vm1413_vm3, %v1266_v52  ;;  %v10457_v47 = vld [vmem:[#allocation22_spill] sm:$0xff] }
 0x18a   : > { %1668 = vrot.lane.b32.xlu1 %v7963_v57, %s7445_s27  ;;  %1670 = vrot.lane.b32.xlu0 %v7977_v61, %s7445_s27  ;;  %v1555_v52 = vld [vmem:[#allocation2 + $0x300] sm:$0xff] }
 0x18c   : > { %v1268_v51 = vpop.permute.xlu1 %1267  ;;  %v1270_v55 = vpop.permute.xlu0 %1269 }
 0x18d   : > { %1449 = vst.msk [vmem:[#allocation3 + $0x118] sm:$0xff] %vm1413_vm3, %v1268_v51  ;;  %1450 = vst.msk [vmem:[#allocation3 + $0x120] sm:$0xff] %vm1413_vm3, %v1270_v55  ;;  %v1556_v51 = vld [vmem:[#allocation2 + $0x308] sm:$0xff] }
 0x18e   : > { %1672 = vrot.lane.b32.xlu1 %v7972_v59, %s7445_s27  ;;  %1674 = vrot.lane.b32.xlu0 %v7985_v1, %s7445_s27 }
 0x190   : > { %v1272_v53 = vpop.permute.xlu1 %1271  ;;  %v1274_v58 = vpop.permute.xlu0 %1273 }
 0x191   : > { %1451 = vst.msk [vmem:[#allocation3 + $0x128] sm:$0xff] %vm1413_vm3, %v1272_v53  ;;  %1452 = vst.msk [vmem:[#allocation3 + $0x130] sm:$0xff] %vm1413_vm3, %v1274_v58  ;;  %v1557_v58 = vld [vmem:[#allocation2 + $0x310] sm:$0xff] }
 0x192   : > { %1676 = vrot.lane.b32.xlu1 %v7979_v62, %s7445_s27  ;;  %1678 = vrot.lane.b32.xlu0 %v7994_v3, %s7445_s27 }
 0x194   : > { %v1276_v57 = vpop.permute.xlu1 %1275  ;;  %v1278_v61 = vpop.permute.xlu0 %1277 }
 0x195   : > { %1453 = vst.msk [vmem:[#allocation3 + $0x138] sm:$0xff] %vm1413_vm3, %v1276_v57  ;;  %1454 = vst.msk [vmem:[#allocation3 + $0x140] sm:$0xff] %vm1413_vm3, %v1278_v61  ;;  %v1919_v57 = vld [vmem:[#allocation2 + $0x21] sm:$0xff] }
 0x196   : > { %1680 = vrot.lane.b32.xlu1 %v7989_v2, %s7445_s27  ;;  %1682 = vrot.lane.b32.xlu0 %v8003_v6, %s7445_s27 }
 0x198   : > { %v1280_v59 = vpop.permute.xlu1 %1279  ;;  %v1282_v1 = vpop.permute.xlu0 %1281 }
 0x199   : > { %1455 = vst.msk [vmem:[#allocation3 + $0x148] sm:$0xff] %vm1413_vm3, %v1280_v59  ;;  %1456 = vst.msk [vmem:[#allocation3 + $0x150] sm:$0xff] %vm1413_vm3, %v1282_v1  ;;  %v1920_v1 = vld [vmem:[#allocation2 + $0x29] sm:$0xff] }
 0x19a   : > { %1684 = vrot.lane.b32.xlu1 %v7996_v4, %s7445_s27  ;;  %1686 = vrot.lane.b32.xlu0 %v8011_v9, %s7445_s27 }
 0x19c   : > { %v1284_v62 = vpop.permute.xlu1 %1283  ;;  %v1286_v3 = vpop.permute.xlu0 %1285 }
 0x19d   : > { %1457 = vst.msk [vmem:[#allocation3 + $0x158] sm:$0xff] %vm1413_vm3, %v1284_v62  ;;  %1458 = vst.msk [vmem:[#allocation3 + $0x160] sm:$0xff] %vm1413_vm3, %v1286_v3  ;;  %v1921_v62 = vld [vmem:[#allocation2 + $0x31] sm:$0xff] }
 0x19e   : > { %1688 = vrot.lane.b32.xlu1 %v8005_v7, %s7445_s27  ;;  %1690 = vrot.lane.b32.xlu0 %v8020_v11, %s7445_s27 }
 0x1a0   : > { %v1288_v2 = vpop.permute.xlu1 %1287  ;;  %v1290_v6 = vpop.permute.xlu0 %1289 }
 0x1a1   : > { %1459 = vst.msk [vmem:[#allocation3 + $0x168] sm:$0xff] %vm1413_vm3, %v1288_v2  ;;  %1460 = vst.msk [vmem:[#allocation3 + $0x170] sm:$0xff] %vm1413_vm3, %v1290_v6  ;;  %v1922_v6 = vld [vmem:[#allocation2 + $0x41] sm:$0xff] }
 0x1a2   : > { %1692 = vrot.lane.b32.xlu1 %v8015_v10, %s7445_s27  ;;  %1694 = vrot.lane.b32.xlu0 %v8029_v14, %s7445_s27 }
 0x1a4   : > { %v1292_v4 = vpop.permute.xlu1 %1291  ;;  %v1294_v9 = vpop.permute.xlu0 %1293 }
 0x1a5   : > { %1461 = vst.msk [vmem:[#allocation3 + $0x178] sm:$0xff] %vm1413_vm3, %v1292_v4  ;;  %1462 = vst.msk [vmem:[#allocation3 + $0x180] sm:$0xff] %vm1413_vm3, %v1294_v9  ;;  %v1923_v4 = vld [vmem:[#allocation2 + $0x49] sm:$0xff] }
 0x1a6   : > { %1696 = vrot.lane.b32.xlu1 %v8022_v12, %s7445_s27  ;;  %1698 = vrot.lane.b32.xlu0 %v8037_v17, %s7445_s27 }
 0x1a8   : > { %v1296_v7 = vpop.permute.xlu1 %1295  ;;  %v1298_v11 = vpop.permute.xlu0 %1297 }
 0x1a9   : > { %1463 = vst.msk [vmem:[#allocation3 + $0x188] sm:$0xff] %vm1413_vm3, %v1296_v7  ;;  %1464 = vst.msk [vmem:[#allocation3 + $0x190] sm:$0xff] %vm1413_vm3, %v1298_v11  ;;  %v1924_v11 = vld [vmem:[#allocation2 + $0x51] sm:$0xff] }
 0x1aa   : > { %1700 = vrot.lane.b32.xlu1 %v8031_v15, %s7445_s27  ;;  %1702 = vrot.lane.b32.xlu0 %v8047_v21, %s7445_s27 }
 0x1ac   : > { %v1300_v10 = vpop.permute.xlu1 %1299  ;;  %v1302_v14 = vpop.permute.xlu0 %1301 }
 0x1ad   : > { %1465 = vst.msk [vmem:[#allocation3 + $0x198] sm:$0xff] %vm1413_vm3, %v1300_v10  ;;  %1466 = vst.msk [vmem:[#allocation3 + $0x1a0] sm:$0xff] %vm1413_vm3, %v1302_v14  ;;  %v1925_v10 = vld [vmem:[#allocation2 + $0x61] sm:$0xff] }
 0x1ae   : > { %1704 = vrot.lane.b32.xlu1 %v8041_v18, %s7445_s27  ;;  %1706 = vrot.lane.b32.xlu0 %v8057_v29, %s7445_s27 }
 0x1b0   : > { %v1304_v12 = vpop.permute.xlu1 %1303  ;;  %v1306_v17 = vpop.permute.xlu0 %1305 }
 0x1b1   : > { %1467 = vst.msk [vmem:[#allocation3 + $0x1a8] sm:$0xff] %vm1413_vm3, %v1304_v12  ;;  %1468 = vst.msk [vmem:[#allocation3 + $0x1b0] sm:$0xff] %vm1413_vm3, %v1306_v17  ;;  %v1926_v17 = vld [vmem:[#allocation2 + $0x69] sm:$0xff] }
 0x1b2   : > { %1708 = vrot.lane.b32.xlu1 %v8049_v24, %s7445_s27  ;;  %1710 = vrot.lane.b32.xlu0 %v8067_v35, %s7445_s27 }
 0x1b4   : > { %v1308_v15 = vpop.permute.xlu1 %1307  ;;  %v1310_v21 = vpop.permute.xlu0 %1309 }
 0x1b5   : > { %1469 = vst.msk [vmem:[#allocation3 + $0x1b8] sm:$0xff] %vm1413_vm3, %v1308_v15  ;;  %1470 = vst.msk [vmem:[#allocation3 + $0x1c0] sm:$0xff] %vm1413_vm3, %v1310_v21  ;;  %v1927_v15 = vld [vmem:[#allocation2 + $0x71] sm:$0xff] }
 0x1b6   : > { %1712 = vrot.lane.b32.xlu1 %v8059_v31, %s7445_s27  ;;  %1714 = vrot.lane.b32.xlu0 %v8077_v41, %s7445_s27 }
 0x1b8   : > { %v1312_v18 = vpop.permute.xlu1 %1311  ;;  %v1314_v29 = vpop.permute.xlu0 %1313 }
 0x1b9   : > { %1471 = vst.msk [vmem:[#allocation3 + $0x1c8] sm:$0xff] %vm1413_vm3, %v1312_v18  ;;  %1472 = vst.msk [vmem:[#allocation3 + $0x1d0] sm:$0xff] %vm1413_vm3, %v1314_v29  ;;  %v1928_v29 = vld [vmem:[#allocation2 + $0x81] sm:$0xff] }
 0x1ba   : > { %1716 = vrot.lane.b32.xlu1 %v8069_v37, %s7445_s27  ;;  %1718 = vrot.lane.b32.xlu0 %v8087_v49, %s7445_s27 }
 0x1bc   : > { %v1316_v24 = vpop.permute.xlu1 %1315  ;;  %v1318_v35 = vpop.permute.xlu0 %1317 }
 0x1bd   : > { %1473 = vst.msk [vmem:[#allocation3 + $0x1d8] sm:$0xff] %vm1413_vm3, %v1316_v24  ;;  %1474 = vst.msk [vmem:[#allocation3 + $0x1e0] sm:$0xff] %vm1413_vm3, %v1318_v35  ;;  %v1929_v24 = vld [vmem:[#allocation2 + $0x89] sm:$0xff] }
 0x1be   : > { %1720 = vrot.lane.b32.xlu1 %v8079_v44, %s7445_s27  ;;  %1722 = vrot.lane.b32.xlu0 %v8097_v63, %s7445_s27 }
 0x1c0   : > { %v1320_v31 = vpop.permute.xlu1 %1319  ;;  %v1322_v41 = vpop.permute.xlu0 %1321 }
 0x1c1   : > { %1475 = vst.msk [vmem:[#allocation3 + $0x1e8] sm:$0xff] %vm1413_vm3, %v1320_v31  ;;  %1476 = vst.msk [vmem:[#allocation3 + $0x1f0] sm:$0xff] %vm1413_vm3, %v1322_v41  ;;  %v1930_v41 = vld [vmem:[#allocation2 + $0x91] sm:$0xff] }
 0x1c2   : > { %1724 = vrot.lane.b32.xlu1 %v8089_v54, %s7445_s27  ;;  %1726 = vrot.lane.b32.xlu0 %v8107_v16, %s7445_s27 }
 0x1c4   : > { %v1324_v37 = vpop.permute.xlu1 %1323  ;;  %v1326_v49 = vpop.permute.xlu0 %1325 }
 0x1c5   : > { %1477 = vst.msk [vmem:[#allocation3 + $0x1f8] sm:$0xff] %vm1413_vm3, %v1324_v37  ;;  %1478 = vst.msk [vmem:[#allocation3 + $0x200] sm:$0xff] %vm1413_vm3, %v1326_v49  ;;  %v1931_v37 = vld [vmem:[#allocation2 + $0xa1] sm:$0xff] }
 0x1c6   : > { %1728 = vrot.lane.b32.xlu1 %v8099_v5, %s7445_s27  ;;  %1730 = vrot.lane.b32.xlu0 %v8117_v33, %s7445_s27  ;;  %v10443_v5 = vld [vmem:[#allocation8_spill] sm:$0xff]  ;;  %v10444_v33 = vld [vmem:[#allocation10_spill] sm:$0xff] }
 0x1c8   : > { %v1328_v44 = vpop.permute.xlu1 %1327  ;;  %v1330_v63 = vpop.permute.xlu0 %1329 }
 0x1c9   : > { %1479 = vst.msk [vmem:[#allocation3 + $0x208] sm:$0xff] %vm1413_vm3, %v1328_v44  ;;  %1480 = vst.msk [vmem:[#allocation3 + $0x210] sm:$0xff] %vm1413_vm3, %v1330_v63  ;;  %v1932_v63 = vld [vmem:[#allocation2 + $0xa9] sm:$0xff] }
 0x1ca   : > { %1732 = vrot.lane.b32.xlu1 %v8109_v20, %s7445_s27  ;;  %1734 = vrot.lane.b32.xlu0 %v8127_v46, %s7445_s27  ;;  %v10445_v20 = vld [vmem:[#allocation9_spill] sm:$0xff]  ;;  %v10446_v46 = vld [vmem:[#allocation12_spill] sm:$0xff] }
 0x1cc   : > { %v1332_v54 = vpop.permute.xlu1 %1331  ;;  %v1334_v16 = vpop.permute.xlu0 %1333 }
 0x1cd   : > { %1481 = vst.msk [vmem:[#allocation3 + $0x218] sm:$0xff] %vm1413_vm3, %v1332_v54  ;;  %1482 = vst.msk [vmem:[#allocation3 + $0x220] sm:$0xff] %vm1413_vm3, %v1334_v16  ;;  %v1933_v54 = vld [vmem:[#allocation2 + $0xb1] sm:$0xff] }
 0x1ce   : > { %1736 = vrot.lane.b32.xlu1 %v10443_v5, %s7445_s27  ;;  %1738 = vrot.lane.b32.xlu0 %v10444_v33, %s7445_s27  ;;  %v1934_v33 = vld [vmem:[#allocation2 + $0xc1] sm:$0xff] }
 0x1d0   : > { %v1336_v0 = vpop.permute.xlu1 %1335  ;;  %v1338_v25 = vpop.permute.xlu0 %1337 }
 0x1d1   : > { %1483 = vst.msk [vmem:[#allocation3 + $0x228] sm:$0xff] %vm1413_vm3, %v1336_v0  ;;  %1484 = vst.msk [vmem:[#allocation3 + $0x230] sm:$0xff] %vm1413_vm3, %v1338_v25  ;;  %v1935_v0 = vld [vmem:[#allocation2 + $0xc9] sm:$0xff] }
 0x1d2   : > { %1740 = vrot.lane.b32.xlu1 %v10445_v20, %s7445_s27  ;;  %1742 = vrot.lane.b32.xlu0 %v10446_v46, %s7445_s27  ;;  %v1936_v46 = vld [vmem:[#allocation2 + $0xd1] sm:$0xff] }
 0x1d4   : > { %v1340_v34 = vpop.permute.xlu1 %1339  ;;  %v1631_v56 = vpop.permute.xlu0 %1630 }
 0x1d5   : > { %1485 = vst.msk [vmem:[#allocation3 + $0x238] sm:$0xff] %vm1413_vm3, %v1340_v34  ;;  %v1937_v34 = vld [vmem:[#allocation2 + $0xe1] sm:$0xff]  ;;  %vm5749_vm3 = vcmask 261312  }
 0x1d6   : > { %1847 = vst.msk [vmem:[#allocation3] sm:$0xff] %vm1846_vm4, %v1631_v56  ;;  %1744 = vrot.lane.b32.xlu1 %v10447_v28, %s7445_s27  ;;  %1746 = vrot.lane.b32.xlu0 %v10448_v48, %s7445_s27  ;;  %v1938_v48 = vld [vmem:[#allocation2 + $0xe9] sm:$0xff] }
 0x1d8   : > { %v1633_v22 = vpop.permute.xlu1 %1632  ;;  %v1635_v39 = vpop.permute.xlu0 %1634 }
 0x1d9   : > { %1848 = vst.msk [vmem:[#allocation3 + $0x8] sm:$0xff] %vm1846_vm4, %v1633_v22  ;;  %1849 = vst.msk [vmem:[#allocation3 + $0x10] sm:$0xff] %vm1846_vm4, %v1635_v39  ;;  %v1939_v22 = vld [vmem:[#allocation2 + $0xf1] sm:$0xff] }
 0x1da   : > { %1748 = vrot.lane.b32.xlu1 %v10449_v19, %s7445_s27  ;;  %1750 = vrot.lane.b32.xlu0 %v10450_v40, %s7445_s27  ;;  %v1940_v40 = vld [vmem:[#allocation2 + $0x101] sm:$0xff] }
 0x1dc   : > { %v1637_v26 = vpop.permute.xlu1 %1636  ;;  %v1639_v60 = vpop.permute.xlu0 %1638 }
 0x1dd   : > { %1850 = vst.msk [vmem:[#allocation3 + $0x18] sm:$0xff] %vm1846_vm4, %v1637_v26  ;;  %1851 = vst.msk [vmem:[#allocation3 + $0x20] sm:$0xff] %vm1846_vm4, %v1639_v60  ;;  %v1941_v26 = vld [vmem:[#allocation2 + $0x109] sm:$0xff] }
 0x1de   : > { %1752 = vrot.lane.b32.xlu1 %v10451_v23, %s7445_s27  ;;  %1754 = vrot.lane.b32.xlu0 %v8180_v13, %s7445_s27  ;;  %v10454_v13 = vld [vmem:[#allocation18_spill] sm:$0xff] }
 0x1e0   : > { %v1641_v30 = vpop.permute.xlu1 %1640  ;;  %v1643_v8 = vpop.permute.xlu0 %1642 }
 0x1e1   : > { %1852 = vst.msk [vmem:[#allocation3 + $0x28] sm:$0xff] %vm1846_vm4, %v1641_v30  ;;  %1853 = vst.msk [vmem:[#allocation3 + $0x30] sm:$0xff] %vm1846_vm4, %v1643_v8  ;;  %v1942_v30 = vld [vmem:[#allocation2 + $0x111] sm:$0xff]  ;;  %v1943_v8 = vld [vmem:[#allocation2 + $0x121] sm:$0xff] }
 0x1e2   : > { %1756 = vrot.lane.b32.xlu1 %v10452_v27, %s7445_s27  ;;  %1758 = vrot.lane.b32.xlu0 %v10453_v36, %s7445_s27 }
 0x1e4   : > { %v1645_v32 = vpop.permute.xlu1 %1644  ;;  %v1647_v42 = vpop.permute.xlu0 %1646 }
 0x1e5   : > { %1854 = vst.msk [vmem:[#allocation3 + $0x38] sm:$0xff] %vm1846_vm4, %v1645_v32  ;;  %1855 = vst.msk [vmem:[#allocation3 + $0x40] sm:$0xff] %vm1846_vm4, %v1647_v42  ;;  %v1944_v32 = vld [vmem:[#allocation2 + $0x129] sm:$0xff]  ;;  %v1945_v42 = vld [vmem:[#allocation2 + $0x131] sm:$0xff] }
 0x1e6   : > { %1760 = vrot.lane.b32.xlu1 %v10454_v13, %s7445_s27  ;;  %1762 = vrot.lane.b32.xlu0 %v10455_v38, %s7445_s27 }
 0x1e8   : > { %v1649_v45 = vpop.permute.xlu1 %1648  ;;  %v1651_v43 = vpop.permute.xlu0 %1650 }
 0x1e9   : > { %1856 = vst.msk [vmem:[#allocation3 + $0x48] sm:$0xff] %vm1846_vm4, %v1649_v45  ;;  %1857 = vst.msk [vmem:[#allocation3 + $0x50] sm:$0xff] %vm1846_vm4, %v1651_v43  ;;  %v1946_v45 = vld [vmem:[#allocation2 + $0x141] sm:$0xff]  ;;  %v1947_v43 = vld [vmem:[#allocation2 + $0x149] sm:$0xff] }
 0x1ea   : > { %1764 = vrot.lane.b32.xlu1 %v10456_v50, %s7445_s27  ;;  %1766 = vrot.lane.b32.xlu0 %v10457_v47, %s7445_s27 }
 0x1ec   : > { %v1653_v55 = vpop.permute.xlu1 %1652  ;;  %v1655_v53 = vpop.permute.xlu0 %1654 }
 0x1ed   : > { %1858 = vst.msk [vmem:[#allocation3 + $0x58] sm:$0xff] %vm1846_vm4, %v1653_v55  ;;  %1859 = vst.msk [vmem:[#allocation3 + $0x60] sm:$0xff] %vm1846_vm4, %v1655_v53 }
 0x1ee   : > { %1768 = vrot.lane.b32.xlu1 %v1555_v52, %s7445_s27  ;;  %1770 = vrot.lane.b32.xlu0 %v1556_v51, %s7445_s27  ;;  %v1948_v52 = vld [vmem:[#allocation2 + $0x151] sm:$0xff]  ;;  %v1949_v51 = vld [vmem:[#allocation2 + $0x161] sm:$0xff] }
 0x1f0   : > { %v1657_v61 = vpop.permute.xlu1 %1656  ;;  %v1659_v59 = vpop.permute.xlu0 %1658 }
 0x1f1   : > { %1860 = vst.msk [vmem:[#allocation3 + $0x68] sm:$0xff] %vm1846_vm4, %v1657_v61  ;;  %1861 = vst.msk [vmem:[#allocation3 + $0x70] sm:$0xff] %vm1846_vm4, %v1659_v59 }
 0x1f2   : > { %1772 = vrot.lane.b32.xlu1 %v1557_v58, %s7445_s27  ;;  %2063 = vrot.lane.b32.xlu0 %v1919_v57, %s7446_s28  ;;  %v1950_v58 = vld [vmem:[#allocation2 + $0x169] sm:$0xff]  ;;  %v1951_v57 = vld [vmem:[#allocation2 + $0x171] sm:$0xff]  ;;  %s7458_s27 = smov 64  }
 0x1f4   : > { %v1661_v3 = vpop.permute.xlu1 %1660  ;;  %v1663_v2 = vpop.permute.xlu0 %1662 }
 0x1f5   : > { %1862 = vst.msk [vmem:[#allocation3 + $0x78] sm:$0xff] %vm1846_vm4, %v1661_v3  ;;  %1863 = vst.msk [vmem:[#allocation3 + $0x80] sm:$0xff] %vm1846_vm4, %v1663_v2 }
 0x1f6   : > { %2065 = vrot.lane.b32.xlu1 %v1920_v1, %s7446_s28  ;;  %2067 = vrot.lane.b32.xlu0 %v1921_v62, %s7446_s28  ;;  %v1952_v1 = vld [vmem:[#allocation2 + $0x181] sm:$0xff]  ;;  %v1953_v62 = vld [vmem:[#allocation2 + $0x189] sm:$0xff] }
 0x1f8   : > { %v1665_v9 = vpop.permute.xlu1 %1664  ;;  %v1667_v7 = vpop.permute.xlu0 %1666 }
 0x1f9   : > { %1864 = vst.msk [vmem:[#allocation3 + $0x88] sm:$0xff] %vm1846_vm4, %v1665_v9  ;;  %1865 = vst.msk [vmem:[#allocation3 + $0x90] sm:$0xff] %vm1846_vm4, %v1667_v7 }
 0x1fa   : > { %2069 = vrot.lane.b32.xlu1 %v1922_v6, %s7446_s28  ;;  %2071 = vrot.lane.b32.xlu0 %v1923_v4, %s7446_s28  ;;  %v1954_v6 = vld [vmem:[#allocation2 + $0x191] sm:$0xff]  ;;  %v1955_v4 = vld [vmem:[#allocation2 + $0x1a1] sm:$0xff] }
 0x1fc   : > { %v1669_v14 = vpop.permute.xlu1 %1668  ;;  %v1671_v12 = vpop.permute.xlu0 %1670 }
 0x1fd   : > { %1866 = vst.msk [vmem:[#allocation3 + $0x98] sm:$0xff] %vm1846_vm4, %v1669_v14  ;;  %1867 = vst.msk [vmem:[#allocation3 + $0xa0] sm:$0xff] %vm1846_vm4, %v1671_v12 }
 0x1fe   : > { %2073 = vrot.lane.b32.xlu1 %v1924_v11, %s7446_s28  ;;  %2075 = vrot.lane.b32.xlu0 %v1925_v10, %s7446_s28  ;;  %v1956_v11 = vld [vmem:[#allocation2 + $0x1a9] sm:$0xff]  ;;  %v1957_v10 = vld [vmem:[#allocation2 + $0x1b1] sm:$0xff] }
 0x200   : > { %v1673_v21 = vpop.permute.xlu1 %1672  ;;  %v1675_v18 = vpop.permute.xlu0 %1674 }
 0x201   : > { %1868 = vst.msk [vmem:[#allocation3 + $0xa8] sm:$0xff] %vm1846_vm4, %v1673_v21  ;;  %1869 = vst.msk [vmem:[#allocation3 + $0xb0] sm:$0xff] %vm1846_vm4, %v1675_v18 }
 0x202   : > { %2077 = vrot.lane.b32.xlu1 %v1926_v17, %s7446_s28  ;;  %2079 = vrot.lane.b32.xlu0 %v1927_v15, %s7446_s28  ;;  %v1958_v17 = vld [vmem:[#allocation2 + $0x1c1] sm:$0xff]  ;;  %v1959_v15 = vld [vmem:[#allocation2 + $0x1c9] sm:$0xff] }
 0x204   : > { %v1677_v35 = vpop.permute.xlu1 %1676  ;;  %v1679_v31 = vpop.permute.xlu0 %1678 }
 0x205   : > { %1870 = vst.msk [vmem:[#allocation3 + $0xb8] sm:$0xff] %vm1846_vm4, %v1677_v35  ;;  %1871 = vst.msk [vmem:[#allocation3 + $0xc0] sm:$0xff] %vm1846_vm4, %v1679_v31 }
 0x206   : > { %2081 = vrot.lane.b32.xlu1 %v1928_v29, %s7446_s28  ;;  %2083 = vrot.lane.b32.xlu0 %v1929_v24, %s7446_s28  ;;  %v1960_v29 = vld [vmem:[#allocation2 + $0x1d1] sm:$0xff]  ;;  %v1961_v24 = vld [vmem:[#allocation2 + $0x1e1] sm:$0xff] }
 0x208   : > { %v1681_v49 = vpop.permute.xlu1 %1680  ;;  %v1683_v44 = vpop.permute.xlu0 %1682 }
 0x209   : > { %1872 = vst.msk [vmem:[#allocation3 + $0xc8] sm:$0xff] %vm1846_vm4, %v1681_v49  ;;  %1873 = vst.msk [vmem:[#allocation3 + $0xd0] sm:$0xff] %vm1846_vm4, %v1683_v44 }
 0x20a   : > { %2085 = vrot.lane.b32.xlu1 %v1930_v41, %s7446_s28  ;;  %2087 = vrot.lane.b32.xlu0 %v1931_v37, %s7446_s28  ;;  %v1962_v41 = vld [vmem:[#allocation2 + $0x1e9] sm:$0xff]  ;;  %v1963_v37 = vld [vmem:[#allocation2 + $0x1f1] sm:$0xff] }
 0x20c   : > { %v1685_v16 = vpop.permute.xlu1 %1684  ;;  %v1687_v5 = vpop.permute.xlu0 %1686 }
 0x20d   : > { %1874 = vst.msk [vmem:[#allocation3 + $0xd8] sm:$0xff] %vm1846_vm4, %v1685_v16  ;;  %1875 = vst.msk [vmem:[#allocation3 + $0xe0] sm:$0xff] %vm1846_vm4, %v1687_v5 }
 0x20e   : > { %2089 = vrot.lane.b32.xlu1 %v1932_v63, %s7446_s28  ;;  %2091 = vrot.lane.b32.xlu0 %v1933_v54, %s7446_s28  ;;  %v1964_v63 = vld [vmem:[#allocation2 + $0x201] sm:$0xff]  ;;  %v1965_v54 = vld [vmem:[#allocation2 + $0x209] sm:$0xff] }
 0x210   : > { %v1689_v25 = vpop.permute.xlu1 %1688  ;;  %v1691_v20 = vpop.permute.xlu0 %1690 }
 0x211   : > { %1876 = vst.msk [vmem:[#allocation3 + $0xe8] sm:$0xff] %vm1846_vm4, %v1689_v25  ;;  %1877 = vst.msk [vmem:[#allocation3 + $0xf0] sm:$0xff] %vm1846_vm4, %v1691_v20 }
 0x212   : > { %2093 = vrot.lane.b32.xlu1 %v1934_v33, %s7446_s28  ;;  %2095 = vrot.lane.b32.xlu0 %v1935_v0, %s7446_s28  ;;  %v1966_v33 = vld [vmem:[#allocation2 + $0x211] sm:$0xff]  ;;  %v1967_v0 = vld [vmem:[#allocation2 + $0x221] sm:$0xff] }
 0x214   : > { %v1693_v56 = vpop.permute.xlu1 %1692  ;;  %v1695_v28 = vpop.permute.xlu0 %1694 }
 0x215   : > { %1878 = vst.msk [vmem:[#allocation3 + $0xf8] sm:$0xff] %vm1846_vm4, %v1693_v56  ;;  %1879 = vst.msk [vmem:[#allocation3 + $0x100] sm:$0xff] %vm1846_vm4, %v1695_v28 }
 0x216   : > { %2097 = vrot.lane.b32.xlu1 %v1936_v46, %s7446_s28  ;;  %2099 = vrot.lane.b32.xlu0 %v1937_v34, %s7446_s28  ;;  %v1968_v46 = vld [vmem:[#allocation2 + $0x229] sm:$0xff]  ;;  %v1969_v34 = vld [vmem:[#allocation2 + $0x231] sm:$0xff] }
 0x218   : > { %v1697_v39 = vpop.permute.xlu1 %1696  ;;  %v1699_v19 = vpop.permute.xlu0 %1698 }
 0x219   : > { %1880 = vst.msk [vmem:[#allocation3 + $0x108] sm:$0xff] %vm1846_vm4, %v1697_v39  ;;  %1881 = vst.msk [vmem:[#allocation3 + $0x110] sm:$0xff] %vm1846_vm4, %v1699_v19 }
 0x21a   : > { %2101 = vrot.lane.b32.xlu1 %v1938_v48, %s7446_s28  ;;  %2103 = vrot.lane.b32.xlu0 %v1939_v22, %s7446_s28  ;;  %v1970_v48 = vld [vmem:[#allocation2 + $0x241] sm:$0xff]  ;;  %v1971_v22 = vld [vmem:[#allocation2 + $0x249] sm:$0xff] }
 0x21c   : > { %v1701_v60 = vpop.permute.xlu1 %1700  ;;  %v1703_v23 = vpop.permute.xlu0 %1702 }
 0x21d   : > { %1882 = vst.msk [vmem:[#allocation3 + $0x118] sm:$0xff] %vm1846_vm4, %v1701_v60  ;;  %1883 = vst.msk [vmem:[#allocation3 + $0x120] sm:$0xff] %vm1846_vm4, %v1703_v23 }
 0x21e   : > { %2105 = vrot.lane.b32.xlu1 %v1940_v40, %s7446_s28  ;;  %2107 = vrot.lane.b32.xlu0 %v1941_v26, %s7446_s28  ;;  %v1972_v40 = vld [vmem:[#allocation2 + $0x251] sm:$0xff]  ;;  %v1973_v26 = vld [vmem:[#allocation2 + $0x261] sm:$0xff] }
 0x220   : > { %v1705_v27 = vpop.permute.xlu1 %1704  ;;  %v1707_v36 = vpop.permute.xlu0 %1706 }
 0x221   : > { %1884 = vst.msk [vmem:[#allocation3 + $0x128] sm:$0xff] %vm1846_vm4, %v1705_v27  ;;  %1885 = vst.msk [vmem:[#allocation3 + $0x130] sm:$0xff] %vm1846_vm4, %v1707_v36 }
 0x222   : > { %2109 = vrot.lane.b32.xlu1 %v1942_v30, %s7446_s28  ;;  %2111 = vrot.lane.b32.xlu0 %v1943_v8, %s7446_s28  ;;  %v1974_v30 = vld [vmem:[#allocation2 + $0x269] sm:$0xff]  ;;  %v1975_v8 = vld [vmem:[#allocation2 + $0x271] sm:$0xff] }
 0x224   : > { %v1709_v13 = vpop.permute.xlu1 %1708  ;;  %v1711_v38 = vpop.permute.xlu0 %1710 }
 0x225   : > { %1886 = vst.msk [vmem:[#allocation3 + $0x138] sm:$0xff] %vm1846_vm4, %v1709_v13  ;;  %1887 = vst.msk [vmem:[#allocation3 + $0x140] sm:$0xff] %vm1846_vm4, %v1711_v38 }
 0x226   : > { %2113 = vrot.lane.b32.xlu1 %v1944_v32, %s7446_s28  ;;  %2115 = vrot.lane.b32.xlu0 %v1945_v42, %s7446_s28  ;;  %v1976_v32 = vld [vmem:[#allocation2 + $0x281] sm:$0xff]  ;;  %v1977_v42 = vld [vmem:[#allocation2 + $0x289] sm:$0xff] }
 0x228   : > { %v1713_v50 = vpop.permute.xlu1 %1712  ;;  %v1715_v47 = vpop.permute.xlu0 %1714 }
 0x229   : > { %1888 = vst.msk [vmem:[#allocation3 + $0x148] sm:$0xff] %vm1846_vm4, %v1713_v50  ;;  %1889 = vst.msk [vmem:[#allocation3 + $0x150] sm:$0xff] %vm1846_vm4, %v1715_v47 }
 0x22a   : > { %2117 = vrot.lane.b32.xlu1 %v1946_v45, %s7446_s28  ;;  %2119 = vrot.lane.b32.xlu0 %v1947_v43, %s7446_s28  ;;  %v1978_v45 = vld [vmem:[#allocation2 + $0x291] sm:$0xff]  ;;  %v1979_v43 = vld [vmem:[#allocation2 + $0x2a1] sm:$0xff] }
 0x22c   : > { %v1717_v55 = vpop.permute.xlu1 %1716  ;;  %v1719_v53 = vpop.permute.xlu0 %1718 }
 0x22d   : > { %1890 = vst.msk [vmem:[#allocation3 + $0x158] sm:$0xff] %vm1846_vm4, %v1717_v55  ;;  %1891 = vst.msk [vmem:[#allocation3 + $0x160] sm:$0xff] %vm1846_vm4, %v1719_v53 }
 0x22e   : > { %2121 = vrot.lane.b32.xlu1 %v1948_v52, %s7446_s28  ;;  %2123 = vrot.lane.b32.xlu0 %v1949_v51, %s7446_s28  ;;  %v1980_v52 = vld [vmem:[#allocation2 + $0x2a9] sm:$0xff]  ;;  %v1981_v51 = vld [vmem:[#allocation2 + $0x2b1] sm:$0xff] }
 0x230   : > { %v1721_v61 = vpop.permute.xlu1 %1720  ;;  %v1723_v59 = vpop.permute.xlu0 %1722 }
 0x231   : > { %1892 = vst.msk [vmem:[#allocation3 + $0x168] sm:$0xff] %vm1846_vm4, %v1721_v61  ;;  %1893 = vst.msk [vmem:[#allocation3 + $0x170] sm:$0xff] %vm1846_vm4, %v1723_v59 }
 0x232   : > { %2125 = vrot.lane.b32.xlu1 %v1950_v58, %s7446_s28  ;;  %2127 = vrot.lane.b32.xlu0 %v1951_v57, %s7446_s28  ;;  %v1982_v58 = vld [vmem:[#allocation2 + $0x2c1] sm:$0xff]  ;;  %v1983_v57 = vld [vmem:[#allocation2 + $0x2c9] sm:$0xff] }
 0x234   : > { %v1725_v3 = vpop.permute.xlu1 %1724  ;;  %v1727_v2 = vpop.permute.xlu0 %1726 }
 0x235   : > { %1894 = vst.msk [vmem:[#allocation3 + $0x178] sm:$0xff] %vm1846_vm4, %v1725_v3  ;;  %1895 = vst.msk [vmem:[#allocation3 + $0x180] sm:$0xff] %vm1846_vm4, %v1727_v2 }
 0x236   : > { %2129 = vrot.lane.b32.xlu1 %v1952_v1, %s7446_s28  ;;  %2131 = vrot.lane.b32.xlu0 %v1953_v62, %s7446_s28  ;;  %v1984_v1 = vld [vmem:[#allocation2 + $0x2d1] sm:$0xff]  ;;  %v1985_v62 = vld [vmem:[#allocation2 + $0x2e1] sm:$0xff] }
 0x238   : > { %v1729_v9 = vpop.permute.xlu1 %1728  ;;  %v1731_v7 = vpop.permute.xlu0 %1730 }
 0x239   : > { %1896 = vst.msk [vmem:[#allocation3 + $0x188] sm:$0xff] %vm1846_vm4, %v1729_v9  ;;  %1897 = vst.msk [vmem:[#allocation3 + $0x190] sm:$0xff] %vm1846_vm4, %v1731_v7 }
 0x23a   : > { %2133 = vrot.lane.b32.xlu1 %v1954_v6, %s7446_s28  ;;  %2135 = vrot.lane.b32.xlu0 %v1955_v4, %s7446_s28  ;;  %v1986_v6 = vld [vmem:[#allocation2 + $0x2e9] sm:$0xff]  ;;  %v1987_v4 = vld [vmem:[#allocation2 + $0x2f1] sm:$0xff] }
 0x23c   : > { %v1733_v14 = vpop.permute.xlu1 %1732  ;;  %v1735_v12 = vpop.permute.xlu0 %1734 }
 0x23d   : > { %1898 = vst.msk [vmem:[#allocation3 + $0x198] sm:$0xff] %vm1846_vm4, %v1733_v14  ;;  %1899 = vst.msk [vmem:[#allocation3 + $0x1a0] sm:$0xff] %vm1846_vm4, %v1735_v12 }
 0x23e   : > { %2137 = vrot.lane.b32.xlu1 %v1956_v11, %s7446_s28  ;;  %2139 = vrot.lane.b32.xlu0 %v1957_v10, %s7446_s28  ;;  %v1988_v11 = vld [vmem:[#allocation2 + $0x301] sm:$0xff]  ;;  %v1989_v10 = vld [vmem:[#allocation2 + $0x309] sm:$0xff] }
 0x240   : > { %v1737_v21 = vpop.permute.xlu1 %1736  ;;  %v1739_v18 = vpop.permute.xlu0 %1738 }
 0x241   : > { %1900 = vst.msk [vmem:[#allocation3 + $0x1a8] sm:$0xff] %vm1846_vm4, %v1737_v21  ;;  %1901 = vst.msk [vmem:[#allocation3 + $0x1b0] sm:$0xff] %vm1846_vm4, %v1739_v18 }
 0x242   : > { %2141 = vrot.lane.b32.xlu1 %v1958_v17, %s7446_s28  ;;  %2143 = vrot.lane.b32.xlu0 %v1959_v15, %s7446_s28  ;;  %v1990_v17 = vld [vmem:[#allocation2 + $0x311] sm:$0xff]  ;;  %v2352_v15 = vld [vmem:[#allocation2 + $0x22] sm:$0xff] }
 0x244   : > { %v1741_v35 = vpop.permute.xlu1 %1740  ;;  %v1743_v31 = vpop.permute.xlu0 %1742 }
 0x245   : > { %1902 = vst.msk [vmem:[#allocation3 + $0x1b8] sm:$0xff] %vm1846_vm4, %v1741_v35  ;;  %1903 = vst.msk [vmem:[#allocation3 + $0x1c0] sm:$0xff] %vm1846_vm4, %v1743_v31 }
 0x246   : > { %2145 = vrot.lane.b32.xlu1 %v1960_v29, %s7446_s28  ;;  %2147 = vrot.lane.b32.xlu0 %v1961_v24, %s7446_s28  ;;  %v2353_v29 = vld [vmem:[#allocation2 + $0x2a] sm:$0xff]  ;;  %v2354_v24 = vld [vmem:[#allocation2 + $0x32] sm:$0xff] }
 0x248   : > { %v1745_v49 = vpop.permute.xlu1 %1744  ;;  %v1747_v44 = vpop.permute.xlu0 %1746 }
 0x249   : > { %1904 = vst.msk [vmem:[#allocation3 + $0x1c8] sm:$0xff] %vm1846_vm4, %v1745_v49  ;;  %1905 = vst.msk [vmem:[#allocation3 + $0x1d0] sm:$0xff] %vm1846_vm4, %v1747_v44 }
 0x24a   : > { %2149 = vrot.lane.b32.xlu1 %v1962_v41, %s7446_s28  ;;  %2151 = vrot.lane.b32.xlu0 %v1963_v37, %s7446_s28  ;;  %v8739_v41 = vld [vmem:[#allocation2 + $0x42] sm:$0xff]  ;;  %v2356_v37 = vld [vmem:[#allocation2 + $0x4a] sm:$0xff] }
 0x24c   : > { %v1749_v16 = vpop.permute.xlu1 %1748  ;;  %v1751_v5 = vpop.permute.xlu0 %1750 }
 0x24d   : > { %1906 = vst.msk [vmem:[#allocation3 + $0x1d8] sm:$0xff] %vm1846_vm4, %v1749_v16  ;;  %1907 = vst.msk [vmem:[#allocation3 + $0x1e0] sm:$0xff] %vm1846_vm4, %v1751_v5 }
 0x24e   : > { %2153 = vrot.lane.b32.xlu1 %v1964_v63, %s7446_s28  ;;  %2155 = vrot.lane.b32.xlu0 %v1965_v54, %s7446_s28  ;;  %v2357_v63 = vld [vmem:[#allocation2 + $0x52] sm:$0xff]  ;;  %v2358_v54 = vld [vmem:[#allocation2 + $0x62] sm:$0xff] }
 0x250   : > { %v1753_v25 = vpop.permute.xlu1 %1752  ;;  %v1755_v20 = vpop.permute.xlu0 %1754 }
 0x251   : > { %1908 = vst.msk [vmem:[#allocation3 + $0x1e8] sm:$0xff] %vm1846_vm4, %v1753_v25  ;;  %1909 = vst.msk [vmem:[#allocation3 + $0x1f0] sm:$0xff] %vm1846_vm4, %v1755_v20 }
 0x252   : > { %2157 = vrot.lane.b32.xlu1 %v1966_v33, %s7446_s28  ;;  %2159 = vrot.lane.b32.xlu0 %v1967_v0, %s7446_s28  ;;  %v2359_v33 = vld [vmem:[#allocation2 + $0x6a] sm:$0xff]  ;;  %v2360_v0 = vld [vmem:[#allocation2 + $0x72] sm:$0xff] }
 0x254   : > { %v1757_v56 = vpop.permute.xlu1 %1756  ;;  %v1759_v28 = vpop.permute.xlu0 %1758 }
 0x255   : > { %1910 = vst.msk [vmem:[#allocation3 + $0x1f8] sm:$0xff] %vm1846_vm4, %v1757_v56  ;;  %1911 = vst.msk [vmem:[#allocation3 + $0x200] sm:$0xff] %vm1846_vm4, %v1759_v28 }
 0x256   : > { %2161 = vrot.lane.b32.xlu1 %v1968_v46, %s7446_s28  ;;  %2163 = vrot.lane.b32.xlu0 %v1969_v34, %s7446_s28  ;;  %v2361_v46 = vld [vmem:[#allocation2 + $0x82] sm:$0xff]  ;;  %v2362_v34 = vld [vmem:[#allocation2 + $0x8a] sm:$0xff] }
 0x258   : > { %v1761_v39 = vpop.permute.xlu1 %1760  ;;  %v1763_v19 = vpop.permute.xlu0 %1762 }
 0x259   : > { %1912 = vst.msk [vmem:[#allocation3 + $0x208] sm:$0xff] %vm1846_vm4, %v1761_v39  ;;  %1913 = vst.msk [vmem:[#allocation3 + $0x210] sm:$0xff] %vm1846_vm4, %v1763_v19 }
 0x25a   : > { %2165 = vrot.lane.b32.xlu1 %v1970_v48, %s7446_s28  ;;  %2167 = vrot.lane.b32.xlu0 %v1971_v22, %s7446_s28  ;;  %v2363_v48 = vld [vmem:[#allocation2 + $0x92] sm:$0xff]  ;;  %v2364_v22 = vld [vmem:[#allocation2 + $0xa2] sm:$0xff] }
 0x25c   : > { %v1765_v60 = vpop.permute.xlu1 %1764  ;;  %v1767_v23 = vpop.permute.xlu0 %1766 }
 0x25d   : > { %1914 = vst.msk [vmem:[#allocation3 + $0x218] sm:$0xff] %vm1846_vm4, %v1765_v60  ;;  %1915 = vst.msk [vmem:[#allocation3 + $0x220] sm:$0xff] %vm1846_vm4, %v1767_v23 }
 0x25e   : > { %2169 = vrot.lane.b32.xlu1 %v1972_v40, %s7446_s28  ;;  %2171 = vrot.lane.b32.xlu0 %v1973_v26, %s7446_s28  ;;  %v2365_v40 = vld [vmem:[#allocation2 + $0xaa] sm:$0xff]  ;;  %v2366_v26 = vld [vmem:[#allocation2 + $0xb2] sm:$0xff] }
 0x260   : > { %v1769_v27 = vpop.permute.xlu1 %1768  ;;  %v1771_v36 = vpop.permute.xlu0 %1770 }
 0x261   : > { %1916 = vst.msk [vmem:[#allocation3 + $0x228] sm:$0xff] %vm1846_vm4, %v1769_v27  ;;  %1917 = vst.msk [vmem:[#allocation3 + $0x230] sm:$0xff] %vm1846_vm4, %v1771_v36 }
 0x262   : > { %2173 = vrot.lane.b32.xlu1 %v1974_v30, %s7446_s28  ;;  %2175 = vrot.lane.b32.xlu0 %v1975_v8, %s7446_s28  ;;  %v2367_v30 = vld [vmem:[#allocation2 + $0xc2] sm:$0xff]  ;;  %v2368_v8 = vld [vmem:[#allocation2 + $0xca] sm:$0xff] }
 0x264   : > { %v1773_v13 = vpop.permute.xlu1 %1772  ;;  %v2064_v38 = vpop.permute.xlu0 %2063 }
 0x265   : > { %1918 = vst.msk [vmem:[#allocation3 + $0x238] sm:$0xff] %vm1846_vm4, %v1773_v13  ;;  %vm5894_vm4 = vcmask 326912  }
 0x266   : > { %2280 = vst.msk [vmem:[#allocation3] sm:$0xff] %vm2279_vm5, %v2064_v38  ;;  %2177 = vrot.lane.b32.xlu1 %v1976_v32, %s7446_s28  ;;  %2179 = vrot.lane.b32.xlu0 %v1977_v42, %s7446_s28  ;;  %v2369_v32 = vld [vmem:[#allocation2 + $0xd2] sm:$0xff]  ;;  %v2370_v42 = vld [vmem:[#allocation2 + $0xe2] sm:$0xff] }
 0x268   : > { %v2066_v50 = vpop.permute.xlu1 %2065  ;;  %v2068_v47 = vpop.permute.xlu0 %2067 }
 0x269   : > { %2281 = vst.msk [vmem:[#allocation3 + $0x8] sm:$0xff] %vm2279_vm5, %v2066_v50  ;;  %2282 = vst.msk [vmem:[#allocation3 + $0x10] sm:$0xff] %vm2279_vm5, %v2068_v47 }
 0x26a   : > { %2181 = vrot.lane.b32.xlu1 %v1978_v45, %s7446_s28  ;;  %2183 = vrot.lane.b32.xlu0 %v1979_v43, %s7446_s28  ;;  %v2371_v45 = vld [vmem:[#allocation2 + $0xea] sm:$0xff]  ;;  %v2372_v43 = vld [vmem:[#allocation2 + $0xf2] sm:$0xff] }
 0x26c   : > { %v2070_v55 = vpop.permute.xlu1 %2069  ;;  %v2072_v53 = vpop.permute.xlu0 %2071 }
 0x26d   : > { %2283 = vst.msk [vmem:[#allocation3 + $0x18] sm:$0xff] %vm2279_vm5, %v2070_v55  ;;  %2284 = vst.msk [vmem:[#allocation3 + $0x20] sm:$0xff] %vm2279_vm5, %v2072_v53 }
 0x26e   : > { %2185 = vrot.lane.b32.xlu1 %v1980_v52, %s7446_s28  ;;  %2187 = vrot.lane.b32.xlu0 %v1981_v51, %s7446_s28  ;;  %v2373_v52 = vld [vmem:[#allocation2 + $0x102] sm:$0xff]  ;;  %v2374_v51 = vld [vmem:[#allocation2 + $0x10a] sm:$0xff] }
 0x270   : > { %v2074_v61 = vpop.permute.xlu1 %2073  ;;  %v2076_v59 = vpop.permute.xlu0 %2075 }
 0x271   : > { %2285 = vst.msk [vmem:[#allocation3 + $0x28] sm:$0xff] %vm2279_vm5, %v2074_v61  ;;  %2286 = vst.msk [vmem:[#allocation3 + $0x30] sm:$0xff] %vm2279_vm5, %v2076_v59 }
 0x272   : > { %2189 = vrot.lane.b32.xlu1 %v1982_v58, %s7446_s28  ;;  %2191 = vrot.lane.b32.xlu0 %v1983_v57, %s7446_s28  ;;  %v2375_v58 = vld [vmem:[#allocation2 + $0x112] sm:$0xff]  ;;  %v2376_v57 = vld [vmem:[#allocation2 + $0x122] sm:$0xff] }
 0x274   : > { %v2078_v3 = vpop.permute.xlu1 %2077  ;;  %v2080_v2 = vpop.permute.xlu0 %2079 }
 0x275   : > { %2287 = vst.msk [vmem:[#allocation3 + $0x38] sm:$0xff] %vm2279_vm5, %v2078_v3  ;;  %2288 = vst.msk [vmem:[#allocation3 + $0x40] sm:$0xff] %vm2279_vm5, %v2080_v2 }
 0x276   : > { %2193 = vrot.lane.b32.xlu1 %v1984_v1, %s7446_s28  ;;  %2195 = vrot.lane.b32.xlu0 %v1985_v62, %s7446_s28  ;;  %v2377_v1 = vld [vmem:[#allocation2 + $0x12a] sm:$0xff]  ;;  %v2378_v62 = vld [vmem:[#allocation2 + $0x132] sm:$0xff] }
 0x278   : > { %v2082_v9 = vpop.permute.xlu1 %2081  ;;  %v2084_v7 = vpop.permute.xlu0 %2083 }
 0x279   : > { %2289 = vst.msk [vmem:[#allocation3 + $0x48] sm:$0xff] %vm2279_vm5, %v2082_v9  ;;  %2290 = vst.msk [vmem:[#allocation3 + $0x50] sm:$0xff] %vm2279_vm5, %v2084_v7 }
 0x27a   : > { %2197 = vrot.lane.b32.xlu1 %v1986_v6, %s7446_s28  ;;  %2199 = vrot.lane.b32.xlu0 %v1987_v4, %s7446_s28  ;;  %v2379_v6 = vld [vmem:[#allocation2 + $0x142] sm:$0xff]  ;;  %v2380_v4 = vld [vmem:[#allocation2 + $0x14a] sm:$0xff] }
 0x27c   : > { %v2086_v14 = vpop.permute.xlu1 %2085  ;;  %v2088_v12 = vpop.permute.xlu0 %2087 }
 0x27d   : > { %2291 = vst.msk [vmem:[#allocation3 + $0x58] sm:$0xff] %vm2279_vm5, %v2086_v14  ;;  %2292 = vst.msk [vmem:[#allocation3 + $0x60] sm:$0xff] %vm2279_vm5, %v2088_v12 }
 0x27e   : > { %2201 = vrot.lane.b32.xlu1 %v1988_v11, %s7446_s28  ;;  %2203 = vrot.lane.b32.xlu0 %v1989_v10, %s7446_s28  ;;  %v2381_v11 = vld [vmem:[#allocation2 + $0x152] sm:$0xff]  ;;  %v2382_v10 = vld [vmem:[#allocation2 + $0x162] sm:$0xff] }
 0x280   : > { %v2090_v21 = vpop.permute.xlu1 %2089  ;;  %v2092_v18 = vpop.permute.xlu0 %2091 }
 0x281   : > { %2293 = vst.msk [vmem:[#allocation3 + $0x68] sm:$0xff] %vm2279_vm5, %v2090_v21  ;;  %2294 = vst.msk [vmem:[#allocation3 + $0x70] sm:$0xff] %vm2279_vm5, %v2092_v18 }
 0x282   : > { %2205 = vrot.lane.b32.xlu1 %v1990_v17, %s7446_s28  ;;  %2496 = vrot.lane.b32.xlu0 %v2352_v15, %s7447_s29  ;;  %v2383_v17 = vld [vmem:[#allocation2 + $0x16a] sm:$0xff]  ;;  %v2384_v15 = vld [vmem:[#allocation2 + $0x172] sm:$0xff] }
 0x284   : > { %v2094_v35 = vpop.permute.xlu1 %2093  ;;  %v2096_v31 = vpop.permute.xlu0 %2095 }
 0x285   : > { %2295 = vst.msk [vmem:[#allocation3 + $0x78] sm:$0xff] %vm2279_vm5, %v2094_v35  ;;  %2296 = vst.msk [vmem:[#allocation3 + $0x80] sm:$0xff] %vm2279_vm5, %v2096_v31 }
 0x286   : > { %2498 = vrot.lane.b32.xlu1 %v2353_v29, %s7447_s29  ;;  %2500 = vrot.lane.b32.xlu0 %v2354_v24, %s7447_s29  ;;  %v2385_v29 = vld [vmem:[#allocation2 + $0x182] sm:$0xff]  ;;  %v2386_v24 = vld [vmem:[#allocation2 + $0x18a] sm:$0xff] }
 0x288   : > { %v2098_v49 = vpop.permute.xlu1 %2097  ;;  %v2100_v44 = vpop.permute.xlu0 %2099 }
 0x289   : > { %2297 = vst.msk [vmem:[#allocation3 + $0x88] sm:$0xff] %vm2279_vm5, %v2098_v49  ;;  %2298 = vst.msk [vmem:[#allocation3 + $0x90] sm:$0xff] %vm2279_vm5, %v2100_v44  ;;  %v2388_v49 = vld [vmem:[#allocation2 + $0x1a2] sm:$0xff] }
 0x28a   : > { %2502 = vrot.lane.b32.xlu1 %v8739_v41, %s7447_s29  ;;  %2504 = vrot.lane.b32.xlu0 %v2356_v37, %s7447_s29  ;;  %v2387_v37 = vld [vmem:[#allocation2 + $0x192] sm:$0xff] }
 0x28c   : > { %v2102_v16 = vpop.permute.xlu1 %2101  ;;  %v2104_v5 = vpop.permute.xlu0 %2103 }
 0x28d   : > { %2299 = vst.msk [vmem:[#allocation3 + $0x98] sm:$0xff] %vm2279_vm5, %v2102_v16  ;;  %2300 = vst.msk [vmem:[#allocation3 + $0xa0] sm:$0xff] %vm2279_vm5, %v2104_v5  ;;  %v2390_v16 = vld [vmem:[#allocation2 + $0x1b2] sm:$0xff] }
 0x28e   : > { %2506 = vrot.lane.b32.xlu1 %v2357_v63, %s7447_s29  ;;  %2508 = vrot.lane.b32.xlu0 %v2358_v54, %s7447_s29  ;;  %v2389_v54 = vld [vmem:[#allocation2 + $0x1aa] sm:$0xff] }
 0x290   : > { %v2106_v25 = vpop.permute.xlu1 %2105  ;;  %v2108_v20 = vpop.permute.xlu0 %2107 }
 0x291   : > { %2301 = vst.msk [vmem:[#allocation3 + $0xa8] sm:$0xff] %vm2279_vm5, %v2106_v25  ;;  %2302 = vst.msk [vmem:[#allocation3 + $0xb0] sm:$0xff] %vm2279_vm5, %v2108_v20  ;;  %v2392_v25 = vld [vmem:[#allocation2 + $0x1ca] sm:$0xff] }
 0x292   : > { %2510 = vrot.lane.b32.xlu1 %v2359_v33, %s7447_s29  ;;  %2512 = vrot.lane.b32.xlu0 %v2360_v0, %s7447_s29  ;;  %v2391_v0 = vld [vmem:[#allocation2 + $0x1c2] sm:$0xff] }
 0x294   : > { %v2110_v56 = vpop.permute.xlu1 %2109  ;;  %v2112_v28 = vpop.permute.xlu0 %2111 }
 0x295   : > { %2303 = vst.msk [vmem:[#allocation3 + $0xb8] sm:$0xff] %vm2279_vm5, %v2110_v56  ;;  %2304 = vst.msk [vmem:[#allocation3 + $0xc0] sm:$0xff] %vm2279_vm5, %v2112_v28  ;;  %v2394_v56 = vld [vmem:[#allocation2 + $0x1e2] sm:$0xff] }
 0x296   : > { %2514 = vrot.lane.b32.xlu1 %v2361_v46, %s7447_s29  ;;  %2516 = vrot.lane.b32.xlu0 %v2362_v34, %s7447_s29  ;;  %v2393_v34 = vld [vmem:[#allocation2 + $0x1d2] sm:$0xff] }
 0x298   : > { %v2114_v39 = vpop.permute.xlu1 %2113  ;;  %v2116_v19 = vpop.permute.xlu0 %2115 }
 0x299   : > { %2305 = vst.msk [vmem:[#allocation3 + $0xc8] sm:$0xff] %vm2279_vm5, %v2114_v39  ;;  %2306 = vst.msk [vmem:[#allocation3 + $0xd0] sm:$0xff] %vm2279_vm5, %v2116_v19  ;;  %v2396_v39 = vld [vmem:[#allocation2 + $0x1f2] sm:$0xff] }
 0x29a   : > { %2518 = vrot.lane.b32.xlu1 %v2363_v48, %s7447_s29  ;;  %2520 = vrot.lane.b32.xlu0 %v2364_v22, %s7447_s29  ;;  %v2395_v22 = vld [vmem:[#allocation2 + $0x1ea] sm:$0xff] }
 0x29c   : > { %v2118_v60 = vpop.permute.xlu1 %2117  ;;  %v2120_v23 = vpop.permute.xlu0 %2119 }
 0x29d   : > { %2307 = vst.msk [vmem:[#allocation3 + $0xd8] sm:$0xff] %vm2279_vm5, %v2118_v60  ;;  %2308 = vst.msk [vmem:[#allocation3 + $0xe0] sm:$0xff] %vm2279_vm5, %v2120_v23  ;;  %v2398_v60 = vld [vmem:[#allocation2 + $0x20a] sm:$0xff] }
 0x29e   : > { %2522 = vrot.lane.b32.xlu1 %v2365_v40, %s7447_s29  ;;  %2524 = vrot.lane.b32.xlu0 %v2366_v26, %s7447_s29  ;;  %v2397_v26 = vld [vmem:[#allocation2 + $0x202] sm:$0xff] }
 0x2a0   : > { %v2122_v27 = vpop.permute.xlu1 %2121  ;;  %v2124_v36 = vpop.permute.xlu0 %2123 }
 0x2a1   : > { %2309 = vst.msk [vmem:[#allocation3 + $0xe8] sm:$0xff] %vm2279_vm5, %v2122_v27  ;;  %2310 = vst.msk [vmem:[#allocation3 + $0xf0] sm:$0xff] %vm2279_vm5, %v2124_v36  ;;  %v2400_v27 = vld [vmem:[#allocation2 + $0x222] sm:$0xff] }
 0x2a2   : > { %2526 = vrot.lane.b32.xlu1 %v2367_v30, %s7447_s29  ;;  %2528 = vrot.lane.b32.xlu0 %v2368_v8, %s7447_s29  ;;  %v2399_v8 = vld [vmem:[#allocation2 + $0x212] sm:$0xff] }
 0x2a4   : > { %v2126_v13 = vpop.permute.xlu1 %2125  ;;  %v2128_v38 = vpop.permute.xlu0 %2127 }
 0x2a5   : > { %2311 = vst.msk [vmem:[#allocation3 + $0xf8] sm:$0xff] %vm2279_vm5, %v2126_v13  ;;  %2312 = vst.msk [vmem:[#allocation3 + $0x100] sm:$0xff] %vm2279_vm5, %v2128_v38  ;;  %v2402_v13 = vld [vmem:[#allocation2 + $0x232] sm:$0xff] }
 0x2a6   : > { %2530 = vrot.lane.b32.xlu1 %v2369_v32, %s7447_s29  ;;  %2532 = vrot.lane.b32.xlu0 %v2370_v42, %s7447_s29  ;;  %v2401_v42 = vld [vmem:[#allocation2 + $0x22a] sm:$0xff] }
 0x2a8   : > { %v2130_v50 = vpop.permute.xlu1 %2129  ;;  %v2132_v47 = vpop.permute.xlu0 %2131 }
 0x2a9   : > { %2313 = vst.msk [vmem:[#allocation3 + $0x108] sm:$0xff] %vm2279_vm5, %v2130_v50  ;;  %2314 = vst.msk [vmem:[#allocation3 + $0x110] sm:$0xff] %vm2279_vm5, %v2132_v47  ;;  %v2404_v50 = vld [vmem:[#allocation2 + $0x24a] sm:$0xff] }
 0x2aa   : > { %2534 = vrot.lane.b32.xlu1 %v2371_v45, %s7447_s29  ;;  %2536 = vrot.lane.b32.xlu0 %v2372_v43, %s7447_s29  ;;  %v2403_v43 = vld [vmem:[#allocation2 + $0x242] sm:$0xff] }
 0x2ac   : > { %v2134_v55 = vpop.permute.xlu1 %2133  ;;  %v2136_v53 = vpop.permute.xlu0 %2135 }
 0x2ad   : > { %2315 = vst.msk [vmem:[#allocation3 + $0x118] sm:$0xff] %vm2279_vm5, %v2134_v55  ;;  %2316 = vst.msk [vmem:[#allocation3 + $0x120] sm:$0xff] %vm2279_vm5, %v2136_v53  ;;  %v2406_v55 = vld [vmem:[#allocation2 + $0x262] sm:$0xff] }
 0x2ae   : > { %2538 = vrot.lane.b32.xlu1 %v2373_v52, %s7447_s29  ;;  %2540 = vrot.lane.b32.xlu0 %v2374_v51, %s7447_s29  ;;  %v2405_v51 = vld [vmem:[#allocation2 + $0x252] sm:$0xff] }
 0x2b0   : > { %v2138_v61 = vpop.permute.xlu1 %2137  ;;  %v2140_v59 = vpop.permute.xlu0 %2139 }
 0x2b1   : > { %2317 = vst.msk [vmem:[#allocation3 + $0x128] sm:$0xff] %vm2279_vm5, %v2138_v61  ;;  %2318 = vst.msk [vmem:[#allocation3 + $0x130] sm:$0xff] %vm2279_vm5, %v2140_v59  ;;  %v2408_v61 = vld [vmem:[#allocation2 + $0x272] sm:$0xff] }
 0x2b2   : > { %2542 = vrot.lane.b32.xlu1 %v2375_v58, %s7447_s29  ;;  %2544 = vrot.lane.b32.xlu0 %v2376_v57, %s7447_s29  ;;  %v2407_v57 = vld [vmem:[#allocation2 + $0x26a] sm:$0xff] }
 0x2b4   : > { %v2142_v3 = vpop.permute.xlu1 %2141  ;;  %v2144_v2 = vpop.permute.xlu0 %2143 }
 0x2b5   : > { %2319 = vst.msk [vmem:[#allocation3 + $0x138] sm:$0xff] %vm2279_vm5, %v2142_v3  ;;  %2320 = vst.msk [vmem:[#allocation3 + $0x140] sm:$0xff] %vm2279_vm5, %v2144_v2  ;;  %v2410_v3 = vld [vmem:[#allocation2 + $0x28a] sm:$0xff] }
 0x2b6   : > { %2546 = vrot.lane.b32.xlu1 %v2377_v1, %s7447_s29  ;;  %2548 = vrot.lane.b32.xlu0 %v2378_v62, %s7447_s29  ;;  %v2409_v62 = vld [vmem:[#allocation2 + $0x282] sm:$0xff] }
 0x2b8   : > { %v2146_v9 = vpop.permute.xlu1 %2145  ;;  %v2148_v7 = vpop.permute.xlu0 %2147 }
 0x2b9   : > { %2321 = vst.msk [vmem:[#allocation3 + $0x148] sm:$0xff] %vm2279_vm5, %v2146_v9  ;;  %2322 = vst.msk [vmem:[#allocation3 + $0x150] sm:$0xff] %vm2279_vm5, %v2148_v7  ;;  %v2412_v9 = vld [vmem:[#allocation2 + $0x2a2] sm:$0xff] }
 0x2ba   : > { %2550 = vrot.lane.b32.xlu1 %v2379_v6, %s7447_s29  ;;  %2552 = vrot.lane.b32.xlu0 %v2380_v4, %s7447_s29  ;;  %v2411_v4 = vld [vmem:[#allocation2 + $0x292] sm:$0xff] }
 0x2bc   : > { %v2150_v14 = vpop.permute.xlu1 %2149  ;;  %v2152_v12 = vpop.permute.xlu0 %2151 }
 0x2bd   : > { %2323 = vst.msk [vmem:[#allocation3 + $0x158] sm:$0xff] %vm2279_vm5, %v2150_v14  ;;  %2324 = vst.msk [vmem:[#allocation3 + $0x160] sm:$0xff] %vm2279_vm5, %v2152_v12  ;;  %v2414_v14 = vld [vmem:[#allocation2 + $0x2b2] sm:$0xff] }
 0x2be   : > { %2554 = vrot.lane.b32.xlu1 %v2381_v11, %s7447_s29  ;;  %2556 = vrot.lane.b32.xlu0 %v2382_v10, %s7447_s29  ;;  %v2413_v10 = vld [vmem:[#allocation2 + $0x2aa] sm:$0xff] }
 0x2c0   : > { %v2154_v21 = vpop.permute.xlu1 %2153  ;;  %v2156_v18 = vpop.permute.xlu0 %2155 }
 0x2c1   : > { %2325 = vst.msk [vmem:[#allocation3 + $0x168] sm:$0xff] %vm2279_vm5, %v2154_v21  ;;  %2326 = vst.msk [vmem:[#allocation3 + $0x170] sm:$0xff] %vm2279_vm5, %v2156_v18  ;;  %v2416_v21 = vld [vmem:[#allocation2 + $0x2ca] sm:$0xff] }
 0x2c2   : > { %2558 = vrot.lane.b32.xlu1 %v2383_v17, %s7447_s29  ;;  %2560 = vrot.lane.b32.xlu0 %v2384_v15, %s7447_s29  ;;  %v2415_v15 = vld [vmem:[#allocation2 + $0x2c2] sm:$0xff] }
 0x2c4   : > { %v2158_v35 = vpop.permute.xlu1 %2157  ;;  %v2160_v31 = vpop.permute.xlu0 %2159 }
 0x2c5   : > { %2327 = vst.msk [vmem:[#allocation3 + $0x178] sm:$0xff] %vm2279_vm5, %v2158_v35  ;;  %2328 = vst.msk [vmem:[#allocation3 + $0x180] sm:$0xff] %vm2279_vm5, %v2160_v31  ;;  %v2418_v35 = vld [vmem:[#allocation2 + $0x2e2] sm:$0xff] }
 0x2c6   : > { %2562 = vrot.lane.b32.xlu1 %v2385_v29, %s7447_s29  ;;  %2564 = vrot.lane.b32.xlu0 %v2386_v24, %s7447_s29  ;;  %v2417_v24 = vld [vmem:[#allocation2 + $0x2d2] sm:$0xff] }
 0x2c8   : > { %v2162_v44 = vpop.permute.xlu1 %2161  ;;  %v2164_v63 = vpop.permute.xlu0 %2163 }
 0x2c9   : > { %2329 = vst.msk [vmem:[#allocation3 + $0x188] sm:$0xff] %vm2279_vm5, %v2162_v44  ;;  %2330 = vst.msk [vmem:[#allocation3 + $0x190] sm:$0xff] %vm2279_vm5, %v2164_v63  ;;  %v2420_v44 = vld [vmem:[#allocation2 + $0x2f2] sm:$0xff] }
 0x2ca   : > { %2566 = vrot.lane.b32.xlu1 %v2387_v37, %s7447_s29  ;;  %2568 = vrot.lane.b32.xlu0 %v2388_v49, %s7447_s29  ;;  %v2419_v49 = vld [vmem:[#allocation2 + $0x2ea] sm:$0xff] }
 0x2cc   : > { %v2166_v5 = vpop.permute.xlu1 %2165  ;;  %v2168_v33 = vpop.permute.xlu0 %2167 }
 0x2cd   : > { %2331 = vst.msk [vmem:[#allocation3 + $0x198] sm:$0xff] %vm2279_vm5, %v2166_v5  ;;  %2332 = vst.msk [vmem:[#allocation3 + $0x1a0] sm:$0xff] %vm2279_vm5, %v2168_v33  ;;  %v2422_v5 = vld [vmem:[#allocation2 + $0x30a] sm:$0xff] }
 0x2ce   : > { %2570 = vrot.lane.b32.xlu1 %v2389_v54, %s7447_s29  ;;  %2572 = vrot.lane.b32.xlu0 %v2390_v16, %s7447_s29  ;;  %v2421_v16 = vld [vmem:[#allocation2 + $0x302] sm:$0xff] }
 0x2d0   : > { %v2170_v20 = vpop.permute.xlu1 %2169  ;;  %v2172_v46 = vpop.permute.xlu0 %2171 }
 0x2d1   : > { %2333 = vst.msk [vmem:[#allocation3 + $0x1a8] sm:$0xff] %vm2279_vm5, %v2170_v20  ;;  %2334 = vst.msk [vmem:[#allocation3 + $0x1b0] sm:$0xff] %vm2279_vm5, %v2172_v46  ;;  %v2786_v20 = vld [vmem:[#allocation2 + $0x40] sm:$0xff] }
 0x2d2   : > { %2574 = vrot.lane.b32.xlu1 %v2391_v0, %s7447_s29  ;;  %2576 = vrot.lane.b32.xlu0 %v2392_v25, %s7447_s29  ;;  %v2423_v25 = vld [vmem:[#allocation2 + $0x312] sm:$0xff] }
 0x2d4   : > { %v2174_v28 = vpop.permute.xlu1 %2173  ;;  %v2176_v48 = vpop.permute.xlu0 %2175 }
 0x2d5   : > { %2335 = vst.msk [vmem:[#allocation3 + $0x1b8] sm:$0xff] %vm2279_vm5, %v2174_v28  ;;  %2336 = vst.msk [vmem:[#allocation3 + $0x1c0] sm:$0xff] %vm2279_vm5, %v2176_v48  ;;  %v2788_v28 = vld [vmem:[#allocation2 + $0x50] sm:$0xff] }
 0x2d6   : > { %2578 = vrot.lane.b32.xlu1 %v2393_v34, %s7447_s29  ;;  %2580 = vrot.lane.b32.xlu0 %v2394_v56, %s7447_s29  ;;  %v2787_v56 = vld [vmem:[#allocation2 + $0x48] sm:$0xff] }
 0x2d8   : > { %v2178_v19 = vpop.permute.xlu1 %2177  ;;  %v2180_v40 = vpop.permute.xlu0 %2179 }
 0x2d9   : > { %2337 = vst.msk [vmem:[#allocation3 + $0x1c8] sm:$0xff] %vm2279_vm5, %v2178_v19  ;;  %2338 = vst.msk [vmem:[#allocation3 + $0x1d0] sm:$0xff] %vm2279_vm5, %v2180_v40  ;;  %v2790_v19 = vld [vmem:[#allocation2 + $0x68] sm:$0xff] }
 0x2da   : > { %2582 = vrot.lane.b32.xlu1 %v2395_v22, %s7447_s29  ;;  %2584 = vrot.lane.b32.xlu0 %v2396_v39, %s7447_s29  ;;  %v2789_v39 = vld [vmem:[#allocation2 + $0x60] sm:$0xff] }
 0x2dc   : > { %v2182_v23 = vpop.permute.xlu1 %2181  ;;  %v2184_v30 = vpop.permute.xlu0 %2183 }
 0x2dd   : > { %2339 = vst.msk [vmem:[#allocation3 + $0x1d8] sm:$0xff] %vm2279_vm5, %v2182_v23  ;;  %2340 = vst.msk [vmem:[#allocation3 + $0x1e0] sm:$0xff] %vm2279_vm5, %v2184_v30  ;;  %v2792_v23 = vld [vmem:[#allocation2 + $0x80] sm:$0xff] }
 0x2de   : > { %2586 = vrot.lane.b32.xlu1 %v2397_v26, %s7447_s29  ;;  %2588 = vrot.lane.b32.xlu0 %v2398_v60, %s7447_s29  ;;  %v2791_v60 = vld [vmem:[#allocation2 + $0x70] sm:$0xff] }
 0x2e0   : > { %v2186_v36 = vpop.permute.xlu1 %2185  ;;  %v2188_v32 = vpop.permute.xlu0 %2187 }
 0x2e1   : > { %2341 = vst.msk [vmem:[#allocation3 + $0x1e8] sm:$0xff] %vm2279_vm5, %v2186_v36  ;;  %2342 = vst.msk [vmem:[#allocation3 + $0x1f0] sm:$0xff] %vm2279_vm5, %v2188_v32  ;;  %v2794_v36 = vld [vmem:[#allocation2 + $0x90] sm:$0xff] }
 0x2e2   : > { %2590 = vrot.lane.b32.xlu1 %v2399_v8, %s7447_s29  ;;  %2592 = vrot.lane.b32.xlu0 %v2400_v27, %s7447_s29  ;;  %v2793_v27 = vld [vmem:[#allocation2 + $0x88] sm:$0xff] }
 0x2e4   : > { %v2190_v38 = vpop.permute.xlu1 %2189  ;;  %v2192_v45 = vpop.permute.xlu0 %2191 }
 0x2e5   : > { %2343 = vst.msk [vmem:[#allocation3 + $0x1f8] sm:$0xff] %vm2279_vm5, %v2190_v38  ;;  %2344 = vst.msk [vmem:[#allocation3 + $0x200] sm:$0xff] %vm2279_vm5, %v2192_v45  ;;  %v2796_v38 = vld [vmem:[#allocation2 + $0xa8] sm:$0xff] }
 0x2e6   : > { %2594 = vrot.lane.b32.xlu1 %v2401_v42, %s7447_s29  ;;  %2596 = vrot.lane.b32.xlu0 %v2402_v13, %s7447_s29  ;;  %v2795_v13 = vld [vmem:[#allocation2 + $0xa0] sm:$0xff] }
 0x2e8   : > { %v2194_v47 = vpop.permute.xlu1 %2193  ;;  %v2196_v52 = vpop.permute.xlu0 %2195 }
 0x2e9   : > { %2345 = vst.msk [vmem:[#allocation3 + $0x208] sm:$0xff] %vm2279_vm5, %v2194_v47  ;;  %2346 = vst.msk [vmem:[#allocation3 + $0x210] sm:$0xff] %vm2279_vm5, %v2196_v52  ;;  %v2798_v47 = vld [vmem:[#allocation2 + $0xc0] sm:$0xff] }
 0x2ea   : > { %2598 = vrot.lane.b32.xlu1 %v2403_v43, %s7447_s29  ;;  %2600 = vrot.lane.b32.xlu0 %v2404_v50, %s7447_s29  ;;  %v2797_v50 = vld [vmem:[#allocation2 + $0xb0] sm:$0xff] }
 0x2ec   : > { %v2198_v53 = vpop.permute.xlu1 %2197  ;;  %v2200_v58 = vpop.permute.xlu0 %2199 }
 0x2ed   : > { %2347 = vst.msk [vmem:[#allocation3 + $0x218] sm:$0xff] %vm2279_vm5, %v2198_v53  ;;  %2348 = vst.msk [vmem:[#allocation3 + $0x220] sm:$0xff] %vm2279_vm5, %v2200_v58  ;;  %v2800_v53 = vld [vmem:[#allocation2 + $0xd0] sm:$0xff] }
 0x2ee   : > { %2602 = vrot.lane.b32.xlu1 %v2405_v51, %s7447_s29  ;;  %2604 = vrot.lane.b32.xlu0 %v2406_v55, %s7447_s29  ;;  %v2799_v55 = vld [vmem:[#allocation2 + $0xc8] sm:$0xff] }
 0x2f0   : > { %v2202_v59 = vpop.permute.xlu1 %2201  ;;  %v2204_v1 = vpop.permute.xlu0 %2203 }
 0x2f1   : > { %2349 = vst.msk [vmem:[#allocation3 + $0x228] sm:$0xff] %vm2279_vm5, %v2202_v59  ;;  %2350 = vst.msk [vmem:[#allocation3 + $0x230] sm:$0xff] %vm2279_vm5, %v2204_v1  ;;  %v2802_v59 = vld [vmem:[#allocation2 + $0xe8] sm:$0xff] }
 0x2f2   : > { %2606 = vrot.lane.b32.xlu1 %v2407_v57, %s7447_s29  ;;  %2608 = vrot.lane.b32.xlu0 %v2408_v61, %s7447_s29  ;;  %v2801_v61 = vld [vmem:[#allocation2 + $0xe0] sm:$0xff] }
 0x2f4   : > { %v2206_v2 = vpop.permute.xlu1 %2205  ;;  %v2497_v6 = vpop.permute.xlu0 %2496 }
 0x2f5   : > { %2351 = vst.msk [vmem:[#allocation3 + $0x238] sm:$0xff] %vm2279_vm5, %v2206_v2  ;;  %v2804_v2 = vld [vmem:[#allocation2 + $0x100] sm:$0xff]  ;;  %vm6039_vm5 = vcmask 392512  }
 0x2f6   : > { %2713 = vst.msk [vmem:[#allocation3] sm:$0xff] %vm2712_vm6, %v2497_v6  ;;  %2610 = vrot.lane.b32.xlu1 %v2409_v62, %s7447_s29  ;;  %2612 = vrot.lane.b32.xlu0 %v2410_v3, %s7447_s29  ;;  %v2803_v3 = vld [vmem:[#allocation2 + $0xf0] sm:$0xff] }
 0x2f8   : > { %v2499_v7 = vpop.permute.xlu1 %2498  ;;  %v2501_v11 = vpop.permute.xlu0 %2500 }
 0x2f9   : > { %2714 = vst.msk [vmem:[#allocation3 + $0x8] sm:$0xff] %vm2712_vm6, %v2499_v7  ;;  %2715 = vst.msk [vmem:[#allocation3 + $0x10] sm:$0xff] %vm2712_vm6, %v2501_v11  ;;  %v2806_v7 = vld [vmem:[#allocation2 + $0x110] sm:$0xff] }
 0x2fa   : > { %2614 = vrot.lane.b32.xlu1 %v2411_v4, %s7447_s29  ;;  %2616 = vrot.lane.b32.xlu0 %v2412_v9, %s7447_s29  ;;  %v2805_v9 = vld [vmem:[#allocation2 + $0x108] sm:$0xff] }
 0x2fc   : > { %v2503_v12 = vpop.permute.xlu1 %2502  ;;  %v2505_v17 = vpop.permute.xlu0 %2504 }
 0x2fd   : > { %2716 = vst.msk [vmem:[#allocation3 + $0x18] sm:$0xff] %vm2712_vm6, %v2503_v12  ;;  %2717 = vst.msk [vmem:[#allocation3 + $0x20] sm:$0xff] %vm2712_vm6, %v2505_v17  ;;  %v2808_v12 = vld [vmem:[#allocation2 + $0x128] sm:$0xff] }
 0x2fe   : > { %2618 = vrot.lane.b32.xlu1 %v2413_v10, %s7447_s29  ;;  %2620 = vrot.lane.b32.xlu0 %v2414_v14, %s7447_s29  ;;  %v2807_v14 = vld [vmem:[#allocation2 + $0x120] sm:$0xff] }
 0x300   : > { %v2507_v18 = vpop.permute.xlu1 %2506  ;;  %v2509_v29 = vpop.permute.xlu0 %2508 }
 0x301   : > { %2718 = vst.msk [vmem:[#allocation3 + $0x28] sm:$0xff] %vm2712_vm6, %v2507_v18  ;;  %2719 = vst.msk [vmem:[#allocation3 + $0x30] sm:$0xff] %vm2712_vm6, %v2509_v29  ;;  %v2810_v18 = vld [vmem:[#allocation2 + $0x140] sm:$0xff] }
 0x302   : > { %2622 = vrot.lane.b32.xlu1 %v2415_v15, %s7447_s29  ;;  %2624 = vrot.lane.b32.xlu0 %v2416_v21, %s7447_s29  ;;  %v2809_v21 = vld [vmem:[#allocation2 + $0x130] sm:$0xff] }
 0x304   : > { %v2511_v31 = vpop.permute.xlu1 %2510  ;;  %v2513_v37 = vpop.permute.xlu0 %2512 }
 0x305   : > { %2720 = vst.msk [vmem:[#allocation3 + $0x38] sm:$0xff] %vm2712_vm6, %v2511_v31  ;;  %2721 = vst.msk [vmem:[#allocation3 + $0x40] sm:$0xff] %vm2712_vm6, %v2513_v37  ;;  %v2812_v31 = vld [vmem:[#allocation2 + $0x150] sm:$0xff] }
 0x306   : > { %2626 = vrot.lane.b32.xlu1 %v2417_v24, %s7447_s29  ;;  %2628 = vrot.lane.b32.xlu0 %v2418_v35, %s7447_s29  ;;  %v2811_v35 = vld [vmem:[#allocation2 + $0x148] sm:$0xff] }
 0x308   : > { %v2515_v63 = vpop.permute.xlu1 %2514  ;;  %v2517_v54 = vpop.permute.xlu0 %2516 }
 0x309   : > { %2722 = vst.msk [vmem:[#allocation3 + $0x48] sm:$0xff] %vm2712_vm6, %v2515_v63  ;;  %2723 = vst.msk [vmem:[#allocation3 + $0x50] sm:$0xff] %vm2712_vm6, %v2517_v54  ;;  %v2814_v63 = vld [vmem:[#allocation2 + $0x168] sm:$0xff] }
 0x30a   : > { %2630 = vrot.lane.b32.xlu1 %v2419_v49, %s7447_s29  ;;  %2632 = vrot.lane.b32.xlu0 %v2420_v44, %s7447_s29  ;;  %v2813_v44 = vld [vmem:[#allocation2 + $0x160] sm:$0xff] }
 0x30c   : > { %v2519_v33 = vpop.permute.xlu1 %2518  ;;  %v2521_v0 = vpop.permute.xlu0 %2520 }
 0x30d   : > { %2724 = vst.msk [vmem:[#allocation3 + $0x58] sm:$0xff] %vm2712_vm6, %v2519_v33  ;;  %2725 = vst.msk [vmem:[#allocation3 + $0x60] sm:$0xff] %vm2712_vm6, %v2521_v0  ;;  %v2816_v33 = vld [vmem:[#allocation2 + $0x180] sm:$0xff] }
 0x30e   : > { %2634 = vrot.lane.b32.xlu1 %v2421_v16, %s7447_s29  ;;  %2636 = vrot.lane.b32.xlu0 %v2422_v5, %s7447_s29  ;;  %v2815_v5 = vld [vmem:[#allocation2 + $0x170] sm:$0xff] }
 0x310   : > { %v2523_v46 = vpop.permute.xlu1 %2522  ;;  %v2525_v34 = vpop.permute.xlu0 %2524 }
 0x311   : > { %2726 = vst.msk [vmem:[#allocation3 + $0x68] sm:$0xff] %vm2712_vm6, %v2523_v46  ;;  %2727 = vst.msk [vmem:[#allocation3 + $0x70] sm:$0xff] %vm2712_vm6, %v2525_v34  ;;  %v2818_v46 = vld [vmem:[#allocation2 + $0x190] sm:$0xff] }
 0x312   : > { %2638 = vrot.lane.b32.xlu1 %v2423_v25, %s7447_s29  ;;  %2930 = vrot.lane.b32.xlu0 %v2786_v20, %s7448_s30  ;;  %v2817_v20 = vld [vmem:[#allocation2 + $0x188] sm:$0xff] }
 0x314   : > { %v2527_v48 = vpop.permute.xlu1 %2526  ;;  %v2529_v22 = vpop.permute.xlu0 %2528 }
 0x315   : > { %2728 = vst.msk [vmem:[#allocation3 + $0x78] sm:$0xff] %vm2712_vm6, %v2527_v48  ;;  %2729 = vst.msk [vmem:[#allocation3 + $0x80] sm:$0xff] %vm2712_vm6, %v2529_v22  ;;  %v2820_v48 = vld [vmem:[#allocation2 + $0x1a8] sm:$0xff] }
 0x316   : > { %2932 = vrot.lane.b32.xlu1 %v2787_v56, %s7448_s30  ;;  %2934 = vrot.lane.b32.xlu0 %v2788_v28, %s7448_s30  ;;  %v2819_v28 = vld [vmem:[#allocation2 + $0x1a0] sm:$0xff] }
 0x318   : > { %v2531_v40 = vpop.permute.xlu1 %2530  ;;  %v2533_v26 = vpop.permute.xlu0 %2532 }
 0x319   : > { %2730 = vst.msk [vmem:[#allocation3 + $0x88] sm:$0xff] %vm2712_vm6, %v2531_v40  ;;  %2731 = vst.msk [vmem:[#allocation3 + $0x90] sm:$0xff] %vm2712_vm6, %v2533_v26  ;;  %v2822_v40 = vld [vmem:[#allocation2 + $0x1c0] sm:$0xff] }
 0x31a   : > { %2936 = vrot.lane.b32.xlu1 %v2789_v39, %s7448_s30  ;;  %2938 = vrot.lane.b32.xlu0 %v2790_v19, %s7448_s30  ;;  %v2821_v19 = vld [vmem:[#allocation2 + $0x1b0] sm:$0xff] }
 0x31c   : > { %v2535_v30 = vpop.permute.xlu1 %2534  ;;  %v2537_v8 = vpop.permute.xlu0 %2536 }
 0x31d   : > { %2732 = vst.msk [vmem:[#allocation3 + $0x98] sm:$0xff] %vm2712_vm6, %v2535_v30  ;;  %2733 = vst.msk [vmem:[#allocation3 + $0xa0] sm:$0xff] %vm2712_vm6, %v2537_v8  ;;  %v2824_v30 = vld [vmem:[#allocation2 + $0x1d0] sm:$0xff] }
 0x31e   : > { %2940 = vrot.lane.b32.xlu1 %v2791_v60, %s7448_s30  ;;  %2942 = vrot.lane.b32.xlu0 %v2792_v23, %s7448_s30  ;;  %v2823_v23 = vld [vmem:[#allocation2 + $0x1c8] sm:$0xff] }
 0x320   : > { %v2539_v32 = vpop.permute.xlu1 %2538  ;;  %v2541_v42 = vpop.permute.xlu0 %2540 }
 0x321   : > { %2734 = vst.msk [vmem:[#allocation3 + $0xa8] sm:$0xff] %vm2712_vm6, %v2539_v32  ;;  %2735 = vst.msk [vmem:[#allocation3 + $0xb0] sm:$0xff] %vm2712_vm6, %v2541_v42  ;;  %v2826_v32 = vld [vmem:[#allocation2 + $0x1e8] sm:$0xff] }
 0x322   : > { %2944 = vrot.lane.b32.xlu1 %v2793_v27, %s7448_s30  ;;  %2946 = vrot.lane.b32.xlu0 %v2794_v36, %s7448_s30  ;;  %v2825_v36 = vld [vmem:[#allocation2 + $0x1e0] sm:$0xff] }
 0x324   : > { %v2543_v45 = vpop.permute.xlu1 %2542  ;;  %v2545_v43 = vpop.permute.xlu0 %2544 }
 0x325   : > { %2736 = vst.msk [vmem:[#allocation3 + $0xb8] sm:$0xff] %vm2712_vm6, %v2543_v45  ;;  %2737 = vst.msk [vmem:[#allocation3 + $0xc0] sm:$0xff] %vm2712_vm6, %v2545_v43  ;;  %v2828_v45 = vld [vmem:[#allocation2 + $0x200] sm:$0xff] }
 0x326   : > { %2948 = vrot.lane.b32.xlu1 %v2795_v13, %s7448_s30  ;;  %2950 = vrot.lane.b32.xlu0 %v2796_v38, %s7448_s30  ;;  %v2827_v38 = vld [vmem:[#allocation2 + $0x1f0] sm:$0xff] }
 0x328   : > { %v2547_v52 = vpop.permute.xlu1 %2546  ;;  %v2549_v51 = vpop.permute.xlu0 %2548 }
 0x329   : > { %2738 = vst.msk [vmem:[#allocation3 + $0xc8] sm:$0xff] %vm2712_vm6, %v2547_v52  ;;  %2739 = vst.msk [vmem:[#allocation3 + $0xd0] sm:$0xff] %vm2712_vm6, %v2549_v51  ;;  %v2830_v52 = vld [vmem:[#allocation2 + $0x210] sm:$0xff] }
 0x32a   : > { %2952 = vrot.lane.b32.xlu1 %v2797_v50, %s7448_s30  ;;  %2954 = vrot.lane.b32.xlu0 %v2798_v47, %s7448_s30  ;;  %v2829_v47 = vld [vmem:[#allocation2 + $0x208] sm:$0xff] }
 0x32c   : > { %v2551_v58 = vpop.permute.xlu1 %2550  ;;  %v2553_v57 = vpop.permute.xlu0 %2552 }
 0x32d   : > { %2740 = vst.msk [vmem:[#allocation3 + $0xd8] sm:$0xff] %vm2712_vm6, %v2551_v58  ;;  %2741 = vst.msk [vmem:[#allocation3 + $0xe0] sm:$0xff] %vm2712_vm6, %v2553_v57  ;;  %v2832_v58 = vld [vmem:[#allocation2 + $0x228] sm:$0xff] }
 0x32e   : > { %2956 = vrot.lane.b32.xlu1 %v2799_v55, %s7448_s30  ;;  %2958 = vrot.lane.b32.xlu0 %v2800_v53, %s7448_s30  ;;  %v2831_v53 = vld [vmem:[#allocation2 + $0x220] sm:$0xff] }
 0x330   : > { %v2555_v1 = vpop.permute.xlu1 %2554  ;;  %v2557_v62 = vpop.permute.xlu0 %2556 }
 0x331   : > { %2742 = vst.msk [vmem:[#allocation3 + $0xe8] sm:$0xff] %vm2712_vm6, %v2555_v1  ;;  %2743 = vst.msk [vmem:[#allocation3 + $0xf0] sm:$0xff] %vm2712_vm6, %v2557_v62  ;;  %v2834_v1 = vld [vmem:[#allocation2 + $0x240] sm:$0xff] }
 0x332   : > { %2960 = vrot.lane.b32.xlu1 %v2801_v61, %s7448_s30  ;;  %2962 = vrot.lane.b32.xlu0 %v2802_v59, %s7448_s30  ;;  %v2833_v59 = vld [vmem:[#allocation2 + $0x230] sm:$0xff] }
 0x334   : > { %v2559_v6 = vpop.permute.xlu1 %2558  ;;  %v2561_v4 = vpop.permute.xlu0 %2560 }
 0x335   : > { %2744 = vst.msk [vmem:[#allocation3 + $0xf8] sm:$0xff] %vm2712_vm6, %v2559_v6  ;;  %2745 = vst.msk [vmem:[#allocation3 + $0x100] sm:$0xff] %vm2712_vm6, %v2561_v4  ;;  %v4158_v6 = vld [vmem:[%s10405_s1 + $0x8] sm:$0xff] }
 0x336   : > { %2964 = vrot.lane.b32.xlu1 %v2803_v3, %s7448_s30  ;;  %2966 = vrot.lane.b32.xlu0 %v2804_v2, %s7448_s30  ;;  %v4157_v2 = vld [vmem:[%s10405_s1] sm:$0xff]  ;;  %v2835_v4 = vld [vmem:[#allocation2 + $0x248] sm:$0xff] }
 0x338   : > { %v2563_v11 = vpop.permute.xlu1 %2562  ;;  %v2565_v10 = vpop.permute.xlu0 %2564 }
 0x339   : > { %2746 = vst.msk [vmem:[#allocation3 + $0x108] sm:$0xff] %vm2712_vm6, %v2563_v11  ;;  %2747 = vst.msk [vmem:[#allocation3 + $0x110] sm:$0xff] %vm2712_vm6, %v2565_v10 }
 0x33a   : > { %2968 = vrot.lane.b32.xlu1 %v2805_v9, %s7448_s30  ;;  %2970 = vrot.lane.b32.xlu0 %v2806_v7, %s7448_s30  ;;  %v7367_v9 = vpack.c.bf16 %v4158_v6, %v4157_v2  ;;  %v3219_v7 = vld [vmem:[#allocation2 + $0x41] sm:$0xff] }
 0x33b   : > { %v3234_v6 = vld [vmem:[#allocation2 + $0xe1] sm:$0xff] }
 0x33c   : > { %v2567_v17 = vpop.permute.xlu1 %2566  ;;  %v2569_v15 = vpop.permute.xlu0 %2568  ;;  %7368 = vmatprep.subr.bf16.mxu0 %v7367_v9  ;;  %7393 = vmatprep.subr.bf16.mxu1 %v7367_v9 }
 0x33d   : > { %2748 = vst.msk [vmem:[#allocation3 + $0x118] sm:$0xff] %vm2712_vm6, %v2567_v17  ;;  %2749 = vst.msk [vmem:[#allocation3 + $0x120] sm:$0xff] %vm2712_vm6, %v2569_v15  ;;  %7370 = vmatpush3.bf16.msra.mxu0 %v7367_v9  ;;  %v3220_v17 = vld [vmem:[#allocation2 + $0x49] sm:$0xff]  ;;  %7395 = vmatpush3.bf16.msra.mxu1 %v7367_v9 }
 0x33e   : > { %2972 = vrot.lane.b32.xlu1 %v2807_v14, %s7448_s30  ;;  %2974 = vrot.lane.b32.xlu0 %v2808_v12, %s7448_s30  ;;  %v4159_v14 = vld [vmem:[%s10405_s1 + $0x10] sm:$0xff]  ;;  %v4160_v12 = vld [vmem:[%s10405_s1 + $0x18] sm:$0x7] }
 0x33f   : > { %v7371_v15 = vpack.c.bf16 %v4160_v12, %v4159_v14 }
 0x340   : > { %v2571_v29 = vpop.permute.xlu1 %2570  ;;  %v2573_v24 = vpop.permute.xlu0 %2572 }
 0x341   : > { %2750 = vst.msk [vmem:[#allocation3 + $0x128] sm:$0xff] %vm2712_vm6, %v2571_v29  ;;  %2751 = vst.msk [vmem:[#allocation3 + $0x130] sm:$0xff] %vm2712_vm6, %v2573_v24  ;;  %7373 = vmatprep.subr.msk.bf16.mxu0 %vm7372_vm9, %v7371_v15  ;;  %7394 = vmatprep.subr.msk.bf16.mxu1 %vm7372_vm9, %v7371_v15  ;;  %v3221_v29 = vld [vmem:[#allocation2 + $0x51] sm:$0xff] }
 0x342   : > { %2976 = vrot.lane.b32.xlu1 %v2809_v21, %s7448_s30  ;;  %2978 = vrot.lane.b32.xlu0 %v2810_v18, %s7448_s30 }
 0x343   : > { %7376 = vmatpush3.bf16.msk.msra.mxu0 %vm7372_vm9, %v7371_v15  ;;  %7396 = vmatpush3.bf16.msk.msra.mxu1 %vm7372_vm9, %v7371_v15  ;;  %v3668_v15 = vld [vmem:[#allocation2 + $0xea] sm:$0xff]  ;;  %vm6540_vm9 = vcmask 588800  }
 0x344   : > { %v2575_v37 = vpop.permute.xlu1 %2574  ;;  %v2577_v49 = vpop.permute.xlu0 %2576 }
 0x345   : > { %2752 = vst.msk [vmem:[#allocation3 + $0x138] sm:$0xff] %vm2712_vm6, %v2575_v37  ;;  %2753 = vst.msk [vmem:[#allocation3 + $0x140] sm:$0xff] %vm2712_vm6, %v2577_v49  ;;  %v3222_v37 = vld [vmem:[#allocation2 + $0x61] sm:$0xff] }
 0x346   : > { %2980 = vrot.lane.b32.xlu1 %v2811_v35, %s7448_s30  ;;  %2982 = vrot.lane.b32.xlu0 %v2812_v31, %s7448_s30  ;;  %v7424_v31 = vld [vmem:[#allocation2 + $0x4a] sm:$0xff] }
 0x348   : > { %v2579_v54 = vpop.permute.xlu1 %2578  ;;  %v2581_v16 = vpop.permute.xlu0 %2580 }
 0x349   : > { %2754 = vst.msk [vmem:[#allocation3 + $0x148] sm:$0xff] %vm2712_vm6, %v2579_v54  ;;  %2755 = vst.msk [vmem:[#allocation3 + $0x150] sm:$0xff] %vm2712_vm6, %v2581_v16 }
 0x34a   : > { %2984 = vrot.lane.b32.xlu1 %v2813_v44, %s7448_s30  ;;  %2986 = vrot.lane.b32.xlu0 %v2814_v63, %s7448_s30  ;;  %v3223_v63 = vld [vmem:[#allocation2 + $0x69] sm:$0xff] }
 0x34c   : > { %v2583_v0 = vpop.permute.xlu1 %2582  ;;  %v2585_v25 = vpop.permute.xlu0 %2584 }
 0x34d   : > { %2756 = vst.msk [vmem:[#allocation3 + $0x158] sm:$0xff] %vm2712_vm6, %v2583_v0  ;;  %2757 = vst.msk [vmem:[#allocation3 + $0x160] sm:$0xff] %vm2712_vm6, %v2585_v25 }
 0x34e   : > { %2988 = vrot.lane.b32.xlu1 %v2815_v5, %s7448_s30  ;;  %2990 = vrot.lane.b32.xlu0 %v2816_v33, %s7448_s30  ;;  %v7426_v5 = vld [vmem:[#allocation2 + $0x62] sm:$0xff]  ;;  %v3224_v33 = vld [vmem:[#allocation2 + $0x71] sm:$0xff] }
 0x350   : > { %v2587_v34 = vpop.permute.xlu1 %2586  ;;  %v2589_v56 = vpop.permute.xlu0 %2588 }
 0x351   : > { %2758 = vst.msk [vmem:[#allocation3 + $0x168] sm:$0xff] %vm2712_vm6, %v2587_v34  ;;  %2759 = vst.msk [vmem:[#allocation3 + $0x170] sm:$0xff] %vm2712_vm6, %v2589_v56  ;;  %v3225_v34 = vld [vmem:[#allocation2 + $0x81] sm:$0xff] }
 0x352   : > { %2992 = vrot.lane.b32.xlu1 %v2817_v20, %s7448_s30  ;;  %2994 = vrot.lane.b32.xlu0 %v2818_v46, %s7448_s30  ;;  %v7427_v20 = vld [vmem:[#allocation2 + $0x6a] sm:$0xff]  ;;  %v3657_v46 = vld [vmem:[#allocation2 + $0x72] sm:$0xff] }
 0x354   : > { %v2591_v22 = vpop.permute.xlu1 %2590  ;;  %v2593_v39 = vpop.permute.xlu0 %2592 }
 0x355   : > { %2760 = vst.msk [vmem:[#allocation3 + $0x178] sm:$0xff] %vm2712_vm6, %v2591_v22  ;;  %2761 = vst.msk [vmem:[#allocation3 + $0x180] sm:$0xff] %vm2712_vm6, %v2593_v39 }
 0x356   : > { %2996 = vrot.lane.b32.xlu1 %v2819_v28, %s7448_s30  ;;  %2998 = vrot.lane.b32.xlu0 %v2820_v48, %s7448_s30  ;;  %v3226_v48 = vld [vmem:[#allocation2 + $0x89] sm:$0xff] }
 0x358   : > { %v2595_v26 = vpop.permute.xlu1 %2594  ;;  %v2597_v60 = vpop.permute.xlu0 %2596 }
 0x359   : > { %2762 = vst.msk [vmem:[#allocation3 + $0x188] sm:$0xff] %vm2712_vm6, %v2595_v26  ;;  %2763 = vst.msk [vmem:[#allocation3 + $0x190] sm:$0xff] %vm2712_vm6, %v2597_v60  ;;  %v3227_v26 = vld [vmem:[#allocation2 + $0x91] sm:$0xff] }
 0x35a   : > { %3000 = vrot.lane.b32.xlu1 %v2821_v19, %s7448_s30  ;;  %3002 = vrot.lane.b32.xlu0 %v2822_v40, %s7448_s30  ;;  %v7428_v19 = vld [vmem:[#allocation2 + $0x82] sm:$0xff]  ;;  %v3659_v40 = vld [vmem:[#allocation2 + $0x8a] sm:$0xff] }
 0x35c   : > { %v2599_v8 = vpop.permute.xlu1 %2598  ;;  %v2601_v27 = vpop.permute.xlu0 %2600 }
 0x35d   : > { %2764 = vst.msk [vmem:[#allocation3 + $0x198] sm:$0xff] %vm2712_vm6, %v2599_v8  ;;  %2765 = vst.msk [vmem:[#allocation3 + $0x1a0] sm:$0xff] %vm2712_vm6, %v2601_v27 }
 0x35e   : > { %3004 = vrot.lane.b32.xlu1 %v2823_v23, %s7448_s30  ;;  %3006 = vrot.lane.b32.xlu0 %v2824_v30, %s7448_s30  ;;  %v3228_v30 = vld [vmem:[#allocation2 + $0xa1] sm:$0xff] }
 0x360   : > { %v2603_v42 = vpop.permute.xlu1 %2602  ;;  %v2605_v13 = vpop.permute.xlu0 %2604 }
 0x361   : > { %2766 = vst.msk [vmem:[#allocation3 + $0x1a8] sm:$0xff] %vm2712_vm6, %v2603_v42  ;;  %2767 = vst.msk [vmem:[#allocation3 + $0x1b0] sm:$0xff] %vm2712_vm6, %v2605_v13  ;;  %v3229_v42 = vld [vmem:[#allocation2 + $0xa9] sm:$0xff] }
 0x362   : > { %3008 = vrot.lane.b32.xlu1 %v2825_v36, %s7448_s30  ;;  %3010 = vrot.lane.b32.xlu0 %v2826_v32, %s7448_s30  ;;  %v7429_v36 = vld [vmem:[#allocation2 + $0x92] sm:$0xff]  ;;  %v3661_v32 = vld [vmem:[#allocation2 + $0xa2] sm:$0xff] }
 0x364   : > { %v2607_v43 = vpop.permute.xlu1 %2606  ;;  %v2609_v50 = vpop.permute.xlu0 %2608 }
 0x365   : > { %2768 = vst.msk [vmem:[#allocation3 + $0x1b8] sm:$0xff] %vm2712_vm6, %v2607_v43  ;;  %2769 = vst.msk [vmem:[#allocation3 + $0x1c0] sm:$0xff] %vm2712_vm6, %v2609_v50  ;;  %v3662_v43 = vld [vmem:[#allocation2 + $0xaa] sm:$0xff] }
 0x366   : > { %3012 = vrot.lane.b32.xlu1 %v2827_v38, %s7448_s30  ;;  %3014 = vrot.lane.b32.xlu0 %v2828_v45, %s7448_s30  ;;  %v3230_v45 = vld [vmem:[#allocation2 + $0xb1] sm:$0xff] }
 0x368   : > { %v2611_v51 = vpop.permute.xlu1 %2610  ;;  %v2613_v55 = vpop.permute.xlu0 %2612 }
 0x369   : > { %2770 = vst.msk [vmem:[#allocation3 + $0x1c8] sm:$0xff] %vm2712_vm6, %v2611_v51  ;;  %2771 = vst.msk [vmem:[#allocation3 + $0x1d0] sm:$0xff] %vm2712_vm6, %v2613_v55  ;;  %v3231_v51 = vld [vmem:[#allocation2 + $0xc1] sm:$0xff] }
 0x36a   : > { %3016 = vrot.lane.b32.xlu1 %v2829_v47, %s7448_s30  ;;  %3018 = vrot.lane.b32.xlu0 %v2830_v52, %s7448_s30  ;;  %v3663_v52 = vld [vmem:[#allocation2 + $0xb2] sm:$0xff] }
 0x36c   : > { %v2615_v57 = vpop.permute.xlu1 %2614  ;;  %v2617_v61 = vpop.permute.xlu0 %2616 }
 0x36d   : > { %2772 = vst.msk [vmem:[#allocation3 + $0x1d8] sm:$0xff] %vm2712_vm6, %v2615_v57  ;;  %2773 = vst.msk [vmem:[#allocation3 + $0x1e0] sm:$0xff] %vm2712_vm6, %v2617_v61  ;;  %v3664_v57 = vld [vmem:[#allocation2 + $0xc2] sm:$0xff] }
 0x36e   : > { %3020 = vrot.lane.b32.xlu1 %v2831_v53, %s7448_s30  ;;  %3022 = vrot.lane.b32.xlu0 %v2832_v58, %s7448_s30  ;;  %v3232_v58 = vld [vmem:[#allocation2 + $0xc9] sm:$0xff] }
 0x370   : > { %v2619_v62 = vpop.permute.xlu1 %2618  ;;  %v2621_v3 = vpop.permute.xlu0 %2620 }
 0x371   : > { %2774 = vst.msk [vmem:[#allocation3 + $0x1e8] sm:$0xff] %vm2712_vm6, %v2619_v62  ;;  %2775 = vst.msk [vmem:[#allocation3 + $0x1f0] sm:$0xff] %vm2712_vm6, %v2621_v3  ;;  %v3233_v62 = vld [vmem:[#allocation2 + $0xd1] sm:$0xff] }
 0x372   : > { %3024 = vrot.lane.b32.xlu1 %v2833_v59, %s7448_s30  ;;  %3026 = vrot.lane.b32.xlu0 %v2834_v1, %s7448_s30  ;;  %v3665_v1 = vld [vmem:[#allocation2 + $0xca] sm:$0xff] }
 0x374   : > { %v2623_v11 = vpop.permute.xlu1 %2622  ;;  %v2625_v10 = vpop.permute.xlu0 %2624 }
 0x375   : > { %2776 = vst.msk [vmem:[#allocation3 + $0x1f8] sm:$0xff] %vm2712_vm6, %v2623_v11  ;;  %2777 = vst.msk [vmem:[#allocation3 + $0x200] sm:$0xff] %vm2712_vm6, %v2625_v10  ;;  %v3667_v11 = vld [vmem:[#allocation2 + $0xe2] sm:$0xff] }
 0x376   : > { %3028 = vrot.lane.b32.xlu1 %v2835_v4, %s7448_s30  ;;  %3363 = vrot.lane.b32.xlu0 %v3219_v7, %s7449_s14  ;;  %v3666_v4 = vld [vmem:[#allocation2 + $0xd2] sm:$0xff]  ;;  %v3235_v10 = vld [vmem:[#allocation2 + $0xe9] sm:$0xff] }
 0x378   : > { %v2627_v21 = vpop.permute.xlu1 %2626  ;;  %v2629_v18 = vpop.permute.xlu0 %2628 }
 0x379   : > { %2778 = vst.msk [vmem:[#allocation3 + $0x208] sm:$0xff] %vm2712_vm6, %v2627_v21  ;;  %2779 = vst.msk [vmem:[#allocation3 + $0x210] sm:$0xff] %vm2712_vm6, %v2629_v18 }
 0x37a   : > { %3365 = vrot.lane.b32.xlu1 %v3220_v17, %s7449_s14  ;;  %3796 = vrot.lane.b32.xlu0 %v8739_v41, %s7451_s15  ;;  %v7425_v41 = vld [vmem:[#allocation2 + $0x52] sm:$0xff] }
 0x37b   : > { %v3236_v17 = vld [vmem:[#allocation2 + $0xf1] sm:$0xff] }
 0x37c   : > { %v2631_v24 = vpop.permute.xlu1 %2630  ;;  %v2633_v35 = vpop.permute.xlu0 %2632 }
 0x37d   : > { %2780 = vst.msk [vmem:[#allocation3 + $0x218] sm:$0xff] %vm2712_vm6, %v2631_v24  ;;  %2781 = vst.msk [vmem:[#allocation3 + $0x220] sm:$0xff] %vm2712_vm6, %v2633_v35  ;;  %v3237_v24 = vld [vmem:[#allocation2 + $0x101] sm:$0xff] }
 0x37e   : > { %3798 = vrot.lane.b32.xlu1 %v7424_v31, %s7451_s15  ;;  %3367 = vrot.lane.b32.xlu0 %v3221_v29, %s7449_s14  ;;  %v3669_v29 = vld [vmem:[#allocation2 + $0xf2] sm:$0xff] }
 0x380   : > { %v2635_v49 = vpop.permute.xlu1 %2634  ;;  %v2637_v44 = vpop.permute.xlu0 %2636 }
 0x381   : > { %2782 = vst.msk [vmem:[#allocation3 + $0x228] sm:$0xff] %vm2712_vm6, %v2635_v49  ;;  %2783 = vst.msk [vmem:[#allocation3 + $0x230] sm:$0xff] %vm2712_vm6, %v2637_v44  ;;  %v3670_v49 = vld [vmem:[#allocation2 + $0x102] sm:$0xff] }
 0x382   : > { %3369 = vrot.lane.b32.xlu1 %v3222_v37, %s7449_s14  ;;  %3800 = vrot.lane.b32.xlu0 %v7425_v41, %s7451_s15  ;;  %v3238_v37 = vld [vmem:[#allocation2 + $0x109] sm:$0xff] }
 0x384   : > { %v2639_v54 = vpop.permute.xlu1 %2638  ;;  %v2931_v16 = vpop.permute.xlu0 %2930 }
 0x385   : > { %2784 = vst.msk [vmem:[#allocation3 + $0x238] sm:$0xff] %vm2712_vm6, %v2639_v54  ;;  %v3239_v54 = vld [vmem:[#allocation2 + $0x111] sm:$0xff]  ;;  %vm6185_vm6 = vcmask 458112  }
 0x386   : > { %3147 = vst.msk [vmem:[#allocation3] sm:$0xff] %vm3146_vm10, %v2931_v16  ;;  %3802 = vrot.lane.b32.xlu1 %v7426_v5, %s7451_s15  ;;  %3371 = vrot.lane.b32.xlu0 %v3223_v63, %s7449_s14  ;;  %v3671_v63 = vld [vmem:[#allocation2 + $0x10a] sm:$0xff] }
 0x388   : > { %v2933_v0 = vpop.permute.xlu1 %2932  ;;  %v2935_v25 = vpop.permute.xlu0 %2934 }
 0x389   : > { %3148 = vst.msk [vmem:[#allocation3 + $0x8] sm:$0xff] %vm3146_vm10, %v2933_v0  ;;  %3149 = vst.msk [vmem:[#allocation3 + $0x10] sm:$0xff] %vm3146_vm10, %v2935_v25  ;;  %v3672_v0 = vld [vmem:[#allocation2 + $0x112] sm:$0xff] }
 0x38a   : > { %3373 = vrot.lane.b32.xlu1 %v3224_v33, %s7449_s14  ;;  %3804 = vrot.lane.b32.xlu0 %v7427_v20, %s7451_s15  ;;  %v3240_v33 = vld [vmem:[#allocation2 + $0x121] sm:$0xff] }
 0x38c   : > { %v2937_v56 = vpop.permute.xlu1 %2936  ;;  %v2939_v28 = vpop.permute.xlu0 %2938 }
 0x38d   : > { %3150 = vst.msk [vmem:[#allocation3 + $0x18] sm:$0xff] %vm3146_vm10, %v2937_v56  ;;  %3151 = vst.msk [vmem:[#allocation3 + $0x20] sm:$0xff] %vm3146_vm10, %v2939_v28 }
 0x38e   : > { %3806 = vrot.lane.b32.xlu1 %v3657_v46, %s7451_s15  ;;  %3375 = vrot.lane.b32.xlu0 %v3225_v34, %s7449_s14  ;;  %v3673_v46 = vld [vmem:[#allocation2 + $0x122] sm:$0xff] }
 0x38f   : > { %v3241_v34 = vld [vmem:[#allocation2 + $0x129] sm:$0xff] }
 0x390   : > { %v2941_v22 = vpop.permute.xlu1 %2940  ;;  %v2943_v39 = vpop.permute.xlu0 %2942 }
 0x391   : > { %3152 = vst.msk [vmem:[#allocation3 + $0x28] sm:$0xff] %vm3146_vm10, %v2941_v22  ;;  %3153 = vst.msk [vmem:[#allocation3 + $0x30] sm:$0xff] %vm3146_vm10, %v2943_v39  ;;  %v3674_v22 = vld [vmem:[#allocation2 + $0x12a] sm:$0xff] }
 0x392   : > { %3377 = vrot.lane.b32.xlu1 %v3226_v48, %s7449_s14  ;;  %3808 = vrot.lane.b32.xlu0 %v7428_v19, %s7451_s15  ;;  %v3242_v48 = vld [vmem:[#allocation2 + $0x131] sm:$0xff] }
 0x394   : > { %v2945_v60 = vpop.permute.xlu1 %2944  ;;  %v2947_v23 = vpop.permute.xlu0 %2946 }
 0x395   : > { %3154 = vst.msk [vmem:[#allocation3 + $0x38] sm:$0xff] %vm3146_vm10, %v2945_v60  ;;  %3155 = vst.msk [vmem:[#allocation3 + $0x40] sm:$0xff] %vm3146_vm10, %v2947_v23 }
 0x396   : > { %3810 = vrot.lane.b32.xlu1 %v3659_v40, %s7451_s15  ;;  %3379 = vrot.lane.b32.xlu0 %v3227_v26, %s7449_s14  ;;  %v3675_v40 = vld [vmem:[#allocation2 + $0x132] sm:$0xff]  ;;  %v3243_v26 = vld [vmem:[#allocation2 + $0x141] sm:$0xff] }
 0x398   : > { %v2949_v8 = vpop.permute.xlu1 %2948  ;;  %v2951_v27 = vpop.permute.xlu0 %2950 }
 0x399   : > { %3156 = vst.msk [vmem:[#allocation3 + $0x48] sm:$0xff] %vm3146_vm10, %v2949_v8  ;;  %3157 = vst.msk [vmem:[#allocation3 + $0x50] sm:$0xff] %vm3146_vm10, %v2951_v27  ;;  %v3676_v8 = vld [vmem:[#allocation2 + $0x142] sm:$0xff] }
 0x39a   : > { %3381 = vrot.lane.b32.xlu1 %v3228_v30, %s7449_s14  ;;  %3812 = vrot.lane.b32.xlu0 %v7429_v36, %s7451_s15  ;;  %v3244_v30 = vld [vmem:[#allocation2 + $0x149] sm:$0xff] }
 0x39c   : > { %v2953_v13 = vpop.permute.xlu1 %2952  ;;  %v2955_v38 = vpop.permute.xlu0 %2954 }
 0x39d   : > { %3158 = vst.msk [vmem:[#allocation3 + $0x58] sm:$0xff] %vm3146_vm10, %v2953_v13  ;;  %3159 = vst.msk [vmem:[#allocation3 + $0x60] sm:$0xff] %vm3146_vm10, %v2955_v38 }
 0x39e   : > { %3814 = vrot.lane.b32.xlu1 %v3661_v32, %s7451_s15  ;;  %3383 = vrot.lane.b32.xlu0 %v3229_v42, %s7449_s14  ;;  %v3677_v32 = vld [vmem:[#allocation2 + $0x14a] sm:$0xff] }
 0x39f   : > { %v3245_v42 = vld [vmem:[#allocation2 + $0x151] sm:$0xff] }
 0x3a0   : > { %v2957_v50 = vpop.permute.xlu1 %2956  ;;  %v2959_v47 = vpop.permute.xlu0 %2958 }
 0x3a1   : > { %3160 = vst.msk [vmem:[#allocation3 + $0x68] sm:$0xff] %vm3146_vm10, %v2957_v50  ;;  %3161 = vst.msk [vmem:[#allocation3 + $0x70] sm:$0xff] %vm3146_vm10, %v2959_v47 }
 0x3a2   : > { %3385 = vrot.lane.b32.xlu1 %v3230_v45, %s7449_s14  ;;  %3816 = vrot.lane.b32.xlu0 %v3662_v43, %s7451_s15  ;;  %v3246_v45 = vld [vmem:[#allocation2 + $0x161] sm:$0xff]  ;;  %v3678_v43 = vld [vmem:[#allocation2 + $0x152] sm:$0xff] }
 0x3a4   : > { %v2961_v55 = vpop.permute.xlu1 %2960  ;;  %v2963_v53 = vpop.permute.xlu0 %2962 }
 0x3a5   : > { %3162 = vst.msk [vmem:[#allocation3 + $0x78] sm:$0xff] %vm3146_vm10, %v2961_v55  ;;  %3163 = vst.msk [vmem:[#allocation3 + $0x80] sm:$0xff] %vm3146_vm10, %v2963_v53 }
 0x3a6   : > { %3818 = vrot.lane.b32.xlu1 %v3663_v52, %s7451_s15  ;;  %3387 = vrot.lane.b32.xlu0 %v3231_v51, %s7449_s14  ;;  %v3679_v52 = vld [vmem:[#allocation2 + $0x162] sm:$0xff] }
 0x3a7   : > { %v3247_v51 = vld [vmem:[#allocation2 + $0x169] sm:$0xff] }
 0x3a8   : > { %v2965_v61 = vpop.permute.xlu1 %2964  ;;  %v2967_v59 = vpop.permute.xlu0 %2966 }
 0x3a9   : > { %3164 = vst.msk [vmem:[#allocation3 + $0x88] sm:$0xff] %vm3146_vm10, %v2965_v61  ;;  %3165 = vst.msk [vmem:[#allocation3 + $0x90] sm:$0xff] %vm3146_vm10, %v2967_v59 }
 0x3aa   : > { %3389 = vrot.lane.b32.xlu1 %v3232_v58, %s7449_s14  ;;  %3820 = vrot.lane.b32.xlu0 %v3664_v57, %s7451_s15  ;;  %v3248_v58 = vld [vmem:[#allocation2 + $0x171] sm:$0xff] }
 0x3ab   : > { %v3680_v57 = vld [vmem:[#allocation2 + $0x16a] sm:$0xff] }
 0x3ac   : > { %v2969_v3 = vpop.permute.xlu1 %2968  ;;  %v2971_v2 = vpop.permute.xlu0 %2970 }
 0x3ad   : > { %3166 = vst.msk [vmem:[#allocation3 + $0x98] sm:$0xff] %vm3146_vm10, %v2969_v3  ;;  %3167 = vst.msk [vmem:[#allocation3 + $0xa0] sm:$0xff] %vm3146_vm10, %v2971_v2 }
 0x3ae   : > { %3822 = vrot.lane.b32.xlu1 %v3665_v1, %s7451_s15  ;;  %3391 = vrot.lane.b32.xlu0 %v3233_v62, %s7449_s14  ;;  %v3681_v1 = vld [vmem:[#allocation2 + $0x172] sm:$0xff]  ;;  %v3249_v62 = vld [vmem:[#allocation2 + $0x181] sm:$0xff] }
 0x3b0   : > { %v2973_v9 = vpop.permute.xlu1 %2972  ;;  %v2975_v7 = vpop.permute.xlu0 %2974 }
 0x3b1   : > { %3168 = vst.msk [vmem:[#allocation3 + $0xa8] sm:$0xff] %vm3146_vm10, %v2973_v9  ;;  %3169 = vst.msk [vmem:[#allocation3 + $0xb0] sm:$0xff] %vm3146_vm10, %v2975_v7 }
 0x3b2   : > { %3393 = vrot.lane.b32.xlu1 %v3234_v6, %s7449_s14  ;;  %3824 = vrot.lane.b32.xlu0 %v3666_v4, %s7451_s15  ;;  %v3250_v6 = vld [vmem:[#allocation2 + $0x189] sm:$0xff] }
 0x3b3   : > { %v3682_v4 = vld [vmem:[#allocation2 + $0x182] sm:$0xff] }
 0x3b4   : > { %v2977_v14 = vpop.permute.xlu1 %2976  ;;  %v2979_v12 = vpop.permute.xlu0 %2978 }
 0x3b5   : > { %3170 = vst.msk [vmem:[#allocation3 + $0xb8] sm:$0xff] %vm3146_vm10, %v2977_v14  ;;  %3171 = vst.msk [vmem:[#allocation3 + $0xc0] sm:$0xff] %vm3146_vm10, %v2979_v12 }
 0x3b6   : > { %3826 = vrot.lane.b32.xlu1 %v3667_v11, %s7451_s15  ;;  %3395 = vrot.lane.b32.xlu0 %v3235_v10, %s7449_s14  ;;  %v3683_v11 = vld [vmem:[#allocation2 + $0x18a] sm:$0xff] }
 0x3b7   : > { %v3251_v10 = vld [vmem:[#allocation2 + $0x191] sm:$0xff] }
 0x3b8   : > { %v2981_v21 = vpop.permute.xlu1 %2980  ;;  %v2983_v18 = vpop.permute.xlu0 %2982 }
 0x3b9   : > { %3172 = vst.msk [vmem:[#allocation3 + $0xc8] sm:$0xff] %vm3146_vm10, %v2981_v21  ;;  %3173 = vst.msk [vmem:[#allocation3 + $0xd0] sm:$0xff] %vm3146_vm10, %v2983_v18 }
 0x3ba   : > { %3397 = vrot.lane.b32.xlu1 %v3236_v17, %s7449_s14  ;;  %3828 = vrot.lane.b32.xlu0 %v3668_v15, %s7451_s15  ;;  %v3252_v15 = vld [vmem:[#allocation2 + $0x1a1] sm:$0xff] }
 0x3bc   : > { %v2985_v35 = vpop.permute.xlu1 %2984  ;;  %v2987_v31 = vpop.permute.xlu0 %2986 }
 0x3bd   : > { %3174 = vst.msk [vmem:[#allocation3 + $0xd8] sm:$0xff] %vm3146_vm10, %v2985_v35  ;;  %3175 = vst.msk [vmem:[#allocation3 + $0xe0] sm:$0xff] %vm3146_vm10, %v2987_v31 }
 0x3be   : > { %3830 = vrot.lane.b32.xlu1 %v3669_v29, %s7451_s15  ;;  %3399 = vrot.lane.b32.xlu0 %v3237_v24, %s7449_s14  ;;  %v3684_v24 = vld [vmem:[#allocation2 + $0x192] sm:$0xff] }
 0x3c0   : > { %v2989_v44 = vpop.permute.xlu1 %2988  ;;  %v2991_v41 = vpop.permute.xlu0 %2990 }
 0x3c1   : > { %3176 = vst.msk [vmem:[#allocation3 + $0xe8] sm:$0xff] %vm3146_vm10, %v2989_v44  ;;  %3177 = vst.msk [vmem:[#allocation3 + $0xf0] sm:$0xff] %vm3146_vm10, %v2991_v41 }
 0x3c2   : > { %3401 = vrot.lane.b32.xlu1 %v3238_v37, %s7449_s14  ;;  %3832 = vrot.lane.b32.xlu0 %v3670_v49, %s7451_s15  ;;  %v3685_v49 = vld [vmem:[#allocation2 + $0x1a2] sm:$0xff] }
 0x3c4   : > { %v2993_v16 = vpop.permute.xlu1 %2992  ;;  %v2995_v5 = vpop.permute.xlu0 %2994 }
 0x3c5   : > { %3178 = vst.msk [vmem:[#allocation3 + $0xf8] sm:$0xff] %vm3146_vm10, %v2993_v16  ;;  %3179 = vst.msk [vmem:[#allocation3 + $0x100] sm:$0xff] %vm3146_vm10, %v2995_v5 }
 0x3c6   : > { %3834 = vrot.lane.b32.xlu1 %v3671_v63, %s7451_s15  ;;  %3403 = vrot.lane.b32.xlu0 %v3239_v54, %s7449_s14  ;;  %v2836_v54 = vld [vmem:[#allocation2 + $0x250] sm:$0xff] }
 0x3c8   : > { %v2997_v25 = vpop.permute.xlu1 %2996  ;;  %v2999_v20 = vpop.permute.xlu0 %2998 }
 0x3c9   : > { %3180 = vst.msk [vmem:[#allocation3 + $0x108] sm:$0xff] %vm3146_vm10, %v2997_v25  ;;  %3181 = vst.msk [vmem:[#allocation3 + $0x110] sm:$0xff] %vm3146_vm10, %v2999_v20 }
 0x3ca   : > { %3405 = vrot.lane.b32.xlu1 %v3240_v33, %s7449_s14  ;;  %3836 = vrot.lane.b32.xlu0 %v3672_v0, %s7451_s15  ;;  %v3253_v0 = vld [vmem:[#allocation2 + $0x1a9] sm:$0xff] }
 0x3cc   : > { %v3001_v56 = vpop.permute.xlu1 %3000  ;;  %v3003_v28 = vpop.permute.xlu0 %3002 }
 0x3cd   : > { %3182 = vst.msk [vmem:[#allocation3 + $0x118] sm:$0xff] %vm3146_vm10, %v3001_v56  ;;  %3183 = vst.msk [vmem:[#allocation3 + $0x120] sm:$0xff] %vm3146_vm10, %v3003_v28 }
 0x3ce   : > { %3838 = vrot.lane.b32.xlu1 %v3673_v46, %s7451_s15  ;;  %3407 = vrot.lane.b32.xlu0 %v3241_v34, %s7449_s14  ;;  %v3254_v34 = vld [vmem:[#allocation2 + $0x1b1] sm:$0xff] }
 0x3d0   : > { %v3005_v39 = vpop.permute.xlu1 %3004  ;;  %v3007_v19 = vpop.permute.xlu0 %3006 }
 0x3d1   : > { %3184 = vst.msk [vmem:[#allocation3 + $0x128] sm:$0xff] %vm3146_vm10, %v3005_v39  ;;  %3185 = vst.msk [vmem:[#allocation3 + $0x130] sm:$0xff] %vm3146_vm10, %v3007_v19 }
 0x3d2   : > { %3409 = vrot.lane.b32.xlu1 %v3242_v48, %s7449_s14  ;;  %3840 = vrot.lane.b32.xlu0 %v3674_v22, %s7451_s15  ;;  %v3686_v22 = vld [vmem:[#allocation2 + $0x1aa] sm:$0xff] }
 0x3d4   : > { %v3009_v60 = vpop.permute.xlu1 %3008  ;;  %v3011_v23 = vpop.permute.xlu0 %3010 }
 0x3d5   : > { %3186 = vst.msk [vmem:[#allocation3 + $0x138] sm:$0xff] %vm3146_vm10, %v3009_v60  ;;  %3187 = vst.msk [vmem:[#allocation3 + $0x140] sm:$0xff] %vm3146_vm10, %v3011_v23 }
 0x3d6   : > { %3842 = vrot.lane.b32.xlu1 %v3675_v40, %s7451_s15  ;;  %3411 = vrot.lane.b32.xlu0 %v3243_v26, %s7449_s14  ;;  %v3687_v26 = vld [vmem:[#allocation2 + $0x1b2] sm:$0xff] }
 0x3d8   : > { %v3013_v27 = vpop.permute.xlu1 %3012  ;;  %v3015_v36 = vpop.permute.xlu0 %3014 }
 0x3d9   : > { %3188 = vst.msk [vmem:[#allocation3 + $0x148] sm:$0xff] %vm3146_vm10, %v3013_v27  ;;  %3189 = vst.msk [vmem:[#allocation3 + $0x150] sm:$0xff] %vm3146_vm10, %v3015_v36  ;;  %v2838_v27 = vld [vmem:[#allocation2 + $0x268] sm:$0xff] }
 0x3da   : > { %3413 = vrot.lane.b32.xlu1 %v3244_v30, %s7449_s14  ;;  %3844 = vrot.lane.b32.xlu0 %v3676_v8, %s7451_s15  ;;  %v3267_v8 = vld [vmem:[#allocation2 + $0x241] sm:$0xff] }
 0x3dc   : > { %v3017_v13 = vpop.permute.xlu1 %3016  ;;  %v3019_v38 = vpop.permute.xlu0 %3018 }
 0x3dd   : > { %3190 = vst.msk [vmem:[#allocation3 + $0x158] sm:$0xff] %vm3146_vm10, %v3017_v13  ;;  %3191 = vst.msk [vmem:[#allocation3 + $0x160] sm:$0xff] %vm3146_vm10, %v3019_v38  ;;  %v3268_v13 = vld [vmem:[#allocation2 + $0x249] sm:$0xff]  ;;  %v3255_v38 = vld [vmem:[#allocation2 + $0x1c1] sm:$0xff] }
 0x3de   : > { %3846 = vrot.lane.b32.xlu1 %v3677_v32, %s7451_s15  ;;  %3415 = vrot.lane.b32.xlu0 %v3245_v42, %s7449_s14 }
 0x3e0   : > { %v3021_v50 = vpop.permute.xlu1 %3020  ;;  %v3023_v47 = vpop.permute.xlu0 %3022 }
 0x3e1   : > { %3192 = vst.msk [vmem:[#allocation3 + $0x168] sm:$0xff] %vm3146_vm10, %v3021_v50  ;;  %3193 = vst.msk [vmem:[#allocation3 + $0x170] sm:$0xff] %vm3146_vm10, %v3023_v47  ;;  %v3700_v47 = vld [vmem:[#allocation2 + $0x242] sm:$0xff] }
 0x3e2   : > { %3417 = vrot.lane.b32.xlu1 %v3246_v45, %s7449_s14  ;;  %3848 = vrot.lane.b32.xlu0 %v3678_v43, %s7451_s15 }
 0x3e4   : > { %v3025_v55 = vpop.permute.xlu1 %3024  ;;  %v3027_v53 = vpop.permute.xlu0 %3026 }
 0x3e5   : > { %3194 = vst.msk [vmem:[#allocation3 + $0x178] sm:$0xff] %vm3146_vm10, %v3025_v55  ;;  %3195 = vst.msk [vmem:[#allocation3 + $0x180] sm:$0xff] %vm3146_vm10, %v3027_v53 }
 0x3e6   : > { %3850 = vrot.lane.b32.xlu1 %v3679_v52, %s7451_s15  ;;  %3419 = vrot.lane.b32.xlu0 %v3247_v51, %s7449_s14  ;;  %v3256_v52 = vld [vmem:[#allocation2 + $0x1c9] sm:$0xff] }
 0x3e8   : > { %v3029_v61 = vpop.permute.xlu1 %3028  ;;  %v3364_v59 = vpop.permute.xlu0 %3363 }
 0x3e9   : > { %3196 = vst.msk [vmem:[#allocation3 + $0x188] sm:$0xff] %vm3146_vm10, %v3029_v61 }
 0x3ea   : > { %3580 = vst.msk [vmem:[#allocation3] sm:$0xff] %vm3579_vm11, %v3364_v59  ;;  %3421 = vrot.lane.b32.xlu1 %v3248_v58, %s7449_s14  ;;  %3852 = vrot.lane.b32.xlu0 %v3680_v57, %s7451_s15  ;;  %v3701_v58 = vld [vmem:[#allocation2 + $0x24a] sm:$0xff]  ;;  %v3688_v57 = vld [vmem:[#allocation2 + $0x1c2] sm:$0xff] }
 0x3ec   : > { %v3366_v3 = vpop.permute.xlu1 %3365  ;;  %v3797_v2 = vpop.permute.xlu0 %3796 }
 0x3ed   : > { %3581 = vst.msk [vmem:[#allocation3 + $0x8] sm:$0xff] %vm3579_vm11, %v3366_v3  ;;  %v3689_v3 = vld [vmem:[#allocation2 + $0x1ca] sm:$0xff] }
 0x3ee   : > { %4013 = vst.msk [vmem:[#allocation3] sm:$0xff] %vm4012_vm12, %v3797_v2  ;;  %3854 = vrot.lane.b32.xlu1 %v3681_v1, %s7451_s15  ;;  %3423 = vrot.lane.b32.xlu0 %v3249_v62, %s7449_s14  ;;  %v2837_v62 = vld [vmem:[#allocation2 + $0x260] sm:$0xff] }
 0x3f0   : > { %v3799_v9 = vpop.permute.xlu1 %3798  ;;  %v3368_v7 = vpop.permute.xlu0 %3367 }
 0x3f1   : > { %4014 = vst.msk [vmem:[#allocation3 + $0x8] sm:$0xff] %vm4012_vm12, %v3799_v9  ;;  %v3269_v9 = vld [vmem:[#allocation2 + $0x251] sm:$0xff] }
 0x3f2   : > { %3582 = vst.msk [vmem:[#allocation3 + $0x10] sm:$0xff] %vm3579_vm11, %v3368_v7  ;;  %3425 = vrot.lane.b32.xlu1 %v3250_v6, %s7449_s14  ;;  %3856 = vrot.lane.b32.xlu0 %v3682_v4, %s7451_s15  ;;  %v2840_v7 = vld [vmem:[#allocation2 + $0x280] sm:$0xff] }
 0x3f4   : > { %v3370_v14 = vpop.permute.xlu1 %3369  ;;  %v3801_v12 = vpop.permute.xlu0 %3800 }
 0x3f5   : > { %v4085_v17 = vld [vmem:[#allocation3] sm:$0xff]  ;;  %3583 = vst.msk [vmem:[#allocation3 + $0x18] sm:$0xff] %vm3579_vm11, %v3370_v14 }
 0x3f6   : > { %4015 = vst.msk [vmem:[#allocation3 + $0x10] sm:$0xff] %vm4012_vm12, %v3801_v12  ;;  %7205 = vmatprep.mubr.msk.f32.mxu0 %vm4168_vm13, %v4085_v17  ;;  %3858 = vrot.lane.b32.xlu1 %v3683_v11, %s7451_s15  ;;  %v3270_v12 = vld [vmem:[#allocation2 + $0x261] sm:$0xff]  ;;  %v3257_v17 = vld [vmem:[#allocation2 + $0x1d1] sm:$0xff] }
 0x3f7   : > { %3427 = vrot.lane.b32.xlu0 %v3251_v10, %s7449_s14 }
 0x3f8   : > { %v3803_v21 = vpop.permute.xlu1 %3802  ;;  %v4086_v18 = vld [vmem:[#allocation3 + $0x8] sm:$0xff]  ;;  %v3372_v29 = vpop.permute.xlu0 %3371 }
 0x3f9   : > { %4016 = vst.msk [vmem:[#allocation3 + $0x18] sm:$0xff] %vm4012_vm12, %v3803_v21  ;;  %7206 = vmatmul.mubr.msk.f32.vlgmr.msra.gmra.mrb[0].mxu0 %vm4168_vm13, %v4086_v18 }
 0x3fa   : > { %3584 = vst.msk [vmem:[#allocation3 + $0x20] sm:$0xff] %vm3579_vm11, %v3372_v29  ;;  %3459 = vrot.lane.b32.xlu1 %v3267_v8, %s7449_s14  ;;  %v3702_v29 = vld [vmem:[#allocation2 + $0x252] sm:$0xff] }
 0x3fb   : > { %3429 = vrot.lane.b32.xlu0 %v3252_v15, %s7449_s14 }
 0x3fc   : > { %v3374_v35 = vpop.permute.xlu1 %3373  ;;  %v3805_v31 = vpop.permute.xlu0 %3804 }
 0x3fd   : > { %v4087_v37 = vld [vmem:[#allocation3 + $0x10] sm:$0xff]  ;;  %3585 = vst.msk [vmem:[#allocation3 + $0x28] sm:$0xff] %vm3579_vm11, %v3374_v35 }
 0x3fe   : > { %4017 = vst.msk [vmem:[#allocation3 + $0x20] sm:$0xff] %vm4012_vm12, %v3805_v31  ;;  %7208 = vmatprep.mubr.msk.f32.mxu0 %vm4168_vm13, %v4087_v37  ;;  %3461 = vrot.lane.b32.xlu1 %v3268_v13, %s7449_s14 }
 0x3ff   : > { %3860 = vrot.lane.b32.xlu0 %v3684_v24, %s7451_s15  ;;  %v3258_v24 = vld [vmem:[#allocation2 + $0x1e1] sm:$0xff] }
 0x400   : > { %v3807_v44 = vpop.permute.xlu1 %3806  ;;  %v4088_v41 = vld [vmem:[#allocation3 + $0x18] sm:$0xff]  ;;  %v3376_v63 = vpop.permute.xlu0 %3375 }
 0x401   : > { %4018 = vst.msk [vmem:[#allocation3 + $0x28] sm:$0xff] %vm4012_vm12, %v3807_v44  ;;  %7209 = vmatmul.mubr.msk.f32.gmra.mrb[2].mxu0 %vm4168_vm13, %v4088_v41  ;;  %v3690_v44 = vld [vmem:[#allocation2 + $0x1d2] sm:$0xff] }
 0x402   : > { %3586 = vst.msk [vmem:[#allocation3 + $0x30] sm:$0xff] %vm3579_vm11, %v3376_v63  ;;  %3892 = vrot.lane.b32.xlu1 %v3700_v47, %s7451_s15 }
 0x403   : > { %3862 = vrot.lane.b32.xlu0 %v3685_v49, %s7451_s15  ;;  %v3703_v49 = vld [vmem:[#allocation2 + $0x262] sm:$0xff] }
 0x404   : > { %v3378_v16 = vpop.permute.xlu1 %3377  ;;  %v3809_v5 = vpop.permute.xlu0 %3808 }
 0x405   : > { %v4089_v33 = vld [vmem:[#allocation3 + $0x20] sm:$0xff]  ;;  %3587 = vst.msk [vmem:[#allocation3 + $0x38] sm:$0xff] %vm3579_vm11, %v3378_v16  ;;  %v2839_v16 = vld [vmem:[#allocation2 + $0x270] sm:$0xff] }
 0x406   : > { %4019 = vst.msk [vmem:[#allocation3 + $0x30] sm:$0xff] %vm4012_vm12, %v3809_v5  ;;  %7211 = vmatprep.mubr.msk.f32.mxu0 %vm4168_vm13, %v4089_v33  ;;  %3894 = vrot.lane.b32.xlu1 %v3701_v58, %s7451_s15  ;;  %v3691_v5 = vld [vmem:[#allocation2 + $0x1e2] sm:$0xff] }
 0x407   : > { %3030 = vrot.lane.b32.xlu0 %v2836_v54, %s7448_s30 }
 0x408   : > { %v3811_v25 = vpop.permute.xlu1 %3810  ;;  %v4090_v20 = vld [vmem:[#allocation3 + $0x28] sm:$0xff]  ;;  %v3380_v46 = vpop.permute.xlu0 %3379 }
 0x409   : > { %4020 = vst.msk [vmem:[#allocation3 + $0x38] sm:$0xff] %vm4012_vm12, %v3811_v25  ;;  %7212 = vmatmul.mubr.msk.f32.gmra.mrb[4].mxu0 %vm4168_vm13, %v4090_v20  ;;  %v3271_v20 = vld [vmem:[#allocation2 + $0x269] sm:$0xff] }
 0x40a   : > { %3588 = vst.msk [vmem:[#allocation3 + $0x40] sm:$0xff] %vm3579_vm11, %v3380_v46  ;;  %3032 = vrot.lane.b32.xlu1 %v2837_v62, %s7448_s30  ;;  %v2842_v46 = vld [vmem:[#allocation2 + $0x290] sm:$0xff] }
 0x40b   : > { %3431 = vrot.lane.b32.xlu0 %v3253_v0, %s7449_s14 }
 0x40c   : > { %v3382_v56 = vpop.permute.xlu1 %3381  ;;  %v3813_v28 = vpop.permute.xlu0 %3812 }
 0x40d   : > { %v4091_v48 = vld [vmem:[#allocation3 + $0x30] sm:$0xff]  ;;  %3589 = vst.msk [vmem:[#allocation3 + $0x48] sm:$0xff] %vm3579_vm11, %v3382_v56 }
 0x40e   : > { %4021 = vst.msk [vmem:[#allocation3 + $0x40] sm:$0xff] %vm4012_vm12, %v3813_v28  ;;  %7214 = vmatprep.mubr.msk.f32.mxu0 %vm4168_vm13, %v4091_v48  ;;  %3463 = vrot.lane.b32.xlu1 %v3269_v9, %s7449_s14  ;;  %v3272_v48 = vld [vmem:[#allocation2 + $0x271] sm:$0xff] }
 0x40f   : > { %3433 = vrot.lane.b32.xlu0 %v3254_v34, %s7449_s14 }
 0x410   : > { %v3815_v39 = vpop.permute.xlu1 %3814  ;;  %v4092_v19 = vld [vmem:[#allocation3 + $0x38] sm:$0xff]  ;;  %v3384_v40 = vpop.permute.xlu0 %3383 }
 0x411   : > { %4022 = vst.msk [vmem:[#allocation3 + $0x48] sm:$0xff] %vm4012_vm12, %v3815_v39  ;;  %7215 = vmatmul.mubr.msk.f32.gmra.mrb[6].mxu0 %vm4168_vm13, %v4092_v19 }
 0x412   : > { %3590 = vst.msk [vmem:[#allocation3 + $0x50] sm:$0xff] %vm3579_vm11, %v3384_v40  ;;  %3465 = vrot.lane.b32.xlu1 %v3270_v12, %s7449_s14 }
 0x413   : > { %3864 = vrot.lane.b32.xlu0 %v3686_v22, %s7451_s15  ;;  %v3259_v22 = vld [vmem:[#allocation2 + $0x1e9] sm:$0xff] }
 0x414   : > { %v3386_v60 = vpop.permute.xlu1 %3385  ;;  %v3817_v23 = vpop.permute.xlu0 %3816 }
 0x415   : > { %v4093_v30 = vld [vmem:[#allocation3 + $0x40] sm:$0xff]  ;;  %3591 = vst.msk [vmem:[#allocation3 + $0x58] sm:$0xff] %vm3579_vm11, %v3386_v60  ;;  %v3260_v60 = vld [vmem:[#allocation2 + $0x1f1] sm:$0xff] }
 0x416   : > { %4023 = vst.msk [vmem:[#allocation3 + $0x50] sm:$0xff] %vm4012_vm12, %v3817_v23  ;;  %7217 = vmatprep.mubr.msk.f32.mxu0 %vm4168_vm13, %v4093_v30  ;;  %3896 = vrot.lane.b32.xlu1 %v3702_v29, %s7451_s15 }
 0x417   : > { %3866 = vrot.lane.b32.xlu0 %v3687_v26, %s7451_s15  ;;  %v3704_v26 = vld [vmem:[#allocation2 + $0x26a] sm:$0xff] }
 0x418   : > { %v3819_v36 = vpop.permute.xlu1 %3818  ;;  %v4094_v32 = vld [vmem:[#allocation3 + $0x48] sm:$0xff]  ;;  %v3388_v42 = vpop.permute.xlu0 %3387 }
 0x419   : > { %4024 = vst.msk [vmem:[#allocation3 + $0x58] sm:$0xff] %vm4012_vm12, %v3819_v36  ;;  %7218 = vmatmul.mubr.msk.f32.gmra.mrb[8].mxu0 %vm4168_vm13, %v4094_v32  ;;  %v3692_v36 = vld [vmem:[#allocation2 + $0x1ea] sm:$0xff] }
 0x41a   : > { %3592 = vst.msk [vmem:[#allocation3 + $0x60] sm:$0xff] %vm3579_vm11, %v3388_v42  ;;  %3898 = vrot.lane.b32.xlu1 %v3703_v49, %s7451_s15 }
 0x41b   : > { %3034 = vrot.lane.b32.xlu0 %v2838_v27, %s7448_s30  ;;  %v3705_v27 = vld [vmem:[#allocation2 + $0x272] sm:$0xff] }
 0x41c   : > { %v3390_v45 = vpop.permute.xlu1 %3389  ;;  %v3821_v43 = vpop.permute.xlu0 %3820 }
 0x41d   : > { %v4095_v50 = vld [vmem:[#allocation3 + $0x50] sm:$0xff]  ;;  %3593 = vst.msk [vmem:[#allocation3 + $0x68] sm:$0xff] %vm3579_vm11, %v3390_v45 }
 0x41e   : > { %4025 = vst.msk [vmem:[#allocation3 + $0x60] sm:$0xff] %vm4012_vm12, %v3821_v43  ;;  %7220 = vmatprep.mubr.msk.f32.mxu0 %vm4168_vm13, %v4095_v50  ;;  %3036 = vrot.lane.b32.xlu1 %v2839_v16, %s7448_s30  ;;  %v3693_v45 = vld [vmem:[#allocation2 + $0x1f2] sm:$0xff] }
 0x41f   : > { %3435 = vrot.lane.b32.xlu0 %v3255_v38, %s7449_s14  ;;  %v2841_v38 = vld [vmem:[#allocation2 + $0x288] sm:$0xff]  ;;  %v3708_v16 = vld [vmem:[#allocation2 + $0x292] sm:$0xff] }
 0x420   : > { %v3823_v51 = vpop.permute.xlu1 %3822  ;;  %v4096_v55 = vld [vmem:[#allocation3 + $0x58] sm:$0xff]  ;;  %v3392_v53 = vpop.permute.xlu0 %3391 }
 0x421   : > { %4026 = vst.msk [vmem:[#allocation3 + $0x68] sm:$0xff] %vm4012_vm12, %v3823_v51  ;;  %7221 = vmatmul.mubr.msk.f32.gmra.mrb[10].mxu0 %vm4168_vm13, %v4096_v55  ;;  %v2844_v51 = vld [vmem:[#allocation2 + $0x2a8] sm:$0xff] }
 0x422   : > { %3594 = vst.msk [vmem:[#allocation3 + $0x70] sm:$0xff] %vm3579_vm11, %v3392_v53  ;;  %3467 = vrot.lane.b32.xlu1 %v3271_v20, %s7449_s14  ;;  %v3696_v20 = vld [vmem:[#allocation2 + $0x212] sm:$0xff] }
 0x423   : > { %3437 = vrot.lane.b32.xlu0 %v3256_v52, %s7449_s14  ;;  %v3273_v52 = vld [vmem:[#allocation2 + $0x281] sm:$0xff] }
 0x424   : > { %v3394_v61 = vpop.permute.xlu1 %3393  ;;  %v3825_v59 = vpop.permute.xlu0 %3824 }
 0x425   : > { %v4097_v1 = vld [vmem:[#allocation3 + $0x60] sm:$0xff]  ;;  %3595 = vst.msk [vmem:[#allocation3 + $0x78] sm:$0xff] %vm3579_vm11, %v3394_v61 }
 0x426   : > { %4027 = vst.msk [vmem:[#allocation3 + $0x70] sm:$0xff] %vm4012_vm12, %v3825_v59  ;;  %7223 = vmatprep.mubr.msk.f32.mxu0 %vm4168_vm13, %v4097_v1  ;;  %3469 = vrot.lane.b32.xlu1 %v3272_v48, %s7449_s14  ;;  %v3261_v61 = vld [vmem:[#allocation2 + $0x201] sm:$0xff] }
 0x427   : > { %3868 = vrot.lane.b32.xlu0 %v3688_v57, %s7451_s15  ;;  %v3274_v57 = vld [vmem:[#allocation2 + $0x289] sm:$0xff] }
 0x428   : > { %v3827_v2 = vpop.permute.xlu1 %3826  ;;  %v4098_v6 = vld [vmem:[#allocation3 + $0x68] sm:$0xff]  ;;  %v3396_v4 = vpop.permute.xlu0 %3395 }
 0x429   : > { %4028 = vst.msk [vmem:[#allocation3 + $0x78] sm:$0xff] %vm4012_vm12, %v3827_v2  ;;  %7224 = vmatmul.mubr.msk.f32.gmra.mrb[12].mxu0 %vm4168_vm13, %v4098_v6  ;;  %v3262_v2 = vld [vmem:[#allocation2 + $0x209] sm:$0xff] }
 0x42a   : > { %3596 = vst.msk [vmem:[#allocation3 + $0x80] sm:$0xff] %vm3579_vm11, %v3396_v4  ;;  %3900 = vrot.lane.b32.xlu1 %v3704_v26, %s7451_s15  ;;  %v3278_v26 = vld [vmem:[#allocation2 + $0x2b1] sm:$0xff] }
 0x42b   : > { %3870 = vrot.lane.b32.xlu0 %v3689_v3, %s7451_s15  ;;  %v3706_v3 = vld [vmem:[#allocation2 + $0x282] sm:$0xff] }
 0x42c   : > { %v3398_v11 = vpop.permute.xlu1 %3397  ;;  %v3829_v10 = vpop.permute.xlu0 %3828 }
 0x42d   : > { %v4099_v14 = vld [vmem:[#allocation3 + $0x70] sm:$0xff]  ;;  %3597 = vst.msk [vmem:[#allocation3 + $0x88] sm:$0xff] %vm3579_vm11, %v3398_v11  ;;  %v3694_v11 = vld [vmem:[#allocation2 + $0x202] sm:$0xff] }
 0x42e   : > { %4029 = vst.msk [vmem:[#allocation3 + $0x80] sm:$0xff] %vm4012_vm12, %v3829_v10  ;;  %7226 = vmatprep.mubr.msk.f32.mxu0 %vm4168_vm13, %v4099_v14  ;;  %3902 = vrot.lane.b32.xlu1 %v3705_v27, %s7451_s15  ;;  %v3266_v27 = vld [vmem:[#allocation2 + $0x231] sm:$0xff] }
 0x42f   : > { %3038 = vrot.lane.b32.xlu0 %v2840_v7, %s7448_s30  ;;  %v3707_v7 = vld [vmem:[#allocation2 + $0x28a] sm:$0xff] }
 0x430   : > { %v3831_v15 = vpop.permute.xlu1 %3830  ;;  %v4100_v21 = vld [vmem:[#allocation3 + $0x78] sm:$0xff]  ;;  %v3400_v18 = vpop.permute.xlu0 %3399 }
 0x431   : > { %4030 = vst.msk [vmem:[#allocation3 + $0x88] sm:$0xff] %vm4012_vm12, %v3831_v15  ;;  %7227 = vmatmul.mubr.msk.f32.gmra.mrb[14].mxu0 %vm4168_vm13, %v4100_v21  ;;  %v3695_v15 = vld [vmem:[#allocation2 + $0x20a] sm:$0xff] }
 0x432   : > { %3598 = vst.msk [vmem:[#allocation3 + $0x90] sm:$0xff] %vm3579_vm11, %v3400_v18  ;;  %3040 = vrot.lane.b32.xlu1 %v2841_v38, %s7448_s30 }
 0x433   : > { %3439 = vrot.lane.b32.xlu0 %v3257_v17, %s7449_s14  ;;  %v2843_v17 = vld [vmem:[#allocation2 + $0x2a0] sm:$0xff] }
 0x434   : > { %v3402_v35 = vpop.permute.xlu1 %3401  ;;  %v3833_v31 = vpop.permute.xlu0 %3832 }
 0x435   : > { %v4101_v37 = vld [vmem:[#allocation3 + $0x80] sm:$0xff]  ;;  %3599 = vst.msk [vmem:[#allocation3 + $0x98] sm:$0xff] %vm3579_vm11, %v3402_v35 }
 0x436   : > { %4031 = vst.msk [vmem:[#allocation3 + $0x90] sm:$0xff] %vm4012_vm12, %v3833_v31  ;;  %7229 = vmatprep.mubr.msk.f32.mxu0 %vm4168_vm13, %v4101_v37  ;;  %3471 = vrot.lane.b32.xlu1 %v3273_v52, %s7449_s14  ;;  %v2846_v35 = vld [vmem:[#allocation2 + $0x2c0] sm:$0xff] }
 0x437   : > { %3441 = vrot.lane.b32.xlu0 %v3258_v24, %s7449_s14  ;;  %v3275_v24 = vld [vmem:[#allocation2 + $0x291] sm:$0xff] }
 0x438   : > { %v3835_v41 = vpop.permute.xlu1 %3834  ;;  %v4102_v63 = vld [vmem:[#allocation3 + $0x88] sm:$0xff]  ;;  %v3404_v54 = vpop.permute.xlu0 %3403 }
 0x439   : > { %4032 = vst.msk [vmem:[#allocation3 + $0x98] sm:$0xff] %vm4012_vm12, %v3835_v41  ;;  %7230 = vmatmul.mubr.msk.f32.gmra.mrb[16].mxu0 %vm4168_vm13, %v4102_v63  ;;  %v3263_v41 = vld [vmem:[#allocation2 + $0x211] sm:$0xff] }
 0x43a   : > { %3600 = vst.msk [vmem:[#allocation3 + $0xa0] sm:$0xff] %vm3579_vm11, %v3404_v54  ;;  %3473 = vrot.lane.b32.xlu1 %v3274_v57, %s7449_s14 }
 0x43b   : > { %3872 = vrot.lane.b32.xlu0 %v3690_v44, %s7451_s15  ;;  %v3276_v44 = vld [vmem:[#allocation2 + $0x2a1] sm:$0xff] }
 0x43c   : > { %v3406_v33 = vpop.permute.xlu1 %3405  ;;  %v3837_v0 = vpop.permute.xlu0 %3836 }
 0x43d   : > { %v4103_v25 = vld [vmem:[#allocation3 + $0x90] sm:$0xff]  ;;  %3601 = vst.msk [vmem:[#allocation3 + $0xa8] sm:$0xff] %vm3579_vm11, %v3406_v33 }
 0x43e   : > { %4033 = vst.msk [vmem:[#allocation3 + $0xa0] sm:$0xff] %vm4012_vm12, %v3837_v0  ;;  %7232 = vmatprep.mubr.msk.f32.mxu0 %vm4168_vm13, %v4103_v25  ;;  %3904 = vrot.lane.b32.xlu1 %v3706_v3, %s7451_s15  ;;  %v3709_v25 = vld [vmem:[#allocation2 + $0x2a2] sm:$0xff] }
 0x43f   : > { %3874 = vrot.lane.b32.xlu0 %v3691_v5, %s7451_s15  ;;  %v3264_v5 = vld [vmem:[#allocation2 + $0x221] sm:$0xff] }
 0x440   : > { %v3839_v34 = vpop.permute.xlu1 %3838  ;;  %v4104_v56 = vld [vmem:[#allocation3 + $0x98] sm:$0xff]  ;;  %v3408_v28 = vpop.permute.xlu0 %3407 }
 0x441   : > { %4034 = vst.msk [vmem:[#allocation3 + $0xa8] sm:$0xff] %vm4012_vm12, %v3839_v34  ;;  %7233 = vmatmul.mubr.msk.f32.gmra.mrb[18].mxu0 %vm4168_vm13, %v4104_v56  ;;  %v2845_v34 = vld [vmem:[#allocation2 + $0x2b0] sm:$0xff]  ;;  %v3697_v56 = vld [vmem:[#allocation2 + $0x222] sm:$0xff] }
 0x442   : > { %3602 = vst.msk [vmem:[#allocation3 + $0xb0] sm:$0xff] %vm3579_vm11, %v3408_v28  ;;  %3906 = vrot.lane.b32.xlu1 %v3707_v7, %s7451_s15  ;;  %v2849_v7 = vld [vmem:[#allocation2 + $0x2e0] sm:$0xff] }
 0x443   : > { %3042 = vrot.lane.b32.xlu0 %v2842_v46, %s7448_s30 }
 0x444   : > { %v3410_v39 = vpop.permute.xlu1 %3409  ;;  %v3841_v19 = vpop.permute.xlu0 %3840 }
 0x445   : > { %v4105_v40 = vld [vmem:[#allocation3 + $0xa0] sm:$0xff]  ;;  %3603 = vst.msk [vmem:[#allocation3 + $0xb8] sm:$0xff] %vm3579_vm11, %v3410_v39  ;;  %v2848_v39 = vld [vmem:[#allocation2 + $0x2d0] sm:$0xff] }
 0x446   : > { %4035 = vst.msk [vmem:[#allocation3 + $0xb0] sm:$0xff] %vm4012_vm12, %v3841_v19  ;;  %7235 = vmatprep.mubr.msk.f32.mxu0 %vm4168_vm13, %v4105_v40  ;;  %3044 = vrot.lane.b32.xlu1 %v2843_v17, %s7448_s30 }
 0x447   : > { %3443 = vrot.lane.b32.xlu0 %v3259_v22, %s7449_s14  ;;  %v3277_v22 = vld [vmem:[#allocation2 + $0x2a9] sm:$0xff] }
 0x448   : > { %v3843_v23 = vpop.permute.xlu1 %3842  ;;  %v4106_v30 = vld [vmem:[#allocation3 + $0xa8] sm:$0xff]  ;;  %v3412_v8 = vpop.permute.xlu0 %3411 }
 0x449   : > { %4036 = vst.msk [vmem:[#allocation3 + $0xb8] sm:$0xff] %vm4012_vm12, %v3843_v23  ;;  %7236 = vmatmul.mubr.msk.f32.gmra.mrb[20].mxu0 %vm4168_vm13, %v4106_v30  ;;  %v3710_v30 = vld [vmem:[#allocation2 + $0x2aa] sm:$0xff] }
 0x44a   : > { %3604 = vst.msk [vmem:[#allocation3 + $0xc0] sm:$0xff] %vm3579_vm11, %v3412_v8  ;;  %3475 = vrot.lane.b32.xlu1 %v3275_v24, %s7449_s14  ;;  %v3711_v8 = vld [vmem:[#allocation2 + $0x2b2] sm:$0xff] }
 0x44b   : > { %3445 = vrot.lane.b32.xlu0 %v3260_v60, %s7449_s14  ;;  %v3265_v60 = vld [vmem:[#allocation2 + $0x229] sm:$0xff] }
 0x44c   : > { %v3414_v32 = vpop.permute.xlu1 %3413  ;;  %v3845_v42 = vpop.permute.xlu0 %3844 }
 0x44d   : > { %v4107_v13 = vld [vmem:[#allocation3 + $0xb0] sm:$0xff]  ;;  %3605 = vst.msk [vmem:[#allocation3 + $0xc8] sm:$0xff] %vm3579_vm11, %v3414_v32  ;;  %v2847_v32 = vld [vmem:[#allocation2 + $0x2c8] sm:$0xff] }
 0x44e   : > { %4037 = vst.msk [vmem:[#allocation3 + $0xc0] sm:$0xff] %vm4012_vm12, %v3845_v42  ;;  %7238 = vmatprep.mubr.msk.f32.mxu0 %vm4168_vm13, %v4107_v13  ;;  %3477 = vrot.lane.b32.xlu1 %v3276_v44, %s7449_s14  ;;  %v3698_v42 = vld [vmem:[#allocation2 + $0x22a] sm:$0xff] }
 0x44f   : > { %3876 = vrot.lane.b32.xlu0 %v3692_v36, %s7451_s15 }
 0x450   : > { %v3847_v43 = vpop.permute.xlu1 %3846  ;;  %v4108_v50 = vld [vmem:[#allocation3 + $0xb8] sm:$0xff]  ;;  %v3416_v47 = vpop.permute.xlu0 %3415 }
 0x451   : > { %4038 = vst.msk [vmem:[#allocation3 + $0xc8] sm:$0xff] %vm4012_vm12, %v3847_v43  ;;  %7239 = vmatmul.mubr.msk.f32.gmra.mrb[22].mxu0 %vm4168_vm13, %v4108_v50  ;;  %v10458_v43 = vmov 0.0   ;;  %v3699_v50 = vld [vmem:[#allocation2 + $0x232] sm:$0xff] }
 0x452   : > { %3606 = vst.msk [vmem:[#allocation3 + $0xd0] sm:$0xff] %vm3579_vm11, %v3416_v47  ;;  %3908 = vrot.lane.b32.xlu1 %v3708_v16, %s7451_s15 }
 0x453   : > { %3878 = vrot.lane.b32.xlu0 %v3693_v45, %s7451_s15  ;;  %v3279_v45 = vld [vmem:[#allocation2 + $0x2c1] sm:$0xff]  ;;  %5222 = vst.msk [vmem:[#allocation5] sm:$0xff] %vm4886_vm14, %v10458_v43  ;;  %5223 = vst.msk [vmem:[#allocation5 + $0x8] sm:$0xff] %vm4886_vm14, %v10458_v43 }
 0x454   : > { %v3418_v55 = vpop.permute.xlu1 %3417  ;;  %v3849_v53 = vpop.permute.xlu0 %3848  ;;  %5226 = vst.msk [vmem:[#allocation5 + $0x18] sm:$0xff] %vm4886_vm14, %v10458_v43  ;;  %5227 = vst.msk [vmem:[#allocation5 + $0x20] sm:$0xff] %vm4886_vm14, %v10458_v43 }
 0x455   : > { %v4109_v58 = vld [vmem:[#allocation3 + $0xc0] sm:$0xff]  ;;  %3607 = vst.msk [vmem:[#allocation3 + $0xd8] sm:$0xff] %vm3579_vm11, %v3418_v55  ;;  %v3280_v55 = vld [vmem:[#allocation2 + $0x2c9] sm:$0xff] }
 0x456   : > { %4039 = vst.msk [vmem:[#allocation3 + $0xd0] sm:$0xff] %vm4012_vm12, %v3849_v53  ;;  %7241 = vmatprep.mubr.msk.f32.mxu0 %vm4168_vm13, %v4109_v58  ;;  %3910 = vrot.lane.b32.xlu1 %v3709_v25, %s7451_s15  ;;  %v2850_v58 = vld [vmem:[#allocation2 + $0x2e8] sm:$0xff] }
 0x457   : > { %3046 = vrot.lane.b32.xlu0 %v2844_v51, %s7448_s30  ;;  %5229 = vst.msk [vmem:[#allocation5 + $0x30] sm:$0xff] %vm4886_vm14, %v10458_v43  ;;  %5230 = vst.msk [vmem:[#allocation5 + $0x38] sm:$0xff] %vm4886_vm14, %v10458_v43 }
 0x458   : > { %v3851_v59 = vpop.permute.xlu1 %3850  ;;  %v4110_v1 = vld [vmem:[#allocation3 + $0xc8] sm:$0xff]  ;;  %v3420_v62 = vpop.permute.xlu0 %3419  ;;  %5232 = vst.msk [vmem:[#allocation5 + $0x48] sm:$0xff] %vm4886_vm14, %v10458_v43  ;;  %5233 = vst.msk [vmem:[#allocation5 + $0x50] sm:$0xff] %vm4886_vm14, %v10458_v43 }
 0x459   : > { %4040 = vst.msk [vmem:[#allocation3 + $0xd8] sm:$0xff] %vm4012_vm12, %v3851_v59  ;;  %7242 = vmatmul.mubr.msk.f32.gmra.mrb[24].mxu0 %vm4168_vm13, %v4110_v1  ;;  %v3712_v59 = vld [vmem:[#allocation2 + $0x2c2] sm:$0xff] }
 0x45a   : > { %3608 = vst.msk [vmem:[#allocation3 + $0xe0] sm:$0xff] %vm3579_vm11, %v3420_v62  ;;  %3048 = vrot.lane.b32.xlu1 %v2845_v34, %s7448_s30  ;;  %v3283_v62 = vld [vmem:[#allocation2 + $0x2e9] sm:$0xff] }
 0x45b   : > { %3447 = vrot.lane.b32.xlu0 %v3261_v61, %s7449_s14  ;;  %5235 = vst.msk [vmem:[#allocation5 + $0x60] sm:$0xff] %vm4886_vm14, %v10458_v43  ;;  %5236 = vst.msk [vmem:[#allocation5 + $0x68] sm:$0xff] %vm4886_vm14, %v10458_v43 }
 0x45c   : > { %v3422_v6 = vpop.permute.xlu1 %3421  ;;  %v3853_v4 = vpop.permute.xlu0 %3852  ;;  %5238 = vst.msk [vmem:[#allocation5 + $0x78] sm:$0xff] %vm4886_vm14, %v10458_v43  ;;  %5239 = vst.msk [vmem:[#allocation5 + $0x80] sm:$0xff] %vm4886_vm14, %v10458_v43 }
 0x45d   : > { %v4111_v9 = vld [vmem:[#allocation3 + $0xd0] sm:$0xff]  ;;  %3609 = vst.msk [vmem:[#allocation3 + $0xe8] sm:$0xff] %vm3579_vm11, %v3422_v6 }
 0x45e   : > { %4041 = vst.msk [vmem:[#allocation3 + $0xe0] sm:$0xff] %vm4012_vm12, %v3853_v4  ;;  %7244 = vmatprep.mubr.msk.f32.mxu0 %vm4168_vm13, %v4111_v9  ;;  %3479 = vrot.lane.b32.xlu1 %v3277_v22, %s7449_s14  ;;  %v3716_v4 = vld [vmem:[#allocation2 + $0x2ea] sm:$0xff]  ;;  %v3717_v22 = vld [vmem:[#allocation2 + $0x2f2] sm:$0xff] }
 0x45f   : > { %3449 = vrot.lane.b32.xlu0 %v3262_v2, %s7449_s14  ;;  %5241 = vst.msk [vmem:[#allocation5 + $0x90] sm:$0xff] %vm4886_vm14, %v10458_v43  ;;  %5242 = vst.msk [vmem:[#allocation5 + $0x98] sm:$0xff] %vm4886_vm14, %v10458_v43  ;;  %v3713_v2 = vld [vmem:[#allocation2 + $0x2ca] sm:$0xff] }
 0x460   : > { %v3855_v10 = vpop.permute.xlu1 %3854  ;;  %v4112_v14 = vld [vmem:[#allocation3 + $0xd8] sm:$0xff]  ;;  %v3424_v12 = vpop.permute.xlu0 %3423  ;;  %5244 = vst.msk [vmem:[#allocation5 + $0xa8] sm:$0xff] %vm4886_vm14, %v10458_v43  ;;  %5245 = vst.msk [vmem:[#allocation5 + $0xb0] sm:$0xff] %vm4886_vm14, %v10458_v43 }
 0x461   : > { %4042 = vst.msk [vmem:[#allocation3 + $0xe8] sm:$0xff] %vm4012_vm12, %v3855_v10  ;;  %7245 = vmatmul.mubr.msk.f32.gmra.mrb[26].mxu0 %vm4168_vm13, %v4112_v14  ;;  %v2852_v10 = vld [vmem:[#allocation2 + $0x300] sm:$0xff] }
 0x462   : > { %3610 = vst.msk [vmem:[#allocation3 + $0xf0] sm:$0xff] %vm3579_vm11, %v3424_v12  ;;  %3481 = vrot.lane.b32.xlu1 %v3278_v26, %s7449_s14  ;;  %v3281_v12 = vld [vmem:[#allocation2 + $0x2d1] sm:$0xff]  ;;  %v2853_v26 = vld [vmem:[#allocation2 + $0x308] sm:$0xff] }
 0x463   : > { %3880 = vrot.lane.b32.xlu0 %v3694_v11, %s7451_s15  ;;  %5247 = vst.msk [vmem:[#allocation5 + $0xc0] sm:$0xff] %vm4886_vm14, %v10458_v43  ;;  %5248 = vst.msk [vmem:[#allocation5 + $0xc8] sm:$0xff] %vm4886_vm14, %v10458_v43 }
 0x464   : > { %v3426_v21 = vpop.permute.xlu1 %3425  ;;  %v3857_v18 = vpop.permute.xlu0 %3856  ;;  %5250 = vst.msk [vmem:[#allocation5 + $0xd8] sm:$0xff] %vm4886_vm14, %v10458_v43  ;;  %5251 = vst.msk [vmem:[#allocation5 + $0xe0] sm:$0xff] %vm4886_vm14, %v10458_v43 }
 0x465   : > { %v4113_v29 = vld [vmem:[#allocation3 + $0xe0] sm:$0xff]  ;;  %3611 = vst.msk [vmem:[#allocation3 + $0xf8] sm:$0xff] %vm3579_vm11, %v3426_v21 }
 0x466   : > { %4043 = vst.msk [vmem:[#allocation3 + $0xf0] sm:$0xff] %vm4012_vm12, %v3857_v18  ;;  %7247 = vmatprep.mubr.msk.f32.mxu0 %vm4168_vm13, %v4113_v29  ;;  %3912 = vrot.lane.b32.xlu1 %v3710_v30, %s7451_s15  ;;  %v3282_v29 = vld [vmem:[#allocation2 + $0x2e1] sm:$0xff]  ;;  %v3286_v30 = vld [vmem:[#allocation2 + $0x309] sm:$0xff] }
 0x467   : > { %3882 = vrot.lane.b32.xlu0 %v3695_v15, %s7451_s15  ;;  %5253 = vst.msk [vmem:[#allocation5 + $0xf0] sm:$0xff] %vm4886_vm14, %v10458_v43  ;;  %5254 = vst.msk [vmem:[#allocation5 + $0xf8] sm:$0xff] %vm4886_vm14, %v10458_v43  ;;  %v3285_v15 = vld [vmem:[#allocation2 + $0x301] sm:$0xff] }
 0x468   : > { %v4114_v31 = vld [vmem:[#allocation3 + $0xe8] sm:$0xff]  ;;  %v3859_v37 = vpop.permute.xlu1 %3858  ;;  %5256 = vst.msk [vmem:[#allocation5 + $0x108] sm:$0xff] %vm4886_vm14, %v10458_v43  ;;  %5257 = vst.msk [vmem:[#allocation5 + $0x110] sm:$0xff] %vm4886_vm14, %v10458_v43 }
 0x469   : > { %v3428_v49 = vpop.permute.xlu0 %3427  ;;  %7248 = vmatmul.mubr.msk.f32.gmra.mrb[28].mxu0 %vm4168_vm13, %v4114_v31  ;;  %4044 = vst.msk [vmem:[#allocation3 + $0xf8] sm:$0xff] %vm4012_vm12, %v3859_v37 }
 0x46a   : > { %3612 = vst.msk [vmem:[#allocation3 + $0x100] sm:$0xff] %vm3579_vm11, %v3428_v49  ;;  %3914 = vrot.lane.b32.xlu1 %v3711_v8, %s7451_s15  ;;  %v3714_v49 = vld [vmem:[#allocation2 + $0x2d2] sm:$0xff] }
 0x46b   : > { %3050 = vrot.lane.b32.xlu0 %v2846_v35, %s7448_s30  ;;  %5259 = vst.msk [vmem:[#allocation5 + $0x120] sm:$0xff] %vm4886_vm14, %v10458_v43  ;;  %5260 = vst.msk [vmem:[#allocation5 + $0x128] sm:$0xff] %vm4886_vm14, %v10458_v43  ;;  %v3718_v35 = vld [vmem:[#allocation2 + $0x302] sm:$0xff] }
 0x46c   : > { %v3460_v13 = vpop.permute.xlu1 %3459  ;;  %5262 = vst.msk [vmem:[#allocation5 + $0x138] sm:$0xff] %vm4886_vm14, %v10458_v43  ;;  %5263 = vst.msk [vmem:[#allocation5 + $0x140] sm:$0xff] %vm4886_vm14, %v10458_v43 }
 0x46d   : > { %v3430_v63 = vpop.permute.xlu0 %3429  ;;  %v4115_v54 = vld [vmem:[#allocation3 + $0xf0] sm:$0xff]  ;;  %3628 = vst.msk [vmem:[#allocation3 + $0x180] sm:$0xff] %vm3579_vm11, %v3460_v13  ;;  %v2855_v13 = vld [vmem:[#allocation2 + $0x320] sm:$0xff] }
 0x46e   : > { %3613 = vst.msk [vmem:[#allocation3 + $0x108] sm:$0xff] %vm3579_vm11, %v3430_v63  ;;  %7250 = vmatprep.mubr.msk.f32.mxu0 %vm4168_vm13, %v4115_v54  ;;  %3052 = vrot.lane.b32.xlu1 %v2847_v32, %s7448_s30  ;;  %v3715_v54 = vld [vmem:[#allocation2 + $0x2e2] sm:$0xff] }
 0x46f   : > { %3451 = vrot.lane.b32.xlu0 %v3263_v41, %s7449_s14  ;;  %v2854_v41 = vld [vmem:[#allocation2 + $0x310] sm:$0xff]  ;;  %5225 = vst.msk [vmem:[#allocation5 + $0x10] sm:$0x3] %vm5224_vm15, %v10458_v43  ;;  %5228 = vst.msk [vmem:[#allocation5 + $0x28] sm:$0x3] %vm5224_vm15, %v10458_v43 }
 0x470   : > { %v4116_v33 = vld [vmem:[#allocation3 + $0xf8] sm:$0xff]  ;;  %v3462_v47 = vpop.permute.xlu1 %3461  ;;  %5231 = vst.msk [vmem:[#allocation5 + $0x40] sm:$0x3] %vm5224_vm15, %v10458_v43  ;;  %5234 = vst.msk [vmem:[#allocation5 + $0x58] sm:$0x3] %vm5224_vm15, %v10458_v43 }
 0x471   : > { %v3861_v0 = vpop.permute.xlu0 %3860  ;;  %7251 = vmatmul.mubr.msk.f32.gmra.mrb[30].mxu0 %vm4168_vm13, %v4116_v33  ;;  %3629 = vst.msk [vmem:[#allocation3 + $0x188] sm:$0xff] %vm3579_vm11, %v3462_v47  ;;  %v9414_v47 = vld [vmem:[%s10406_s2] ss:$0 sm:$0xff] }
 0x472   : > { %4045 = vst.msk [vmem:[#allocation3 + $0x100] sm:$0xff] %vm4012_vm12, %v3861_v0  ;;  %3483 = vrot.lane.b32.xlu1 %v3279_v45, %s7449_s14  ;;  %v2851_v0 = vld [vmem:[#allocation2 + $0x2f0] sm:$0xff] }
 0x473   : > { %3453 = vrot.lane.b32.xlu0 %v3264_v5, %s7449_s14  ;;  %v3287_v5 = vld [vmem:[#allocation2 + $0x311] sm:$0xff]  ;;  %5237 = vst.msk [vmem:[#allocation5 + $0x70] sm:$0x3] %vm5224_vm15, %v10458_v43  ;;  %5240 = vst.msk [vmem:[#allocation5 + $0x88] sm:$0x3] %vm5224_vm15, %v10458_v43 }
 0x474   : > { %v3893_v53 = vpop.permute.xlu1 %3892  ;;  %5243 = vst.msk [vmem:[#allocation5 + $0xa0] sm:$0x3] %vm5224_vm15, %v10458_v43  ;;  %5246 = vst.msk [vmem:[#allocation5 + $0xb8] sm:$0x3] %vm5224_vm15, %v10458_v43 }
 0x475   : > { %v3863_v46 = vpop.permute.xlu0 %3862  ;;  %4061 = vst.msk [vmem:[#allocation3 + $0x180] sm:$0xff] %vm4012_vm12, %v3893_v53 }
 0x476   : > { %4046 = vst.msk [vmem:[#allocation3 + $0x108] sm:$0xff] %vm4012_vm12, %v3863_v46  ;;  %3485 = vrot.lane.b32.xlu1 %v3280_v55, %s7449_s14  ;;  %v3284_v46 = vld [vmem:[#allocation2 + $0x2f1] sm:$0xff] }
 0x477   : > { %3884 = vrot.lane.b32.xlu0 %v3696_v20, %s7451_s15  ;;  %5249 = vst.msk [vmem:[#allocation5 + $0xd0] sm:$0x3] %vm5224_vm15, %v10458_v43  ;;  %5252 = vst.msk [vmem:[#allocation5 + $0xe8] sm:$0x3] %vm5224_vm15, %v10458_v43 }
 0x478   : > { %v3895_v1 = vpop.permute.xlu1 %3894  ;;  %5255 = vst.msk [vmem:[#allocation5 + $0x100] sm:$0x3] %vm5224_vm15, %v10458_v43  ;;  %5258 = vst.msk [vmem:[#allocation5 + $0x118] sm:$0x3] %vm5224_vm15, %v10458_v43 }
 0x479   : > { %v3031_v28 = vpop.permute.xlu0 %3030  ;;  %v4117_v48 = vld [vmem:[#allocation3 + $0x100] sm:$0xff]  ;;  %4062 = vst.msk [vmem:[#allocation3 + $0x188] sm:$0xff] %vm4012_vm12, %v3895_v1 }
 0x47a   : > { %3197 = vst.msk [vmem:[#allocation3 + $0x190] sm:$0xff] %vm3146_vm10, %v3031_v28  ;;  %7253 = vmatprep.mubr.msk.f32.mxu0 %vm4168_vm13, %v4117_v48  ;;  %3916 = vrot.lane.b32.xlu1 %v3712_v59, %s7451_s15  ;;  %v3720_v48 = vld [vmem:[#allocation2 + $0x312] sm:$0xff] }
 0x47b   : > { %3886 = vrot.lane.b32.xlu0 %v3697_v56, %s7451_s15  ;;  %5261 = vst.msk [vmem:[#allocation5 + $0x130] sm:$0x3] %vm5224_vm15, %v10458_v43  ;;  %5264 = vst.msk [vmem:[#allocation5 + $0x148] sm:$0x3] %vm5224_vm15, %v10458_v43 }
 0x47c   : > { %v3033_v6 = vpop.permute.xlu1 %3032 }
 0x47d   : > { %v3432_v19 = vpop.permute.xlu0 %3431  ;;  %v4118_v40 = vld [vmem:[#allocation3 + $0x108] sm:$0xff]  ;;  %3198 = vst.msk [vmem:[#allocation3 + $0x198] sm:$0xff] %vm3146_vm10, %v3033_v6 }
 0x47e   : > { %3614 = vst.msk [vmem:[#allocation3 + $0x110] sm:$0xff] %vm3579_vm11, %v3432_v19  ;;  %7254 = vmatmul.mubr.msk.f32.gmra.mrb[32].mxu0 %vm4168_vm13, %v4118_v40  ;;  %3918 = vrot.lane.b32.xlu1 %v3713_v2, %s7451_s15 }
 0x47f   : > { %3054 = vrot.lane.b32.xlu0 %v2848_v39, %s7448_s30 }
 0x480   : > { %v3464_v11 = vpop.permute.xlu1 %3463 }
 0x481   : > { %v3434_v23 = vpop.permute.xlu0 %3433  ;;  %3630 = vst.msk [vmem:[#allocation3 + $0x190] sm:$0xff] %vm3579_vm11, %v3464_v11 }
 0x482   : > { %3615 = vst.msk [vmem:[#allocation3 + $0x118] sm:$0xff] %vm3579_vm11, %v3434_v23  ;;  %3056 = vrot.lane.b32.xlu1 %v2849_v7, %s7448_s30 }
 0x483   : > { %3455 = vrot.lane.b32.xlu0 %v3265_v60, %s7449_s14 }
 0x484   : > { %v3466_v17 = vpop.permute.xlu1 %3465 }
 0x485   : > { %v3865_v36 = vpop.permute.xlu0 %3864  ;;  %3631 = vst.msk [vmem:[#allocation3 + $0x198] sm:$0xff] %vm3579_vm11, %v3466_v17  ;;  %v3722_v17 = vld [vmem:[#allocation2 + $0x32a] sm:$0xff] }
 0x486   : > { %4047 = vst.msk [vmem:[#allocation3 + $0x110] sm:$0xff] %vm4012_vm12, %v3865_v36  ;;  %3487 = vrot.lane.b32.xlu1 %v3281_v12, %s7449_s14  ;;  %v3719_v36 = vld [vmem:[#allocation2 + $0x30a] sm:$0xff] }
 0x487   : > { %3457 = vrot.lane.b32.xlu0 %v3266_v27, %s7449_s14 }
 0x488   : > { %v3897_v24 = vpop.permute.xlu1 %3896 }
 0x489   : > { %v3867_v38 = vpop.permute.xlu0 %3866  ;;  %4063 = vst.msk [vmem:[#allocation3 + $0x190] sm:$0xff] %vm4012_vm12, %v3897_v24 }
 0x48a   : > { %4048 = vst.msk [vmem:[#allocation3 + $0x118] sm:$0xff] %vm4012_vm12, %v3867_v38  ;;  %3489 = vrot.lane.b32.xlu1 %v3282_v29, %s7449_s14 }
 0x48b   : > { %3888 = vrot.lane.b32.xlu0 %v3698_v42, %s7451_s15 }
 0x48c   : > { %v3899_v44 = vpop.permute.xlu1 %3898 }
 0x48d   : > { %v3035_v52 = vpop.permute.xlu0 %3034  ;;  %v4119_v51 = vld [vmem:[#allocation3 + $0x110] sm:$0xff]  ;;  %4064 = vst.msk [vmem:[#allocation3 + $0x198] sm:$0xff] %vm4012_vm12, %v3899_v44 }
 0x48e   : > { %3199 = vst.msk [vmem:[#allocation3 + $0x1a0] sm:$0xff] %vm3146_vm10, %v3035_v52  ;;  %7256 = vmatprep.mubr.msk.f32.mxu0 %vm4168_vm13, %v4119_v51  ;;  %3920 = vrot.lane.b32.xlu1 %v3714_v49, %s7451_s15  ;;  %v2856_v52 = vld [vmem:[#allocation2 + $0x328] sm:$0xff] }
 0x48f   : > { %3890 = vrot.lane.b32.xlu0 %v3699_v50, %s7451_s15  ;;  %v3288_v51 = vld [vmem:[#allocation2 + $0x321] sm:$0xff] }
 0x490   : > { %v3037_v16 = vpop.permute.xlu1 %3036 }
 0x491   : > { %v3436_v57 = vpop.permute.xlu0 %3435  ;;  %v4120_v61 = vld [vmem:[#allocation3 + $0x118] sm:$0xff]  ;;  %3200 = vst.msk [vmem:[#allocation3 + $0x1a8] sm:$0xff] %vm3146_vm10, %v3037_v16 }
 0x492   : > { %3616 = vst.msk [vmem:[#allocation3 + $0x120] sm:$0xff] %vm3579_vm11, %v3436_v57  ;;  %7257 = vmatmul.mubr.msk.f32.gmra.mrb[34].mxu0 %vm4168_vm13, %v4120_v61  ;;  %3922 = vrot.lane.b32.xlu1 %v3715_v54, %s7451_s15 }
 0x493   : > { %3058 = vrot.lane.b32.xlu0 %v2850_v58, %s7448_s30 }
 0x494   : > { %v3468_v25 = vpop.permute.xlu1 %3467 }
 0x495   : > { %v3438_v3 = vpop.permute.xlu0 %3437  ;;  %3632 = vst.msk [vmem:[#allocation3 + $0x1a0] sm:$0xff] %vm3579_vm11, %v3468_v25 }
 0x496   : > { %3617 = vst.msk [vmem:[#allocation3 + $0x128] sm:$0xff] %vm3579_vm11, %v3438_v3  ;;  %3060 = vrot.lane.b32.xlu1 %v2851_v0, %s7448_s30 }
 0x497   : > { %3491 = vrot.lane.b32.xlu0 %v3283_v62, %s7449_s14 }
 0x498   : > { %v3470_v34 = vpop.permute.xlu1 %3469 }
 0x499   : > { %v3869_v9 = vpop.permute.xlu0 %3868  ;;  %3633 = vst.msk [vmem:[#allocation3 + $0x1a8] sm:$0xff] %vm3579_vm11, %v3470_v34  ;;  %v5340_v34 = vld [vmem:[#allocation5 + $0x9] sm:$0xff] }
 0x49a   : > { %4049 = vst.msk [vmem:[#allocation3 + $0x120] sm:$0xff] %vm4012_vm12, %v3869_v9  ;;  %3493 = vrot.lane.b32.xlu1 %v3284_v46, %s7449_s14  ;;  %v3721_v9 = vld [vmem:[#allocation2 + $0x322] sm:$0xff] }
 0x49b   : > { %3924 = vrot.lane.b32.xlu0 %v3716_v4, %s7451_s15  ;;  %v3289_v4 = vld [vmem:[#allocation2 + $0x329] sm:$0xff] }
 0x49c   : > { %v3901_v39 = vpop.permute.xlu1 %3900 }
 0x49d   : > { %v3871_v14 = vpop.permute.xlu0 %3870  ;;  %4065 = vst.msk [vmem:[#allocation3 + $0x1a0] sm:$0xff] %vm4012_vm12, %v3901_v39 }
 0x49e   : > { %4050 = vst.msk [vmem:[#allocation3 + $0x128] sm:$0xff] %vm4012_vm12, %v3871_v14  ;;  %3926 = vrot.lane.b32.xlu1 %v3717_v22, %s7451_s15 }
 0x49f   : > { %3062 = vrot.lane.b32.xlu0 %v2852_v10, %s7448_s30 }
 0x4a0   : > { %v3903_v60 = vpop.permute.xlu1 %3902 }
 0x4a1   : > { %v3039_v21 = vpop.permute.xlu0 %3038  ;;  %v4121_v18 = vld [vmem:[#allocation3 + $0x120] sm:$0xff]  ;;  %4066 = vst.msk [vmem:[#allocation3 + $0x1a8] sm:$0xff] %vm4012_vm12, %v3903_v60 }
 0x4a2   : > { %3201 = vst.msk [vmem:[#allocation3 + $0x1b0] sm:$0xff] %vm3146_vm10, %v3039_v21  ;;  %7259 = vmatprep.mubr.msk.f32.mxu0 %vm4168_vm13, %v4121_v18  ;;  %3064 = vrot.lane.b32.xlu1 %v2853_v26, %s7448_s30 }
 0x4a3   : > { %3495 = vrot.lane.b32.xlu0 %v3285_v15, %s7449_s14  ;;  %v2857_v15 = vld [vmem:[#allocation2 + $0x330] sm:$0xff] }
 0x4a4   : > { %v3041_v8 = vpop.permute.xlu1 %3040 }
 0x4a5   : > { %v3440_v31 = vpop.permute.xlu0 %3439  ;;  %v4122_v37 = vld [vmem:[#allocation3 + $0x128] sm:$0xff]  ;;  %3202 = vst.msk [vmem:[#allocation3 + $0x1b8] sm:$0xff] %vm3146_vm10, %v3041_v8 }
 0x4a6   : > { %3618 = vst.msk [vmem:[#allocation3 + $0x130] sm:$0xff] %vm3579_vm11, %v3440_v31  ;;  %7260 = vmatmul.mubr.msk.f32.gmra.mrb[36].mxu0 %vm4168_vm13, %v4122_v37  ;;  %3497 = vrot.lane.b32.xlu1 %v3286_v30, %s7449_s14  ;;  %v5339_v31 = vld [vmem:[#allocation5 + $0x1] sm:$0xff]  ;;  %v3290_v37 = vld [vmem:[#allocation2 + $0x331] sm:$0xff] }
 0x4a7   : > { %3928 = vrot.lane.b32.xlu0 %v3718_v35, %s7451_s15 }
 0x4a8   : > { %v3472_v32 = vpop.permute.xlu1 %3471 }
 0x4a9   : > { %v3442_v63 = vpop.permute.xlu0 %3441  ;;  %3634 = vst.msk [vmem:[#allocation3 + $0x1b0] sm:$0xff] %vm3579_vm11, %v3472_v32 }
 0x4aa   : > { %3619 = vst.msk [vmem:[#allocation3 + $0x138] sm:$0xff] %vm3579_vm11, %v3442_v63  ;;  %3930 = vrot.lane.b32.xlu1 %v3719_v36, %s7451_s15 }
 0x4ab   : > { %3066 = vrot.lane.b32.xlu0 %v2854_v41, %s7448_s30 }
 0x4ac   : > { %v3474_v38 = vpop.permute.xlu1 %3473 }
 0x4ad   : > { %v3873_v33 = vpop.permute.xlu0 %3872  ;;  %3635 = vst.msk [vmem:[#allocation3 + $0x1b8] sm:$0xff] %vm3579_vm11, %v3474_v38 }
 0x4ae   : > { %4051 = vst.msk [vmem:[#allocation3 + $0x130] sm:$0xff] %vm4012_vm12, %v3873_v33  ;;  %3068 = vrot.lane.b32.xlu1 %v2855_v13, %s7448_s30 }
 0x4af   : > { %3499 = vrot.lane.b32.xlu0 %v3287_v5, %s7449_s14  ;;  %v3723_v5 = vld [vmem:[#allocation2 + $0x332] sm:$0xff] }
 0x4b0   : > { %v3905_v53 = vpop.permute.xlu1 %3904 }
 0x4b1   : > { %v3875_v20 = vpop.permute.xlu0 %3874  ;;  %4067 = vst.msk [vmem:[#allocation3 + $0x1b0] sm:$0xff] %vm4012_vm12, %v3905_v53 }
 0x4b2   : > { %4052 = vst.msk [vmem:[#allocation3 + $0x138] sm:$0xff] %vm4012_vm12, %v3875_v20  ;;  %3501 = vrot.lane.b32.xlu1 %v3288_v51, %s7449_s14 }
 0x4b3   : > { %3932 = vrot.lane.b32.xlu0 %v3720_v48, %s7451_s15 }
 0x4b4   : > { %v3907_v2 = vpop.permute.xlu1 %3906 }
 0x4b5   : > { %v3043_v56 = vpop.permute.xlu0 %3042  ;;  %v4123_v28 = vld [vmem:[#allocation3 + $0x130] sm:$0xff]  ;;  %4068 = vst.msk [vmem:[#allocation3 + $0x1b8] sm:$0xff] %vm4012_vm12, %v3907_v2 }
 0x4b6   : > { %3203 = vst.msk [vmem:[#allocation3 + $0x1c0] sm:$0xff] %vm3146_vm10, %v3043_v56  ;;  %7262 = vmatprep.mubr.msk.f32.mxu0 %vm4168_vm13, %v4123_v28  ;;  %3934 = vrot.lane.b32.xlu1 %v3721_v9, %s7451_s15 }
 0x4b7   : > { %3070 = vrot.lane.b32.xlu0 %v2856_v52, %s7448_s30 }
 0x4b8   : > { %v3045_v11 = vpop.permute.xlu1 %3044 }
 0x4b9   : > { %v3444_v19 = vpop.permute.xlu0 %3443  ;;  %v4124_v40 = vld [vmem:[#allocation3 + $0x138] sm:$0xff]  ;;  %3204 = vst.msk [vmem:[#allocation3 + $0x1c8] sm:$0xff] %vm3146_vm10, %v3045_v11 }
 0x4ba   : > { %3620 = vst.msk [vmem:[#allocation3 + $0x140] sm:$0xff] %vm3579_vm11, %v3444_v19  ;;  %7263 = vmatmul.mubr.msk.f32.gmra.mrb[38].mxu0 %vm4168_vm13, %v4124_v40  ;;  %3072 = vrot.lane.b32.xlu1 %v2857_v15, %s7448_s30 }
 0x4bb   : > { %3503 = vrot.lane.b32.xlu0 %v3289_v4, %s7449_s14 }
 0x4bc   : > { %v3476_v24 = vpop.permute.xlu1 %3475 }
 0x4bd   : > { %v3446_v23 = vpop.permute.xlu0 %3445  ;;  %3636 = vst.msk [vmem:[#allocation3 + $0x1c0] sm:$0xff] %vm3579_vm11, %v3476_v24 }
 0x4be   : > { %3621 = vst.msk [vmem:[#allocation3 + $0x148] sm:$0xff] %vm3579_vm11, %v3446_v23  ;;  %3505 = vrot.lane.b32.xlu1 %v3290_v37, %s7449_s14 }
 0x4bf   : > { %3936 = vrot.lane.b32.xlu0 %v3722_v17, %s7451_s15 }
 0x4c0   : > { %v3478_v44 = vpop.permute.xlu1 %3477 }
 0x4c1   : > { %v3877_v27 = vpop.permute.xlu0 %3876  ;;  %3637 = vst.msk [vmem:[#allocation3 + $0x1c8] sm:$0xff] %vm3579_vm11, %v3478_v44 }
 0x4c2   : > { %4053 = vst.msk [vmem:[#allocation3 + $0x140] sm:$0xff] %vm4012_vm12, %v3877_v27  ;;  %3938 = vrot.lane.b32.xlu1 %v3723_v5, %s7451_s15 }
 0x4c3   : > { %5387 = vrot.lane.b32.xlu0 %v5339_v31, %s7452_s20 }
 0x4c4   : > { %v3909_v25 = vpop.permute.xlu1 %3908 }
 0x4c5   : > { %v3879_v42 = vpop.permute.xlu0 %3878  ;;  %4069 = vst.msk [vmem:[#allocation3 + $0x1c0] sm:$0xff] %vm4012_vm12, %v3909_v25 }
 0x4c6   : > { %4054 = vst.msk [vmem:[#allocation3 + $0x148] sm:$0xff] %vm4012_vm12, %v3879_v42  ;;  %5389 = vrot.lane.b32.xlu1 %v5340_v34, %s7452_s20 }
 0x4c8   : > { %v3911_v22 = vpop.permute.xlu1 %3910 }
 0x4c9   : > { %v3047_v45 = vpop.permute.xlu0 %3046  ;;  %v4125_v50 = vld [vmem:[#allocation3 + $0x140] sm:$0xff]  ;;  %4070 = vst.msk [vmem:[#allocation3 + $0x1c8] sm:$0xff] %vm4012_vm12, %v3911_v22 }
 0x4ca   : > { %3205 = vst.msk [vmem:[#allocation3 + $0x1d0] sm:$0xff] %vm3146_vm10, %v3047_v45  ;;  %7265 = vmatprep.mubr.msk.f32.mxu0 %vm4168_vm13, %v4125_v50 }
 0x4cc   : > { %v7207_v55 = vpop.f32.mrb[0].mxu0  ;;  %v3049_v42 = vpop.permute.xlu1 %3048 }
 0x4cd   : > { %v3448_v58 = vpop.permute.xlu0 %3447  ;;  %v4126_v57 = vld [vmem:[#allocation3 + $0x148] sm:$0xff]  ;;  %v4461_v61 = vadd.f32 %v7207_v55, %v9414_v47  ;;  %v4455_v59 = vpop.f32.mrb[1].mxu0  ;;  %3206 = vst.msk [vmem:[#allocation3 + $0x1d8] sm:$0xff] %vm3146_vm10, %v3049_v42 }
 0x4ce   : > { %3622 = vst.msk [vmem:[#allocation3 + $0x150] sm:$0xff] %vm3579_vm11, %v3448_v58  ;;  %7266 = vmatmul.mubr.msk.f32.gmra.mrb[40].mxu0 %vm4168_vm13, %v4126_v57  ;;  %v4456_v1 = vadd.f32 %v9414_v47, %v4455_v59 }
 0x4cf   : > { %v4815_v62 = vmax.f32 %v4461_v61, 0.0 }
 0x4d0   : > { %v4814_v3 = vmax.f32 %v4456_v1, 0.0  ;;  %v3480_v57 = vpop.permute.xlu1 %3479 }
 0x4d1   : > { %v3450_v6 = vpop.permute.xlu0 %3449  ;;  %4888 = vst.msk [vmem:[#allocation4 + $0x8] sm:$0xff] %vm4886_vm14, %v4815_v62 }
 0x4d2   : > { %3623 = vst.msk [vmem:[#allocation3 + $0x158] sm:$0xff] %vm3579_vm11, %v3450_v6  ;;  %3638 = vst.msk [vmem:[#allocation3 + $0x1d0] sm:$0xff] %vm3579_vm11, %v3480_v57 }
 0x4d3   : > { %4887 = vst.msk [vmem:[#allocation4] sm:$0xff] %vm4886_vm14, %v4814_v3 }
 0x4d4   : > { %v7210_v7 = vpop.f32.mrb[2].mxu0  ;;  %v3482_v6 = vpop.permute.xlu1 %3481 }
 0x4d5   : > { %v3881_v10 = vpop.permute.xlu0 %3880  ;;  %v4471_v14 = vadd.f32 %v7210_v7, %v9414_v47  ;;  %v4465_v12 = vpop.f32.mrb[3].mxu0  ;;  %3639 = vst.msk [vmem:[#allocation3 + $0x1d8] sm:$0xff] %vm3579_vm11, %v3482_v6 }
 0x4d6   : > { %4055 = vst.msk [vmem:[#allocation3 + $0x150] sm:$0xff] %vm4012_vm12, %v3881_v10  ;;  %v4466_v21 = vadd.f32 %v9414_v47, %v4465_v12 }
 0x4d7   : > { %v4817_v18 = vmax.f32 %v4471_v14, 0.0 }
 0x4d8   : > { %v4816_v29 = vmax.f32 %v4466_v21, 0.0  ;;  %v3913_v10 = vpop.permute.xlu1 %3912 }
 0x4d9   : > { %v3883_v35 = vpop.permute.xlu0 %3882  ;;  %4890 = vst.msk [vmem:[#allocation4 + $0x18] sm:$0xff] %vm4886_vm14, %v4817_v18 }
 0x4da   : > { %4056 = vst.msk [vmem:[#allocation3 + $0x158] sm:$0xff] %vm4012_vm12, %v3883_v35  ;;  %v4959_v19 = vld [vmem:[#allocation4] ss:$2 sm:$0xff]  ;;  %v5007_v40 = vld [vmem:[#allocation4 + $0x1] ss:$2 sm:$0xff]  ;;  %4071 = vst.msk [vmem:[#allocation3 + $0x1d0] sm:$0xff] %vm4012_vm12, %v3913_v10 }
 0x4db   : > { %4889 = vst.msk [vmem:[#allocation4 + $0x10] sm:$0xff] %vm4886_vm14, %v4816_v29  ;;  %v5150_v27 = vmax.f32 %v4959_v19, %v5007_v40 }
 0x4dc   : > { %v7213_v49 = vpop.f32.mrb[4].mxu0  ;;  %v3915_v37 = vpop.permute.xlu1 %3914 }
 0x4dd   : > { %v3051_v41 = vpop.permute.xlu0 %3050  ;;  %v4127_v63 = vld [vmem:[#allocation3 + $0x150] sm:$0xff]  ;;  %v4481_v54 = vadd.f32 %v7213_v49, %v9414_v47  ;;  %v4475_v16 = vpop.f32.mrb[5].mxu0  ;;  %4072 = vst.msk [vmem:[#allocation3 + $0x1d8] sm:$0xff] %vm4012_vm12, %v3915_v37 }
 0x4de   : > { %3207 = vst.msk [vmem:[#allocation3 + $0x1e0] sm:$0xff] %vm3146_vm10, %v3051_v41  ;;  %7268 = vmatprep.mubr.msk.f32.mxu0 %vm4168_vm13, %v4127_v63  ;;  %v4476_v33 = vadd.f32 %v9414_v47, %v4475_v16  ;;  %v4133_v16 = vld [vmem:[#allocation3 + $0x180] sm:$0xff] }
 0x4df   : > { %v4819_v0 = vmax.f32 %v4481_v54, 0.0  ;;  %7277 = vmatprep.mubr.msk.f32.mxu1 %vm4168_vm13, %v4133_v16 }
 0x4e0   : > { %v4818_v43 = vmax.f32 %v4476_v33, 0.0  ;;  %v3053_v54 = vpop.permute.xlu1 %3052 }
 0x4e1   : > { %v3452_v20 = vpop.permute.xlu0 %3451  ;;  %v4128_v46 = vld [vmem:[#allocation3 + $0x158] sm:$0xff]  ;;  %4892 = vst.msk [vmem:[#allocation4 + $0x28] sm:$0xff] %vm4886_vm14, %v4819_v0 }
 0x4e2   : > { %3624 = vst.msk [vmem:[#allocation3 + $0x160] sm:$0xff] %vm3579_vm11, %v3452_v20  ;;  %7269 = vmatmul.mubr.msk.f32.gmra.mrb[42].mxu0 %vm4168_vm13, %v4128_v46  ;;  %v4961_v56 = vld [vmem:[#allocation4 + $0x10] ss:$2 sm:$0xf]  ;;  %v4134_v20 = vld [vmem:[#allocation3 + $0x188] sm:$0xff] }
 0x4e3   : > { %4891 = vst.msk [vmem:[#allocation4 + $0x20] sm:$0xff] %vm4886_vm14, %v4818_v43  ;;  %v5009_v28 = vld [vmem:[#allocation4 + $0x11] ss:$2 sm:$0xf]  ;;  %7278 = vmatmul.mubr.msk.f32.vlgmr.msra.gmra.mrb[0].mxu1 %vm4168_vm13, %v4134_v20 }
 0x4e4   : > { %v7216_v48 = vpop.f32.mrb[6].mxu0  ;;  %v5151_v30 = vmax.f32 %v4961_v56, %v5009_v28  ;;  %3208 = vst.msk [vmem:[#allocation3 + $0x1e8] sm:$0xff] %vm3146_vm10, %v3053_v54 }
 0x4e5   : > { %v3454_v39 = vpop.permute.xlu0 %3453  ;;  %v4491_v26 = vadd.f32 %v7216_v48, %v9414_v47  ;;  %v4485_v60 = vpop.f32.mrb[7].mxu0 }
 0x4e6   : > { %3625 = vst.msk [vmem:[#allocation3 + $0x168] sm:$0xff] %vm3579_vm11, %v3454_v39  ;;  %v4486_v23 = vadd.f32 %v9414_v47, %v4485_v60  ;;  %v3484_v39 = vpop.permute.xlu1 %3483 }
 0x4e7   : > { %v4821_v8 = vmax.f32 %v4491_v26, 0.0  ;;  %3640 = vst.msk [vmem:[#allocation3 + $0x1e0] sm:$0xff] %vm3579_vm11, %v3484_v39 }
 0x4e8   : > { %v5057_v36 = vld [vmem:[#allocation4 + $0x28] ss:$2 sm:$0xf]  ;;  %v5105_v32 = vld [vmem:[#allocation4 + $0x29] ss:$2 sm:$0xf] }
 0x4e9   : > { %v3885_v13 = vpop.permute.xlu0 %3884  ;;  %v5175_v38 = vmax.f32 %v5057_v36, %v5105_v32  ;;  %4894 = vst.msk [vmem:[#allocation4 + $0x38] sm:$0xff] %vm4886_vm14, %v4821_v8  ;;  %v4820_v52 = vmax.f32 %v4486_v23, 0.0 }
 0x4ea   : > { %v5055_v45 = vld [vmem:[#allocation4 + $0x18] ss:$2 sm:$0xff]  ;;  %v5103_v50 = vld [vmem:[#allocation4 + $0x19] ss:$2 sm:$0xff]  ;;  %4057 = vst.msk [vmem:[#allocation3 + $0x160] sm:$0xff] %vm4012_vm12, %v3885_v13  ;;  %v3486_v13 = vpop.permute.xlu1 %3485 }
 0x4eb   : > { %v5174_v51 = vmax.f32 %v5055_v45, %v5103_v50  ;;  %v5199_v55 = vmax.f32 %v5151_v30, %v5175_v38  ;;  %4893 = vst.msk [vmem:[#allocation4 + $0x30] sm:$0xff] %vm4886_vm14, %v4820_v52  ;;  %v4135_v30 = vld [vmem:[#allocation3 + $0x190] sm:$0xff]  ;;  %v4137_v38 = vld [vmem:[#allocation3 + $0x1a0] sm:$0xff] }
 0x4ec   : > { %v7219_v58 = vpop.f32.mrb[8].mxu0  ;;  %7280 = vmatprep.mubr.msk.f32.mxu1 %vm4168_vm13, %v4135_v30  ;;  %3641 = vst.msk [vmem:[#allocation3 + $0x1e8] sm:$0xff] %vm3579_vm11, %v3486_v13 }
 0x4ed   : > { %v5198_v53 = vmax.f32 %v5150_v27, %v5174_v51  ;;  %v3887_v61 = vpop.permute.xlu0 %3886  ;;  %v4501_v59 = vadd.f32 %v7219_v58, %v9414_v47  ;;  %v4495_v1 = vpop.f32.mrb[9].mxu0  ;;  %5268 = vst.msk [vmem:[#allocation5 + $0x21] sm:$0xf] %vm5267_vm0, %v5199_v55  ;;  %v4136_v27 = vld [vmem:[#allocation3 + $0x198] sm:$0xff]  ;;  %v4138_v51 = vld [vmem:[#allocation3 + $0x1a8] sm:$0xff] }
 0x4ee   : > { %4058 = vst.msk [vmem:[#allocation3 + $0x168] sm:$0xff] %vm4012_vm12, %v3887_v61  ;;  %v4496_v62 = vadd.f32 %v9414_v47, %v4495_v1  ;;  %7281 = vmatmul.mubr.msk.f32.gmra.mrb[2].mxu1 %vm4168_vm13, %v4136_v27  ;;  %v3917_v57 = vpop.permute.xlu1 %3916 }
 0x4ef   : > { %5266 = vst.msk [vmem:[#allocation5 + $0x19] sm:$0xff] %vm4886_vm14, %v5198_v53  ;;  %v4823_v3 = vmax.f32 %v4501_v59, 0.0  ;;  %7283 = vmatprep.mubr.msk.f32.mxu1 %vm4168_vm13, %v4137_v38 }
 0x4f0   : > { %v4822_v2 = vmax.f32 %v4496_v62, 0.0  ;;  %4073 = vst.msk [vmem:[#allocation3 + $0x1e0] sm:$0xff] %vm4012_vm12, %v3917_v57 }
 0x4f1   : > { %v3055_v4 = vpop.permute.xlu0 %3054  ;;  %v4129_v9 = vld [vmem:[#allocation3 + $0x160] sm:$0xff]  ;;  %4896 = vst.msk [vmem:[#allocation4 + $0x48] sm:$0xff] %vm4886_vm14, %v4823_v3 }
 0x4f2   : > { %3209 = vst.msk [vmem:[#allocation3 + $0x1f0] sm:$0xff] %vm3146_vm10, %v3055_v4  ;;  %7271 = vmatprep.mubr.msk.f32.mxu0 %vm4168_vm13, %v4129_v9  ;;  %v4963_v33 = vld [vmem:[#allocation4 + $0x30] ss:$2 sm:$0xff]  ;;  %v5011_v0 = vld [vmem:[#allocation4 + $0x31] ss:$2 sm:$0xff]  ;;  %7284 = vmatmul.mubr.msk.f32.gmra.mrb[4].mxu1 %vm4168_vm13, %v4138_v51  ;;  %v3919_v62 = vpop.permute.xlu1 %3918 }
 0x4f3   : > { %4895 = vst.msk [vmem:[#allocation4 + $0x40] sm:$0xff] %vm4886_vm14, %v4822_v2  ;;  %v5152_v28 = vmax.f32 %v4963_v33, %v5011_v0 }
 0x4f4   : > { %v7222_v7 = vpop.f32.mrb[10].mxu0  ;;  %v5342_v11 = vld [vmem:[#allocation5 + $0x21] sm:$0xff]  ;;  %4074 = vst.msk [vmem:[#allocation3 + $0x1e8] sm:$0xff] %vm4012_vm12, %v3919_v62 }
 0x4f5   : > { %v3456_v14 = vpop.permute.xlu0 %3455  ;;  %v4130_v12 = vld [vmem:[#allocation3 + $0x168] sm:$0xff]  ;;  %v4511_v17 = vadd.f32 %v7222_v7, %v9414_v47  ;;  %v4505_v15 = vpop.f32.mrb[11].mxu0  ;;  %5393 = vrot.lane.b32.xlu1 %v5342_v11, %s7452_s20 }
 0x4f6   : > { %v5341_v21 = vld [vmem:[#allocation5 + $0x19] sm:$0xff]  ;;  %3626 = vst.msk [vmem:[#allocation3 + $0x170] sm:$0xff] %vm3579_vm11, %v3456_v14  ;;  %7272 = vmatmul.mubr.msk.f32.gmra.mrb[44].mxu0 %vm4168_vm13, %v4130_v12  ;;  %v4506_v29 = vadd.f32 %v9414_v47, %v4505_v15  ;;  %v3057_v14 = vpop.permute.xlu1 %3056 }
 0x4f7   : > { %v9490_v18 = vld [vmem:[#allocation5 + $0x18] sm:$0xff]  ;;  %5391 = vrot.lane.b32.xlu0 %v5341_v21, %s7452_s20  ;;  %v9498_v24 = vld [vmem:[#allocation5 + $0x20] sm:$0xff]  ;;  %v4825_v35 = vmax.f32 %v4511_v17, 0.0  ;;  %3210 = vst.msk [vmem:[#allocation3 + $0x1f8] sm:$0xff] %vm3146_vm10, %v3057_v14 }
 0x4f8   : > { %5317 = vst.msk [vmem:[#allocation6 + $0x10] sm:$0xff] %vm4886_vm14, %v9490_v18  ;;  %5318 = vst.msk [vmem:[#allocation6 + $0x18] sm:$0xff] %vm4886_vm14, %v9498_v24  ;;  %v4824_v31 = vmax.f32 %v4506_v29, 0.0 }
 0x4f9   : > { %v3458_v49 = vpop.permute.xlu0 %3457  ;;  %4898 = vst.msk [vmem:[#allocation4 + $0x58] sm:$0xff] %vm4886_vm14, %v4825_v35 }
 0x4fa   : > { %3627 = vst.msk [vmem:[#allocation3 + $0x178] sm:$0xff] %vm3579_vm11, %v3458_v49  ;;  %v4965_v44 = vld [vmem:[#allocation4 + $0x40] ss:$2 sm:$0xf]  ;;  %v3488_v21 = vpop.permute.xlu1 %3487 }
 0x4fb   : > { %4897 = vst.msk [vmem:[#allocation4 + $0x50] sm:$0xff] %vm4886_vm14, %v4824_v31  ;;  %v5013_v41 = vld [vmem:[#allocation4 + $0x41] ss:$2 sm:$0xf] }
 0x4fc   : > { %v7225_v63 = vpop.f32.mrb[12].mxu0  ;;  %v5153_v34 = vmax.f32 %v4965_v44, %v5013_v41  ;;  %3642 = vst.msk [vmem:[#allocation3 + $0x1f0] sm:$0xff] %vm3579_vm11, %v3488_v21 }
 0x4fd   : > { %v3889_v5 = vpop.permute.xlu0 %3888  ;;  %v4521_v43 = vadd.f32 %v7225_v63, %v9414_v47  ;;  %v4515_v25 = vpop.f32.mrb[13].mxu0 }
 0x4fe   : > { %4059 = vst.msk [vmem:[#allocation3 + $0x170] sm:$0xff] %vm4012_vm12, %v3889_v5  ;;  %v4516_v46 = vadd.f32 %v9414_v47, %v4515_v25  ;;  %v3490_v5 = vpop.permute.xlu1 %3489 }
 0x4ff   : > { %v4827_v56 = vmax.f32 %v4521_v43, 0.0  ;;  %3643 = vst.msk [vmem:[#allocation3 + $0x1f8] sm:$0xff] %vm3579_vm11, %v3490_v5 }
 0x500   : > { %v5061_v48 = vld [vmem:[#allocation4 + $0x58] ss:$2 sm:$0xf]  ;;  %v5109_v22 = vld [vmem:[#allocation4 + $0x59] ss:$2 sm:$0xf] }
 0x501   : > { %v3891_v19 = vpop.permute.xlu0 %3890  ;;  %v5177_v40 = vmax.f32 %v5061_v48, %v5109_v22  ;;  %4900 = vst.msk [vmem:[#allocation4 + $0x68] sm:$0xff] %vm4886_vm14, %v4827_v56  ;;  %v4826_v23 = vmax.f32 %v4516_v46, 0.0 }
 0x502   : > { %v5059_v26 = vld [vmem:[#allocation4 + $0x48] ss:$2 sm:$0xff]  ;;  %v5107_v60 = vld [vmem:[#allocation4 + $0x49] ss:$2 sm:$0xff]  ;;  %4060 = vst.msk [vmem:[#allocation3 + $0x178] sm:$0xff] %vm4012_vm12, %v3891_v19  ;;  %v3921_v48 = vpop.permute.xlu1 %3920 }
 0x503   : > { %v5176_v8 = vmax.f32 %v5059_v26, %v5107_v60  ;;  %v5201_v36 = vmax.f32 %v5153_v34, %v5177_v40  ;;  %4899 = vst.msk [vmem:[#allocation4 + $0x60] sm:$0xff] %vm4886_vm14, %v4826_v23 }
 0x504   : > { %v7228_v42 = vpop.f32.mrb[14].mxu0  ;;  %4075 = vst.msk [vmem:[#allocation3 + $0x1f0] sm:$0xff] %vm4012_vm12, %v3921_v48 }
 0x505   : > { %v5200_v32 = vmax.f32 %v5152_v28, %v5176_v8  ;;  %v4131_v45 = vld [vmem:[#allocation3 + $0x170] sm:$0xff]  ;;  %v4531_v50 = vadd.f32 %v7228_v42, %v9414_v47  ;;  %v4525_v52 = vpop.f32.mrb[15].mxu0  ;;  %5270 = vst.msk [vmem:[#allocation5 + $0x39] sm:$0xf] %vm5267_vm0, %v5201_v36  ;;  %v3059_v34 = vpop.permute.xlu0 %3058 }
 0x506   : > { %7274 = vmatprep.mubr.msk.f32.mxu0 %vm4168_vm13, %v4131_v45  ;;  %v4526_v55 = vadd.f32 %v9414_v47, %v4525_v52  ;;  %3211 = vst.msk [vmem:[#allocation3 + $0x200] sm:$0xff] %vm3146_vm10, %v3059_v34  ;;  %v3923_v23 = vpop.permute.xlu1 %3922  ;;  %v4139_v34 = vld [vmem:[#allocation3 + $0x1b0] sm:$0xff] }
 0x507   : > { %5269 = vst.msk [vmem:[#allocation5 + $0x31] sm:$0xff] %vm4886_vm14, %v5200_v32  ;;  %v4829_v53 = vmax.f32 %v4531_v50, 0.0  ;;  %7286 = vmatprep.mubr.msk.f32.mxu1 %vm4168_vm13, %v4139_v34 }
 0x508   : > { %v4828_v58 = vmax.f32 %v4526_v55, 0.0  ;;  %4076 = vst.msk [vmem:[#allocation3 + $0x1f8] sm:$0xff] %vm4012_vm12, %v3923_v23 }
 0x509   : > { %v4132_v61 = vld [vmem:[#allocation3 + $0x178] sm:$0xff]  ;;  %4902 = vst.msk [vmem:[#allocation4 + $0x78] sm:$0xff] %vm4886_vm14, %v4829_v53  ;;  %v3492_v26 = vpop.permute.xlu0 %3491 }
 0x50a   : > { %7275 = vmatmul.mubr.msk.f32.gmra.mrb[46].mxu0 %vm4168_vm13, %v4132_v61  ;;  %4901 = vst.msk [vmem:[#allocation4 + $0x70] sm:$0xff] %vm4886_vm14, %v4828_v58  ;;  %v4967_v29 = vld [vmem:[#allocation4 + $0x60] ss:$2 sm:$0xff]  ;;  %v5015_v35 = vld [vmem:[#allocation4 + $0x61] ss:$2 sm:$0xff]  ;;  %v3061_v13 = vpop.permute.xlu1 %3060 }
 0x50b   : > { %v5154_v63 = vmax.f32 %v4967_v29, %v5015_v35  ;;  %3644 = vst.msk [vmem:[#allocation3 + $0x200] sm:$0xff] %vm3579_vm11, %v3492_v26 }
 0x50c   : > { %v7231_v59 = vpop.f32.mrb[16].mxu0  ;;  %v5344_v1 = vld [vmem:[#allocation5 + $0x39] sm:$0xff]  ;;  %3212 = vst.msk [vmem:[#allocation3 + $0x208] sm:$0xff] %vm3146_vm10, %v3061_v13 }
 0x50d   : > { %v4541_v3 = vadd.f32 %v7231_v59, %v9414_v47  ;;  %v4535_v2 = vpop.f32.mrb[17].mxu0  ;;  %5397 = vrot.lane.b32.xlu1 %v5344_v1, %s7452_s20  ;;  %v3925_v27 = vpop.permute.xlu0 %3924 }
 0x50e   : > { %v9532_v6 = vld [vmem:[#allocation5 + $0x31] sm:$0xff]  ;;  %v4536_v7 = vadd.f32 %v9414_v47, %v4535_v2  ;;  %4077 = vst.msk [vmem:[#allocation3 + $0x200] sm:$0xff] %vm4012_vm12, %v3925_v27  ;;  %v3494_v53 = vpop.permute.xlu1 %3493 }
 0x50f   : > { %v9535_v4 = vld [vmem:[#allocation5 + $0x38] sm:$0xff]  ;;  %v9537_v9 = vld [vmem:[#allocation5 + $0x30] sm:$0xff]  ;;  %5395 = vrot.lane.b32.xlu0 %v9532_v6, %s7452_s20  ;;  %v4831_v11 = vmax.f32 %v4541_v3, 0.0  ;;  %3645 = vst.msk [vmem:[#allocation3 + $0x208] sm:$0xff] %vm3579_vm11, %v3494_v53 }
 0x510   : > { %5320 = vst.msk [vmem:[#allocation6 + $0x28] sm:$0xff] %vm4886_vm14, %v9535_v4  ;;  %5319 = vst.msk [vmem:[#allocation6 + $0x20] sm:$0xff] %vm4886_vm14, %v9537_v9  ;;  %v4830_v10 = vmax.f32 %v4536_v7, 0.0  ;;  %v4144_v53 = vld [vmem:[#allocation3 + $0x1d8] sm:$0xff] }
 0x511   : > { %4904 = vst.msk [vmem:[#allocation4 + $0x88] sm:$0xff] %vm4886_vm14, %v4831_v11  ;;  %v4969_v12 = vld [vmem:[#allocation4 + $0x70] ss:$2 sm:$0xf]  ;;  %v3063_v55 = vpop.permute.xlu0 %3062 }
 0x512   : > { %4903 = vst.msk [vmem:[#allocation4 + $0x80] sm:$0xff] %vm4886_vm14, %v4830_v10  ;;  %v5017_v17 = vld [vmem:[#allocation4 + $0x71] ss:$2 sm:$0xf]  ;;  %v3927_v7 = vpop.permute.xlu1 %3926 }
 0x513   : > { %v5155_v44 = vmax.f32 %v4969_v12, %v5017_v17  ;;  %3213 = vst.msk [vmem:[#allocation3 + $0x210] sm:$0xff] %vm3146_vm10, %v3063_v55 }
 0x514   : > { %v7234_v15 = vpop.f32.mrb[18].mxu0  ;;  %4078 = vst.msk [vmem:[#allocation3 + $0x208] sm:$0xff] %vm4012_vm12, %v3927_v7 }
 0x515   : > { %v4551_v31 = vadd.f32 %v7234_v15, %v9414_v47  ;;  %v4545_v37 = vpop.f32.mrb[19].mxu0  ;;  %v3496_v59 = vpop.permute.xlu0 %3495 }
 0x516   : > { %v4546_v49 = vadd.f32 %v9414_v47, %v4545_v37  ;;  %3646 = vst.msk [vmem:[#allocation3 + $0x210] sm:$0xff] %vm3579_vm11, %v3496_v59 }
 0x517   : > { %v4833_v41 = vmax.f32 %v4551_v31, 0.0 }
 0x518   : > { %v5065_v54 = vld [vmem:[#allocation4 + $0x88] ss:$2 sm:$0xf]  ;;  %v5113_v16 = vld [vmem:[#allocation4 + $0x89] ss:$2 sm:$0xf] }
 0x519   : > { %v5179_v33 = vmax.f32 %v5065_v54, %v5113_v16  ;;  %v5063_v0 = vld [vmem:[#allocation4 + $0x78] ss:$2 sm:$0xff]  ;;  %v5111_v43 = vld [vmem:[#allocation4 + $0x79] ss:$2 sm:$0xff]  ;;  %4906 = vst.msk [vmem:[#allocation4 + $0x98] sm:$0xff] %vm4886_vm14, %v4833_v41  ;;  %v4832_v25 = vmax.f32 %v4546_v49, 0.0  ;;  %v3929_v21 = vpop.permute.xlu0 %3928  ;;  %v3065_v49 = vpop.permute.xlu1 %3064 }
 0x51a   : > { %v5178_v20 = vmax.f32 %v5063_v0, %v5111_v43  ;;  %4079 = vst.msk [vmem:[#allocation3 + $0x210] sm:$0xff] %vm4012_vm12, %v3929_v21 }
 0x51b   : > { %v5203_v46 = vmax.f32 %v5155_v44, %v5179_v33  ;;  %4905 = vst.msk [vmem:[#allocation4 + $0x90] sm:$0xff] %vm4886_vm14, %v4832_v25 }
 0x51c   : > { %v5202_v56 = vmax.f32 %v5154_v63, %v5178_v20  ;;  %v7237_v28 = vpop.f32.mrb[20].mxu0  ;;  %3214 = vst.msk [vmem:[#allocation3 + $0x218] sm:$0xff] %vm3146_vm10, %v3065_v49 }
 0x51d   : > { %v4561_v22 = vadd.f32 %v7237_v28, %v9414_v47  ;;  %v4555_v39 = vpop.f32.mrb[21].mxu0  ;;  %5272 = vst.msk [vmem:[#allocation5 + $0x51] sm:$0xf] %vm5267_vm0, %v5203_v46  ;;  %v3067_v16 = vpop.permute.xlu0 %3066  ;;  %v4140_v28 = vld [vmem:[#allocation3 + $0x1b8] sm:$0xff] }
 0x51e   : > { %5271 = vst.msk [vmem:[#allocation5 + $0x49] sm:$0xff] %vm4886_vm14, %v5202_v56  ;;  %v4556_v19 = vadd.f32 %v9414_v47, %v4555_v39  ;;  %v3498_v0 = vpop.permute.xlu1 %3497  ;;  %7287 = vmatmul.mubr.msk.f32.gmra.mrb[6].mxu1 %vm4168_vm13, %v4140_v28 }
 0x51f   : > { %v4835_v40 = vmax.f32 %v4561_v22, 0.0  ;;  %3215 = vst.msk [vmem:[#allocation3 + $0x220] sm:$0xff] %vm3146_vm10, %v3067_v16 }
 0x520   : > { %v4834_v60 = vmax.f32 %v4556_v19, 0.0  ;;  %3647 = vst.msk [vmem:[#allocation3 + $0x218] sm:$0xff] %vm3579_vm11, %v3498_v0  ;;  %v4141_v19 = vld [vmem:[#allocation3 + $0x1c0] sm:$0xff] }
 0x521   : > { %4908 = vst.msk [vmem:[#allocation4 + $0xa8] sm:$0xff] %vm4886_vm14, %v4835_v40  ;;  %v3500_v46 = vpop.permute.xlu0 %3499  ;;  %7289 = vmatprep.mubr.msk.f32.mxu1 %vm4168_vm13, %v4141_v19 }
 0x522   : > { %4907 = vst.msk [vmem:[#allocation4 + $0xa0] sm:$0xff] %vm4886_vm14, %v4834_v60  ;;  %v4971_v1 = vld [vmem:[#allocation4 + $0x90] ss:$2 sm:$0xff]  ;;  %v5019_v62 = vld [vmem:[#allocation4 + $0x91] ss:$2 sm:$0xff]  ;;  %v3931_v56 = vpop.permute.xlu1 %3930 }
 0x523   : > { %v5156_v12 = vmax.f32 %v4971_v1, %v5019_v62  ;;  %3648 = vst.msk [vmem:[#allocation3 + $0x220] sm:$0xff] %vm3579_vm11, %v3500_v46 }
 0x524   : > { %v7240_v30 = vpop.f32.mrb[22].mxu0  ;;  %v9565_v8 = vld [vmem:[#allocation5 + $0x51] sm:$0xff]  ;;  %4080 = vst.msk [vmem:[#allocation3 + $0x218] sm:$0xff] %vm4012_vm12, %v3931_v56 }
 0x525   : > { %v4571_v36 = vadd.f32 %v7240_v30, %v9414_v47  ;;  %v4565_v32 = vpop.f32.mrb[23].mxu0  ;;  %5401 = vrot.lane.b32.xlu1 %v9565_v8, %s7452_s20  ;;  %v9570_v42 = vld [vmem:[#allocation5 + $0x49] sm:$0xff]  ;;  %v3933_v39 = vpop.permute.xlu0 %3932 }
 0x526   : > { %v9573_v38 = vld [vmem:[#allocation5 + $0x50] sm:$0xff]  ;;  %v9575_v45 = vld [vmem:[#allocation5 + $0x48] sm:$0xff]  ;;  %v4566_v50 = vadd.f32 %v9414_v47, %v4565_v32  ;;  %5399 = vrot.lane.b32.xlu0 %v9570_v42, %s7452_s20  ;;  %4081 = vst.msk [vmem:[#allocation3 + $0x220] sm:$0xff] %vm4012_vm12, %v3933_v39  ;;  %v3069_v23 = vpop.permute.xlu1 %3068 }
 0x527   : > { %5322 = vst.msk [vmem:[#allocation6 + $0x38] sm:$0xff] %vm4886_vm14, %v9573_v38  ;;  %5321 = vst.msk [vmem:[#allocation6 + $0x30] sm:$0xff] %vm4886_vm14, %v9575_v45  ;;  %v4837_v52 = vmax.f32 %v4571_v36, 0.0  ;;  %v4142_v30 = vld [vmem:[#allocation3 + $0x1c8] sm:$0xff] }
 0x528   : > { %v4836_v51 = vmax.f32 %v4566_v50, 0.0  ;;  %3216 = vst.msk [vmem:[#allocation3 + $0x228] sm:$0xff] %vm3146_vm10, %v3069_v23  ;;  %7290 = vmatmul.mubr.msk.f32.gmra.mrb[8].mxu1 %vm4168_vm13, %v4142_v30  ;;  %v5292_v39 = vld [vmem:[#allocation5 + $0x8] sm:$0xff] }
 0x529   : > { %4910 = vst.msk [vmem:[#allocation4 + $0xb8] sm:$0xff] %vm4886_vm14, %v4837_v52  ;;  %v4973_v58 = vld [vmem:[#allocation4 + $0xa0] ss:$2 sm:$0xf]  ;;  %v3071_v52 = vpop.permute.xlu0 %3070  ;;  %5316 = vst.msk [vmem:[#allocation6 + $0x8] sm:$0xff] %vm4886_vm14, %v5292_v39 }
 0x52a   : > { %4909 = vst.msk [vmem:[#allocation4 + $0xb0] sm:$0xff] %vm4886_vm14, %v4836_v51  ;;  %v5021_v57 = vld [vmem:[#allocation4 + $0xa1] ss:$2 sm:$0xf]  ;;  %v4143_v51 = vld [vmem:[#allocation3 + $0x1d0] sm:$0xff]  ;;  %v3502_v55 = vpop.permute.xlu1 %3501 }
 0x52b   : > { %v5157_v10 = vmax.f32 %v4973_v58, %v5021_v57  ;;  %3217 = vst.msk [vmem:[#allocation3 + $0x230] sm:$0xff] %vm3146_vm10, %v3071_v52  ;;  %7292 = vmatprep.mubr.msk.f32.mxu1 %vm4168_vm13, %v4143_v51 }
 0x52c   : > { %v7243_v61 = vpop.f32.mrb[24].mxu0  ;;  %3649 = vst.msk [vmem:[#allocation3 + $0x228] sm:$0xff] %vm3579_vm11, %v3502_v55  ;;  %7293 = vmatmul.mubr.msk.f32.gmra.mrb[10].mxu1 %vm4168_vm13, %v4144_v53 }
 0x52d   : > { %v4581_v3 = vadd.f32 %v7243_v61, %v9414_v47  ;;  %v4575_v2 = vpop.f32.mrb[25].mxu0  ;;  %v3504_v59 = vpop.permute.xlu0 %3503 }
 0x52e   : > { %v4576_v11 = vadd.f32 %v9414_v47, %v4575_v2  ;;  %3650 = vst.msk [vmem:[#allocation3 + $0x230] sm:$0xff] %vm3579_vm11, %v3504_v59  ;;  %v3935_v7 = vpop.permute.xlu1 %3934 }
 0x52f   : > { %v4839_v14 = vmax.f32 %v4581_v3, 0.0  ;;  %4082 = vst.msk [vmem:[#allocation3 + $0x228] sm:$0xff] %vm4012_vm12, %v3935_v7 }
 0x530   : > { %v5069_v17 = vld [vmem:[#allocation4 + $0xb8] ss:$2 sm:$0xf]  ;;  %v5117_v15 = vld [vmem:[#allocation4 + $0xb9] ss:$2 sm:$0xf] }
 0x531   : > { %v5181_v29 = vmax.f32 %v5069_v17, %v5117_v15  ;;  %v5067_v35 = vld [vmem:[#allocation4 + $0xa8] ss:$2 sm:$0xff]  ;;  %v5115_v31 = vld [vmem:[#allocation4 + $0xa9] ss:$2 sm:$0xff]  ;;  %4912 = vst.msk [vmem:[#allocation4 + $0xc8] sm:$0xff] %vm4886_vm14, %v4839_v14  ;;  %v4838_v37 = vmax.f32 %v4576_v11, 0.0  ;;  %v3937_v21 = vpop.permute.xlu0 %3936 }
 0x532   : > { %v5180_v44 = vmax.f32 %v5067_v35, %v5115_v31  ;;  %4083 = vst.msk [vmem:[#allocation3 + $0x230] sm:$0xff] %vm4012_vm12, %v3937_v21  ;;  %v3073_v49 = vpop.permute.xlu1 %3072  ;;  %v4148_v21 = vld [vmem:[#allocation3 + $0x1f8] sm:$0xff] }
 0x533   : > { %v5205_v41 = vmax.f32 %v5157_v10, %v5181_v29  ;;  %4911 = vst.msk [vmem:[#allocation4 + $0xc0] sm:$0xff] %vm4886_vm14, %v4838_v37 }
 0x534   : > { %v5204_v63 = vmax.f32 %v5156_v12, %v5180_v44  ;;  %v7246_v54 = vpop.f32.mrb[26].mxu0  ;;  %3218 = vst.msk [vmem:[#allocation3 + $0x238] sm:$0xff] %vm3146_vm10, %v3073_v49  ;;  %v4149_v49 = vld [vmem:[#allocation3 + $0x200] sm:$0xff]  ;;  %vm6822_vm10 = vcmask 130048  }
 0x535   : > { %v4591_v5 = vadd.f32 %v7246_v54, %v9414_v47  ;;  %v4585_v33 = vpop.f32.mrb[27].mxu0  ;;  %5274 = vst.msk [vmem:[#allocation5 + $0x69] sm:$0xf] %vm5267_vm0, %v5205_v41  ;;  %v5388_v19 = vpop.permute.xlu0 %5387 }
 0x536   : > { %5273 = vst.msk [vmem:[#allocation5 + $0x61] sm:$0xff] %vm4886_vm14, %v5204_v63  ;;  %v4586_v43 = vadd.f32 %v9414_v47, %v4585_v33  ;;  %v3506_v54 = vpop.permute.xlu1 %3505 }
 0x537   : > { %v4841_v25 = vmax.f32 %v4591_v5, 0.0  ;;  %3651 = vst.msk [vmem:[#allocation3 + $0x238] sm:$0xff] %vm3579_vm11, %v3506_v54  ;;  %vm6918_vm11 = vcmask 128000  }
 0x538   : > { %v4840_v20 = vmax.f32 %v4586_v43, 0.0 }
 0x539   : > { %4914 = vst.msk [vmem:[#allocation4 + $0xd8] sm:$0xff] %vm4886_vm14, %v4841_v25 }
 0x53a   : > { %4913 = vst.msk [vmem:[#allocation4 + $0xd0] sm:$0xff] %vm4886_vm14, %v4840_v20  ;;  %v4975_v1 = vld [vmem:[#allocation4 + $0xc0] ss:$2 sm:$0xff]  ;;  %v5023_v62 = vld [vmem:[#allocation4 + $0xc1] ss:$2 sm:$0xff]  ;;  %v3939_v5 = vpop.permute.xlu1 %3938 }
 0x53b   : > { %v5158_v12 = vmax.f32 %v4975_v1, %v5023_v62  ;;  %4084 = vst.msk [vmem:[#allocation3 + $0x238] sm:$0xff] %vm4012_vm12, %v3939_v5 }
 0x53c   : > { %v7249_v48 = vpop.f32.mrb[28].mxu0  ;;  %v9609_v22 = vld [vmem:[#allocation5 + $0x69] sm:$0xff] }
 0x53d   : > { %v4601_v40 = vadd.f32 %v7249_v48, %v9414_v47  ;;  %v4595_v26 = vpop.f32.mrb[29].mxu0  ;;  %5405 = vrot.lane.b32.xlu1 %v9609_v22, %s7452_s20  ;;  %v9614_v60 = vld [vmem:[#allocation5 + $0x61] sm:$0xff] }
 0x53e   : > { %v9618_v27 = vld [vmem:[#allocation5 + $0x68] sm:$0xff]  ;;  %v4596_v36 = vadd.f32 %v9414_v47, %v4595_v26  ;;  %5403 = vrot.lane.b32.xlu0 %v9614_v60, %s7452_s20  ;;  %v9627_v32 = vld [vmem:[#allocation5 + $0x60] sm:$0xff] }
 0x53f   : > { %5324 = vst.msk [vmem:[#allocation6 + $0x48] sm:$0xff] %vm4886_vm14, %v9618_v27  ;;  %v4843_v13 = vmax.f32 %v4601_v40, 0.0  ;;  %5323 = vst.msk [vmem:[#allocation6 + $0x40] sm:$0xff] %vm4886_vm14, %v9627_v32  ;;  %v5291_v48 = vld [vmem:[#allocation5] sm:$0xff]  ;;  %v5390_v40 = vpop.permute.xlu1 %5389 }
 0x540   : > { %v4842_v50 = vmax.f32 %v4596_v36, 0.0  ;;  %5315 = vst.msk [vmem:[#allocation6] sm:$0xff] %vm4886_vm14, %v5291_v48 }
 0x541   : > { %4916 = vst.msk [vmem:[#allocation4 + $0xe8] sm:$0xff] %vm4886_vm14, %v4843_v13  ;;  %v4977_v58 = vld [vmem:[#allocation4 + $0xd0] ss:$2 sm:$0xf] }
 0x542   : > { %4915 = vst.msk [vmem:[#allocation4 + $0xe0] sm:$0xff] %vm4886_vm14, %v4842_v50  ;;  %v5025_v57 = vld [vmem:[#allocation4 + $0xd1] ss:$2 sm:$0xf] }
 0x543   : > { %v5159_v10 = vmax.f32 %v4977_v58, %v5025_v57  ;;  %5460 = vst.msk [vmem:[#allocation6] sm:$0xff] %vm5459_vm1, %v5388_v19  ;;  %5461 = vst.msk [vmem:[#allocation6 + $0x8] sm:$0xff] %vm5459_vm1, %v5390_v40 }
 0x544   : > { %v7252_v61 = vpop.f32.mrb[30].mxu0 }
 0x545   : > { %v4611_v3 = vadd.f32 %v7252_v61, %v9414_v47  ;;  %v4605_v2 = vpop.f32.mrb[31].mxu0 }
 0x546   : > { %v4606_v11 = vadd.f32 %v9414_v47, %v4605_v2 }
 0x547   : > { %v4845_v14 = vmax.f32 %v4611_v3, 0.0 }
 0x548   : > { %v5073_v17 = vld [vmem:[#allocation4 + $0xe8] ss:$2 sm:$0xf]  ;;  %v5121_v15 = vld [vmem:[#allocation4 + $0xe9] ss:$2 sm:$0xf] }
 0x549   : > { %v5183_v29 = vmax.f32 %v5073_v17, %v5121_v15  ;;  %v5071_v35 = vld [vmem:[#allocation4 + $0xd8] ss:$2 sm:$0xff]  ;;  %v5119_v31 = vld [vmem:[#allocation4 + $0xd9] ss:$2 sm:$0xff]  ;;  %4918 = vst.msk [vmem:[#allocation4 + $0xf8] sm:$0xff] %vm4886_vm14, %v4845_v14  ;;  %v4844_v37 = vmax.f32 %v4606_v11, 0.0 }
 0x54a   : > { %v5182_v44 = vmax.f32 %v5071_v35, %v5119_v31  ;;  %v4145_v11 = vld [vmem:[#allocation3 + $0x1e0] sm:$0xff]  ;;  %v4146_v14 = vld [vmem:[#allocation3 + $0x1e8] sm:$0xff]  ;;  %v4147_v15 = vld [vmem:[#allocation3 + $0x1f0] sm:$0xff] }
 0x54b   : > { %v5207_v41 = vmax.f32 %v5159_v10, %v5183_v29  ;;  %4917 = vst.msk [vmem:[#allocation4 + $0xf0] sm:$0xff] %vm4886_vm14, %v4844_v37  ;;  %7295 = vmatprep.mubr.msk.f32.mxu1 %vm4168_vm13, %v4145_v11 }
 0x54c   : > { %v5206_v63 = vmax.f32 %v5158_v12, %v5182_v44  ;;  %7296 = vmatmul.mubr.msk.f32.gmra.mrb[12].mxu1 %vm4168_vm13, %v4146_v14  ;;  %v4150_v44 = vld [vmem:[#allocation3 + $0x208] sm:$0xff] }
 0x54d   : > { %5276 = vst.msk [vmem:[#allocation5 + $0x81] sm:$0xf] %vm5267_vm0, %v5207_v41  ;;  %7298 = vmatprep.mubr.msk.f32.mxu1 %vm4168_vm13, %v4147_v15 }
 0x54e   : > { %5275 = vst.msk [vmem:[#allocation5 + $0x79] sm:$0xff] %vm4886_vm14, %v5206_v63 }
 0x550   : > { %7299 = vmatmul.mubr.msk.f32.gmra.mrb[14].mxu1 %vm4168_vm13, %v4148_v21 }
 0x551   : > { %v7255_v16 = vpop.f32.mrb[32].mxu0  ;;  %7301 = vmatprep.mubr.msk.f32.mxu1 %vm4168_vm13, %v4149_v49 }
 0x552   : > { %v4621_v33 = vadd.f32 %v7255_v16, %v9414_v47  ;;  %v4615_v0 = vpop.f32.mrb[33].mxu0  ;;  %v4979_v55 = vld [vmem:[#allocation4 + $0xf0] ss:$2 sm:$0xff]  ;;  %v5027_v53 = vld [vmem:[#allocation4 + $0xf1] ss:$2 sm:$0xff] }
 0x553   : > { %v4616_v43 = vadd.f32 %v9414_v47, %v4615_v0  ;;  %v5160_v61 = vmax.f32 %v4979_v55, %v5027_v53  ;;  %v4153_v55 = vld [vmem:[#allocation3 + $0x220] sm:$0xff]  ;;  %v4154_v53 = vld [vmem:[#allocation3 + $0x228] sm:$0xff] }
 0x554   : > { %v4847_v25 = vmax.f32 %v4621_v33, 0.0  ;;  %v9651_v20 = vld [vmem:[#allocation5 + $0x81] sm:$0xff]  ;;  %7302 = vmatmul.mubr.msk.f32.gmra.mrb[16].mxu1 %vm4168_vm13, %v4150_v44 }
 0x555   : > { %v4846_v46 = vmax.f32 %v4616_v43, 0.0  ;;  %5409 = vrot.lane.b32.xlu1 %v9651_v20, %s7452_s20  ;;  %v9655_v34 = vld [vmem:[#allocation5 + $0x79] sm:$0xff] }
 0x556   : > { %v9657_v56 = vld [vmem:[#allocation5 + $0x80] sm:$0xff]  ;;  %v9659_v28 = vld [vmem:[#allocation5 + $0x78] sm:$0xff]  ;;  %4920 = vst.msk [vmem:[#allocation4 + $0x108] sm:$0xff] %vm4886_vm14, %v4847_v25  ;;  %5407 = vrot.lane.b32.xlu0 %v9655_v34, %s7452_s20 }
 0x557   : > { %5326 = vst.msk [vmem:[#allocation6 + $0x58] sm:$0xff] %vm4886_vm14, %v9657_v56  ;;  %5325 = vst.msk [vmem:[#allocation6 + $0x50] sm:$0xff] %vm4886_vm14, %v9659_v28  ;;  %v9712_v25 = vld [vmem:[%s10406_s2] ss:$0 sm:$0xff] }
 0x558   : > { %4919 = vst.msk [vmem:[#allocation4 + $0x100] sm:$0xff] %vm4886_vm14, %v4846_v46 }
 0x55f   : > { %v4981_v58 = vld [vmem:[#allocation4 + $0x100] ss:$2 sm:$0xf]  ;;  %v5029_v57 = vld [vmem:[#allocation4 + $0x101] ss:$2 sm:$0xf] }
 0x560   : > { %v5161_v62 = vmax.f32 %v4981_v58, %v5029_v57 }
 0x565   : > { %v7258_v26 = vpop.f32.mrb[34].mxu0 }
 0x566   : > { %v4631_v23 = vadd.f32 %v7258_v26, %v9414_v47  ;;  %v4625_v30 = vpop.f32.mrb[35].mxu0 }
 0x567   : > { %v4626_v36 = vadd.f32 %v9414_v47, %v4625_v30  ;;  %v5394_v13 = vpop.permute.xlu1 %5393  ;;  %v4151_v30 = vld [vmem:[#allocation3 + $0x210] sm:$0xff] }
 0x568   : > { %v4849_v50 = vmax.f32 %v4631_v23, 0.0  ;;  %5463 = vst.msk [vmem:[#allocation6 + $0x18] sm:$0xff] %vm5459_vm1, %v5394_v13  ;;  %7304 = vmatprep.mubr.msk.f32.mxu1 %vm4168_vm13, %v4151_v30 }
 0x569   : > { %v5392_v52 = vpop.permute.xlu0 %5391  ;;  %v4848_v51 = vmax.f32 %v4626_v36, 0.0  ;;  %v4152_v36 = vld [vmem:[#allocation3 + $0x218] sm:$0xff] }
 0x56a   : > { %5462 = vst.msk [vmem:[#allocation6 + $0x10] sm:$0xff] %vm5459_vm1, %v5392_v52  ;;  %7305 = vmatmul.mubr.msk.f32.gmra.mrb[18].mxu1 %vm4168_vm13, %v4152_v36 }
 0x56b   : > { %4922 = vst.msk [vmem:[#allocation4 + $0x118] sm:$0xff] %vm4886_vm14, %v4849_v50  ;;  %4921 = vst.msk [vmem:[#allocation4 + $0x110] sm:$0xff] %vm4886_vm14, %v4848_v51  ;;  %7307 = vmatprep.mubr.msk.f32.mxu1 %vm4168_vm13, %v4153_v55 }
 0x56e   : > { %7308 = vmatmul.mubr.msk.f32.gmra.mrb[20].mxu1 %vm4168_vm13, %v4154_v53 }
 0x572   : > { %v5077_v59 = vld [vmem:[#allocation4 + $0x118] ss:$2 sm:$0xf]  ;;  %v5125_v1 = vld [vmem:[#allocation4 + $0x119] ss:$2 sm:$0xf] }
 0x573   : > { %v5185_v3 = vmax.f32 %v5077_v59, %v5125_v1  ;;  %v5075_v2 = vld [vmem:[#allocation4 + $0x108] ss:$2 sm:$0xff]  ;;  %v5123_v7 = vld [vmem:[#allocation4 + $0x109] ss:$2 sm:$0xff]  ;;  %v4156_v59 = vld [vmem:[#allocation3 + $0x238] sm:$0xff] }
 0x574   : > { %v5184_v10 = vmax.f32 %v5075_v2, %v5123_v7 }
 0x575   : > { %v5209_v12 = vmax.f32 %v5161_v62, %v5185_v3 }
 0x576   : > { %v5208_v17 = vmax.f32 %v5160_v61, %v5184_v10  ;;  %v4155_v61 = vld [vmem:[#allocation3 + $0x230] sm:$0xff] }
 0x577   : > { %5278 = vst.msk [vmem:[#allocation5 + $0x99] sm:$0xf] %vm5267_vm0, %v5209_v12  ;;  %7310 = vmatprep.mubr.msk.f32.mxu1 %vm4168_vm13, %v4155_v61 }
 0x578   : > { %5277 = vst.msk [vmem:[#allocation5 + $0x91] sm:$0xff] %vm4886_vm14, %v5208_v17  ;;  %7311 = vmatmul.mubr.msk.f32.gmra.mrb[22].mxu1 %vm4168_vm13, %v4156_v59 }
 0x579   : > { %v7261_v29 = vpop.f32.mrb[36].mxu0 }
 0x57a   : > { %v4641_v35 = vadd.f32 %v7261_v29, %v9414_v47  ;;  %v4635_v31 = vpop.f32.mrb[37].mxu0 }
 0x57b   : > { %v4636_v37 = vadd.f32 %v9414_v47, %v4635_v31 }
 0x57c   : > { %v4851_v41 = vmax.f32 %v4641_v35, 0.0 }
 0x57d   : > { %v4850_v63 = vmax.f32 %v4636_v37, 0.0 }
 0x57e   : > { %v9688_v54 = vld [vmem:[#allocation5 + $0x99] sm:$0xff]  ;;  %4924 = vst.msk [vmem:[#allocation4 + $0x128] sm:$0xff] %vm4886_vm14, %v4851_v41 }
 0x57f   : > { %5413 = vrot.lane.b32.xlu1 %v9688_v54, %s7452_s20  ;;  %v9694_v16 = vld [vmem:[#allocation5 + $0x91] sm:$0xff]  ;;  %4923 = vst.msk [vmem:[#allocation4 + $0x120] sm:$0xff] %vm4886_vm14, %v4850_v63  ;;  %v5398_v33 = vpop.permute.xlu1 %5397 }
 0x580   : > { %v9696_v5 = vld [vmem:[#allocation5 + $0x98] sm:$0xff]  ;;  %v9698_v47 = vld [vmem:[#allocation5 + $0x90] sm:$0xff]  ;;  %5411 = vrot.lane.b32.xlu0 %v9694_v16, %s7452_s20  ;;  %5465 = vst.msk [vmem:[#allocation6 + $0x28] sm:$0xff] %vm5459_vm1, %v5398_v33 }
 0x581   : > { %5328 = vst.msk [vmem:[#allocation6 + $0x68] sm:$0xff] %vm4886_vm14, %v9696_v5  ;;  %5327 = vst.msk [vmem:[#allocation6 + $0x60] sm:$0xff] %vm4886_vm14, %v9698_v47  ;;  %v5396_v0 = vpop.permute.xlu0 %5395 }
 0x582   : > { %5464 = vst.msk [vmem:[#allocation6 + $0x20] sm:$0xff] %vm5459_vm1, %v5396_v0 }
 0x586   : > { %v4983_v3 = vld [vmem:[#allocation4 + $0x120] ss:$2 sm:$0xff]  ;;  %v5031_v2 = vld [vmem:[#allocation4 + $0x121] ss:$2 sm:$0xff] }
 0x587   : > { %v5162_v15 = vmax.f32 %v4983_v3, %v5031_v2 }
 0x58d   : > { %v7264_v43 = vpop.f32.mrb[38].mxu0 }
 0x58e   : > { %v4651_v46 = vadd.f32 %v9712_v25, %v7264_v43  ;;  %v4645_v48 = vpop.f32.mrb[39].mxu0 }
 0x58f   : > { %v4646_v39 = vadd.f32 %v9712_v25, %v4645_v48 }
 0x590   : > { %v4853_v19 = vmax.f32 %v4651_v46, 0.0 }
 0x591   : > { %v4852_v40 = vmax.f32 %v4646_v39, 0.0 }
 0x592   : > { %4926 = vst.msk [vmem:[#allocation4 + $0x138] sm:$0xff] %vm4886_vm14, %v4853_v19 }
 0x593   : > { %4925 = vst.msk [vmem:[#allocation4 + $0x130] sm:$0xff] %vm4886_vm14, %v4852_v40 }
 0x597   : > { %v5402_v26 = vpop.permute.xlu1 %5401 }
 0x598   : > { %5467 = vst.msk [vmem:[#allocation6 + $0x38] sm:$0xff] %vm5459_vm1, %v5402_v26  ;;  %v5400_v23 = vpop.permute.xlu0 %5399 }
 0x599   : > { %5466 = vst.msk [vmem:[#allocation6 + $0x30] sm:$0xff] %vm5459_vm1, %v5400_v23 }
 0x59a   : > { %v4985_v1 = vld [vmem:[#allocation4 + $0x130] ss:$2 sm:$0xf]  ;;  %v5033_v62 = vld [vmem:[#allocation4 + $0x131] ss:$2 sm:$0xf] }
 0x59b   : > { %v5163_v10 = vmax.f32 %v4985_v1, %v5033_v62 }
 0x5a1   : > { %v7267_v13 = vpop.f32.mrb[40].mxu0 }
 0x5a2   : > { %v4661_v50 = vadd.f32 %v9712_v25, %v7267_v13  ;;  %v4655_v52 = vpop.f32.mrb[41].mxu0 }
 0x5a3   : > { %v4656_v51 = vadd.f32 %v9712_v25, %v4655_v52 }
 0x5a4   : > { %v4855_v58 = vmax.f32 %v4661_v50, 0.0 }
 0x5a5   : > { %v4854_v57 = vmax.f32 %v4656_v51, 0.0 }
 0x5a6   : > { %4928 = vst.msk [vmem:[#allocation4 + $0x148] sm:$0xff] %vm4886_vm14, %v4855_v58 }
 0x5a7   : > { %4927 = vst.msk [vmem:[#allocation4 + $0x140] sm:$0xff] %vm4886_vm14, %v4854_v57 }
 0x5ad   : > { %v5081_v7 = vld [vmem:[#allocation4 + $0x148] ss:$2 sm:$0xf]  ;;  %v5129_v11 = vld [vmem:[#allocation4 + $0x149] ss:$2 sm:$0xf] }
 0x5ae   : > { %v5187_v14 = vmax.f32 %v5081_v7, %v5129_v11  ;;  %v5079_v12 = vld [vmem:[#allocation4 + $0x138] ss:$2 sm:$0xff]  ;;  %v5127_v17 = vld [vmem:[#allocation4 + $0x139] ss:$2 sm:$0xff] }
 0x5af   : > { %v5186_v21 = vmax.f32 %v5079_v12, %v5127_v17  ;;  %v5406_v29 = vpop.permute.xlu1 %5405 }
 0x5b0   : > { %v5211_v35 = vmax.f32 %v5163_v10, %v5187_v14  ;;  %5469 = vst.msk [vmem:[#allocation6 + $0x48] sm:$0xff] %vm5459_vm1, %v5406_v29  ;;  %v5404_v31 = vpop.permute.xlu0 %5403 }
 0x5b1   : > { %v5210_v37 = vmax.f32 %v5162_v15, %v5186_v21  ;;  %5468 = vst.msk [vmem:[#allocation6 + $0x40] sm:$0xff] %vm5459_vm1, %v5404_v31 }
 0x5b2   : > { %5280 = vst.msk [vmem:[#allocation5 + $0xb1] sm:$0xf] %vm5267_vm0, %v5211_v35 }
 0x5b3   : > { %5279 = vst.msk [vmem:[#allocation5 + $0xa9] sm:$0xff] %vm4886_vm14, %v5210_v37 }
 0x5b5   : > { %v7270_v49 = vpop.f32.mrb[42].mxu0 }
 0x5b6   : > { %v4671_v44 = vadd.f32 %v9712_v25, %v7270_v49  ;;  %v4665_v41 = vpop.f32.mrb[43].mxu0  ;;  %v7279_v52 = vpop.f32.mrb[0].mxu1 }
 0x5b7   : > { %v4666_v63 = vadd.f32 %v9712_v25, %v4665_v41  ;;  %v4701_v51 = vadd.f32 %v9712_v25, %v7279_v52  ;;  %v4695_v55 = vpop.f32.mrb[1].mxu1 }
 0x5b8   : > { %v4857_v33 = vmax.f32 %v4671_v44, 0.0  ;;  %v4696_v53 = vadd.f32 %v9712_v25, %v4695_v55 }
 0x5b9   : > { %v4856_v0 = vmax.f32 %v4666_v63, 0.0  ;;  %v5354_v43 = vld [vmem:[#allocation5 + $0xb1] sm:$0xff]  ;;  %v4863_v58 = vmax.f32 %v4701_v51, 0.0 }
 0x5ba   : > { %4930 = vst.msk [vmem:[#allocation4 + $0x158] sm:$0xff] %vm4886_vm14, %v4857_v33  ;;  %5417 = vrot.lane.b32.xlu1 %v5354_v43, %s7452_s20  ;;  %v9738_v46 = vld [vmem:[#allocation5 + $0xa9] sm:$0xff]  ;;  %v4862_v57 = vmax.f32 %v4696_v53, 0.0 }
 0x5bb   : > { %v9740_v48 = vld [vmem:[#allocation5 + $0xb0] sm:$0xff]  ;;  %v9742_v39 = vld [vmem:[#allocation5 + $0xa8] sm:$0xff]  ;;  %4929 = vst.msk [vmem:[#allocation4 + $0x150] sm:$0xff] %vm4886_vm14, %v4856_v0  ;;  %5415 = vrot.lane.b32.xlu0 %v9738_v46, %s7452_s20  ;;  %4936 = vst.msk [vmem:[#allocation4 + $0x188] sm:$0xff] %vm4886_vm14, %v4863_v58 }
 0x5bc   : > { %5330 = vst.msk [vmem:[#allocation6 + $0x78] sm:$0xff] %vm4886_vm14, %v9740_v48  ;;  %5329 = vst.msk [vmem:[#allocation6 + $0x70] sm:$0xff] %vm4886_vm14, %v9742_v39 }
 0x5bd   : > { %4935 = vst.msk [vmem:[#allocation4 + $0x180] sm:$0xff] %vm4886_vm14, %v4862_v57 }
 0x5c1   : > { %v7282_v61 = vpop.f32.mrb[2].mxu1 }
 0x5c2   : > { %v4711_v59 = vadd.f32 %v9712_v25, %v7282_v61  ;;  %v4705_v1 = vpop.f32.mrb[3].mxu1 }
 0x5c3   : > { %v4706_v62 = vadd.f32 %v9712_v25, %v4705_v1 }
 0x5c4   : > { %v4865_v3 = vmax.f32 %v4711_v59, 0.0  ;;  %v4991_v49 = vld [vmem:[#allocation4 + $0x180] ss:$2 sm:$0xff]  ;;  %v5039_v44 = vld [vmem:[#allocation4 + $0x181] ss:$2 sm:$0xff] }
 0x5c5   : > { %v7285_v2 = vpop.f32.mrb[4].mxu1  ;;  %v4864_v7 = vmax.f32 %v4706_v62, 0.0 }
 0x5c6   : > { %v4721_v11 = vadd.f32 %v9712_v25, %v7285_v2  ;;  %v4715_v10 = vpop.f32.mrb[5].mxu1  ;;  %4938 = vst.msk [vmem:[#allocation4 + $0x198] sm:$0xff] %vm4886_vm14, %v4865_v3 }
 0x5c7   : > { %v5410_v19 = vpop.permute.xlu1 %5409  ;;  %v4716_v14 = vadd.f32 %v9712_v25, %v4715_v10  ;;  %4937 = vst.msk [vmem:[#allocation4 + $0x190] sm:$0xff] %vm4886_vm14, %v4864_v7 }
 0x5c8   : > { %5471 = vst.msk [vmem:[#allocation6 + $0x58] sm:$0xff] %vm5459_vm1, %v5410_v19  ;;  %v5408_v40 = vpop.permute.xlu0 %5407  ;;  %v4867_v17 = vmax.f32 %v4721_v11, 0.0  ;;  %v5166_v19 = vmax.f32 %v4991_v49, %v5039_v44  ;;  %v7432_v49 = vld [vmem:[#allocation5 + $0x19] sm:$0xff] }
 0x5c9   : > { %v7273_v26 = vpop.f32.mrb[44].mxu0  ;;  %5470 = vst.msk [vmem:[#allocation6 + $0x50] sm:$0xff] %vm5459_vm1, %v5408_v40  ;;  %v4866_v29 = vmax.f32 %v4716_v14, 0.0  ;;  %v5486_v44 = vld [vmem:[#allocation5 + $0x1a] sm:$0xff] }
 0x5ca   : > { %v4681_v23 = vadd.f32 %v9712_v25, %v7273_v26  ;;  %v4675_v30 = vpop.f32.mrb[45].mxu0  ;;  %4940 = vst.msk [vmem:[#allocation4 + $0x1a8] sm:$0xff] %vm4886_vm14, %v4867_v17 }
 0x5cb   : > { %v4676_v36 = vadd.f32 %v9712_v25, %v4675_v30  ;;  %4939 = vst.msk [vmem:[#allocation4 + $0x1a0] sm:$0xff] %vm4886_vm14, %v4866_v29 }
 0x5cc   : > { %v4859_v13 = vmax.f32 %v4681_v23, 0.0 }
 0x5cd   : > { %v4858_v50 = vmax.f32 %v4676_v36, 0.0 }
 0x5ce   : > { %4932 = vst.msk [vmem:[#allocation4 + $0x168] sm:$0xff] %vm4886_vm14, %v4859_v13  ;;  %v4993_v41 = vld [vmem:[#allocation4 + $0x190] ss:$2 sm:$0xf] }
 0x5cf   : > { %4931 = vst.msk [vmem:[#allocation4 + $0x160] sm:$0xff] %vm4886_vm14, %v4858_v50  ;;  %v5041_v63 = vld [vmem:[#allocation4 + $0x191] ss:$2 sm:$0xf]  ;;  %v4987_v13 = vld [vmem:[#allocation4 + $0x150] ss:$2 sm:$0xff] }
 0x5d0   : > { %v5167_v43 = vmax.f32 %v4993_v41, %v5041_v63  ;;  %v5035_v50 = vld [vmem:[#allocation4 + $0x151] ss:$2 sm:$0xff]  ;;  %v6525_v41 = vld [vmem:[%s10407_s3 + $0x8] sm:$0xff] }
 0x5d1   : > { %v5089_v40 = vld [vmem:[#allocation4 + $0x1a8] ss:$2 sm:$0xf]  ;;  %v5137_v26 = vld [vmem:[#allocation4 + $0x1a9] ss:$2 sm:$0xf]  ;;  %v5164_v62 = vmax.f32 %v4987_v13, %v5035_v50 }
 0x5d2   : > { %v5191_v23 = vmax.f32 %v5089_v40, %v5137_v26  ;;  %v5087_v30 = vld [vmem:[#allocation4 + $0x198] ss:$2 sm:$0xff]  ;;  %v5135_v36 = vld [vmem:[#allocation4 + $0x199] ss:$2 sm:$0xff] }
 0x5d3   : > { %v5190_v52 = vmax.f32 %v5087_v30, %v5135_v36  ;;  %v6528_v26 = vld [vmem:[%s10407_s3 + $0x20] sm:$0xff] }
 0x5d4   : > { %v5215_v53 = vmax.f32 %v5167_v43, %v5191_v23  ;;  %v6529_v23 = vld [vmem:[%s10407_s3 + $0x28] sm:$0xff] }
 0x5d5   : > { %v5214_v1 = vmax.f32 %v5166_v19, %v5190_v52  ;;  %v7385_v13 = vpack.c.bf16 %v6529_v23, %v6528_v26 }
 0x5d6   : > { %v4989_v33 = vld [vmem:[#allocation4 + $0x160] ss:$2 sm:$0xf]  ;;  %v5037_v0 = vld [vmem:[#allocation4 + $0x161] ss:$2 sm:$0xf] }
 0x5d7   : > { %v5165_v58 = vmax.f32 %v4989_v33, %v5037_v0  ;;  %5284 = vst.msk [vmem:[#allocation5 + $0xe1] sm:$0xf] %vm5267_vm0, %v5215_v53  ;;  %v6526_v33 = vld [vmem:[%s10407_s3 + $0x10] sm:$0xff]  ;;  %v6527_v0 = vld [vmem:[%s10407_s3 + $0x18] sm:$0xff] }
 0x5d8   : > { %5283 = vst.msk [vmem:[#allocation5 + $0xd9] sm:$0xff] %vm4886_vm14, %v5214_v1  ;;  %v7381_v43 = vpack.c.bf16 %v6527_v0, %v6526_v33 }
 0x5dd   : > { %v7276_v12 = vpop.f32.mrb[46].mxu0 }
 0x5de   : > { %v4691_v15 = vadd.f32 %v9712_v25, %v7276_v12  ;;  %v4685_v21 = vpop.f32.mrb[47].mxu0 }
 0x5df   : > { %v4686_v35 = vadd.f32 %v9712_v25, %v4685_v21  ;;  %v9779_v14 = vld [vmem:[#allocation5 + $0xd8] sm:$0xff]  ;;  %v9781_v12 = vld [vmem:[#allocation5 + $0xe0] sm:$0xff] }
 0x5e0   : > { %v4861_v31 = vmax.f32 %v4691_v15, 0.0  ;;  %5333 = vst.msk [vmem:[#allocation6 + $0x90] sm:$0xff] %vm4886_vm14, %v9779_v14  ;;  %5334 = vst.msk [vmem:[#allocation6 + $0x98] sm:$0xff] %vm4886_vm14, %v9781_v12 }
 0x5e1   : > { %v4860_v37 = vmax.f32 %v4686_v35, 0.0  ;;  %v5485_v35 = vld [vmem:[#allocation5 + $0xa] sm:$0xff] }
 0x5e2   : > { %4934 = vst.msk [vmem:[#allocation4 + $0x178] sm:$0xff] %vm4886_vm14, %v4861_v31  ;;  %v5484_v31 = vld [vmem:[#allocation5 + $0x2] sm:$0xff] }
 0x5e3   : > { %4933 = vst.msk [vmem:[#allocation4 + $0x170] sm:$0xff] %vm4886_vm14, %v4860_v37  ;;  %v7431_v37 = vld [vmem:[#allocation5 + $0x21] sm:$0xff] }
 0x5e9   : > { %v5085_v51 = vld [vmem:[#allocation4 + $0x178] ss:$2 sm:$0xf]  ;;  %v5133_v55 = vld [vmem:[#allocation4 + $0x179] ss:$2 sm:$0xf] }
 0x5ea   : > { %v5189_v57 = vmax.f32 %v5085_v51, %v5133_v55  ;;  %v5083_v61 = vld [vmem:[#allocation4 + $0x168] ss:$2 sm:$0xff]  ;;  %v5131_v59 = vld [vmem:[#allocation4 + $0x169] ss:$2 sm:$0xff] }
 0x5eb   : > { %v5188_v3 = vmax.f32 %v5083_v61, %v5131_v59  ;;  %v6530_v61 = vld [vmem:[%s10407_s3 + $0x30] sm:$0xff]  ;;  %v6531_v59 = vld [vmem:[%s10407_s3 + $0x38] sm:$0xff] }
 0x5ec   : > { %v5213_v2 = vmax.f32 %v5165_v58, %v5189_v57 }
 0x5ed   : > { %v5212_v7 = vmax.f32 %v5164_v62, %v5188_v3  ;;  %v7389_v3 = vpack.c.bf16 %v6531_v59, %v6530_v61 }
 0x5ee   : > { %5282 = vst.msk [vmem:[#allocation5 + $0xc9] sm:$0xf] %vm5267_vm0, %v5213_v2 }
 0x5ef   : > { %5281 = vst.msk [vmem:[#allocation5 + $0xc1] sm:$0xff] %vm4886_vm14, %v5212_v7  ;;  %v6355_v7 = vld [vmem:[#allocation5 + $0x32] sm:$0xff] }
 0x5f1   : > { %v5414_v11 = vpop.permute.xlu1 %5413  ;;  %v7288_v19 = vpop.f32.mrb[6].mxu1 }
 0x5f2   : > { %5473 = vst.msk [vmem:[#allocation6 + $0x68] sm:$0xff] %vm5459_vm1, %v5414_v11  ;;  %v5412_v10 = vpop.permute.xlu0 %5411  ;;  %v4725_v40 = vpop.f32.mrb[7].mxu1 }
 0x5f3   : > { %5472 = vst.msk [vmem:[#allocation6 + $0x60] sm:$0xff] %vm5459_vm1, %v5412_v10  ;;  %v4726_v30 = vadd.f32 %v9712_v25, %v4725_v40  ;;  %v7433_v10 = vld [vmem:[#allocation5 + $0x39] sm:$0xff] }
 0x5f5   : > { %v9787_v17 = vld [vmem:[#allocation5 + $0xc9] sm:$0xff]  ;;  %v4868_v55 = vmax.f32 %v4726_v30, 0.0 }
 0x5f6   : > { %5421 = vrot.lane.b32.xlu1 %v9787_v17, %s7452_s20  ;;  %v9791_v15 = vld [vmem:[#allocation5 + $0xc1] sm:$0xff] }
 0x5f7   : > { %v9793_v21 = vld [vmem:[#allocation5 + $0xc8] sm:$0xff]  ;;  %v9795_v29 = vld [vmem:[#allocation5 + $0xc0] sm:$0xff]  ;;  %5419 = vrot.lane.b32.xlu0 %v9791_v15, %s7452_s20  ;;  %4941 = vst.msk [vmem:[#allocation4 + $0x1b0] sm:$0xff] %vm4886_vm14, %v4868_v55 }
 0x5f8   : > { %5332 = vst.msk [vmem:[#allocation6 + $0x88] sm:$0xff] %vm4886_vm14, %v9793_v21  ;;  %5331 = vst.msk [vmem:[#allocation6 + $0x80] sm:$0xff] %vm4886_vm14, %v9795_v29 }
 0x5fa   : > { %5534 = vrot.lane.b32.xlu1 %v5485_v35, %s7453_s23  ;;  %v6532_v35 = vld [vmem:[%s10407_s3 + $0x40] sm:$0xff] }
 0x5fb   : > { %5532 = vrot.lane.b32.xlu0 %v5484_v31, %s7453_s23  ;;  %v7291_v36 = vpop.f32.mrb[8].mxu1 }
 0x5fc   : > { %v4741_v52 = vadd.f32 %v9712_v25, %v7291_v36  ;;  %v4735_v51 = vpop.f32.mrb[9].mxu1 }
 0x5fd   : > { %v4736_v53 = vadd.f32 %v9712_v25, %v4735_v51 }
 0x5fe   : > { %5679 = vrot.lane.b32.xlu1 %v9498_v24, %s7451_s15  ;;  %v5920_v24 = vld [vmem:[#allocation5 + $0x22] sm:$0xff]  ;;  %v4871_v58 = vmax.f32 %v4741_v52, 0.0 }
 0x5ff   : > { %5677 = vrot.lane.b32.xlu0 %v9490_v18, %s7451_s15  ;;  %v6524_v18 = vld [vmem:[%s10407_s3] sm:$0xff]  ;;  %v7294_v57 = vpop.f32.mrb[10].mxu1  ;;  %v4870_v1 = vmax.f32 %v4736_v53, 0.0 }
 0x600   : > { %v7377_v63 = vpack.c.bf16 %v6525_v41, %v6524_v18  ;;  %v4745_v62 = vpop.f32.mrb[11].mxu1  ;;  %4944 = vst.msk [vmem:[#allocation4 + $0x1c8] sm:$0xff] %vm4886_vm14, %v4871_v58  ;;  %v6359_v58 = vld [vmem:[#allocation5 + $0x62] sm:$0xff] }
 0x601   : > { %v4746_v2 = vadd.f32 %v9712_v25, %v4745_v62  ;;  %4943 = vst.msk [vmem:[#allocation4 + $0x1c0] sm:$0xff] %vm4886_vm14, %v4870_v1 }
 0x602   : > { %5824 = vrot.lane.b32.xlu1 %v7431_v37, %s7454_s24  ;;  %7378 = vmatprep.subr.bf16.mxu1 %v7377_v63 }
 0x603   : > { %5822 = vrot.lane.b32.xlu0 %v7432_v49, %s7454_s24  ;;  %7380 = vmatpush3.bf16.msra.mxu1 %v7377_v63 }
 0x604   : > { %7382 = vmatprep.subr.bf16.mxu1 %v7381_v43 }
 0x606   : > { %5536 = vrot.lane.b32.xlu1 %v5486_v44, %s7453_s23 }
 0x607   : > { %5967 = vrot.lane.b32.xlu0 %v5486_v44, %s7455_s25  ;;  %7384 = vmatpush3.bf16.msra.mxu1 %v7381_v43 }
 0x608   : > { %7386 = vmatprep.subr.bf16.mxu1 %v7385_v13  ;;  %v4997_v49 = vld [vmem:[#allocation4 + $0x1c0] ss:$2 sm:$0xf]  ;;  %v5045_v44 = vld [vmem:[#allocation4 + $0x1c1] ss:$2 sm:$0xf] }
 0x609   : > { %v5169_v18 = vmax.f32 %v4997_v49, %v5045_v44 }
 0x60a   : > { %6113 = vrot.lane.b32.xlu1 %v9537_v9, %s7456_s26 }
 0x60b   : > { %5969 = vrot.lane.b32.xlu0 %v5920_v24, %s7455_s25  ;;  %7388 = vmatpush3.bf16.msra.mxu1 %v7385_v13 }
 0x60c   : > { %7390 = vmatprep.subr.bf16.mxu1 %v7389_v3 }
 0x60e   : > { %5681 = vrot.lane.b32.xlu1 %v9537_v9, %s7451_s15  ;;  %v4731_v9 = vadd.f32 %v9712_v25, %v7288_v19 }
 0x60f   : > { %5538 = vrot.lane.b32.xlu0 %v5920_v24, %s7453_s23  ;;  %7392 = vmatpush3.bf16.msra.mxu1 %v7389_v3  ;;  %v6356_v24 = vld [vmem:[#allocation5 + $0x3a] sm:$0xff] }
 0x610   : > { %v4869_v50 = vmax.f32 %v4731_v9, 0.0  ;;  %7329 = vmatprep.subr.mxu1 %v6532_v35 }
 0x612   : > { %6258 = vrot.lane.b32.xlu1 %v9532_v6, %s7457_s10  ;;  %4942 = vst.msk [vmem:[#allocation4 + $0x1b8] sm:$0xff] %vm4886_vm14, %v4869_v50  ;;  %v6358_v50 = vld [vmem:[#allocation5 + $0x52] sm:$0xff] }
 0x613   : > { %6115 = vrot.lane.b32.xlu0 %v9535_v4, %s7456_s26  ;;  %7330 = vmatpush3.msra.mxu1 %v6532_v35 }
 0x616   : > { %5826 = vrot.lane.b32.xlu1 %v9532_v6, %s7454_s24  ;;  %v4751_v6 = vadd.f32 %v9712_v25, %v7294_v57 }
 0x617   : > { %5683 = vrot.lane.b32.xlu0 %v9535_v4, %s7451_s15  ;;  %v4872_v4 = vmax.f32 %v4746_v2, 0.0 }
 0x618   : > { %v4873_v11 = vmax.f32 %v4751_v6, 0.0 }
 0x619   : > { %4945 = vst.msk [vmem:[#allocation4 + $0x1d0] sm:$0xff] %vm4886_vm14, %v4872_v4  ;;  %v4995_v31 = vld [vmem:[#allocation4 + $0x1b0] ss:$2 sm:$0xff]  ;;  %v5043_v37 = vld [vmem:[#allocation4 + $0x1b1] ss:$2 sm:$0xff] }
 0x61a   : > { %6403 = vrot.lane.b32.xlu1 %v6355_v7, %s7458_s27  ;;  %4946 = vst.msk [vmem:[#allocation4 + $0x1d8] sm:$0xff] %vm4886_vm14, %v4873_v11  ;;  %v5168_v41 = vmax.f32 %v4995_v31, %v5043_v37 }
 0x61b   : > { %6260 = vrot.lane.b32.xlu0 %v7433_v10, %s7457_s10 }
 0x61e   : > { %5971 = vrot.lane.b32.xlu1 %v6355_v7, %s7455_s25 }
 0x61f   : > { %5828 = vrot.lane.b32.xlu0 %v7433_v10, %s7454_s24 }
 0x620   : > { %v5091_v43 = vld [vmem:[#allocation4 + $0x1c8] ss:$2 sm:$0xff]  ;;  %v5139_v19 = vld [vmem:[#allocation4 + $0x1c9] ss:$2 sm:$0xff] }
 0x621   : > { %v5093_v63 = vld [vmem:[#allocation4 + $0x1d8] ss:$2 sm:$0xf]  ;;  %v5141_v33 = vld [vmem:[#allocation4 + $0x1d9] ss:$2 sm:$0xf]  ;;  %v5192_v9 = vmax.f32 %v5091_v43, %v5139_v19 }
 0x622   : > { %5540 = vrot.lane.b32.xlu1 %v6355_v7, %s7453_s23  ;;  %v5193_v0 = vmax.f32 %v5093_v63, %v5141_v33  ;;  %v6360_v7 = vld [vmem:[#allocation5 + $0x6a] sm:$0xff] }
 0x623   : > { %6405 = vrot.lane.b32.xlu0 %v6356_v24, %s7458_s27  ;;  %v5216_v26 = vmax.f32 %v5168_v41, %v5192_v9 }
 0x624   : > { %v5217_v40 = vmax.f32 %v5169_v18, %v5193_v0 }
 0x625   : > { %5285 = vst.msk [vmem:[#allocation5 + $0xf1] sm:$0xff] %vm4886_vm14, %v5216_v26  ;;  %v6361_v26 = vld [vmem:[#allocation5 + $0x7a] sm:$0xff] }
 0x626   : > { %6117 = vrot.lane.b32.xlu1 %v9575_v45, %s7456_s26  ;;  %5286 = vst.msk [vmem:[#allocation5 + $0xf9] sm:$0xf] %vm5267_vm0, %v5217_v40 }
 0x627   : > { %5973 = vrot.lane.b32.xlu0 %v6356_v24, %s7455_s25 }
 0x62a   : > { %5685 = vrot.lane.b32.xlu1 %v9575_v45, %s7451_s15  ;;  %v6357_v45 = vld [vmem:[#allocation5 + $0x4a] sm:$0xff] }
 0x62b   : > { %5542 = vrot.lane.b32.xlu0 %v6356_v24, %s7453_s23 }
 0x62c   : > { %v5418_v23 = vpop.permute.xlu1 %5417  ;;  %v9886_v36 = vld [vmem:[#allocation5 + $0xf0] sm:$0xff] }
 0x62d   : > { %5475 = vst.msk [vmem:[#allocation6 + $0x78] sm:$0xff] %vm5459_vm1, %v5418_v23  ;;  %v5416_v30 = vpop.permute.xlu0 %5415  ;;  %v9888_v13 = vld [vmem:[#allocation5 + $0xf8] sm:$0xff] }
 0x62e   : > { %5474 = vst.msk [vmem:[#allocation6 + $0x70] sm:$0xff] %vm5459_vm1, %v5416_v30  ;;  %6262 = vrot.lane.b32.xlu1 %v9570_v42, %s7457_s10 }
 0x62f   : > { %6119 = vrot.lane.b32.xlu0 %v9573_v38, %s7456_s26  ;;  %5335 = vst.msk [vmem:[#allocation6 + $0xa0] sm:$0xff] %vm4886_vm14, %v9886_v36  ;;  %5336 = vst.msk [vmem:[#allocation6 + $0xa8] sm:$0xff] %vm4886_vm14, %v9888_v13 }
 0x632   : > { %5830 = vrot.lane.b32.xlu1 %v9570_v42, %s7454_s24 }
 0x633   : > { %5687 = vrot.lane.b32.xlu0 %v9573_v38, %s7451_s15 }
 0x636   : > { %6407 = vrot.lane.b32.xlu1 %v6357_v45, %s7458_s27 }
 0x637   : > { %6264 = vrot.lane.b32.xlu0 %v9565_v8, %s7457_s10 }
 0x63a   : > { %5975 = vrot.lane.b32.xlu1 %v6357_v45, %s7455_s25 }
 0x63b   : > { %5832 = vrot.lane.b32.xlu0 %v9565_v8, %s7454_s24  ;;  %v7297_v8 = vpop.f32.mrb[12].mxu1 }
 0x63c   : > { %v4761_v42 = vadd.f32 %v9712_v25, %v7297_v8  ;;  %v4755_v38 = vpop.f32.mrb[13].mxu1 }
 0x63d   : > { %v7300_v52 = vpop.f32.mrb[14].mxu1 }
 0x63e   : > { %5544 = vrot.lane.b32.xlu1 %v6357_v45, %s7453_s23  ;;  %v4875_v51 = vmax.f32 %v4761_v42, 0.0  ;;  %v4771_v55 = vadd.f32 %v9712_v25, %v7300_v52  ;;  %v4765_v53 = vpop.f32.mrb[15].mxu1  ;;  %v6362_v45 = vld [vmem:[#allocation5 + $0x82] sm:$0xff] }
 0x63f   : > { %6409 = vrot.lane.b32.xlu0 %v6358_v50, %s7458_s27  ;;  %v4766_v61 = vadd.f32 %v9712_v25, %v4765_v53  ;;  %v7303_v59 = vpop.f32.mrb[16].mxu1 }
 0x640   : > { %4948 = vst.msk [vmem:[#allocation4 + $0x1e8] sm:$0xff] %vm4886_vm14, %v4875_v51  ;;  %v4781_v1 = vadd.f32 %v9712_v25, %v7303_v59 }
 0x641   : > { %v4876_v6 = vmax.f32 %v4766_v61, 0.0 }
 0x642   : > { %6121 = vrot.lane.b32.xlu1 %v9627_v32, %s7456_s26  ;;  %v4879_v3 = vmax.f32 %v4781_v1, 0.0 }
 0x643   : > { %5977 = vrot.lane.b32.xlu0 %v6358_v50, %s7455_s25  ;;  %4949 = vst.msk [vmem:[#allocation4 + $0x1f0] sm:$0xff] %vm4886_vm14, %v4876_v6 }
 0x644   : > { %4952 = vst.msk [vmem:[#allocation4 + $0x208] sm:$0xff] %vm4886_vm14, %v4879_v3 }
 0x646   : > { %5689 = vrot.lane.b32.xlu1 %v9627_v32, %s7451_s15  ;;  %v4756_v32 = vadd.f32 %v9712_v25, %v4755_v38 }
 0x647   : > { %5546 = vrot.lane.b32.xlu0 %v6358_v50, %s7453_s23 }
 0x648   : > { %v4874_v57 = vmax.f32 %v4756_v32, 0.0 }
 0x64a   : > { %6266 = vrot.lane.b32.xlu1 %v9614_v60, %s7457_s10  ;;  %4947 = vst.msk [vmem:[#allocation4 + $0x1e0] sm:$0xff] %vm4886_vm14, %v4874_v57  ;;  %v5001_v10 = vld [vmem:[#allocation4 + $0x1f0] ss:$2 sm:$0xf] }
 0x64b   : > { %6123 = vrot.lane.b32.xlu0 %v9618_v27, %s7456_s26  ;;  %v5049_v35 = vld [vmem:[#allocation4 + $0x1f1] ss:$2 sm:$0xf]  ;;  %v5097_v49 = vld [vmem:[#allocation4 + $0x208] ss:$2 sm:$0xf] }
 0x64c   : > { %v5171_v37 = vmax.f32 %v5001_v10, %v5049_v35  ;;  %v5145_v44 = vld [vmem:[#allocation4 + $0x209] ss:$2 sm:$0xf] }
 0x64d   : > { %v5195_v24 = vmax.f32 %v5097_v49, %v5145_v44 }
 0x64e   : > { %5834 = vrot.lane.b32.xlu1 %v9614_v60, %s7454_s24  ;;  %v4877_v60 = vmax.f32 %v4771_v55, 0.0 }
 0x64f   : > { %5691 = vrot.lane.b32.xlu0 %v9618_v27, %s7451_s15  ;;  %v4775_v27 = vpop.f32.mrb[17].mxu1  ;;  %v5219_v63 = vmax.f32 %v5171_v37, %v5195_v24 }
 0x650   : > { %v4776_v62 = vadd.f32 %v9712_v25, %v4775_v27  ;;  %4950 = vst.msk [vmem:[#allocation4 + $0x1f8] sm:$0xff] %vm4886_vm14, %v4877_v60  ;;  %v7306_v42 = vpop.f32.mrb[18].mxu1 }
 0x651   : > { %v4999_v11 = vld [vmem:[#allocation4 + $0x1e0] ss:$2 sm:$0xff]  ;;  %v5047_v4 = vld [vmem:[#allocation4 + $0x1e1] ss:$2 sm:$0xff]  ;;  %5288 = vst.msk [vmem:[#allocation5 + $0x111] sm:$0xf] %vm5267_vm0, %v5219_v63 }
 0x652   : > { %6411 = vrot.lane.b32.xlu1 %v6359_v58, %s7458_s27  ;;  %v4878_v2 = vmax.f32 %v4776_v62, 0.0  ;;  %v5170_v31 = vmax.f32 %v4999_v11, %v5047_v4  ;;  %v4785_v38 = vpop.f32.mrb[19].mxu1 }
 0x653   : > { %6268 = vrot.lane.b32.xlu0 %v9609_v22, %s7457_s10  ;;  %v4786_v32 = vadd.f32 %v9712_v25, %v4785_v38  ;;  %v7309_v52 = vpop.f32.mrb[20].mxu1 }
 0x654   : > { %4951 = vst.msk [vmem:[#allocation4 + $0x200] sm:$0xff] %vm4886_vm14, %v4878_v2  ;;  %v4801_v53 = vadd.f32 %v9712_v25, %v7309_v52 }
 0x655   : > { %v4880_v61 = vmax.f32 %v4786_v32, 0.0 }
 0x656   : > { %5979 = vrot.lane.b32.xlu1 %v6359_v58, %s7455_s25  ;;  %v4883_v1 = vmax.f32 %v4801_v53, 0.0  ;;  %v6221_v53 = vld [vmem:[#allocation5 + $0xb1] sm:$0xff] }
 0x657   : > { %5836 = vrot.lane.b32.xlu0 %v9609_v22, %s7454_s24  ;;  %4953 = vst.msk [vmem:[#allocation4 + $0x210] sm:$0xff] %vm4886_vm14, %v4880_v61  ;;  %v6366_v61 = vld [vmem:[#allocation5 + $0xb2] sm:$0xff] }
 0x658   : > { %4956 = vst.msk [vmem:[#allocation4 + $0x228] sm:$0xff] %vm4886_vm14, %v4883_v1 }
 0x65a   : > { %5548 = vrot.lane.b32.xlu1 %v6359_v58, %s7453_s23  ;;  %v4795_v58 = vpop.f32.mrb[21].mxu1 }
 0x65b   : > { %6413 = vrot.lane.b32.xlu0 %v6360_v7, %s7458_s27  ;;  %v5095_v22 = vld [vmem:[#allocation4 + $0x1f8] ss:$2 sm:$0xff]  ;;  %v5143_v18 = vld [vmem:[#allocation4 + $0x1f9] ss:$2 sm:$0xff]  ;;  %v4796_v59 = vadd.f32 %v9712_v25, %v4795_v58  ;;  %v7312_v60 = vpop.f32.mrb[22].mxu1 }
 0x65c   : > { %v5194_v41 = vmax.f32 %v5095_v22, %v5143_v18  ;;  %v4811_v27 = vadd.f32 %v9712_v25, %v7312_v60  ;;  %v4805_v6 = vpop.f32.mrb[23].mxu1 }
 0x65d   : > { %v4882_v62 = vmax.f32 %v4796_v59, 0.0  ;;  %v4806_v3 = vadd.f32 %v9712_v25, %v4805_v6 }
 0x65e   : > { %6125 = vrot.lane.b32.xlu1 %v9659_v28, %s7456_s26  ;;  %v5218_v33 = vmax.f32 %v5170_v31, %v5194_v41  ;;  %v6363_v31 = vld [vmem:[#allocation5 + $0x92] sm:$0xff] }
 0x65f   : > { %5981 = vrot.lane.b32.xlu0 %v6360_v7, %s7455_s25  ;;  %4955 = vst.msk [vmem:[#allocation4 + $0x220] sm:$0xff] %vm4886_vm14, %v4882_v62  ;;  %v4884_v11 = vmax.f32 %v4806_v3, 0.0 }
 0x660   : > { %5287 = vst.msk [vmem:[#allocation5 + $0x109] sm:$0xff] %vm4886_vm14, %v5218_v33 }
 0x661   : > { %4957 = vst.msk [vmem:[#allocation4 + $0x230] sm:$0xff] %vm4886_vm14, %v4884_v11 }
 0x662   : > { %5693 = vrot.lane.b32.xlu1 %v9659_v28, %s7451_s15 }
 0x663   : > { %5550 = vrot.lane.b32.xlu0 %v6360_v7, %s7453_s23  ;;  %v4885_v7 = vmax.f32 %v4811_v27, 0.0 }
 0x665   : > { %4958 = vst.msk [vmem:[#allocation4 + $0x238] sm:$0xff] %vm4886_vm14, %v4885_v7 }
 0x666   : > { %6270 = vrot.lane.b32.xlu1 %v9655_v34, %s7457_s10  ;;  %v5005_v49 = vld [vmem:[#allocation4 + $0x220] ss:$2 sm:$0xf]  ;;  %v5053_v44 = vld [vmem:[#allocation4 + $0x221] ss:$2 sm:$0xf] }
 0x667   : > { %6127 = vrot.lane.b32.xlu0 %v9657_v56, %s7456_s26  ;;  %v9958_v28 = vld [vmem:[#allocation5 + $0x108] sm:$0xff]  ;;  %v9960_v19 = vld [vmem:[#allocation5 + $0x110] sm:$0xff]  ;;  %v5173_v18 = vmax.f32 %v5005_v49, %v5053_v44 }
 0x668   : > { %v5422_v0 = vpop.permute.xlu1 %5421  ;;  %5337 = vst.msk [vmem:[#allocation6 + $0xb0] sm:$0xff] %vm4886_vm14, %v9958_v28  ;;  %5338 = vst.msk [vmem:[#allocation6 + $0xb8] sm:$0xff] %vm4886_vm14, %v9960_v19  ;;  %v5099_v33 = vld [vmem:[#allocation4 + $0x228] ss:$2 sm:$0xff] }
 0x669   : > { %5477 = vst.msk [vmem:[#allocation6 + $0x88] sm:$0xff] %vm5459_vm1, %v5422_v0  ;;  %v5420_v43 = vpop.permute.xlu0 %5419  ;;  %v5147_v0 = vld [vmem:[#allocation4 + $0x229] ss:$2 sm:$0xff] }
 0x66a   : > { %5476 = vst.msk [vmem:[#allocation6 + $0x80] sm:$0xff] %vm5459_vm1, %v5420_v43  ;;  %5838 = vrot.lane.b32.xlu1 %v9655_v34, %s7454_s24 }
 0x66b   : > { %5695 = vrot.lane.b32.xlu0 %v9657_v56, %s7451_s15 }
 0x66c   : > { %v5535_v9 = vpop.permute.xlu1 %5534  ;;  %v5101_v41 = vld [vmem:[#allocation4 + $0x238] ss:$2 sm:$0xf]  ;;  %v5149_v63 = vld [vmem:[#allocation4 + $0x239] ss:$2 sm:$0xf] }
 0x66d   : > { %5606 = vst.msk [vmem:[#allocation6 + $0x8] sm:$0xff] %vm5604_vm2, %v5535_v9  ;;  %v5533_v40 = vpop.permute.xlu0 %5532 }
 0x66e   : > { %5605 = vst.msk [vmem:[#allocation6] sm:$0xff] %vm5604_vm2, %v5533_v40  ;;  %6415 = vrot.lane.b32.xlu1 %v6361_v26, %s7458_s27 }
 0x66f   : > { %6272 = vrot.lane.b32.xlu0 %v9651_v20, %s7457_s10 }
 0x670   : > { %v5680_v34 = vpop.permute.xlu1 %5679 }
 0x671   : > { %5751 = vst.msk [vmem:[#allocation6 + $0x8] sm:$0xff] %vm5749_vm3, %v5680_v34  ;;  %v5678_v56 = vpop.permute.xlu0 %5677 }
 0x672   : > { %5750 = vst.msk [vmem:[#allocation6] sm:$0xff] %vm5749_vm3, %v5678_v56  ;;  %5983 = vrot.lane.b32.xlu1 %v6361_v26, %s7455_s25 }
 0x673   : > { %5840 = vrot.lane.b32.xlu0 %v9651_v20, %s7454_s24  ;;  %v4791_v20 = vadd.f32 %v9712_v25, %v7306_v42 }
 0x674   : > { %v5825_v23 = vpop.permute.xlu1 %5824 }
 0x675   : > { %5896 = vst.msk [vmem:[#allocation6 + $0x8] sm:$0xff] %vm5894_vm4, %v5825_v23  ;;  %v5823_v30 = vpop.permute.xlu0 %5822  ;;  %v4881_v55 = vmax.f32 %v4791_v20, 0.0  ;;  %v6364_v23 = vld [vmem:[#allocation5 + $0x9a] sm:$0xff] }
 0x676   : > { %5895 = vst.msk [vmem:[#allocation6] sm:$0xff] %vm5894_vm4, %v5823_v30  ;;  %5552 = vrot.lane.b32.xlu1 %v6361_v26, %s7453_s23 }
 0x677   : > { %6417 = vrot.lane.b32.xlu0 %v6362_v45, %s7458_s27  ;;  %4954 = vst.msk [vmem:[#allocation4 + $0x218] sm:$0xff] %vm4886_vm14, %v4881_v55  ;;  %v6365_v55 = vld [vmem:[#allocation5 + $0xaa] sm:$0xff] }
 0x678   : > { %v5537_v50 = vpop.permute.xlu1 %5536 }
 0x679   : > { %5607 = vst.msk [vmem:[#allocation6 + $0x10] sm:$0xff] %vm5604_vm2, %v5537_v50  ;;  %v5968_v8 = vpop.permute.xlu0 %5967 }
 0x67a   : > { %6040 = vst.msk [vmem:[#allocation6] sm:$0xff] %vm6039_vm5, %v5968_v8  ;;  %6129 = vrot.lane.b32.xlu1 %v9698_v47, %s7456_s26 }
 0x67b   : > { %5985 = vrot.lane.b32.xlu0 %v6362_v45, %s7455_s25 }
 0x67c   : > { %v6114_v51 = vpop.permute.xlu1 %6113 }
 0x67d   : > { %6186 = vst.msk [vmem:[#allocation6] sm:$0xff] %vm6185_vm6, %v6114_v51  ;;  %v5970_v57 = vpop.permute.xlu0 %5969 }
 0x67e   : > { %6041 = vst.msk [vmem:[#allocation6 + $0x8] sm:$0xff] %vm6039_vm5, %v5970_v57  ;;  %5697 = vrot.lane.b32.xlu1 %v9698_v47, %s7451_s15  ;;  %v5003_v10 = vld [vmem:[#allocation4 + $0x210] ss:$2 sm:$0xff]  ;;  %v5051_v35 = vld [vmem:[#allocation4 + $0x211] ss:$2 sm:$0xff] }
 0x67f   : > { %5554 = vrot.lane.b32.xlu0 %v6362_v45, %s7453_s23  ;;  %v5172_v22 = vmax.f32 %v5003_v10, %v5051_v35  ;;  %v6368_v35 = vld [vmem:[#allocation5 + $0xca] sm:$0xff] }
 0x680   : > { %v5682_v2 = vpop.permute.xlu1 %5681 }
 0x681   : > { %5752 = vst.msk [vmem:[#allocation6 + $0x10] sm:$0xff] %vm5749_vm3, %v5682_v2  ;;  %v5539_v47 = vpop.permute.xlu0 %5538 }
 0x682   : > { %5608 = vst.msk [vmem:[#allocation6 + $0x18] sm:$0xff] %vm5604_vm2, %v5539_v47  ;;  %6274 = vrot.lane.b32.xlu1 %v9694_v16, %s7457_s10 }
 0x683   : > { %6131 = vrot.lane.b32.xlu0 %v9696_v5, %s7456_s26 }
 0x684   : > { %v6259_v25 = vpop.permute.xlu1 %6258 }
 0x685   : > { %6331 = vst.msk [vmem:[#allocation6] sm:$0xff] %vm6330_vm7, %v6259_v25  ;;  %v6116_v4 = vpop.permute.xlu0 %6115  ;;  %v6367_v25 = vld [vmem:[#allocation5 + $0xc2] sm:$0xff] }
 0x686   : > { %6187 = vst.msk [vmem:[#allocation6 + $0x8] sm:$0xff] %vm6185_vm6, %v6116_v4  ;;  %5842 = vrot.lane.b32.xlu1 %v9694_v16, %s7454_s24  ;;  %v5197_v16 = vmax.f32 %v5101_v41, %v5149_v63 }
 0x687   : > { %5699 = vrot.lane.b32.xlu0 %v9696_v5, %s7451_s15  ;;  %v5196_v5 = vmax.f32 %v5099_v33, %v5147_v0  ;;  %v6369_v0 = vld [vmem:[#allocation5 + $0xda] sm:$0xff] }
 0x688   : > { %v5827_v37 = vpop.permute.xlu1 %5826  ;;  %v5221_v9 = vmax.f32 %v5173_v18, %v5197_v16  ;;  %v6224_v18 = vld [vmem:[#allocation5 + $0xd9] sm:$0xff] }
 0x689   : > { %5897 = vst.msk [vmem:[#allocation6 + $0x10] sm:$0xff] %vm5894_vm4, %v5827_v37  ;;  %v5684_v24 = vpop.permute.xlu0 %5683  ;;  %v5220_v26 = vmax.f32 %v5172_v22, %v5196_v5  ;;  %v6225_v5 = vld [vmem:[#allocation5 + $0xe1] sm:$0xff] }
 0x68a   : > { %5753 = vst.msk [vmem:[#allocation6 + $0x18] sm:$0xff] %vm5749_vm3, %v5684_v24  ;;  %6419 = vrot.lane.b32.xlu1 %v6363_v31, %s7458_s27 }
 0x68b   : > { %6276 = vrot.lane.b32.xlu0 %v9688_v54, %s7457_s10  ;;  %5290 = vst.msk [vmem:[#allocation5 + $0x129] sm:$0xf] %vm5267_vm0, %v5221_v9 }
 0x68c   : > { %v6404_v43 = vpop.permute.xlu1 %6403  ;;  %5289 = vst.msk [vmem:[#allocation5 + $0x121] sm:$0xff] %vm4886_vm14, %v5220_v26  ;;  %v6370_v26 = vld [vmem:[#allocation5 + $0xe2] sm:$0xff] }
 0x68d   : > { %6476 = vst.msk [vmem:[#allocation6] sm:$0xff] %vm6475_vm8, %v6404_v43  ;;  %v6261_v40 = vpop.permute.xlu0 %6260 }
 0x68e   : > { %6332 = vst.msk [vmem:[#allocation6 + $0x8] sm:$0xff] %vm6330_vm7, %v6261_v40  ;;  %5987 = vrot.lane.b32.xlu1 %v6363_v31, %s7455_s25 }
 0x68f   : > { %5844 = vrot.lane.b32.xlu0 %v9688_v54, %s7454_s24 }
 0x690   : > { %v5972_v34 = vpop.permute.xlu1 %5971 }
 0x691   : > { %6042 = vst.msk [vmem:[#allocation6 + $0x10] sm:$0xff] %vm6039_vm5, %v5972_v34  ;;  %v5829_v56 = vpop.permute.xlu0 %5828 }
 0x692   : > { %5898 = vst.msk [vmem:[#allocation6 + $0x18] sm:$0xff] %vm5894_vm4, %v5829_v56  ;;  %5556 = vrot.lane.b32.xlu1 %v6363_v31, %s7453_s23 }
 0x693   : > { %6421 = vrot.lane.b32.xlu0 %v6364_v23, %s7458_s27 }
 0x694   : > { %v5541_v30 = vpop.permute.xlu1 %5540  ;;  %v6500_v45 = vld [vmem:[#allocation6] sm:$0xff] }
 0x695   : > { %5609 = vst.msk [vmem:[#allocation6 + $0x20] sm:$0xff] %vm5604_vm2, %v5541_v30  ;;  %v6406_v50 = vpop.permute.xlu0 %6405  ;;  %7331 = vmatprep.mubr.msk.f32.mxu1 %vm6540_vm9, %v6500_v45 }
 0x696   : > { %6477 = vst.msk [vmem:[#allocation6 + $0x8] sm:$0xff] %vm6475_vm8, %v6406_v50  ;;  %6133 = vrot.lane.b32.xlu1 %v9742_v39, %s7456_s26 }
 0x697   : > { %5989 = vrot.lane.b32.xlu0 %v6364_v23, %s7455_s25 }
 0x698   : > { %v6118_v54 = vpop.permute.xlu1 %6117 }
 0x699   : > { %6188 = vst.msk [vmem:[#allocation6 + $0x10] sm:$0xff] %vm6185_vm6, %v6118_v54  ;;  %v5974_v8 = vpop.permute.xlu0 %5973 }
 0x69a   : > { %6043 = vst.msk [vmem:[#allocation6 + $0x18] sm:$0xff] %vm6039_vm5, %v5974_v8  ;;  %5701 = vrot.lane.b32.xlu1 %v9742_v39, %s7451_s15 }
 0x69b   : > { %5558 = vrot.lane.b32.xlu0 %v6364_v23, %s7453_s23 }
 0x69c   : > { %v5686_v42 = vpop.permute.xlu1 %5685 }
 0x69d   : > { %5754 = vst.msk [vmem:[#allocation6 + $0x20] sm:$0xff] %vm5749_vm3, %v5686_v42  ;;  %v5543_v20 = vpop.permute.xlu0 %5542  ;;  %v6501_v38 = vld [vmem:[#allocation6 + $0x8] sm:$0xff] }
 0x69e   : > { %5610 = vst.msk [vmem:[#allocation6 + $0x28] sm:$0xff] %vm5604_vm2, %v5543_v20  ;;  %6278 = vrot.lane.b32.xlu1 %v9738_v46, %s7457_s10  ;;  %7332 = vmatmul.mubr.msk.f32.vlgmr.msra.gmra.mrb[24].mxu1 %vm6540_vm9, %v6501_v38  ;;  %v6226_v38 = vld [vmem:[#allocation5 + $0xf1] sm:$0xff] }
 0x69f   : > { %6135 = vrot.lane.b32.xlu0 %v9740_v48, %s7456_s26 }
 0x6a0   : > { %v6263_v32 = vpop.permute.xlu1 %6262 }
 0x6a1   : > { %6333 = vst.msk [vmem:[#allocation6 + $0x10] sm:$0xff] %vm6330_vm7, %v6263_v32  ;;  %v6120_v39 = vpop.permute.xlu0 %6119 }
 0x6a2   : > { %6189 = vst.msk [vmem:[#allocation6 + $0x18] sm:$0xff] %vm6185_vm6, %v6120_v39  ;;  %5846 = vrot.lane.b32.xlu1 %v9738_v46, %s7454_s24 }
 0x6a3   : > { %5703 = vrot.lane.b32.xlu0 %v9740_v48, %s7451_s15 }
 0x6a4   : > { %v5831_v52 = vpop.permute.xlu1 %5830 }
 0x6a5   : > { %5899 = vst.msk [vmem:[#allocation6 + $0x20] sm:$0xff] %vm5894_vm4, %v5831_v52  ;;  %v5688_v51 = vpop.permute.xlu0 %5687 }
 0x6a6   : > { %5755 = vst.msk [vmem:[#allocation6 + $0x28] sm:$0xff] %vm5749_vm3, %v5688_v51  ;;  %6423 = vrot.lane.b32.xlu1 %v6365_v55, %s7458_s27  ;;  %v6371_v51 = vld [vmem:[#allocation5 + $0xf2] sm:$0xff] }
 0x6a7   : > { %6280 = vrot.lane.b32.xlu0 %v6221_v53, %s7457_s10 }
 0x6a8   : > { %v6408_v58 = vpop.permute.xlu1 %6407 }
 0x6a9   : > { %6478 = vst.msk [vmem:[#allocation6 + $0x10] sm:$0xff] %vm6475_vm8, %v6408_v58  ;;  %v6265_v57 = vpop.permute.xlu0 %6264 }
 0x6aa   : > { %6334 = vst.msk [vmem:[#allocation6 + $0x18] sm:$0xff] %vm6330_vm7, %v6265_v57  ;;  %5991 = vrot.lane.b32.xlu1 %v6365_v55, %s7455_s25 }
 0x6ab   : > { %5848 = vrot.lane.b32.xlu0 %v6221_v53, %s7454_s24 }
 0x6ac   : > { %v5976_v46 = vpop.permute.xlu1 %5975 }
 0x6ad   : > { %6044 = vst.msk [vmem:[#allocation6 + $0x20] sm:$0xff] %vm6039_vm5, %v5976_v46  ;;  %v5833_v48 = vpop.permute.xlu0 %5832 }
 0x6ae   : > { %5900 = vst.msk [vmem:[#allocation6 + $0x28] sm:$0xff] %vm5894_vm4, %v5833_v48  ;;  %5560 = vrot.lane.b32.xlu1 %v6365_v55, %s7453_s23  ;;  %v6227_v55 = vld [vmem:[#allocation5 + $0xf9] sm:$0xff] }
 0x6af   : > { %6425 = vrot.lane.b32.xlu0 %v6366_v61, %s7458_s27  ;;  %v6372_v48 = vld [vmem:[#allocation5 + $0xfa] sm:$0xff] }
 0x6b0   : > { %v5545_v59 = vpop.permute.xlu1 %5544  ;;  %v6502_v60 = vld [vmem:[#allocation6 + $0x10] sm:$0xff] }
 0x6b1   : > { %5611 = vst.msk [vmem:[#allocation6 + $0x30] sm:$0xff] %vm5604_vm2, %v5545_v59  ;;  %v6410_v1 = vpop.permute.xlu0 %6409  ;;  %7334 = vmatprep.mubr.msk.f32.mxu1 %vm6540_vm9, %v6502_v60 }
 0x6b2   : > { %6479 = vst.msk [vmem:[#allocation6 + $0x18] sm:$0xff] %vm6475_vm8, %v6410_v1  ;;  %6137 = vrot.lane.b32.xlu1 %v9795_v29, %s7456_s26 }
 0x6b3   : > { %5993 = vrot.lane.b32.xlu0 %v6366_v61, %s7455_s25 }
 0x6b4   : > { %v6122_v27 = vpop.permute.xlu1 %6121 }
 0x6b5   : > { %6190 = vst.msk [vmem:[#allocation6 + $0x20] sm:$0xff] %vm6185_vm6, %v6122_v27  ;;  %v5978_v6 = vpop.permute.xlu0 %5977 }
 0x6b6   : > { %6045 = vst.msk [vmem:[#allocation6 + $0x28] sm:$0xff] %vm6039_vm5, %v5978_v6  ;;  %5705 = vrot.lane.b32.xlu1 %v9795_v29, %s7451_s15 }
 0x6b7   : > { %5562 = vrot.lane.b32.xlu0 %v6366_v61, %s7453_s23 }
 0x6b8   : > { %v5690_v62 = vpop.permute.xlu1 %5689 }
 0x6b9   : > { %5756 = vst.msk [vmem:[#allocation6 + $0x30] sm:$0xff] %vm5749_vm3, %v5690_v62  ;;  %v5547_v3 = vpop.permute.xlu0 %5546  ;;  %v6503_v2 = vld [vmem:[#allocation6 + $0x18] sm:$0xff] }
 0x6ba   : > { %5612 = vst.msk [vmem:[#allocation6 + $0x38] sm:$0xff] %vm5604_vm2, %v5547_v3  ;;  %6282 = vrot.lane.b32.xlu1 %v9791_v15, %s7457_s10  ;;  %7335 = vmatmul.mubr.msk.f32.gmra.mrb[26].mxu1 %vm6540_vm9, %v6503_v2 }
 0x6bb   : > { %6139 = vrot.lane.b32.xlu0 %v9793_v21, %s7456_s26 }
 0x6bc   : > { %v6267_v7 = vpop.permute.xlu1 %6266 }
 0x6bd   : > { %6335 = vst.msk [vmem:[#allocation6 + $0x20] sm:$0xff] %vm6330_vm7, %v6267_v7  ;;  %v6124_v29 = vpop.permute.xlu0 %6123  ;;  %v6228_v7 = vld [vmem:[#allocation5 + $0x109] sm:$0xff] }
 0x6be   : > { %6191 = vst.msk [vmem:[#allocation6 + $0x28] sm:$0xff] %vm6185_vm6, %v6124_v29  ;;  %5850 = vrot.lane.b32.xlu1 %v9791_v15, %s7454_s24 }
 0x6bf   : > { %5707 = vrot.lane.b32.xlu0 %v9793_v21, %s7451_s15 }
 0x6c0   : > { %v5835_v47 = vpop.permute.xlu1 %5834 }
 0x6c1   : > { %5901 = vst.msk [vmem:[#allocation6 + $0x30] sm:$0xff] %vm5894_vm4, %v5835_v47  ;;  %v5692_v11 = vpop.permute.xlu0 %5691 }
 0x6c2   : > { %5757 = vst.msk [vmem:[#allocation6 + $0x38] sm:$0xff] %vm5749_vm3, %v5692_v11  ;;  %6427 = vrot.lane.b32.xlu1 %v6367_v25, %s7458_s27 }
 0x6c3   : > { %6284 = vrot.lane.b32.xlu0 %v9787_v17, %s7457_s10 }
 0x6c4   : > { %v6412_v4 = vpop.permute.xlu1 %6411 }
 0x6c5   : > { %6480 = vst.msk [vmem:[#allocation6 + $0x20] sm:$0xff] %vm6475_vm8, %v6412_v4  ;;  %v6269_v10 = vpop.permute.xlu0 %6268  ;;  %v6229_v4 = vld [vmem:[#allocation5 + $0x111] sm:$0xff] }
 0x6c6   : > { %6336 = vst.msk [vmem:[#allocation6 + $0x28] sm:$0xff] %vm6330_vm7, %v6269_v10  ;;  %5995 = vrot.lane.b32.xlu1 %v6367_v25, %s7455_s25 }
 0x6c7   : > { %5852 = vrot.lane.b32.xlu0 %v9787_v17, %s7454_s24 }
 0x6c8   : > { %v5980_v15 = vpop.permute.xlu1 %5979 }
 0x6c9   : > { %6046 = vst.msk [vmem:[#allocation6 + $0x30] sm:$0xff] %vm6039_vm5, %v5980_v15  ;;  %v5837_v21 = vpop.permute.xlu0 %5836 }
 0x6ca   : > { %5902 = vst.msk [vmem:[#allocation6 + $0x38] sm:$0xff] %vm5894_vm4, %v5837_v21  ;;  %5564 = vrot.lane.b32.xlu1 %v6367_v25, %s7453_s23  ;;  %v6373_v25 = vld [vmem:[#allocation5 + $0x10a] sm:$0xff] }
 0x6cb   : > { %6429 = vrot.lane.b32.xlu0 %v6368_v35, %s7458_s27 }
 0x6cc   : > { %v5549_v31 = vpop.permute.xlu1 %5548  ;;  %v6504_v37 = vld [vmem:[#allocation6 + $0x20] sm:$0xff] }
 0x6cd   : > { %5613 = vst.msk [vmem:[#allocation6 + $0x40] sm:$0xff] %vm5604_vm2, %v5549_v31  ;;  %v6414_v49 = vpop.permute.xlu0 %6413  ;;  %7337 = vmatprep.mubr.msk.f32.mxu1 %vm6540_vm9, %v6504_v37  ;;  %v6374_v31 = vld [vmem:[#allocation5 + $0x112] sm:$0xff] }
 0x6ce   : > { %6481 = vst.msk [vmem:[#allocation6 + $0x28] sm:$0xff] %vm6475_vm8, %v6414_v49  ;;  %6141 = vrot.lane.b32.xlu1 %v9779_v14, %s7456_s26 }
 0x6cf   : > { %5997 = vrot.lane.b32.xlu0 %v6368_v35, %s7455_s25 }
 0x6d0   : > { %v6126_v17 = vpop.permute.xlu1 %6125 }
 0x6d1   : > { %6192 = vst.msk [vmem:[#allocation6 + $0x30] sm:$0xff] %vm6185_vm6, %v6126_v17  ;;  %v5982_v44 = vpop.permute.xlu0 %5981 }
 0x6d2   : > { %6047 = vst.msk [vmem:[#allocation6 + $0x38] sm:$0xff] %vm6039_vm5, %v5982_v44  ;;  %5709 = vrot.lane.b32.xlu1 %v9779_v14, %s7451_s15 }
 0x6d3   : > { %5566 = vrot.lane.b32.xlu0 %v6368_v35, %s7453_s23 }
 0x6d4   : > { %v5694_v24 = vpop.permute.xlu1 %5693 }
 0x6d5   : > { %5758 = vst.msk [vmem:[#allocation6 + $0x40] sm:$0xff] %vm5749_vm3, %v5694_v24  ;;  %v5551_v22 = vpop.permute.xlu0 %5550  ;;  %v6505_v41 = vld [vmem:[#allocation6 + $0x28] sm:$0xff] }
 0x6d6   : > { %5614 = vst.msk [vmem:[#allocation6 + $0x48] sm:$0xff] %vm5604_vm2, %v5551_v22  ;;  %6286 = vrot.lane.b32.xlu1 %v6224_v18, %s7457_s10  ;;  %7338 = vmatmul.mubr.msk.f32.gmra.mrb[28].mxu1 %vm6540_vm9, %v6505_v41  ;;  %v6085_v22 = vld [vmem:[#allocation5 + $0x120] sm:$0xff] }
 0x6d7   : > { %6143 = vrot.lane.b32.xlu0 %v9781_v12, %s7456_s26 }
 0x6d8   : > { %v6271_v63 = vpop.permute.xlu1 %6270 }
 0x6d9   : > { %6337 = vst.msk [vmem:[#allocation6 + $0x30] sm:$0xff] %vm6330_vm7, %v6271_v63  ;;  %v6128_v14 = vpop.permute.xlu0 %6127 }
 0x6da   : > { %6193 = vst.msk [vmem:[#allocation6 + $0x38] sm:$0xff] %vm6185_vm6, %v6128_v14  ;;  %5854 = vrot.lane.b32.xlu1 %v6224_v18, %s7454_s24 }
 0x6db   : > { %5711 = vrot.lane.b32.xlu0 %v9781_v12, %s7451_s15 }
 0x6dc   : > { %v5839_v16 = vpop.permute.xlu1 %5838 }
 0x6dd   : > { %5903 = vst.msk [vmem:[#allocation6 + $0x40] sm:$0xff] %vm5894_vm4, %v5839_v16  ;;  %v5696_v33 = vpop.permute.xlu0 %5695  ;;  %v6230_v16 = vld [vmem:[#allocation5 + $0x121] sm:$0xff] }
 0x6de   : > { %5759 = vst.msk [vmem:[#allocation6 + $0x48] sm:$0xff] %vm5749_vm3, %v5696_v33  ;;  %6431 = vrot.lane.b32.xlu1 %v6369_v0, %s7458_s27  ;;  %v6086_v33 = vld [vmem:[#allocation5 + $0x128] sm:$0xff] }
 0x6df   : > { %6288 = vrot.lane.b32.xlu0 %v6225_v5, %s7457_s10 }
 0x6e0   : > { %v6416_v43 = vpop.permute.xlu1 %6415 }
 0x6e1   : > { %6482 = vst.msk [vmem:[#allocation6 + $0x30] sm:$0xff] %vm6475_vm8, %v6416_v43  ;;  %v6273_v9 = vpop.permute.xlu0 %6272 }
 0x6e2   : > { %6338 = vst.msk [vmem:[#allocation6 + $0x38] sm:$0xff] %vm6330_vm7, %v6273_v9  ;;  %5856 = vrot.lane.b32.xlu1 %v6225_v5, %s7454_s24 }
 0x6e3   : > { %5423 = vrot.lane.b32.xlu0 %v6224_v18, %s7452_s20 }
 0x6e4   : > { %v5984_v12 = vpop.permute.xlu1 %5983 }
 0x6e5   : > { %6048 = vst.msk [vmem:[#allocation6 + $0x40] sm:$0xff] %vm6039_vm5, %v5984_v12  ;;  %v5841_v40 = vpop.permute.xlu0 %5840 }
 0x6e6   : > { %5904 = vst.msk [vmem:[#allocation6 + $0x48] sm:$0xff] %vm5894_vm4, %v5841_v40  ;;  %6433 = vrot.lane.b32.xlu1 %v6370_v26, %s7458_s27  ;;  %v6375_v40 = vld [vmem:[#allocation5 + $0x122] sm:$0xff] }
 0x6e7   : > { %5999 = vrot.lane.b32.xlu0 %v6369_v0, %s7455_s25 }
 0x6e8   : > { %v5553_v34 = vpop.permute.xlu1 %5552  ;;  %v6506_v56 = vld [vmem:[#allocation6 + $0x30] sm:$0xff] }
 0x6e9   : > { %5615 = vst.msk [vmem:[#allocation6 + $0x50] sm:$0xff] %vm5604_vm2, %v5553_v34  ;;  %v6418_v23 = vpop.permute.xlu0 %6417  ;;  %7340 = vmatprep.mubr.msk.f32.mxu1 %vm6540_vm9, %v6506_v56 }
 0x6ea   : > { %6483 = vst.msk [vmem:[#allocation6 + $0x38] sm:$0xff] %vm6475_vm8, %v6418_v23  ;;  %5568 = vrot.lane.b32.xlu1 %v6369_v0, %s7453_s23 }
 0x6eb   : > { %5425 = vrot.lane.b32.xlu0 %v6225_v5, %s7452_s20 }
 0x6ec   : > { %v6130_v30 = vpop.permute.xlu1 %6129 }
 0x6ed   : > { %6194 = vst.msk [vmem:[#allocation6 + $0x40] sm:$0xff] %vm6185_vm6, %v6130_v30  ;;  %v5986_v45 = vpop.permute.xlu0 %5985 }
 0x6ee   : > { %6049 = vst.msk [vmem:[#allocation6 + $0x48] sm:$0xff] %vm6039_vm5, %v5986_v45  ;;  %6145 = vrot.lane.b32.xlu1 %v9886_v36, %s7456_s26  ;;  %v5942_v45 = vld [vmem:[#allocation5 + $0x12a] sm:$0xff] }
 0x6ef   : > { %6001 = vrot.lane.b32.xlu0 %v6370_v26, %s7455_s25 }
 0x6f0   : > { %v5698_v50 = vpop.permute.xlu1 %5697 }
 0x6f1   : > { %5760 = vst.msk [vmem:[#allocation6 + $0x50] sm:$0xff] %vm5749_vm3, %v5698_v50  ;;  %v5555_v54 = vpop.permute.xlu0 %5554  ;;  %v6507_v8 = vld [vmem:[#allocation6 + $0x38] sm:$0xff] }
 0x6f2   : > { %5616 = vst.msk [vmem:[#allocation6 + $0x58] sm:$0xff] %vm5604_vm2, %v5555_v54  ;;  %5713 = vrot.lane.b32.xlu1 %v9886_v36, %s7451_s15  ;;  %7341 = vmatmul.mubr.msk.f32.gmra.mrb[30].mxu1 %vm6540_vm9, %v6507_v8  ;;  %v6088_v54 = vld [vmem:[#allocation5 + $0x140] sm:$0xff] }
 0x6f3   : > { %5570 = vrot.lane.b32.xlu0 %v6370_v26, %s7453_s23  ;;  %v6231_v26 = vld [vmem:[#allocation5 + $0x129] sm:$0xff] }
 0x6f4   : > { %v6275_v42 = vpop.permute.xlu1 %6274 }
 0x6f5   : > { %6339 = vst.msk [vmem:[#allocation6 + $0x40] sm:$0xff] %vm6330_vm7, %v6275_v42  ;;  %v6132_v20 = vpop.permute.xlu0 %6131  ;;  %v6087_v42 = vld [vmem:[#allocation5 + $0x138] sm:$0xff] }
 0x6f6   : > { %6195 = vst.msk [vmem:[#allocation6 + $0x48] sm:$0xff] %vm6185_vm6, %v6132_v20  ;;  %6290 = vrot.lane.b32.xlu1 %v6226_v38, %s7457_s10 }
 0x6f7   : > { %6147 = vrot.lane.b32.xlu0 %v9888_v13, %s7456_s26 }
 0x6f8   : > { %v5843_v32 = vpop.permute.xlu1 %5842 }
 0x6f9   : > { %5905 = vst.msk [vmem:[#allocation6 + $0x50] sm:$0xff] %vm5894_vm4, %v5843_v32  ;;  %v5700_v36 = vpop.permute.xlu0 %5699 }
 0x6fa   : > { %5761 = vst.msk [vmem:[#allocation6 + $0x58] sm:$0xff] %vm5749_vm3, %v5700_v36  ;;  %5858 = vrot.lane.b32.xlu1 %v6226_v38, %s7454_s24  ;;  %v6232_v36 = vld [vmem:[#allocation5 + $0x139] sm:$0xff] }
 0x6fb   : > { %5715 = vrot.lane.b32.xlu0 %v9888_v13, %s7451_s15 }
 0x6fc   : > { %v6420_v39 = vpop.permute.xlu1 %6419 }
 0x6fd   : > { %6484 = vst.msk [vmem:[#allocation6 + $0x40] sm:$0xff] %vm6475_vm8, %v6420_v39  ;;  %v6277_v52 = vpop.permute.xlu0 %6276 }
 0x6fe   : > { %6340 = vst.msk [vmem:[#allocation6 + $0x48] sm:$0xff] %vm6330_vm7, %v6277_v52  ;;  %6435 = vrot.lane.b32.xlu1 %v6371_v51, %s7458_s27  ;;  %v6378_v52 = vld [vmem:[#allocation5 + $0x142] sm:$0xff] }
 0x6ff   : > { %6292 = vrot.lane.b32.xlu0 %v6227_v55, %s7457_s10 }
 0x700   : > { %v5988_v53 = vpop.permute.xlu1 %5987 }
 0x701   : > { %6050 = vst.msk [vmem:[#allocation6 + $0x50] sm:$0xff] %vm6039_vm5, %v5988_v53  ;;  %v5845_v58 = vpop.permute.xlu0 %5844 }
 0x702   : > { %5906 = vst.msk [vmem:[#allocation6 + $0x58] sm:$0xff] %vm5894_vm4, %v5845_v58  ;;  %5860 = vrot.lane.b32.xlu1 %v6227_v55, %s7454_s24 }
 0x703   : > { %5427 = vrot.lane.b32.xlu0 %v6226_v38, %s7452_s20  ;;  %v6233_v38 = vld [vmem:[#allocation5 + $0x141] sm:$0xff] }
 0x704   : > { %v5557_v13 = vpop.permute.xlu1 %5556  ;;  %v6508_v57 = vld [vmem:[#allocation6 + $0x40] sm:$0xff] }
 0x705   : > { %5617 = vst.msk [vmem:[#allocation6 + $0x60] sm:$0xff] %vm5604_vm2, %v5557_v13  ;;  %v6422_v46 = vpop.permute.xlu0 %6421  ;;  %7343 = vmatprep.mubr.msk.f32.mxu1 %vm6540_vm9, %v6508_v57 }
 0x706   : > { %6485 = vst.msk [vmem:[#allocation6 + $0x48] sm:$0xff] %vm6475_vm8, %v6422_v46  ;;  %6437 = vrot.lane.b32.xlu1 %v6372_v48, %s7458_s27 }
 0x707   : > { %6003 = vrot.lane.b32.xlu0 %v6371_v51, %s7455_s25 }
 0x708   : > { %v6134_v61 = vpop.permute.xlu1 %6133 }
 0x709   : > { %6196 = vst.msk [vmem:[#allocation6 + $0x50] sm:$0xff] %vm6185_vm6, %v6134_v61  ;;  %v5990_v59 = vpop.permute.xlu0 %5989 }
 0x70a   : > { %6051 = vst.msk [vmem:[#allocation6 + $0x58] sm:$0xff] %vm6039_vm5, %v5990_v59  ;;  %5572 = vrot.lane.b32.xlu1 %v6371_v51, %s7453_s23 }
 0x70b   : > { %5429 = vrot.lane.b32.xlu0 %v6227_v55, %s7452_s20  ;;  %v6377_v55 = vld [vmem:[#allocation5 + $0x13a] sm:$0xff] }
 0x70c   : > { %v5702_v60 = vpop.permute.xlu1 %5701 }
 0x70d   : > { %5762 = vst.msk [vmem:[#allocation6 + $0x60] sm:$0xff] %vm5749_vm3, %v5702_v60  ;;  %v5559_v1 = vpop.permute.xlu0 %5558  ;;  %v6509_v27 = vld [vmem:[#allocation6 + $0x48] sm:$0xff] }
 0x70e   : > { %5618 = vst.msk [vmem:[#allocation6 + $0x68] sm:$0xff] %vm5604_vm2, %v5559_v1  ;;  %6149 = vrot.lane.b32.xlu1 %v9958_v28, %s7456_s26  ;;  %7344 = vmatmul.mubr.msk.f32.gmra.mrb[32].mxu1 %vm6540_vm9, %v6509_v27 }
 0x70f   : > { %6005 = vrot.lane.b32.xlu0 %v6372_v48, %s7455_s25 }
 0x710   : > { %v6279_v6 = vpop.permute.xlu1 %6278 }
 0x711   : > { %6341 = vst.msk [vmem:[#allocation6 + $0x50] sm:$0xff] %vm6330_vm7, %v6279_v6  ;;  %v6136_v62 = vpop.permute.xlu0 %6135 }
 0x712   : > { %6197 = vst.msk [vmem:[#allocation6 + $0x58] sm:$0xff] %vm6185_vm6, %v6136_v62  ;;  %5717 = vrot.lane.b32.xlu1 %v9958_v28, %s7451_s15 }
 0x713   : > { %5574 = vrot.lane.b32.xlu0 %v6372_v48, %s7453_s23 }
 0x714   : > { %v5847_v3 = vpop.permute.xlu1 %5846 }
 0x715   : > { %5907 = vst.msk [vmem:[#allocation6 + $0x60] sm:$0xff] %vm5894_vm4, %v5847_v3  ;;  %v5704_v2 = vpop.permute.xlu0 %5703 }
 0x716   : > { %5763 = vst.msk [vmem:[#allocation6 + $0x68] sm:$0xff] %vm5749_vm3, %v5704_v2  ;;  %6294 = vrot.lane.b32.xlu1 %v6228_v7, %s7457_s10 }
 0x717   : > { %6151 = vrot.lane.b32.xlu0 %v9960_v19, %s7456_s26 }
 0x718   : > { %v6424_v29 = vpop.permute.xlu1 %6423 }
 0x719   : > { %6486 = vst.msk [vmem:[#allocation6 + $0x50] sm:$0xff] %vm6475_vm8, %v6424_v29  ;;  %v6281_v47 = vpop.permute.xlu0 %6280 }
 0x71a   : > { %6342 = vst.msk [vmem:[#allocation6 + $0x58] sm:$0xff] %vm6330_vm7, %v6281_v47  ;;  %5862 = vrot.lane.b32.xlu1 %v6228_v7, %s7454_s24  ;;  %v10281_v47 = vld [vmem:[%s10408_s4] ss:$0 sm:$0xff] }
 0x71b   : > { %5719 = vrot.lane.b32.xlu0 %v9960_v19, %s7451_s15 }
 0x71c   : > { %v5992_v28 = vpop.permute.xlu1 %5991 }
 0x71d   : > { %6052 = vst.msk [vmem:[#allocation6 + $0x60] sm:$0xff] %vm6039_vm5, %v5992_v28  ;;  %v5849_v11 = vpop.permute.xlu0 %5848 }
 0x71e   : > { %5908 = vst.msk [vmem:[#allocation6 + $0x68] sm:$0xff] %vm5894_vm4, %v5849_v11  ;;  %6439 = vrot.lane.b32.xlu1 %v6373_v25, %s7458_s27 }
 0x71f   : > { %6296 = vrot.lane.b32.xlu0 %v6229_v4, %s7457_s10 }
 0x720   : > { %v5561_v10 = vpop.permute.xlu1 %5560  ;;  %v6510_v15 = vld [vmem:[#allocation6 + $0x50] sm:$0xff] }
 0x721   : > { %5619 = vst.msk [vmem:[#allocation6 + $0x70] sm:$0xff] %vm5604_vm2, %v5561_v10  ;;  %v6426_v21 = vpop.permute.xlu0 %6425  ;;  %7346 = vmatprep.mubr.msk.f32.mxu1 %vm6540_vm9, %v6510_v15 }
 0x722   : > { %6487 = vst.msk [vmem:[#allocation6 + $0x58] sm:$0xff] %vm6475_vm8, %v6426_v21  ;;  %5864 = vrot.lane.b32.xlu1 %v6229_v4, %s7454_s24 }
 0x723   : > { %5431 = vrot.lane.b32.xlu0 %v6228_v7, %s7452_s20 }
 0x724   : > { %v6138_v19 = vpop.permute.xlu1 %6137 }
 0x725   : > { %6198 = vst.msk [vmem:[#allocation6 + $0x60] sm:$0xff] %vm6185_vm6, %v6138_v19  ;;  %v5994_v35 = vpop.permute.xlu0 %5993 }
 0x726   : > { %6053 = vst.msk [vmem:[#allocation6 + $0x68] sm:$0xff] %vm6039_vm5, %v5994_v35  ;;  %6441 = vrot.lane.b32.xlu1 %v6374_v31, %s7458_s27 }
 0x727   : > { %6007 = vrot.lane.b32.xlu0 %v6373_v25, %s7455_s25 }
 0x728   : > { %v5706_v37 = vpop.permute.xlu1 %5705 }
 0x729   : > { %5764 = vst.msk [vmem:[#allocation6 + $0x70] sm:$0xff] %vm5749_vm3, %v5706_v37  ;;  %v5563_v49 = vpop.permute.xlu0 %5562  ;;  %v6511_v17 = vld [vmem:[#allocation6 + $0x58] sm:$0xff] }
 0x72a   : > { %5620 = vst.msk [vmem:[#allocation6 + $0x78] sm:$0xff] %vm5604_vm2, %v5563_v49  ;;  %5576 = vrot.lane.b32.xlu1 %v6373_v25, %s7453_s23  ;;  %7347 = vmatmul.mubr.msk.f32.gmra.mrb[34].mxu1 %vm6540_vm9, %v6511_v17 }
 0x72b   : > { %5433 = vrot.lane.b32.xlu0 %v6229_v4, %s7452_s20 }
 0x72c   : > { %v6283_v44 = vpop.permute.xlu1 %6282 }
 0x72d   : > { %6343 = vst.msk [vmem:[#allocation6 + $0x60] sm:$0xff] %vm6330_vm7, %v6283_v44  ;;  %v6140_v24 = vpop.permute.xlu0 %6139 }
 0x72e   : > { %6199 = vst.msk [vmem:[#allocation6 + $0x68] sm:$0xff] %vm6185_vm6, %v6140_v24  ;;  %6153 = vrot.lane.b32.xlu1 %v6085_v22, %s7456_s26 }
 0x72f   : > { %6009 = vrot.lane.b32.xlu0 %v6374_v31, %s7455_s25 }
 0x730   : > { %v5851_v18 = vpop.permute.xlu1 %5850 }
 0x731   : > { %5909 = vst.msk [vmem:[#allocation6 + $0x70] sm:$0xff] %vm5894_vm4, %v5851_v18  ;;  %v5708_v41 = vpop.permute.xlu0 %5707 }
 0x732   : > { %5765 = vst.msk [vmem:[#allocation6 + $0x78] sm:$0xff] %vm5749_vm3, %v5708_v41  ;;  %5721 = vrot.lane.b32.xlu1 %v6085_v22, %s7451_s15 }
 0x733   : > { %5578 = vrot.lane.b32.xlu0 %v6374_v31, %s7453_s23  ;;  %s7398_s23 = smul.u32 48, %s10460_s19 }
 0x734   : > { %v6428_v63 = vpop.permute.xlu1 %6427 }
 0x735   : > { %6488 = vst.msk [vmem:[#allocation6 + $0x60] sm:$0xff] %vm6475_vm8, %v6428_v63  ;;  %v6285_v14 = vpop.permute.xlu0 %6284 }
 0x736   : > { %6344 = vst.msk [vmem:[#allocation6 + $0x68] sm:$0xff] %vm6330_vm7, %v6285_v14  ;;  %6298 = vrot.lane.b32.xlu1 %v6230_v16, %s7457_s10 }
 0x737   : > { %6155 = vrot.lane.b32.xlu0 %v6086_v33, %s7456_s26 }
 0x738   : > { %v5996_v0 = vpop.permute.xlu1 %5995 }
 0x739   : > { %6054 = vst.msk [vmem:[#allocation6 + $0x70] sm:$0xff] %vm6039_vm5, %v5996_v0  ;;  %v5853_v5 = vpop.permute.xlu0 %5852 }
 0x73a   : > { %5910 = vst.msk [vmem:[#allocation6 + $0x78] sm:$0xff] %vm5894_vm4, %v5853_v5  ;;  %5866 = vrot.lane.b32.xlu1 %v6230_v16, %s7454_s24 }
 0x73b   : > { %5723 = vrot.lane.b32.xlu0 %v6086_v33, %s7451_s15 }
 0x73c   : > { %v5565_v43 = vpop.permute.xlu1 %5564  ;;  %v6512_v9 = vld [vmem:[#allocation6 + $0x60] sm:$0xff] }
 0x73d   : > { %5621 = vst.msk [vmem:[#allocation6 + $0x80] sm:$0xff] %vm5604_vm2, %v5565_v43  ;;  %v6430_v12 = vpop.permute.xlu0 %6429  ;;  %7349 = vmatprep.mubr.msk.f32.mxu1 %vm6540_vm9, %v6512_v9 }
 0x73e   : > { %6489 = vst.msk [vmem:[#allocation6 + $0x68] sm:$0xff] %vm6475_vm8, %v6430_v12  ;;  %6443 = vrot.lane.b32.xlu1 %v6375_v40, %s7458_s27 }
 0x73f   : > { %6300 = vrot.lane.b32.xlu0 %v6231_v26, %s7457_s10 }
 0x740   : > { %v6142_v34 = vpop.permute.xlu1 %6141 }
 0x741   : > { %6200 = vst.msk [vmem:[#allocation6 + $0x70] sm:$0xff] %vm6185_vm6, %v6142_v34  ;;  %v5998_v56 = vpop.permute.xlu0 %5997 }
 0x742   : > { %6055 = vst.msk [vmem:[#allocation6 + $0x78] sm:$0xff] %vm6039_vm5, %v5998_v56  ;;  %6011 = vrot.lane.b32.xlu1 %v6375_v40, %s7455_s25 }
 0x743   : > { %5868 = vrot.lane.b32.xlu0 %v6231_v26, %s7454_s24 }
 0x744   : > { %v5710_v23 = vpop.permute.xlu1 %5709 }
 0x745   : > { %5766 = vst.msk [vmem:[#allocation6 + $0x80] sm:$0xff] %vm5749_vm3, %v5710_v23  ;;  %v5567_v30 = vpop.permute.xlu0 %5566  ;;  %v6513_v50 = vld [vmem:[#allocation6 + $0x68] sm:$0xff] }
 0x746   : > { %5622 = vst.msk [vmem:[#allocation6 + $0x88] sm:$0xff] %vm5604_vm2, %v5567_v30  ;;  %6013 = vrot.lane.b32.xlu1 %v5942_v45, %s7455_s25  ;;  %7350 = vmatmul.mubr.msk.f32.gmra.mrb[36].mxu1 %vm6540_vm9, %v6513_v50 }
 0x747   : > { %6445 = vrot.lane.b32.xlu0 %v5942_v45, %s7458_s27 }
 0x748   : > { %v6287_v8 = vpop.permute.xlu1 %6286 }
 0x749   : > { %6345 = vst.msk [vmem:[#allocation6 + $0x70] sm:$0xff] %vm6330_vm7, %v6287_v8  ;;  %v6144_v20 = vpop.permute.xlu0 %6143 }
 0x74a   : > { %6201 = vst.msk [vmem:[#allocation6 + $0x78] sm:$0xff] %vm6185_vm6, %v6144_v20  ;;  %6159 = vrot.lane.b32.xlu1 %v6088_v54, %s7456_s26 }
 0x74b   : > { %6157 = vrot.lane.b32.xlu0 %v6087_v42, %s7456_s26  ;;  %s10321_s26 = scalar_lea.vmem %s10409_s5, %s7398_s23 }
 0x74c   : > { %v5855_v32 = vpop.permute.xlu1 %5854 }
 0x74d   : > { %5911 = vst.msk [vmem:[#allocation6 + $0x80] sm:$0xff] %vm5894_vm4, %v5855_v32  ;;  %v5712_v39 = vpop.permute.xlu0 %5711 }
 0x74e   : > { %5767 = vst.msk [vmem:[#allocation6 + $0x88] sm:$0xff] %vm5749_vm3, %v5712_v39  ;;  %6304 = vrot.lane.b32.xlu1 %v6233_v38, %s7457_s10 }
 0x74f   : > { %6302 = vrot.lane.b32.xlu0 %v6232_v36, %s7457_s10 }
 0x750   : > { %v6432_v51 = vpop.permute.xlu1 %6431 }
 0x751   : > { %6490 = vst.msk [vmem:[#allocation6 + $0x70] sm:$0xff] %vm6475_vm8, %v6432_v51  ;;  %v6289_v53 = vpop.permute.xlu0 %6288 }
 0x752   : > { %6346 = vst.msk [vmem:[#allocation6 + $0x78] sm:$0xff] %vm6330_vm7, %v6289_v53  ;;  %6449 = vrot.lane.b32.xlu1 %v6378_v52, %s7458_s27 }
 0x753   : > { %6447 = vrot.lane.b32.xlu0 %v6377_v55, %s7458_s27 }
 0x754   : > { %v5857_v58 = vpop.permute.xlu1 %5856 }
 0x755   : > { %5912 = vst.msk [vmem:[#allocation6 + $0x88] sm:$0xff] %vm5894_vm4, %v5857_v58  ;;  %v5424_v13 = vpop.permute.xlu0 %5423 }
 0x756   : > { %5478 = vst.msk [vmem:[#allocation6 + $0x90] sm:$0xff] %vm5459_vm1, %v5424_v13 }
 0x758   : > { %v6434_v57 = vpop.permute.xlu1 %6433  ;;  %v6514_v46 = vld [vmem:[#allocation6 + $0x70] sm:$0xff] }
 0x759   : > { %6491 = vst.msk [vmem:[#allocation6 + $0x78] sm:$0xff] %vm6475_vm8, %v6434_v57  ;;  %v6000_v48 = vpop.permute.xlu0 %5999  ;;  %7352 = vmatprep.mubr.msk.f32.mxu1 %vm6540_vm9, %v6514_v46 }
 0x75a   : > { %6056 = vst.msk [vmem:[#allocation6 + $0x80] sm:$0xff] %vm6039_vm5, %v6000_v48 }
 0x75c   : > { %v5569_v61 = vpop.permute.xlu1 %5568 }
 0x75d   : > { %5623 = vst.msk [vmem:[#allocation6 + $0x90] sm:$0xff] %vm5604_vm2, %v5569_v61  ;;  %v5426_v59 = vpop.permute.xlu0 %5425 }
 0x75e   : > { %5479 = vst.msk [vmem:[#allocation6 + $0x98] sm:$0xff] %vm5459_vm1, %v5426_v59 }
 0x760   : > { %v6146_v60 = vpop.permute.xlu1 %6145  ;;  %v6515_v1 = vld [vmem:[#allocation6 + $0x78] sm:$0xff] }
 0x761   : > { %6202 = vst.msk [vmem:[#allocation6 + $0x80] sm:$0xff] %vm6185_vm6, %v6146_v60  ;;  %v6002_v27 = vpop.permute.xlu0 %6001  ;;  %7353 = vmatmul.mubr.msk.f32.gmra.mrb[38].mxu1 %vm6540_vm9, %v6515_v1 }
 0x762   : > { %6057 = vst.msk [vmem:[#allocation6 + $0x88] sm:$0xff] %vm6039_vm5, %v6002_v27 }
 0x764   : > { %v5714_v6 = vpop.permute.xlu1 %5713 }
 0x765   : > { %5768 = vst.msk [vmem:[#allocation6 + $0x90] sm:$0xff] %vm5749_vm3, %v5714_v6  ;;  %v5571_v62 = vpop.permute.xlu0 %5570 }
 0x766   : > { %5624 = vst.msk [vmem:[#allocation6 + $0x98] sm:$0xff] %vm5604_vm2, %v5571_v62 }
 0x768   : > { %v6291_v3 = vpop.permute.xlu1 %6290 }
 0x769   : > { %6347 = vst.msk [vmem:[#allocation6 + $0x80] sm:$0xff] %vm6330_vm7, %v6291_v3  ;;  %v6148_v2 = vpop.permute.xlu0 %6147 }
 0x76a   : > { %6203 = vst.msk [vmem:[#allocation6 + $0x88] sm:$0xff] %vm6185_vm6, %v6148_v2 }
 0x76c   : > { %v5859_v7 = vpop.permute.xlu1 %5858 }
 0x76d   : > { %5913 = vst.msk [vmem:[#allocation6 + $0x90] sm:$0xff] %vm5894_vm4, %v5859_v7  ;;  %v5716_v29 = vpop.permute.xlu0 %5715 }
 0x76e   : > { %5769 = vst.msk [vmem:[#allocation6 + $0x98] sm:$0xff] %vm5749_vm3, %v5716_v29 }
 0x770   : > { %v6436_v28 = vpop.permute.xlu1 %6435 }
 0x771   : > { %6492 = vst.msk [vmem:[#allocation6 + $0x80] sm:$0xff] %vm6475_vm8, %v6436_v28  ;;  %v6293_v11 = vpop.permute.xlu0 %6292  ;;  %v7333_v25 = vpop.f32.mrb[24].mxu1 }
 0x772   : > { %6348 = vst.msk [vmem:[#allocation6 + $0x88] sm:$0xff] %vm6330_vm7, %v6293_v11  ;;  %v6685_v4 = vadd.f32 %v7333_v25, %v10281_v47  ;;  %v6679_v10 = vpop.f32.mrb[25].mxu1 }
 0x773   : > { %v6680_v15 = vadd.f32 %v10281_v47, %v6679_v10 }
 0x774   : > { %v6799_v21 = vmax.f32 %v6685_v4, 0.0  ;;  %v5861_v19 = vpop.permute.xlu1 %5860 }
 0x775   : > { %v6798_v35 = vmax.f32 %v6680_v15, 0.0  ;;  %5914 = vst.msk [vmem:[#allocation6 + $0x98] sm:$0xff] %vm5894_vm4, %v5861_v19  ;;  %v5428_v31 = vpop.permute.xlu0 %5427 }
 0x776   : > { %6824 = vst.msk [vmem:[#allocation7 + $0x8] sm:$0xff] %vm6822_vm10, %v6799_v21 }
 0x777   : > { %5480 = vst.msk [vmem:[#allocation6 + $0xa0] sm:$0xff] %vm5459_vm1, %v5428_v31 }
 0x778   : > { %6823 = vst.msk [vmem:[#allocation7] sm:$0xff] %vm6822_vm10, %v6798_v35  ;;  %v6438_v37 = vpop.permute.xlu1 %6437  ;;  %v6516_v49 = vld [vmem:[#allocation6 + $0x80] sm:$0xff] }
 0x779   : > { %6493 = vst.msk [vmem:[#allocation6 + $0x88] sm:$0xff] %vm6475_vm8, %v6438_v37  ;;  %v6004_v17 = vpop.permute.xlu0 %6003  ;;  %7355 = vmatprep.mubr.msk.f32.mxu1 %vm6540_vm9, %v6516_v49 }
 0x77a   : > { %6058 = vst.msk [vmem:[#allocation6 + $0x90] sm:$0xff] %vm6039_vm5, %v6004_v17 }
 0x77c   : > { %v5573_v44 = vpop.permute.xlu1 %5572 }
 0x77d   : > { %5625 = vst.msk [vmem:[#allocation6 + $0xa0] sm:$0xff] %vm5604_vm2, %v5573_v44  ;;  %v5430_v24 = vpop.permute.xlu0 %5429 }
 0x77e   : > { %5481 = vst.msk [vmem:[#allocation6 + $0xa8] sm:$0xff] %vm5459_vm1, %v5430_v24 }
 0x77f   : > { %v6847_v50 = vld [vmem:[#allocation7] ss:$2 sm:$0x3f]  ;;  %v6859_v54 = vld [vmem:[#allocation7 + $0x1] ss:$2 sm:$0x3f] }
 0x780   : > { %v6150_v22 = vpop.permute.xlu1 %6149  ;;  %v6517_v18 = vld [vmem:[#allocation6 + $0x88] sm:$0xff]  ;;  %v6894_v20 = vadd.f32 %v6859_v54, %v6847_v50 }
 0x781   : > { %6204 = vst.msk [vmem:[#allocation6 + $0x90] sm:$0xff] %vm6185_vm6, %v6150_v22  ;;  %v6006_v41 = vpop.permute.xlu0 %6005  ;;  %7356 = vmatmul.mubr.msk.f32.gmra.mrb[40].mxu1 %vm6540_vm9, %v6517_v18 }
 0x782   : > { %6059 = vst.msk [vmem:[#allocation6 + $0x98] sm:$0xff] %vm6039_vm5, %v6006_v41 }
 0x784   : > { %v5718_v63 = vpop.permute.xlu1 %5717 }
 0x785   : > { %5770 = vst.msk [vmem:[#allocation6 + $0xa0] sm:$0xff] %vm5749_vm3, %v5718_v63  ;;  %v5575_v14 = vpop.permute.xlu0 %5574 }
 0x786   : > { %5626 = vst.msk [vmem:[#allocation6 + $0xa8] sm:$0xff] %vm5604_vm2, %v5575_v14 }
 0x788   : > { %v6295_v16 = vpop.permute.xlu1 %6294 }
 0x789   : > { %6349 = vst.msk [vmem:[#allocation6 + $0x90] sm:$0xff] %vm6330_vm7, %v6295_v16  ;;  %v6152_v33 = vpop.permute.xlu0 %6151 }
 0x78a   : > { %6205 = vst.msk [vmem:[#allocation6 + $0x98] sm:$0xff] %vm6185_vm6, %v6152_v33 }
 0x78c   : > { %v5863_v0 = vpop.permute.xlu1 %5862 }
 0x78d   : > { %5915 = vst.msk [vmem:[#allocation6 + $0xa0] sm:$0xff] %vm5894_vm4, %v5863_v0  ;;  %v5720_v5 = vpop.permute.xlu0 %5719  ;;  %v7336_v43 = vpop.f32.mrb[26].mxu1 }
 0x78e   : > { %5771 = vst.msk [vmem:[#allocation6 + $0xa8] sm:$0xff] %vm5749_vm3, %v5720_v5  ;;  %v6695_v9 = vadd.f32 %v7336_v43, %v10281_v47  ;;  %v6689_v12 = vpop.f32.mrb[27].mxu1 }
 0x78f   : > { %v6690_v40 = vadd.f32 %v10281_v47, %v6689_v12 }
 0x790   : > { %v6801_v26 = vmax.f32 %v6695_v9, 0.0  ;;  %v6440_v34 = vpop.permute.xlu1 %6439 }
 0x791   : > { %v6800_v56 = vmax.f32 %v6690_v40, 0.0  ;;  %6494 = vst.msk [vmem:[#allocation6 + $0x90] sm:$0xff] %vm6475_vm8, %v6440_v34  ;;  %v6297_v23 = vpop.permute.xlu0 %6296 }
 0x792   : > { %6826 = vst.msk [vmem:[#allocation7 + $0x18] sm:$0xff] %vm6822_vm10, %v6801_v26 }
 0x793   : > { %6350 = vst.msk [vmem:[#allocation6 + $0x98] sm:$0xff] %vm6330_vm7, %v6297_v23 }
 0x794   : > { %6825 = vst.msk [vmem:[#allocation7 + $0x10] sm:$0xff] %vm6822_vm10, %v6800_v56  ;;  %v5865_v30 = vpop.permute.xlu1 %5864 }
 0x795   : > { %5916 = vst.msk [vmem:[#allocation6 + $0xa8] sm:$0xff] %vm5894_vm4, %v5865_v30  ;;  %v5432_v45 = vpop.permute.xlu0 %5431 }
 0x796   : > { %5482 = vst.msk [vmem:[#allocation6 + $0xb0] sm:$0xff] %vm5459_vm1, %v5432_v45 }
 0x798   : > { %v6442_v8 = vpop.permute.xlu1 %6441  ;;  %v6518_v42 = vld [vmem:[#allocation6 + $0x90] sm:$0xff] }
 0x799   : > { %6495 = vst.msk [vmem:[#allocation6 + $0x98] sm:$0xff] %vm6475_vm8, %v6442_v8  ;;  %v6008_v38 = vpop.permute.xlu0 %6007  ;;  %7358 = vmatprep.mubr.msk.f32.mxu1 %vm6540_vm9, %v6518_v42 }
 0x79a   : > { %6060 = vst.msk [vmem:[#allocation6 + $0xa0] sm:$0xff] %vm6039_vm5, %v6008_v38 }
 0x79b   : > { %v6871_v32 = vld [vmem:[#allocation7 + $0x10] ss:$2 sm:$0x3f]  ;;  %v6883_v39 = vld [vmem:[#allocation7 + $0x11] ss:$2 sm:$0x3f] }
 0x79c   : > { %v6900_v36 = vadd.f32 %v6894_v20, %v6871_v32  ;;  %v5577_v52 = vpop.permute.xlu1 %5576 }
 0x79d   : > { %5627 = vst.msk [vmem:[#allocation6 + $0xb0] sm:$0xff] %vm5604_vm2, %v5577_v52  ;;  %v5434_v55 = vpop.permute.xlu0 %5433 }
 0x79e   : > { %v6906_v51 = vadd.f32 %v6900_v36, %v6883_v39  ;;  %5483 = vst.msk [vmem:[#allocation6 + $0xb8] sm:$0xff] %vm5459_vm1, %v5434_v55 }
 0x7a0   : > { %v6912_v53 = vmul.f32 0.25, %v6906_v51  ;;  %v6154_v58 = vpop.permute.xlu1 %6153  ;;  %v6519_v13 = vld [vmem:[#allocation6 + $0x98] sm:$0xff] }
 0x7a1   : > { %6206 = vst.msk [vmem:[#allocation6 + $0xa0] sm:$0xff] %vm6185_vm6, %v6154_v58  ;;  %v6010_v57 = vpop.permute.xlu0 %6009  ;;  %7359 = vmatmul.mubr.msk.f32.gmra.mrb[42].mxu1 %vm6540_vm9, %v6519_v13 }
 0x7a2   : > { %6919 = vst.msk [vmem:[%s10321_s26] sm:$0x3f] %vm6918_vm11, %v6912_v53 }
 0x7a3   : > { %6061 = vst.msk [vmem:[#allocation6 + $0xa8] sm:$0xff] %vm6039_vm5, %v6010_v57 }
 0x7a4   : > { %v5722_v46 = vpop.permute.xlu1 %5721 }
 0x7a5   : > { %5772 = vst.msk [vmem:[#allocation6 + $0xb0] sm:$0xff] %vm5749_vm3, %v5722_v46  ;;  %v5579_v48 = vpop.permute.xlu0 %5578 }
 0x7a6   : > { %5628 = vst.msk [vmem:[#allocation6 + $0xb8] sm:$0xff] %vm5604_vm2, %v5579_v48 }
 0x7a8   : > { %v6299_v61 = vpop.permute.xlu1 %6298 }
 0x7a9   : > { %6351 = vst.msk [vmem:[#allocation6 + $0xa0] sm:$0xff] %vm6330_vm7, %v6299_v61  ;;  %v6156_v59 = vpop.permute.xlu0 %6155  ;;  %v7339_v60 = vpop.f32.mrb[28].mxu1 }
 0x7aa   : > { %6207 = vst.msk [vmem:[#allocation6 + $0xa8] sm:$0xff] %vm6185_vm6, %v6156_v59  ;;  %v6705_v1 = vadd.f32 %v7339_v60, %v10281_v47  ;;  %v6699_v27 = vpop.f32.mrb[29].mxu1 }
 0x7ab   : > { %v6700_v6 = vadd.f32 %v10281_v47, %v6699_v27 }
 0x7ac   : > { %v6803_v62 = vmax.f32 %v6705_v1, 0.0  ;;  %v5867_v3 = vpop.permute.xlu1 %5866 }
 0x7ad   : > { %v6802_v2 = vmax.f32 %v6700_v6, 0.0  ;;  %5917 = vst.msk [vmem:[#allocation6 + $0xb0] sm:$0xff] %vm5894_vm4, %v5867_v3  ;;  %v5724_v7 = vpop.permute.xlu0 %5723 }
 0x7ae   : > { %6828 = vst.msk [vmem:[#allocation7 + $0x28] sm:$0xff] %vm6822_vm10, %v6803_v62 }
 0x7af   : > { %5773 = vst.msk [vmem:[#allocation6 + $0xb8] sm:$0xff] %vm5749_vm3, %v5724_v7 }
 0x7b0   : > { %6827 = vst.msk [vmem:[#allocation7 + $0x20] sm:$0xff] %vm6822_vm10, %v6802_v2  ;;  %v6444_v29 = vpop.permute.xlu1 %6443 }
 0x7b1   : > { %6496 = vst.msk [vmem:[#allocation6 + $0xa0] sm:$0xff] %vm6475_vm8, %v6444_v29  ;;  %v6301_v28 = vpop.permute.xlu0 %6300 }
 0x7b2   : > { %6352 = vst.msk [vmem:[#allocation6 + $0xa8] sm:$0xff] %vm6330_vm7, %v6301_v28 }
 0x7b4   : > { %v6012_v11 = vpop.permute.xlu1 %6011 }
 0x7b5   : > { %6062 = vst.msk [vmem:[#allocation6 + $0xb0] sm:$0xff] %vm6039_vm5, %v6012_v11  ;;  %v5869_v25 = vpop.permute.xlu0 %5868 }
 0x7b6   : > { %5918 = vst.msk [vmem:[#allocation6 + $0xb8] sm:$0xff] %vm5894_vm4, %v5869_v25 }
 0x7b7   : > { %v6849_v33 = vld [vmem:[#allocation7 + $0x20] ss:$2 sm:$0x3f]  ;;  %v6861_v0 = vld [vmem:[#allocation7 + $0x21] ss:$2 sm:$0x3f] }
 0x7b8   : > { %v6014_v4 = vpop.permute.xlu1 %6013  ;;  %v6520_v10 = vld [vmem:[#allocation6 + $0xa0] sm:$0xff]  ;;  %v6895_v5 = vadd.f32 %v6861_v0, %v6849_v33 }
 0x7b9   : > { %6063 = vst.msk [vmem:[#allocation6 + $0xb8] sm:$0xff] %vm6039_vm5, %v6014_v4  ;;  %v6446_v15 = vpop.permute.xlu0 %6445  ;;  %7361 = vmatprep.mubr.msk.f32.mxu1 %vm6540_vm9, %v6520_v10 }
 0x7ba   : > { %6497 = vst.msk [vmem:[#allocation6 + $0xa8] sm:$0xff] %vm6475_vm8, %v6446_v15 }
 0x7bc   : > { %v6160_v21 = vpop.permute.xlu1 %6159 }
 0x7bd   : > { %v6158_v19 = vpop.permute.xlu0 %6157  ;;  %6209 = vst.msk [vmem:[#allocation6 + $0xb8] sm:$0xff] %vm6185_vm6, %v6160_v21 }
 0x7be   : > { %6208 = vst.msk [vmem:[#allocation6 + $0xb0] sm:$0xff] %vm6185_vm6, %v6158_v19 }
 0x7c0   : > { %v6305_v35 = vpop.permute.xlu1 %6304 }
 0x7c1   : > { %v6303_v31 = vpop.permute.xlu0 %6302  ;;  %6354 = vst.msk [vmem:[#allocation6 + $0xb8] sm:$0xff] %vm6330_vm7, %v6305_v35  ;;  %v6521_v37 = vld [vmem:[#allocation6 + $0xa8] sm:$0xff] }
 0x7c2   : > { %6353 = vst.msk [vmem:[#allocation6 + $0xb0] sm:$0xff] %vm6330_vm7, %v6303_v31  ;;  %7362 = vmatmul.mubr.msk.f32.gmra.mrb[44].mxu1 %vm6540_vm9, %v6521_v37 }
 0x7c4   : > { %v6450_v49 = vpop.permute.xlu1 %6449 }
 0x7c5   : > { %v6448_v17 = vpop.permute.xlu0 %6447  ;;  %v7342_v44 = vpop.f32.mrb[30].mxu1  ;;  %6499 = vst.msk [vmem:[#allocation6 + $0xb8] sm:$0xff] %vm6475_vm8, %v6450_v49 }
 0x7c6   : > { %6498 = vst.msk [vmem:[#allocation6 + $0xb0] sm:$0xff] %vm6475_vm8, %v6448_v17  ;;  %v6715_v24 = vadd.f32 %v7342_v44, %v10281_v47  ;;  %v6709_v22 = vpop.f32.mrb[31].mxu1 }
 0x7c7   : > { %v6710_v18 = vadd.f32 %v10281_v47, %v6709_v22 }
 0x7c8   : > { %v6805_v41 = vmax.f32 %v6715_v24, 0.0 }
 0x7c9   : > { %v6804_v63 = vmax.f32 %v6710_v18, 0.0 }
 0x7ca   : > { %6830 = vst.msk [vmem:[#allocation7 + $0x38] sm:$0xff] %vm6822_vm10, %v6805_v41 }
 0x7cb   : > { %6829 = vst.msk [vmem:[#allocation7 + $0x30] sm:$0xff] %vm6822_vm10, %v6804_v63 }
 0x7cc   : > { %v6523_v14 = vld [vmem:[#allocation6 + $0xb8] sm:$0xff] }
 0x7cd   : > { %v6522_v16 = vld [vmem:[#allocation6 + $0xb0] sm:$0xff] }
 0x7ce   : > { %7364 = vmatprep.mubr.msk.f32.mxu1 %vm6540_vm9, %v6522_v16 }
 0x7cf   : > { %7365 = vmatmul.mubr.msk.f32.gmra.mrb[46].mxu1 %vm6540_vm9, %v6523_v14 }
 0x7d2   : > { %v6873_v43 = vld [vmem:[#allocation7 + $0x30] ss:$2 sm:$0x3f]  ;;  %v6885_v12 = vld [vmem:[#allocation7 + $0x31] ss:$2 sm:$0x3f] }
 0x7d3   : > { %v6901_v9 = vadd.f32 %v6895_v5, %v6873_v43 }
 0x7d5   : > { %v6907_v40 = vadd.f32 %v6901_v9, %v6885_v12 }
 0x7d7   : > { %v6913_v26 = vmul.f32 0.25, %v6907_v40 }
 0x7d9   : > { %6920 = vst.msk [vmem:[%s10321_s26 + $0x8] sm:$0x3f] %vm6918_vm11, %v6913_v26 }
 0x7e1   : > { %v7345_v34 = vpop.f32.mrb[32].mxu1 }
 0x7e2   : > { %v6725_v56 = vadd.f32 %v7345_v34, %v10281_v47  ;;  %v6719_v23 = vpop.f32.mrb[33].mxu1 }
 0x7e3   : > { %v6720_v30 = vadd.f32 %v10281_v47, %v6719_v23 }
 0x7e4   : > { %v6807_v45 = vmax.f32 %v6725_v56, 0.0 }
 0x7e5   : > { %v6806_v50 = vmax.f32 %v6720_v30, 0.0 }
 0x7e6   : > { %6832 = vst.msk [vmem:[#allocation7 + $0x48] sm:$0xff] %vm6822_vm10, %v6807_v45 }
 0x7e7   : > { %6831 = vst.msk [vmem:[#allocation7 + $0x40] sm:$0xff] %vm6822_vm10, %v6806_v50 }
 0x7ee   : > { %v6851_v36 = vld [vmem:[#allocation7 + $0x40] ss:$2 sm:$0x3f]  ;;  %v6863_v39 = vld [vmem:[#allocation7 + $0x41] ss:$2 sm:$0x3f] }
 0x7ef   : > { %v6896_v52 = vadd.f32 %v6863_v39, %v6851_v36 }
 0x7fd   : > { %v7348_v54 = vpop.f32.mrb[34].mxu1 }
 0x7fe   : > { %v6735_v8 = vadd.f32 %v7348_v54, %v10281_v47  ;;  %v6729_v42 = vpop.f32.mrb[35].mxu1 }
 0x7ff   : > { %v6730_v20 = vadd.f32 %v10281_v47, %v6729_v42 }
 0x800   : > { %v6809_v38 = vmax.f32 %v6735_v8, 0.0 }
 0x801   : > { %v6808_v32 = vmax.f32 %v6730_v20, 0.0 }
 0x802   : > { %6834 = vst.msk [vmem:[#allocation7 + $0x58] sm:$0xff] %vm6822_vm10, %v6809_v38 }
 0x803   : > { %6833 = vst.msk [vmem:[#allocation7 + $0x50] sm:$0xff] %vm6822_vm10, %v6808_v32 }
 0x80a   : > { %v6875_v51 = vld [vmem:[#allocation7 + $0x50] ss:$2 sm:$0x3f]  ;;  %v6887_v53 = vld [vmem:[#allocation7 + $0x51] ss:$2 sm:$0x3f] }
 0x80b   : > { %v6902_v55 = vadd.f32 %v6896_v52, %v6875_v51 }
 0x80d   : > { %v6908_v58 = vadd.f32 %v6902_v55, %v6887_v53 }
 0x80f   : > { %v6914_v13 = vmul.f32 0.25, %v6908_v58 }
 0x811   : > { %6921 = vst.msk [vmem:[%s10321_s26 + $0x10] sm:$0x3f] %vm6918_vm11, %v6914_v13 }
 0x819   : > { %v7351_v57 = vpop.f32.mrb[36].mxu1 }
 0x81a   : > { %v6745_v46 = vadd.f32 %v7351_v57, %v10281_v47  ;;  %v6739_v48 = vpop.f32.mrb[37].mxu1 }
 0x81b   : > { %v6740_v61 = vadd.f32 %v10281_v47, %v6739_v48 }
 0x81c   : > { %v6811_v59 = vmax.f32 %v6745_v46, 0.0 }
 0x81d   : > { %v6810_v60 = vmax.f32 %v6740_v61, 0.0 }
 0x81e   : > { %6836 = vst.msk [vmem:[#allocation7 + $0x68] sm:$0xff] %vm6822_vm10, %v6811_v59 }
 0x81f   : > { %6835 = vst.msk [vmem:[#allocation7 + $0x60] sm:$0xff] %vm6822_vm10, %v6810_v60 }
 0x826   : > { %v6853_v7 = vld [vmem:[#allocation7 + $0x60] ss:$2 sm:$0x3f]  ;;  %v6865_v29 = vld [vmem:[#allocation7 + $0x61] ss:$2 sm:$0x3f] }
 0x827   : > { %v6897_v28 = vadd.f32 %v6865_v29, %v6853_v7 }
 0x834   : > { %v7354_v1 = vpop.f32.mrb[38].mxu1 }
 0x835   : > { %v6755_v27 = vadd.f32 %v7354_v1, %v10281_v47  ;;  %v6749_v6 = vpop.f32.mrb[39].mxu1 }
 0x836   : > { %v6750_v62 = vadd.f32 %v10281_v47, %v6749_v6 }
 0x837   : > { %v6813_v3 = vmax.f32 %v6755_v27, 0.0 }
 0x838   : > { %v6812_v2 = vmax.f32 %v6750_v62, 0.0 }
 0x839   : > { %6838 = vst.msk [vmem:[#allocation7 + $0x78] sm:$0xff] %vm6822_vm10, %v6813_v3 }
 0x83a   : > { %6837 = vst.msk [vmem:[#allocation7 + $0x70] sm:$0xff] %vm6822_vm10, %v6812_v2 }
 0x841   : > { %v6877_v11 = vld [vmem:[#allocation7 + $0x70] ss:$2 sm:$0x3f]  ;;  %v6889_v4 = vld [vmem:[#allocation7 + $0x71] ss:$2 sm:$0x3f] }
 0x842   : > { %v6903_v25 = vadd.f32 %v6897_v28, %v6877_v11 }
 0x844   : > { %v6909_v10 = vadd.f32 %v6903_v25, %v6889_v4 }
 0x846   : > { %v6915_v15 = vmul.f32 0.25, %v6909_v10 }
 0x848   : > { %6922 = vst.msk [vmem:[%s10321_s26 + $0x18] sm:$0x3f] %vm6918_vm11, %v6915_v15 }
 0x854   : > { %v7357_v21 = vpop.f32.mrb[40].mxu1 }
 0x855   : > { %v6765_v19 = vadd.f32 %v7357_v21, %v10281_v47  ;;  %v6759_v35 = vpop.f32.mrb[41].mxu1 }
 0x856   : > { %v6760_v31 = vadd.f32 %v10281_v47, %v6759_v35 }
 0x857   : > { %v6815_v37 = vmax.f32 %v6765_v19, 0.0 }
 0x858   : > { %v6814_v49 = vmax.f32 %v6760_v31, 0.0 }
 0x859   : > { %6840 = vst.msk [vmem:[#allocation7 + $0x88] sm:$0xff] %vm6822_vm10, %v6815_v37 }
 0x85a   : > { %6839 = vst.msk [vmem:[#allocation7 + $0x80] sm:$0xff] %vm6822_vm10, %v6814_v49 }
 0x861   : > { %v6855_v63 = vld [vmem:[#allocation7 + $0x80] ss:$2 sm:$0x3f]  ;;  %v6867_v14 = vld [vmem:[#allocation7 + $0x81] ss:$2 sm:$0x3f] }
 0x862   : > { %v6898_v16 = vadd.f32 %v6867_v14, %v6855_v63 }
 0x874   : > { %v7360_v17 = vpop.f32.mrb[42].mxu1 }
 0x875   : > { %v6775_v44 = vadd.f32 %v7360_v17, %v10281_v47  ;;  %v6769_v24 = vpop.f32.mrb[43].mxu1 }
 0x876   : > { %v6770_v22 = vadd.f32 %v10281_v47, %v6769_v24 }
 0x877   : > { %v6817_v18 = vmax.f32 %v6775_v44, 0.0 }
 0x878   : > { %v6816_v41 = vmax.f32 %v6770_v22, 0.0 }
 0x879   : > { %6842 = vst.msk [vmem:[#allocation7 + $0x98] sm:$0xff] %vm6822_vm10, %v6817_v18 }
 0x87a   : > { %6841 = vst.msk [vmem:[#allocation7 + $0x90] sm:$0xff] %vm6822_vm10, %v6816_v41 }
 0x881   : > { %v6879_v33 = vld [vmem:[#allocation7 + $0x90] ss:$2 sm:$0x3f]  ;;  %v6891_v5 = vld [vmem:[#allocation7 + $0x91] ss:$2 sm:$0x3f] }
 0x882   : > { %v6904_v0 = vadd.f32 %v6898_v16, %v6879_v33 }
 0x884   : > { %v6910_v43 = vadd.f32 %v6904_v0, %v6891_v5 }
 0x886   : > { %v6916_v9 = vmul.f32 0.25, %v6910_v43 }
 0x888   : > { %6923 = vst.msk [vmem:[%s10321_s26 + $0x20] sm:$0x3f] %vm6918_vm11, %v6916_v9 }
 0x895   : > { %v7363_v12 = vpop.f32.mrb[44].mxu1 }
 0x896   : > { %v6785_v40 = vadd.f32 %v7363_v12, %v10281_v47  ;;  %v6779_v26 = vpop.f32.mrb[45].mxu1 }
 0x897   : > { %v6780_v34 = vadd.f32 %v10281_v47, %v6779_v26 }
 0x898   : > { %v6819_v56 = vmax.f32 %v6785_v40, 0.0 }
 0x899   : > { %v6818_v23 = vmax.f32 %v6780_v34, 0.0 }
 0x89a   : > { %6844 = vst.msk [vmem:[#allocation7 + $0xa8] sm:$0xff] %vm6822_vm10, %v6819_v56 }
 0x89b   : > { %6843 = vst.msk [vmem:[#allocation7 + $0xa0] sm:$0xff] %vm6822_vm10, %v6818_v23 }
 0x8a2   : > { %v7366_v30 = vpop.f32.mrb[46].mxu1  ;;  %v6857_v20 = vld [vmem:[#allocation7 + $0xa0] ss:$2 sm:$0x3f] }
 0x8a3   : > { %v6795_v45 = vadd.f32 %v7366_v30, %v10281_v47  ;;  %v6789_v50 = vpop.f32.mrb[47].mxu1  ;;  %v6869_v38 = vld [vmem:[#allocation7 + $0xa1] ss:$2 sm:$0x3f] }
 0x8a4   : > { %v6790_v54 = vadd.f32 %v10281_v47, %v6789_v50  ;;  %v6899_v32 = vadd.f32 %v6869_v38, %v6857_v20 }
 0x8a5   : > { %v6821_v8 = vmax.f32 %v6795_v45, 0.0 }
 0x8a6   : > { %v6820_v42 = vmax.f32 %v6790_v54, 0.0 }
 0x8a7   : > { %6846 = vst.msk [vmem:[#allocation7 + $0xb8] sm:$0xff] %vm6822_vm10, %v6821_v8 }
 0x8a8   : > { %6845 = vst.msk [vmem:[#allocation7 + $0xb0] sm:$0xff] %vm6822_vm10, %v6820_v42 }
 0x8af   : > { %v6881_v36 = vld [vmem:[#allocation7 + $0xb0] ss:$2 sm:$0x3f]  ;;  %v6893_v52 = vld [vmem:[#allocation7 + $0xb1] ss:$2 sm:$0x3f] }
 0x8b0   : > { %v6905_v39 = vadd.f32 %v6899_v32, %v6881_v36 }
 0x8b2   : > { %v6911_v51 = vadd.f32 %v6905_v39, %v6893_v52 }
 0x8b4   : > { %v6917_v55 = vmul.f32 0.25, %v6911_v51 }
 0x8b6   : > { %6924 = vst.msk [vmem:[%s10321_s26 + $0x28] sm:$0x3f] %vm6918_vm11, %v6917_v55 }
 0x8b7 PF: > { %s15_s18 = sadd.s32 1, %s7440_s18  }
 0x8b8   : > { %p12_p4 = scmp.ge.s32.totalorder %s15_s18, 4  }
 0x8ba   :  { %14 = sbr.rel (!%p12_p4) target bundleno = 1 (0x1), region = 192 }

</bundles_post_ra>
